<compile_context>
chip_gen: v7x
topology: tpu7x:2x2x1
jax: 0.10.0
libtpu: 0.0.40
codegen_flags: <defaults>
</compile_context>

<pallas_src>
import functools

import numpy as np

import jax
import jax.numpy as jnp
from jax import lax
from jax.experimental import pallas as pl
from jax.experimental.pallas import tpu as pltpu

# ----------------------------------------------------------------------------
# Config (small synthetic sizes consistent with the module's forward)
# ----------------------------------------------------------------------------
CLIP_MEAN = jnp.array([0.48145466, 0.4578275, 0.40821073], jnp.float32)
CLIP_STD = jnp.array([0.26862954, 0.26130258, 0.27577711], jnp.float32)
VAE_SCALING = 0.18215          # SD latent scaling factor
LATENT_CH = 4                  # unet.config.in_channels (== feat_dim)
CROSS_ATTN_DIM = 32            # unet.config.cross_attention_dim (text states are zeros)
SEQ_LEN = 77                   # text sequence length (unused: zero states collapse attn)
MODEL_CH = 32                  # tiny UNet width
TIME_EMB_DIM = 64
NUM_GROUPS = 8
TIMESTEP = 100


# ----------------------------------------------------------------------------
# Static helpers
# ----------------------------------------------------------------------------
def timestep_embedding(t, dim):
    # sinusoidal embedding (cos|sin concat; synthetic weights — not bit-matched to
    # diffusers' Timesteps flip convention).
    half = dim // 2
    freqs = jnp.exp(-jnp.log(10000.0) * jnp.arange(half, dtype=jnp.float32) / half)
    args = t * freqs
    return jnp.concatenate([jnp.cos(args), jnp.sin(args)])[None, :]       # [1, dim]


def _border_masks(B, Hl, Wl):
    """Per-row {0,1} validity masks (not_top, not_bot, not_left, not_right) for the
    zero-padded 3x3 convs on row-flattened (Hl, Wl) grids, tiled over the batch."""
    i = np.repeat(np.arange(Hl), Wl)
    j = np.tile(np.arange(Wl), Hl)
    m = np.stack([i > 0, i < Hl - 1, j > 0, j < Wl - 1], axis=1).astype(np.float32)
    return jnp.asarray(np.tile(m, (B, 1)))                                # [B*Hl*Wl, 4]


# ----------------------------------------------------------------------------
# Fused UNet-body Pallas kernel — one grid step, both batch elements stacked
# ----------------------------------------------------------------------------
def _unet_kernel(inp_ref, vecs_ref, wslab_ref, co_w_ref, out_ref, *, B, Hl, Wl):
    f32 = jnp.float32
    hw = Hl * Wl
    n = B * hw                       # total rows (all batch elements stacked)
    C = MODEL_CH
    G = NUM_GROUPS
    cg = C // G
    K9 = 9 * C                       # fused-conv K for MODEL_CH inputs
    K9_IN = 9 * LATENT_CH            # fused-conv K for conv_in

    def mm(a, b):
        # bf16 operands -> single-pass MXU issue; accumulate in f32.
        return jnp.dot(a.astype(jnp.bfloat16), b.astype(jnp.bfloat16),
                       preferred_element_type=f32)

    def mmf(a, b):
        # exact f32 matmul (GroupNorm statistics / broadcast-back).
        return jnp.dot(a, b, preferred_element_type=f32)

    def silu(x):
        return x * jax.nn.sigmoid(x)

    # ---- packed [1, C] parameter vectors ------------------------------------
    def vec(k):
        return vecs_ref[k:k + 1, :]

    ci_b, gn1_g, gn1_b, c1_b, tp, gn2_g, gn2_b, c2_b, a_bo, ogn_g, ogn_b = (
        vec(k) for k in range(11))
    co_b = vecs_ref[11:12, :LATENT_CH]

    # ---- packed conv weights (bf16, 8-row-aligned slices) --------------------
    w_c1 = wslab_ref[0:K9, :]
    w_c2 = wslab_ref[K9:2 * K9, :]
    w_ci = wslab_ref[2 * K9:2 * K9 + K9_IN, :]

    # ---- per-row zero-padding border masks (precomputed in the wrapper) ------
    mcol = 3 * LATENT_CH
    not_top = inp_ref[:, mcol + 0:mcol + 1]
    not_bot = inp_ref[:, mcol + 1:mcol + 2]
    not_left = inp_ref[:, mcol + 2:mcol + 3]
    not_right = inp_ref[:, mcol + 3:mcol + 4]
    m_tl = not_top * not_left
    m_tr = not_top * not_right
    m_bl = not_bot * not_left
    m_br = not_bot * not_right
    # tap order matches the [9*cin, cout] weight layout: (dh, dw) row-major.
    taps = (
        (-Wl - 1, m_tl), (-Wl, not_top), (-Wl + 1, m_tr),
        (-1, not_left), (0, None), (1, not_right),
        (Wl - 1, m_bl), (Wl, not_bot), (Wl + 1, m_br),
    )

    def conv3x3(x, w, b):
        # 3x3 / stride-1 / zero-pad-1 conv on row-flattened NHWC activations:
        # row shifts via pltpu.roll (XLU slot), borders + cross-sample leakage
        # masked, all 9 taps concatenated along lanes -> ONE fused MXU matmul.
        cols = []
        for off, m in taps:
            xs = x if off == 0 else pltpu.roll(x, (-off) % n, axis=0)
            cols.append(xs if m is None else xs * m)
        return mm(jnp.concatenate(cols, axis=1), w) + b

    # ---- constant selection matrices (built once; single grid step) ----------
    # sample selection: per-sample GroupNorm statistics with stacked batches
    r_nb = lax.broadcasted_iota(jnp.int32, (n, B), 0)
    b_nb = lax.broadcasted_iota(jnp.int32, (n, B), 1)
    sel = jnp.logical_and(r_nb >= b_nb * hw, r_nb < (b_nb + 1) * hw).astype(f32)     # [n, B]
    r_bn = lax.broadcasted_iota(jnp.int32, (B, n), 1)
    b_bn = lax.broadcasted_iota(jnp.int32, (B, n), 0)
    sel_t = jnp.logical_and(r_bn >= b_bn * hw, r_bn < (b_bn + 1) * hw).astype(f32)   # [B, n]
    # channel -> group assignment
    c_cg = lax.broadcasted_iota(jnp.int32, (C, G), 0)
    g_cg = lax.broadcasted_iota(jnp.int32, (C, G), 1)
    cmat = jnp.logical_and(c_cg >= g_cg * cg, c_cg < (g_cg + 1) * cg).astype(f32)    # [C, G]
    c_gc = lax.broadcasted_iota(jnp.int32, (G, C), 1)
    g_gc = lax.broadcasted_iota(jnp.int32, (G, C), 0)
    cmat_t = jnp.logical_and(c_gc >= g_gc * cg, c_gc < (g_gc + 1) * cg).astype(f32)  # [G, C]
    inv_cnt = 1.0 / float(hw * cg)   # folded normalization count

    def group_norm(x, gamma, beta, apply_silu):
        # per-(sample, group) stats via selection matmuls; var = E[x^2] - E[x]^2
        xg = mmf(x, cmat)                                       # [n, G]
        xsqg = mmf(x * x, cmat)                                 # [n, G]
        mean_bg = mmf(sel_t, xg) * inv_cnt                      # [B, G]
        var_bg = jnp.maximum(mmf(sel_t, xsqg) * inv_cnt - mean_bg * mean_bg, 0.0)
        inv_bg = lax.rsqrt(var_bg + 1e-5)                       # [B, G]
        scale_bc = mmf(inv_bg, cmat_t) * gamma                  # [B, C] (inv*gamma combined)
        shift_bc = beta - mmf(mean_bg, cmat_t) * scale_bc       # [B, C]
        y = x * mmf(sel, scale_bc) + mmf(sel, shift_bc)         # [n, C]
        return silu(y) if apply_silu else y

    # ---- VAE latent sampling: latents = (mean + std * eps) * scaling ---------
    mean_l = inp_ref[:, 0:LATENT_CH]
    logvar = jnp.clip(inp_ref[:, LATENT_CH:2 * LATENT_CH], -30.0, 20.0)
    eps = inp_ref[:, 2 * LATENT_CH:3 * LATENT_CH]
    latents = (mean_l + jnp.exp(0.5 * logvar) * eps) * VAE_SCALING        # [n, 4]

    # ---- UNet conv_in ---------------------------------------------------------
    h = conv3x3(latents, w_ci, ci_b)                                      # [n, 32]

    # ---- ResNet block with timestep injection (tp precomputed in wrapper) ----
    res = h
    h = group_norm(h, gn1_g, gn1_b, apply_silu=True)
    h = conv3x3(h, w_c1, c1_b)
    h = h + tp
    h = group_norm(h, gn2_g, gn2_b, apply_silu=True)
    h = conv3x3(h, w_c2, c2_b)
    h = h + res

    # ---- cross-attention: encoder_hidden_states == 0  =>  k = v = 0, so the
    #      attention output reduces exactly to its out-projection bias. ---------
    # TODO(synk): general (nonzero-ehs) attention path omitted; the module always passes zeros.
    h = h + a_bo

    # ---- output head ----------------------------------------------------------
    h = group_norm(h, ogn_g, ogn_b, apply_silu=True)
    out_ref[...] = conv3x3(h, co_w_ref[...], co_b)                        # [n, 4]


# ----------------------------------------------------------------------------
# Parameter init (deterministic, synthetic — no checkpoint load), kernel-ready
# ----------------------------------------------------------------------------
def init_params(key):
    keys = iter(jax.random.split(key, 16))

    def w(shape, scale=0.02):
        return scale * jax.random.normal(next(keys), shape, jnp.float32)

    def conv_w(cout, cin):
        # PyTorch [Cout, Cin, 3, 3] -> fused-im2col layout [9*Cin, Cout]
        # (tap-major (dh, dw), channel-minor — matches the kernel's tap concat).
        return w((cout, cin, 3, 3)).transpose(2, 3, 1, 0).reshape(9 * cin, cout)

    def vae_conv_w(cout, cin):
        # PyTorch [Cout, Cin, 3, 3] -> HWIO for lax.conv_general_dilated
        return w((cout, cin, 3, 3)).transpose(2, 3, 1, 0)

    def zeros_vec(c):
        return jnp.zeros((1, c), jnp.float32)

    def ones_vec(c):
        return jnp.ones((1, c), jnp.float32)

    p = {}
    # simplified VAE encoder: 3 -> 16 (s2) -> 2*latent (s2)
    p["vae_c1_w"] = vae_conv_w(16, 3); p["vae_c1_b"] = jnp.zeros((16,), jnp.float32)
    p["vae_c2_w"] = vae_conv_w(2 * LATENT_CH, 16)
    p["vae_c2_b"] = jnp.zeros((2 * LATENT_CH,), jnp.float32)
    # timestep-embedding MLP + ResNet time projection (evaluated in the wrapper)
    p["t_w1"] = w((MODEL_CH, TIME_EMB_DIM)); p["t_b1"] = zeros_vec(TIME_EMB_DIM)
    p["t_w2"] = w((TIME_EMB_DIM, TIME_EMB_DIM)); p["t_b2"] = zeros_vec(TIME_EMB_DIM)
    p["r_tp_w"] = w((TIME_EMB_DIM, MODEL_CH)); p["r_tp_b"] = zeros_vec(MODEL_CH)
    # unet conv_in
    p["ci_w"] = conv_w(MODEL_CH, LATENT_CH); p["ci_b"] = zeros_vec(MODEL_CH)
    # resnet block
    p["r_gn1_g"] = ones_vec(MODEL_CH); p["r_gn1_b"] = zeros_vec(MODEL_CH)
    p["r_c1_w"] = conv_w(MODEL_CH, MODEL_CH); p["r_c1_b"] = zeros_vec(MODEL_CH)
    p["r_gn2_g"] = ones_vec(MODEL_CH); p["r_gn2_b"] = zeros_vec(MODEL_CH)
    p["r_c2_w"] = conv_w(MODEL_CH, MODEL_CH); p["r_c2_b"] = zeros_vec(MODEL_CH)
    # cross-attention: with all-zero encoder_hidden_states only the out-proj bias matters
    p["a_bo"] = zeros_vec(MODEL_CH)
    # output head
    p["o_gn_g"] = ones_vec(MODEL_CH); p["o_gn_b"] = zeros_vec(MODEL_CH)
    p["co_w"] = conv_w(LATENT_CH, MODEL_CH); p["co_b"] = zeros_vec(LATENT_CH)
    return p


# ----------------------------------------------------------------------------
# Forward pass (mirrors StableDiffusionFeatureExtractor.forward)
# ----------------------------------------------------------------------------
def forward(images, params, eps_key):
    B, _, H, W = images.shape
    Hl, Wl = H // 4, W // 4
    hw = Hl * Wl
    n = B * hw

    # 1) feature_extractor: CLIP normalization (do_rescale=False -> inputs in [0,1]).
    # TODO(synk): CLIPImageProcessor resize/center-crop omitted; small synthetic spatial size kept.
    x = jnp.transpose(images, (0, 2, 3, 1))                               # NCHW -> NHWC
    x = (x - CLIP_MEAN) / CLIP_STD

    # 2) VAE.encode(...) -> posterior moments (two tiny strided convs; XLA-native).
    dn = ("NHWC", "HWIO", "NHWC")
    h = lax.conv_general_dilated(x, params["vae_c1_w"], (2, 2), ((1, 1), (1, 1)),
                                 dimension_numbers=dn) + params["vae_c1_b"]
    h = h * jax.nn.sigmoid(h)                                             # SiLU
    moments = lax.conv_general_dilated(h, params["vae_c2_w"], (2, 2), ((1, 1), (1, 1)),
                                       dimension_numbers=dn) + params["vae_c2_b"]
    moments_flat = moments.reshape(n, 2 * LATENT_CH)                      # [n, 8]
    eps = jax.random.normal(eps_key, (n, LATENT_CH), jnp.float32)         # sample() noise

    # 3) encoder_hidden_states = zeros(B, 77, cross_attention_dim): k = v = 0, so the
    #    cross-attention output is exactly its out-projection bias (added in-kernel).

    # 4) timestep embedding MLP + ResNet time projection: identical for every batch
    #    element and pixel -> hoisted out of the kernel (perf review).
    t_sin = timestep_embedding(jnp.float32(TIMESTEP), MODEL_CH)           # [1, 32]
    temb = jax.nn.silu(t_sin @ params["t_w1"] + params["t_b1"])
    temb = temb @ params["t_w2"] + params["t_b2"]                         # [1, 64]
    tp = jax.nn.silu(temb) @ params["r_tp_w"] + params["r_tp_b"]          # [1, 32]

    # ---- pack kernel inputs (4 DMAs total) -----------------------------------
    inp = jnp.concatenate([moments_flat, eps, _border_masks(B, Hl, Wl)], axis=1)  # [n, 16]
    pad = jnp.zeros((1, MODEL_CH - LATENT_CH), jnp.float32)
    vecs = jnp.concatenate([
        params["ci_b"], params["r_gn1_g"], params["r_gn1_b"], params["r_c1_b"],
        tp, params["r_gn2_g"], params["r_gn2_b"], params["r_c2_b"],
        params["a_bo"], params["o_gn_g"], params["o_gn_b"],
        jnp.concatenate([params["co_b"], pad], axis=1),
    ], axis=0)                                                            # [12, 32]
    wslab = jnp.concatenate(
        [params["r_c1_w"], params["r_c2_w"], params["ci_w"]], axis=0
    ).astype(jnp.bfloat16)                                                # [612, 32]
    co_w = params["co_w"].astype(jnp.bfloat16)                            # [288, 4]

    # 5) Fused UNet body: latent sampling + conv_in + ResNet(GN/SiLU/conv + temb)
    #    + zero-ehs attention bias + output head; everything resident in VMEM.
    #    Both batch elements merged into ONE grid step (M = 128 rows): no repeated
    #    per-grid-step cost on the single-TC v5e/v6e.
    # TODO(synk): on v7x the batch could instead be split across the 2 TensorCores
    #             via CORE_PARALLEL / core_map; the whole kernel is tiny so the
    #             single-step form is kept for portability.
    kernel = functools.partial(_unet_kernel, B=B, Hl=Hl, Wl=Wl)
    out_flat = pl.pallas_call(
        kernel,
        out_shape=jax.ShapeDtypeStruct((n, LATENT_CH), jnp.float32),
        grid=(1,),
        in_specs=[
            pl.BlockSpec(inp.shape, lambda i: (0, 0)),
            pl.BlockSpec(vecs.shape, lambda i: (0, 0)),
            pl.BlockSpec(wslab.shape, lambda i: (0, 0)),
            pl.BlockSpec(co_w.shape, lambda i: (0, 0)),
        ],
        out_specs=pl.BlockSpec((n, LATENT_CH), lambda i: (0, 0)),
        compiler_params=pltpu.CompilerParams(dimension_semantics=("arbitrary",)),
    )(inp, vecs, wslab, co_w)

    return out_flat.reshape(B, Hl, Wl, LATENT_CH).transpose(0, 3, 1, 2)   # NCHW out


# ----------------------------------------------------------------------------
if __name__ == "__main__":
    key = jax.random.PRNGKey(0)
    k_img, k_par, k_eps = jax.random.split(key, 3)
    images = jax.random.uniform(k_img, (2, 3, 32, 32), jnp.float32)       # NCHW in [0,1]
    params = init_params(k_par)

    fwd = jax.jit(forward)
    out = jax.block_until_ready(fwd(images, params, k_eps))

    assert out.shape == (2, LATENT_CH, 8, 8), out.shape
    assert out.dtype == jnp.float32
    assert bool(jnp.all(jnp.isfinite(out)))
    print("KERNEL_OK")
</pallas_src>

<mosaic_0001>
module attributes {stable_mosaic.version = 11 : i64} {
  func.func @_unet_kernel(%arg0: i32, %arg1: memref<128x16xf32, #tpu.memory_space<vmem>>, %arg2: memref<12x32xf32, #tpu.memory_space<vmem>>, %arg3: memref<612x32xbf16, #tpu.memory_space<vmem>>, %arg4: memref<288x4xbf16, #tpu.memory_space<vmem>>, %arg5: memref<128x4xf32, #tpu.memory_space<vmem>>) attributes {dimension_semantics = [#tpu.dimension_semantics<arbitrary>], iteration_bounds = array<i64: 1>, scalar_prefetch = 0 : i64, scratch_operands = 0 : i64, tpu.core_type = #tpu.core_type<tc>, window_params = [{pipeline_mode = #tpu.pipeline_mode<synchronous>, transform_indices = @transform_0, window_bounds = array<i64: 128, 16>}, {pipeline_mode = #tpu.pipeline_mode<synchronous>, transform_indices = @transform_1, window_bounds = array<i64: 12, 32>}, {pipeline_mode = #tpu.pipeline_mode<synchronous>, transform_indices = @transform_2, window_bounds = array<i64: 612, 32>}, {pipeline_mode = #tpu.pipeline_mode<synchronous>, transform_indices = @transform_3, window_bounds = array<i64: 288, 4>}, {pipeline_mode = #tpu.pipeline_mode<synchronous>, transform_indices = @transform_4, window_bounds = array<i64: 128, 4>}]} {
    %c0 = arith.constant 0 : index
    %c0_0 = arith.constant 0 : index
    %0 = vector.load %arg2[%c0, %c0_0] : memref<12x32xf32, #tpu.memory_space<vmem>>, vector<1x32xf32>
    %c1 = arith.constant 1 : index
    %c0_1 = arith.constant 0 : index
    %1 = vector.load %arg2[%c1, %c0_1] : memref<12x32xf32, #tpu.memory_space<vmem>>, vector<1x32xf32>
    %c2 = arith.constant 2 : index
    %c0_2 = arith.constant 0 : index
    %2 = vector.load %arg2[%c2, %c0_2] : memref<12x32xf32, #tpu.memory_space<vmem>>, vector<1x32xf32>
    %c3 = arith.constant 3 : index
    %c0_3 = arith.constant 0 : index
    %3 = vector.load %arg2[%c3, %c0_3] : memref<12x32xf32, #tpu.memory_space<vmem>>, vector<1x32xf32>
    %c4 = arith.constant 4 : index
    %c0_4 = arith.constant 0 : index
    %4 = vector.load %arg2[%c4, %c0_4] : memref<12x32xf32, #tpu.memory_space<vmem>>, vector<1x32xf32>
    %c5 = arith.constant 5 : index
    %c0_5 = arith.constant 0 : index
    %5 = vector.load %arg2[%c5, %c0_5] : memref<12x32xf32, #tpu.memory_space<vmem>>, vector<1x32xf32>
    %c6 = arith.constant 6 : index
    %c0_6 = arith.constant 0 : index
    %6 = vector.load %arg2[%c6, %c0_6] : memref<12x32xf32, #tpu.memory_space<vmem>>, vector<1x32xf32>
    %c7 = arith.constant 7 : index
    %c0_7 = arith.constant 0 : index
    %7 = vector.load %arg2[%c7, %c0_7] : memref<12x32xf32, #tpu.memory_space<vmem>>, vector<1x32xf32>
    %c8 = arith.constant 8 : index
    %c0_8 = arith.constant 0 : index
    %8 = vector.load %arg2[%c8, %c0_8] : memref<12x32xf32, #tpu.memory_space<vmem>>, vector<1x32xf32>
    %c9 = arith.constant 9 : index
    %c0_9 = arith.constant 0 : index
    %9 = vector.load %arg2[%c9, %c0_9] : memref<12x32xf32, #tpu.memory_space<vmem>>, vector<1x32xf32>
    %c10 = arith.constant 10 : index
    %c0_10 = arith.constant 0 : index
    %10 = vector.load %arg2[%c10, %c0_10] : memref<12x32xf32, #tpu.memory_space<vmem>>, vector<1x32xf32>
    %c11 = arith.constant 11 : index
    %c0_11 = arith.constant 0 : index
    %11 = vector.load %arg2[%c11, %c0_11] : memref<12x32xf32, #tpu.memory_space<vmem>>, vector<1x4xf32>
    %c0_12 = arith.constant 0 : index
    %c0_13 = arith.constant 0 : index
    %12 = vector.load %arg3[%c0_12, %c0_13] : memref<612x32xbf16, #tpu.memory_space<vmem>>, vector<288x32xbf16>
    %c288 = arith.constant 288 : index
    %c0_14 = arith.constant 0 : index
    %13 = vector.load %arg3[%c288, %c0_14] : memref<612x32xbf16, #tpu.memory_space<vmem>>, vector<288x32xbf16>
    %c576 = arith.constant 576 : index
    %c0_15 = arith.constant 0 : index
    %14 = vector.load %arg3[%c576, %c0_15] : memref<612x32xbf16, #tpu.memory_space<vmem>>, vector<36x32xbf16>
    %c0_16 = arith.constant 0 : index
    %c12 = arith.constant 12 : index
    %15 = vector.load %arg1[%c0_16, %c12] : memref<128x16xf32, #tpu.memory_space<vmem>>, vector<128x1xf32>
    %c0_17 = arith.constant 0 : index
    %c13 = arith.constant 13 : index
    %16 = vector.load %arg1[%c0_17, %c13] : memref<128x16xf32, #tpu.memory_space<vmem>>, vector<128x1xf32>
    %c0_18 = arith.constant 0 : index
    %c14 = arith.constant 14 : index
    %17 = vector.load %arg1[%c0_18, %c14] : memref<128x16xf32, #tpu.memory_space<vmem>>, vector<128x1xf32>
    %c0_19 = arith.constant 0 : index
    %c15 = arith.constant 15 : index
    %18 = vector.load %arg1[%c0_19, %c15] : memref<128x16xf32, #tpu.memory_space<vmem>>, vector<128x1xf32>
    %19 = arith.mulf %15, %17 : vector<128x1xf32>
    %20 = arith.mulf %15, %18 : vector<128x1xf32>
    %21 = arith.mulf %16, %17 : vector<128x1xf32>
    %22 = arith.mulf %16, %18 : vector<128x1xf32>
    %23 = tpu.iota {dimensions = array<i32: 0>} : vector<128x2xi32>
    %24 = tpu.iota {dimensions = array<i32: 1>} : vector<128x2xi32>
    %c64_i32 = arith.constant 64 : i32
    %25 = vector.broadcast %c64_i32 : i32 to vector<128x2xi32>
    %26 = arith.muli %24, %25 : vector<128x2xi32>
    %27 = arith.cmpi sge, %23, %26 : vector<128x2xi32>
    %c1_i32 = arith.constant 1 : i32
    %28 = vector.broadcast %c1_i32 : i32 to vector<128x2xi32>
    %29 = arith.addi %24, %28 : vector<128x2xi32>
    %c64_i32_20 = arith.constant 64 : i32
    %30 = vector.broadcast %c64_i32_20 : i32 to vector<128x2xi32>
    %31 = arith.muli %29, %30 : vector<128x2xi32>
    %32 = arith.cmpi slt, %23, %31 : vector<128x2xi32>
    %33 = arith.andi %27, %32 : vector<128x2xi1>
    %34 = arith.extui %33 : vector<128x2xi1> to vector<128x2xi32>
    %35 = arith.sitofp %34 : vector<128x2xi32> to vector<128x2xf32>
    %36 = tpu.iota {dimensions = array<i32: 1>} : vector<2x128xi32>
    %37 = tpu.iota {dimensions = array<i32: 0>} : vector<2x128xi32>
    %c64_i32_21 = arith.constant 64 : i32
    %38 = vector.broadcast %c64_i32_21 : i32 to vector<2x128xi32>
    %39 = arith.muli %37, %38 : vector<2x128xi32>
    %40 = arith.cmpi sge, %36, %39 : vector<2x128xi32>
    %c1_i32_22 = arith.constant 1 : i32
    %41 = vector.broadcast %c1_i32_22 : i32 to vector<2x128xi32>
    %42 = arith.addi %37, %41 : vector<2x128xi32>
    %c64_i32_23 = arith.constant 64 : i32
    %43 = vector.broadcast %c64_i32_23 : i32 to vector<2x128xi32>
    %44 = arith.muli %42, %43 : vector<2x128xi32>
    %45 = arith.cmpi slt, %36, %44 : vector<2x128xi32>
    %46 = arith.andi %40, %45 : vector<2x128xi1>
    %47 = arith.extui %46 : vector<2x128xi1> to vector<2x128xi32>
    %48 = arith.sitofp %47 : vector<2x128xi32> to vector<2x128xf32>
    %49 = tpu.iota {dimensions = array<i32: 0>} : vector<32x8xi32>
    %50 = tpu.iota {dimensions = array<i32: 1>} : vector<32x8xi32>
    %c4_i32 = arith.constant 4 : i32
    %51 = vector.broadcast %c4_i32 : i32 to vector<32x8xi32>
    %52 = arith.muli %50, %51 : vector<32x8xi32>
    %53 = arith.cmpi sge, %49, %52 : vector<32x8xi32>
    %c1_i32_24 = arith.constant 1 : i32
    %54 = vector.broadcast %c1_i32_24 : i32 to vector<32x8xi32>
    %55 = arith.addi %50, %54 : vector<32x8xi32>
    %c4_i32_25 = arith.constant 4 : i32
    %56 = vector.broadcast %c4_i32_25 : i32 to vector<32x8xi32>
    %57 = arith.muli %55, %56 : vector<32x8xi32>
    %58 = arith.cmpi slt, %49, %57 : vector<32x8xi32>
    %59 = arith.andi %53, %58 : vector<32x8xi1>
    %60 = arith.extui %59 : vector<32x8xi1> to vector<32x8xi32>
    %61 = arith.sitofp %60 : vector<32x8xi32> to vector<32x8xf32>
    %62 = tpu.iota {dimensions = array<i32: 1>} : vector<8x32xi32>
    %63 = tpu.iota {dimensions = array<i32: 0>} : vector<8x32xi32>
    %c4_i32_26 = arith.constant 4 : i32
    %64 = vector.broadcast %c4_i32_26 : i32 to vector<8x32xi32>
    %65 = arith.muli %63, %64 : vector<8x32xi32>
    %66 = arith.cmpi sge, %62, %65 : vector<8x32xi32>
    %c1_i32_27 = arith.constant 1 : i32
    %67 = vector.broadcast %c1_i32_27 : i32 to vector<8x32xi32>
    %68 = arith.addi %63, %67 : vector<8x32xi32>
    %c4_i32_28 = arith.constant 4 : i32
    %69 = vector.broadcast %c4_i32_28 : i32 to vector<8x32xi32>
    %70 = arith.muli %68, %69 : vector<8x32xi32>
    %71 = arith.cmpi slt, %62, %70 : vector<8x32xi32>
    %72 = arith.andi %66, %71 : vector<8x32xi1>
    %73 = arith.extui %72 : vector<8x32xi1> to vector<8x32xi32>
    %74 = arith.sitofp %73 : vector<8x32xi32> to vector<8x32xf32>
    %c0_29 = arith.constant 0 : index
    %c0_30 = arith.constant 0 : index
    %75 = vector.load %arg1[%c0_29, %c0_30] : memref<128x16xf32, #tpu.memory_space<vmem>>, vector<128x4xf32>
    %c0_31 = arith.constant 0 : index
    %c4_32 = arith.constant 4 : index
    %76 = vector.load %arg1[%c0_31, %c4_32] : memref<128x16xf32, #tpu.memory_space<vmem>>, vector<128x4xf32>
    %cst = arith.constant -3.000000e+01 : f32
    %cst_33 = arith.constant 2.000000e+01 : f32
    %77 = vector.broadcast %cst : f32 to vector<128x4xf32>
    %78 = arith.maximumf %77, %76 : vector<128x4xf32>
    %79 = vector.broadcast %cst_33 : f32 to vector<128x4xf32>
    %80 = arith.minimumf %79, %78 : vector<128x4xf32>
    %c0_34 = arith.constant 0 : index
    %c8_35 = arith.constant 8 : index
    %81 = vector.load %arg1[%c0_34, %c8_35] : memref<128x16xf32, #tpu.memory_space<vmem>>, vector<128x4xf32>
    %cst_36 = arith.constant 5.000000e-01 : f32
    %82 = vector.broadcast %cst_36 : f32 to vector<128x4xf32>
    %83 = arith.mulf %82, %80 : vector<128x4xf32>
    %84 = math.exp %83 : vector<128x4xf32>
    %85 = arith.mulf %84, %81 : vector<128x4xf32>
    %86 = arith.addf %75, %85 : vector<128x4xf32>
    %cst_37 = arith.constant 1.821500e-01 : f32
    %87 = vector.broadcast %cst_37 : f32 to vector<128x4xf32>
    %88 = arith.mulf %86, %87 : vector<128x4xf32>
    %c9_i32 = arith.constant 9 : i32
    %89 = tpu.dynamic_rotate %88 by %c9_i32 dim 0 : vector<128x4xf32>, i32 -> vector<128x4xf32>
    %90 = vector.broadcast %19 : vector<128x1xf32> to vector<128x4xf32>
    %91 = arith.mulf %89, %90 : vector<128x4xf32>
    %c8_i32 = arith.constant 8 : i32
    %92 = tpu.dynamic_rotate %88 by %c8_i32 dim 0 : vector<128x4xf32>, i32 -> vector<128x4xf32>
    %93 = vector.broadcast %15 : vector<128x1xf32> to vector<128x4xf32>
    %94 = arith.mulf %92, %93 : vector<128x4xf32>
    %c7_i32 = arith.constant 7 : i32
    %95 = tpu.dynamic_rotate %88 by %c7_i32 dim 0 : vector<128x4xf32>, i32 -> vector<128x4xf32>
    %96 = vector.broadcast %20 : vector<128x1xf32> to vector<128x4xf32>
    %97 = arith.mulf %95, %96 : vector<128x4xf32>
    %c1_i32_38 = arith.constant 1 : i32
    %98 = tpu.dynamic_rotate %88 by %c1_i32_38 dim 0 : vector<128x4xf32>, i32 -> vector<128x4xf32>
    %99 = vector.broadcast %17 : vector<128x1xf32> to vector<128x4xf32>
    %100 = arith.mulf %98, %99 : vector<128x4xf32>
    %c127_i32 = arith.constant 127 : i32
    %101 = tpu.dynamic_rotate %88 by %c127_i32 dim 0 : vector<128x4xf32>, i32 -> vector<128x4xf32>
    %102 = vector.broadcast %18 : vector<128x1xf32> to vector<128x4xf32>
    %103 = arith.mulf %101, %102 : vector<128x4xf32>
    %c121_i32 = arith.constant 121 : i32
    %104 = tpu.dynamic_rotate %88 by %c121_i32 dim 0 : vector<128x4xf32>, i32 -> vector<128x4xf32>
    %105 = vector.broadcast %21 : vector<128x1xf32> to vector<128x4xf32>
    %106 = arith.mulf %104, %105 : vector<128x4xf32>
    %c120_i32 = arith.constant 120 : i32
    %107 = tpu.dynamic_rotate %88 by %c120_i32 dim 0 : vector<128x4xf32>, i32 -> vector<128x4xf32>
    %108 = vector.broadcast %16 : vector<128x1xf32> to vector<128x4xf32>
    %109 = arith.mulf %107, %108 : vector<128x4xf32>
    %c119_i32 = arith.constant 119 : i32
    %110 = tpu.dynamic_rotate %88 by %c119_i32 dim 0 : vector<128x4xf32>, i32 -> vector<128x4xf32>
    %111 = vector.broadcast %22 : vector<128x1xf32> to vector<128x4xf32>
    %112 = arith.mulf %110, %111 : vector<128x4xf32>
    %113 = tpu.concatenate %91, %94, %97, %100, %88, %103, %106, %109, %112 in 1 : vector<128x4xf32>, vector<128x4xf32>, vector<128x4xf32>, vector<128x4xf32>, vector<128x4xf32>, vector<128x4xf32>, vector<128x4xf32>, vector<128x4xf32>, vector<128x4xf32> -> vector<128x36xf32>
    %114 = arith.truncf %113 : vector<128x36xf32> to vector<128x36xbf16>
    %cst_39 = arith.constant dense<0.000000e+00> : vector<128x32xf32>
    %115 = tpu.matmul %114, %14, %cst_39 {dimension_numbers = #tpu.dot_dimension_numbers<[1], [0], [0], [1], [0, 0, 1, 1], [], []>} : vector<128x36xbf16>, vector<36x32xbf16>, vector<128x32xf32> -> vector<128x32xf32>
    %116 = vector.broadcast %0 : vector<1x32xf32> to vector<128x32xf32>
    %117 = arith.addf %115, %116 : vector<128x32xf32>
    %cst_40 = arith.constant dense<0.000000e+00> : vector<128x8xf32>
    %118 = tpu.matmul %117, %61, %cst_40 {dimension_numbers = #tpu.dot_dimension_numbers<[1], [0], [0], [1], [0, 0, 1, 1], [], []>} : vector<128x32xf32>, vector<32x8xf32>, vector<128x8xf32> -> vector<128x8xf32>
    %119 = arith.mulf %117, %117 : vector<128x32xf32>
    %cst_41 = arith.constant dense<0.000000e+00> : vector<128x8xf32>
    %120 = tpu.matmul %119, %61, %cst_41 {dimension_numbers = #tpu.dot_dimension_numbers<[1], [0], [0], [1], [0, 0, 1, 1], [], []>} : vector<128x32xf32>, vector<32x8xf32>, vector<128x8xf32> -> vector<128x8xf32>
    %cst_42 = arith.constant dense<0.000000e+00> : vector<2x8xf32>
    %121 = tpu.matmul %48, %118, %cst_42 {dimension_numbers = #tpu.dot_dimension_numbers<[1], [0], [0], [1], [0, 0, 1, 1], [], []>} : vector<2x128xf32>, vector<128x8xf32>, vector<2x8xf32> -> vector<2x8xf32>
    %cst_43 = arith.constant 3.906250e-03 : f32
    %122 = vector.broadcast %cst_43 : f32 to vector<2x8xf32>
    %123 = arith.mulf %121, %122 : vector<2x8xf32>
    %cst_44 = arith.constant dense<0.000000e+00> : vector<2x8xf32>
    %124 = tpu.matmul %48, %120, %cst_44 {dimension_numbers = #tpu.dot_dimension_numbers<[1], [0], [0], [1], [0, 0, 1, 1], [], []>} : vector<2x128xf32>, vector<128x8xf32>, vector<2x8xf32> -> vector<2x8xf32>
    %cst_45 = arith.constant 3.906250e-03 : f32
    %125 = vector.broadcast %cst_45 : f32 to vector<2x8xf32>
    %126 = arith.mulf %124, %125 : vector<2x8xf32>
    %127 = arith.mulf %123, %123 : vector<2x8xf32>
    %128 = arith.subf %126, %127 : vector<2x8xf32>
    %cst_46 = arith.constant 0.000000e+00 : f32
    %129 = vector.broadcast %cst_46 : f32 to vector<2x8xf32>
    %130 = arith.maximumf %128, %129 : vector<2x8xf32>
    %cst_47 = arith.constant 9.99999974E-6 : f32
    %131 = vector.broadcast %cst_47 : f32 to vector<2x8xf32>
    %132 = arith.addf %130, %131 : vector<2x8xf32>
    %133 = math.rsqrt %132 : vector<2x8xf32>
    %cst_48 = arith.constant dense<0.000000e+00> : vector<2x32xf32>
    %134 = tpu.matmul %133, %74, %cst_48 {dimension_numbers = #tpu.dot_dimension_numbers<[1], [0], [0], [1], [0, 0, 1, 1], [], []>} : vector<2x8xf32>, vector<8x32xf32>, vector<2x32xf32> -> vector<2x32xf32>
    %135 = vector.broadcast %1 : vector<1x32xf32> to vector<2x32xf32>
    %136 = arith.mulf %134, %135 : vector<2x32xf32>
    %cst_49 = arith.constant dense<0.000000e+00> : vector<2x32xf32>
    %137 = tpu.matmul %123, %74, %cst_49 {dimension_numbers = #tpu.dot_dimension_numbers<[1], [0], [0], [1], [0, 0, 1, 1], [], []>} : vector<2x8xf32>, vector<8x32xf32>, vector<2x32xf32> -> vector<2x32xf32>
    %138 = arith.mulf %137, %136 : vector<2x32xf32>
    %139 = vector.broadcast %2 : vector<1x32xf32> to vector<2x32xf32>
    %140 = arith.subf %139, %138 : vector<2x32xf32>
    %cst_50 = arith.constant dense<0.000000e+00> : vector<128x32xf32>
    %141 = tpu.matmul %35, %136, %cst_50 {dimension_numbers = #tpu.dot_dimension_numbers<[1], [0], [0], [1], [0, 0, 1, 1], [], []>} : vector<128x2xf32>, vector<2x32xf32>, vector<128x32xf32> -> vector<128x32xf32>
    %142 = arith.mulf %117, %141 : vector<128x32xf32>
    %cst_51 = arith.constant dense<0.000000e+00> : vector<128x32xf32>
    %143 = tpu.matmul %35, %140, %cst_51 {dimension_numbers = #tpu.dot_dimension_numbers<[1], [0], [0], [1], [0, 0, 1, 1], [], []>} : vector<128x2xf32>, vector<2x32xf32>, vector<128x32xf32> -> vector<128x32xf32>
    %144 = arith.addf %142, %143 : vector<128x32xf32>
    %145 = arith.negf %144 : vector<128x32xf32>
    %146 = math.exp %145 : vector<128x32xf32>
    %cst_52 = arith.constant 1.000000e+00 : f32
    %147 = vector.broadcast %cst_52 : f32 to vector<128x32xf32>
    %148 = arith.addf %147, %146 : vector<128x32xf32>
    %149 = arith.divf %147, %148 : vector<128x32xf32>
    %150 = arith.mulf %144, %149 : vector<128x32xf32>
    %c9_i32_53 = arith.constant 9 : i32
    %151 = tpu.dynamic_rotate %150 by %c9_i32_53 dim 0 : vector<128x32xf32>, i32 -> vector<128x32xf32>
    %152 = vector.broadcast %19 : vector<128x1xf32> to vector<128x32xf32>
    %153 = arith.mulf %151, %152 : vector<128x32xf32>
    %c8_i32_54 = arith.constant 8 : i32
    %154 = tpu.dynamic_rotate %150 by %c8_i32_54 dim 0 : vector<128x32xf32>, i32 -> vector<128x32xf32>
    %155 = vector.broadcast %15 : vector<128x1xf32> to vector<128x32xf32>
    %156 = arith.mulf %154, %155 : vector<128x32xf32>
    %c7_i32_55 = arith.constant 7 : i32
    %157 = tpu.dynamic_rotate %150 by %c7_i32_55 dim 0 : vector<128x32xf32>, i32 -> vector<128x32xf32>
    %158 = vector.broadcast %20 : vector<128x1xf32> to vector<128x32xf32>
    %159 = arith.mulf %157, %158 : vector<128x32xf32>
    %c1_i32_56 = arith.constant 1 : i32
    %160 = tpu.dynamic_rotate %150 by %c1_i32_56 dim 0 : vector<128x32xf32>, i32 -> vector<128x32xf32>
    %161 = vector.broadcast %17 : vector<128x1xf32> to vector<128x32xf32>
    %162 = arith.mulf %160, %161 : vector<128x32xf32>
    %c127_i32_57 = arith.constant 127 : i32
    %163 = tpu.dynamic_rotate %150 by %c127_i32_57 dim 0 : vector<128x32xf32>, i32 -> vector<128x32xf32>
    %164 = vector.broadcast %18 : vector<128x1xf32> to vector<128x32xf32>
    %165 = arith.mulf %163, %164 : vector<128x32xf32>
    %c121_i32_58 = arith.constant 121 : i32
    %166 = tpu.dynamic_rotate %150 by %c121_i32_58 dim 0 : vector<128x32xf32>, i32 -> vector<128x32xf32>
    %167 = vector.broadcast %21 : vector<128x1xf32> to vector<128x32xf32>
    %168 = arith.mulf %166, %167 : vector<128x32xf32>
    %c120_i32_59 = arith.constant 120 : i32
    %169 = tpu.dynamic_rotate %150 by %c120_i32_59 dim 0 : vector<128x32xf32>, i32 -> vector<128x32xf32>
    %170 = vector.broadcast %16 : vector<128x1xf32> to vector<128x32xf32>
    %171 = arith.mulf %169, %170 : vector<128x32xf32>
    %c119_i32_60 = arith.constant 119 : i32
    %172 = tpu.dynamic_rotate %150 by %c119_i32_60 dim 0 : vector<128x32xf32>, i32 -> vector<128x32xf32>
    %173 = vector.broadcast %22 : vector<128x1xf32> to vector<128x32xf32>
    %174 = arith.mulf %172, %173 : vector<128x32xf32>
    %175 = tpu.concatenate %153, %156, %159, %162, %150, %165, %168, %171, %174 in 1 : vector<128x32xf32>, vector<128x32xf32>, vector<128x32xf32>, vector<128x32xf32>, vector<128x32xf32>, vector<128x32xf32>, vector<128x32xf32>, vector<128x32xf32>, vector<128x32xf32> -> vector<128x288xf32>
    %176 = arith.truncf %175 : vector<128x288xf32> to vector<128x288xbf16>
    %cst_61 = arith.constant dense<0.000000e+00> : vector<128x32xf32>
    %177 = tpu.matmul %176, %12, %cst_61 {dimension_numbers = #tpu.dot_dimension_numbers<[1], [0], [0], [1], [0, 0, 1, 1], [], []>} : vector<128x288xbf16>, vector<288x32xbf16>, vector<128x32xf32> -> vector<128x32xf32>
    %178 = vector.broadcast %3 : vector<1x32xf32> to vector<128x32xf32>
    %179 = arith.addf %177, %178 : vector<128x32xf32>
    %180 = vector.broadcast %4 : vector<1x32xf32> to vector<128x32xf32>
    %181 = arith.addf %179, %180 : vector<128x32xf32>
    %cst_62 = arith.constant dense<0.000000e+00> : vector<128x8xf32>
    %182 = tpu.matmul %181, %61, %cst_62 {dimension_numbers = #tpu.dot_dimension_numbers<[1], [0], [0], [1], [0, 0, 1, 1], [], []>} : vector<128x32xf32>, vector<32x8xf32>, vector<128x8xf32> -> vector<128x8xf32>
    %183 = arith.mulf %181, %181 : vector<128x32xf32>
    %cst_63 = arith.constant dense<0.000000e+00> : vector<128x8xf32>
    %184 = tpu.matmul %183, %61, %cst_63 {dimension_numbers = #tpu.dot_dimension_numbers<[1], [0], [0], [1], [0, 0, 1, 1], [], []>} : vector<128x32xf32>, vector<32x8xf32>, vector<128x8xf32> -> vector<128x8xf32>
    %cst_64 = arith.constant dense<0.000000e+00> : vector<2x8xf32>
    %185 = tpu.matmul %48, %182, %cst_64 {dimension_numbers = #tpu.dot_dimension_numbers<[1], [0], [0], [1], [0, 0, 1, 1], [], []>} : vector<2x128xf32>, vector<128x8xf32>, vector<2x8xf32> -> vector<2x8xf32>
    %cst_65 = arith.constant 3.906250e-03 : f32
    %186 = vector.broadcast %cst_65 : f32 to vector<2x8xf32>
    %187 = arith.mulf %185, %186 : vector<2x8xf32>
    %cst_66 = arith.constant dense<0.000000e+00> : vector<2x8xf32>
    %188 = tpu.matmul %48, %184, %cst_66 {dimension_numbers = #tpu.dot_dimension_numbers<[1], [0], [0], [1], [0, 0, 1, 1], [], []>} : vector<2x128xf32>, vector<128x8xf32>, vector<2x8xf32> -> vector<2x8xf32>
    %cst_67 = arith.constant 3.906250e-03 : f32
    %189 = vector.broadcast %cst_67 : f32 to vector<2x8xf32>
    %190 = arith.mulf %188, %189 : vector<2x8xf32>
    %191 = arith.mulf %187, %187 : vector<2x8xf32>
    %192 = arith.subf %190, %191 : vector<2x8xf32>
    %cst_68 = arith.constant 0.000000e+00 : f32
    %193 = vector.broadcast %cst_68 : f32 to vector<2x8xf32>
    %194 = arith.maximumf %192, %193 : vector<2x8xf32>
    %cst_69 = arith.constant 9.99999974E-6 : f32
    %195 = vector.broadcast %cst_69 : f32 to vector<2x8xf32>
    %196 = arith.addf %194, %195 : vector<2x8xf32>
    %197 = math.rsqrt %196 : vector<2x8xf32>
    %cst_70 = arith.constant dense<0.000000e+00> : vector<2x32xf32>
    %198 = tpu.matmul %197, %74, %cst_70 {dimension_numbers = #tpu.dot_dimension_numbers<[1], [0], [0], [1], [0, 0, 1, 1], [], []>} : vector<2x8xf32>, vector<8x32xf32>, vector<2x32xf32> -> vector<2x32xf32>
    %199 = vector.broadcast %5 : vector<1x32xf32> to vector<2x32xf32>
    %200 = arith.mulf %198, %199 : vector<2x32xf32>
    %cst_71 = arith.constant dense<0.000000e+00> : vector<2x32xf32>
    %201 = tpu.matmul %187, %74, %cst_71 {dimension_numbers = #tpu.dot_dimension_numbers<[1], [0], [0], [1], [0, 0, 1, 1], [], []>} : vector<2x8xf32>, vector<8x32xf32>, vector<2x32xf32> -> vector<2x32xf32>
    %202 = arith.mulf %201, %200 : vector<2x32xf32>
    %203 = vector.broadcast %6 : vector<1x32xf32> to vector<2x32xf32>
    %204 = arith.subf %203, %202 : vector<2x32xf32>
    %cst_72 = arith.constant dense<0.000000e+00> : vector<128x32xf32>
    %205 = tpu.matmul %35, %200, %cst_72 {dimension_numbers = #tpu.dot_dimension_numbers<[1], [0], [0], [1], [0, 0, 1, 1], [], []>} : vector<128x2xf32>, vector<2x32xf32>, vector<128x32xf32> -> vector<128x32xf32>
    %206 = arith.mulf %181, %205 : vector<128x32xf32>
    %cst_73 = arith.constant dense<0.000000e+00> : vector<128x32xf32>
    %207 = tpu.matmul %35, %204, %cst_73 {dimension_numbers = #tpu.dot_dimension_numbers<[1], [0], [0], [1], [0, 0, 1, 1], [], []>} : vector<128x2xf32>, vector<2x32xf32>, vector<128x32xf32> -> vector<128x32xf32>
    %208 = arith.addf %206, %207 : vector<128x32xf32>
    %209 = arith.negf %208 : vector<128x32xf32>
    %210 = math.exp %209 : vector<128x32xf32>
    %cst_74 = arith.constant 1.000000e+00 : f32
    %211 = vector.broadcast %cst_74 : f32 to vector<128x32xf32>
    %212 = arith.addf %211, %210 : vector<128x32xf32>
    %213 = arith.divf %211, %212 : vector<128x32xf32>
    %214 = arith.mulf %208, %213 : vector<128x32xf32>
    %c9_i32_75 = arith.constant 9 : i32
    %215 = tpu.dynamic_rotate %214 by %c9_i32_75 dim 0 : vector<128x32xf32>, i32 -> vector<128x32xf32>
    %216 = vector.broadcast %19 : vector<128x1xf32> to vector<128x32xf32>
    %217 = arith.mulf %215, %216 : vector<128x32xf32>
    %c8_i32_76 = arith.constant 8 : i32
    %218 = tpu.dynamic_rotate %214 by %c8_i32_76 dim 0 : vector<128x32xf32>, i32 -> vector<128x32xf32>
    %219 = vector.broadcast %15 : vector<128x1xf32> to vector<128x32xf32>
    %220 = arith.mulf %218, %219 : vector<128x32xf32>
    %c7_i32_77 = arith.constant 7 : i32
    %221 = tpu.dynamic_rotate %214 by %c7_i32_77 dim 0 : vector<128x32xf32>, i32 -> vector<128x32xf32>
    %222 = vector.broadcast %20 : vector<128x1xf32> to vector<128x32xf32>
    %223 = arith.mulf %221, %222 : vector<128x32xf32>
    %c1_i32_78 = arith.constant 1 : i32
    %224 = tpu.dynamic_rotate %214 by %c1_i32_78 dim 0 : vector<128x32xf32>, i32 -> vector<128x32xf32>
    %225 = vector.broadcast %17 : vector<128x1xf32> to vector<128x32xf32>
    %226 = arith.mulf %224, %225 : vector<128x32xf32>
    %c127_i32_79 = arith.constant 127 : i32
    %227 = tpu.dynamic_rotate %214 by %c127_i32_79 dim 0 : vector<128x32xf32>, i32 -> vector<128x32xf32>
    %228 = vector.broadcast %18 : vector<128x1xf32> to vector<128x32xf32>
    %229 = arith.mulf %227, %228 : vector<128x32xf32>
    %c121_i32_80 = arith.constant 121 : i32
    %230 = tpu.dynamic_rotate %214 by %c121_i32_80 dim 0 : vector<128x32xf32>, i32 -> vector<128x32xf32>
    %231 = vector.broadcast %21 : vector<128x1xf32> to vector<128x32xf32>
    %232 = arith.mulf %230, %231 : vector<128x32xf32>
    %c120_i32_81 = arith.constant 120 : i32
    %233 = tpu.dynamic_rotate %214 by %c120_i32_81 dim 0 : vector<128x32xf32>, i32 -> vector<128x32xf32>
    %234 = vector.broadcast %16 : vector<128x1xf32> to vector<128x32xf32>
    %235 = arith.mulf %233, %234 : vector<128x32xf32>
    %c119_i32_82 = arith.constant 119 : i32
    %236 = tpu.dynamic_rotate %214 by %c119_i32_82 dim 0 : vector<128x32xf32>, i32 -> vector<128x32xf32>
    %237 = vector.broadcast %22 : vector<128x1xf32> to vector<128x32xf32>
    %238 = arith.mulf %236, %237 : vector<128x32xf32>
    %239 = tpu.concatenate %217, %220, %223, %226, %214, %229, %232, %235, %238 in 1 : vector<128x32xf32>, vector<128x32xf32>, vector<128x32xf32>, vector<128x32xf32>, vector<128x32xf32>, vector<128x32xf32>, vector<128x32xf32>, vector<128x32xf32>, vector<128x32xf32> -> vector<128x288xf32>
    %240 = arith.truncf %239 : vector<128x288xf32> to vector<128x288xbf16>
    %cst_83 = arith.constant dense<0.000000e+00> : vector<128x32xf32>
    %241 = tpu.matmul %240, %13, %cst_83 {dimension_numbers = #tpu.dot_dimension_numbers<[1], [0], [0], [1], [0, 0, 1, 1], [], []>} : vector<128x288xbf16>, vector<288x32xbf16>, vector<128x32xf32> -> vector<128x32xf32>
    %242 = vector.broadcast %7 : vector<1x32xf32> to vector<128x32xf32>
    %243 = arith.addf %241, %242 : vector<128x32xf32>
    %244 = arith.addf %243, %117 : vector<128x32xf32>
    %245 = vector.broadcast %8 : vector<1x32xf32> to vector<128x32xf32>
    %246 = arith.addf %244, %245 : vector<128x32xf32>
    %cst_84 = arith.constant dense<0.000000e+00> : vector<128x8xf32>
    %247 = tpu.matmul %246, %61, %cst_84 {dimension_numbers = #tpu.dot_dimension_numbers<[1], [0], [0], [1], [0, 0, 1, 1], [], []>} : vector<128x32xf32>, vector<32x8xf32>, vector<128x8xf32> -> vector<128x8xf32>
    %248 = arith.mulf %246, %246 : vector<128x32xf32>
    %cst_85 = arith.constant dense<0.000000e+00> : vector<128x8xf32>
    %249 = tpu.matmul %248, %61, %cst_85 {dimension_numbers = #tpu.dot_dimension_numbers<[1], [0], [0], [1], [0, 0, 1, 1], [], []>} : vector<128x32xf32>, vector<32x8xf32>, vector<128x8xf32> -> vector<128x8xf32>
    %cst_86 = arith.constant dense<0.000000e+00> : vector<2x8xf32>
    %250 = tpu.matmul %48, %247, %cst_86 {dimension_numbers = #tpu.dot_dimension_numbers<[1], [0], [0], [1], [0, 0, 1, 1], [], []>} : vector<2x128xf32>, vector<128x8xf32>, vector<2x8xf32> -> vector<2x8xf32>
    %cst_87 = arith.constant 3.906250e-03 : f32
    %251 = vector.broadcast %cst_87 : f32 to vector<2x8xf32>
    %252 = arith.mulf %250, %251 : vector<2x8xf32>
    %cst_88 = arith.constant dense<0.000000e+00> : vector<2x8xf32>
    %253 = tpu.matmul %48, %249, %cst_88 {dimension_numbers = #tpu.dot_dimension_numbers<[1], [0], [0], [1], [0, 0, 1, 1], [], []>} : vector<2x128xf32>, vector<128x8xf32>, vector<2x8xf32> -> vector<2x8xf32>
    %cst_89 = arith.constant 3.906250e-03 : f32
    %254 = vector.broadcast %cst_89 : f32 to vector<2x8xf32>
    %255 = arith.mulf %253, %254 : vector<2x8xf32>
    %256 = arith.mulf %252, %252 : vector<2x8xf32>
    %257 = arith.subf %255, %256 : vector<2x8xf32>
    %cst_90 = arith.constant 0.000000e+00 : f32
    %258 = vector.broadcast %cst_90 : f32 to vector<2x8xf32>
    %259 = arith.maximumf %257, %258 : vector<2x8xf32>
    %cst_91 = arith.constant 9.99999974E-6 : f32
    %260 = vector.broadcast %cst_91 : f32 to vector<2x8xf32>
    %261 = arith.addf %259, %260 : vector<2x8xf32>
    %262 = math.rsqrt %261 : vector<2x8xf32>
    %cst_92 = arith.constant dense<0.000000e+00> : vector<2x32xf32>
    %263 = tpu.matmul %262, %74, %cst_92 {dimension_numbers = #tpu.dot_dimension_numbers<[1], [0], [0], [1], [0, 0, 1, 1], [], []>} : vector<2x8xf32>, vector<8x32xf32>, vector<2x32xf32> -> vector<2x32xf32>
    %264 = vector.broadcast %9 : vector<1x32xf32> to vector<2x32xf32>
    %265 = arith.mulf %263, %264 : vector<2x32xf32>
    %cst_93 = arith.constant dense<0.000000e+00> : vector<2x32xf32>
    %266 = tpu.matmul %252, %74, %cst_93 {dimension_numbers = #tpu.dot_dimension_numbers<[1], [0], [0], [1], [0, 0, 1, 1], [], []>} : vector<2x8xf32>, vector<8x32xf32>, vector<2x32xf32> -> vector<2x32xf32>
    %267 = arith.mulf %266, %265 : vector<2x32xf32>
    %268 = vector.broadcast %10 : vector<1x32xf32> to vector<2x32xf32>
    %269 = arith.subf %268, %267 : vector<2x32xf32>
    %cst_94 = arith.constant dense<0.000000e+00> : vector<128x32xf32>
    %270 = tpu.matmul %35, %265, %cst_94 {dimension_numbers = #tpu.dot_dimension_numbers<[1], [0], [0], [1], [0, 0, 1, 1], [], []>} : vector<128x2xf32>, vector<2x32xf32>, vector<128x32xf32> -> vector<128x32xf32>
    %271 = arith.mulf %246, %270 : vector<128x32xf32>
    %cst_95 = arith.constant dense<0.000000e+00> : vector<128x32xf32>
    %272 = tpu.matmul %35, %269, %cst_95 {dimension_numbers = #tpu.dot_dimension_numbers<[1], [0], [0], [1], [0, 0, 1, 1], [], []>} : vector<128x2xf32>, vector<2x32xf32>, vector<128x32xf32> -> vector<128x32xf32>
    %273 = arith.addf %271, %272 : vector<128x32xf32>
    %274 = arith.negf %273 : vector<128x32xf32>
    %275 = math.exp %274 : vector<128x32xf32>
    %cst_96 = arith.constant 1.000000e+00 : f32
    %276 = vector.broadcast %cst_96 : f32 to vector<128x32xf32>
    %277 = arith.addf %276, %275 : vector<128x32xf32>
    %278 = arith.divf %276, %277 : vector<128x32xf32>
    %279 = arith.mulf %273, %278 : vector<128x32xf32>
    %c0_97 = arith.constant 0 : index
    %c0_98 = arith.constant 0 : index
    %280 = vector.load %arg4[%c0_97, %c0_98] : memref<288x4xbf16, #tpu.memory_space<vmem>>, vector<288x4xbf16>
    %c9_i32_99 = arith.constant 9 : i32
    %281 = tpu.dynamic_rotate %279 by %c9_i32_99 dim 0 : vector<128x32xf32>, i32 -> vector<128x32xf32>
    %282 = vector.broadcast %19 : vector<128x1xf32> to vector<128x32xf32>
    %283 = arith.mulf %281, %282 : vector<128x32xf32>
    %c8_i32_100 = arith.constant 8 : i32
    %284 = tpu.dynamic_rotate %279 by %c8_i32_100 dim 0 : vector<128x32xf32>, i32 -> vector<128x32xf32>
    %285 = vector.broadcast %15 : vector<128x1xf32> to vector<128x32xf32>
    %286 = arith.mulf %284, %285 : vector<128x32xf32>
    %c7_i32_101 = arith.constant 7 : i32
    %287 = tpu.dynamic_rotate %279 by %c7_i32_101 dim 0 : vector<128x32xf32>, i32 -> vector<128x32xf32>
    %288 = vector.broadcast %20 : vector<128x1xf32> to vector<128x32xf32>
    %289 = arith.mulf %287, %288 : vector<128x32xf32>
    %c1_i32_102 = arith.constant 1 : i32
    %290 = tpu.dynamic_rotate %279 by %c1_i32_102 dim 0 : vector<128x32xf32>, i32 -> vector<128x32xf32>
    %291 = vector.broadcast %17 : vector<128x1xf32> to vector<128x32xf32>
    %292 = arith.mulf %290, %291 : vector<128x32xf32>
    %c127_i32_103 = arith.constant 127 : i32
    %293 = tpu.dynamic_rotate %279 by %c127_i32_103 dim 0 : vector<128x32xf32>, i32 -> vector<128x32xf32>
    %294 = vector.broadcast %18 : vector<128x1xf32> to vector<128x32xf32>
    %295 = arith.mulf %293, %294 : vector<128x32xf32>
    %c121_i32_104 = arith.constant 121 : i32
    %296 = tpu.dynamic_rotate %279 by %c121_i32_104 dim 0 : vector<128x32xf32>, i32 -> vector<128x32xf32>
    %297 = vector.broadcast %21 : vector<128x1xf32> to vector<128x32xf32>
    %298 = arith.mulf %296, %297 : vector<128x32xf32>
    %c120_i32_105 = arith.constant 120 : i32
    %299 = tpu.dynamic_rotate %279 by %c120_i32_105 dim 0 : vector<128x32xf32>, i32 -> vector<128x32xf32>
    %300 = vector.broadcast %16 : vector<128x1xf32> to vector<128x32xf32>
    %301 = arith.mulf %299, %300 : vector<128x32xf32>
    %c119_i32_106 = arith.constant 119 : i32
    %302 = tpu.dynamic_rotate %279 by %c119_i32_106 dim 0 : vector<128x32xf32>, i32 -> vector<128x32xf32>
    %303 = vector.broadcast %22 : vector<128x1xf32> to vector<128x32xf32>
    %304 = arith.mulf %302, %303 : vector<128x32xf32>
    %305 = tpu.concatenate %283, %286, %289, %292, %279, %295, %298, %301, %304 in 1 : vector<128x32xf32>, vector<128x32xf32>, vector<128x32xf32>, vector<128x32xf32>, vector<128x32xf32>, vector<128x32xf32>, vector<128x32xf32>, vector<128x32xf32>, vector<128x32xf32> -> vector<128x288xf32>
    %306 = arith.truncf %305 : vector<128x288xf32> to vector<128x288xbf16>
    %cst_107 = arith.constant dense<0.000000e+00> : vector<128x4xf32>
    %307 = tpu.matmul %306, %280, %cst_107 {dimension_numbers = #tpu.dot_dimension_numbers<[1], [0], [0], [1], [0, 0, 1, 1], [], []>} : vector<128x288xbf16>, vector<288x4xbf16>, vector<128x4xf32> -> vector<128x4xf32>
    %308 = vector.broadcast %11 : vector<1x4xf32> to vector<128x4xf32>
    %309 = arith.addf %307, %308 : vector<128x4xf32>
    %c0_108 = arith.constant 0 : index
    %c0_109 = arith.constant 0 : index
    %310 = vector.load %arg5[%c0_108, %c0_109] : memref<128x4xf32, #tpu.memory_space<vmem>>, vector<128x4xf32>
    tpu.vector_store %arg5[%c0_108, %c0_109], %309 {strides = array<i32>} : memref<128x4xf32, #tpu.memory_space<vmem>>, vector<128x4xf32>,
    return
  }
  func.func @transform_0(%arg0: i32) -> (i32, i32) {
    %c0_i32 = arith.constant 0 : i32
    %c0_i32_0 = arith.constant 0 : i32
    %c0_i32_1 = arith.constant 0 : i32
    return %c0_i32, %c0_i32_0 : i32, i32
  }
  func.func @transform_1(%arg0: i32) -> (i32, i32) {
    %c0_i32 = arith.constant 0 : i32
    %c0_i32_0 = arith.constant 0 : i32
    %c0_i32_1 = arith.constant 0 : i32
    return %c0_i32, %c0_i32_0 : i32, i32
  }
  func.func @transform_2(%arg0: i32) -> (i32, i32) {
    %c0_i32 = arith.constant 0 : i32
    %c0_i32_0 = arith.constant 0 : i32
    %c0_i32_1 = arith.constant 0 : i32
    return %c0_i32, %c0_i32_0 : i32, i32
  }
  func.func @transform_3(%arg0: i32) -> (i32, i32) {
    %c0_i32 = arith.constant 0 : i32
    %c0_i32_0 = arith.constant 0 : i32
    %c0_i32_1 = arith.constant 0 : i32
    return %c0_i32, %c0_i32_0 : i32, i32
  }
  func.func @transform_4(%arg0: i32) -> (i32, i32) {
    %c0_i32 = arith.constant 0 : i32
    %c0_i32_0 = arith.constant 0 : i32
    %c0_i32_1 = arith.constant 0 : i32
    return %c0_i32, %c0_i32_0 : i32, i32
  }
}

</mosaic_0001>

<bundles_post_ra>
// kernel: forward.1
= control target key start
LH: loop header
LB: loop body
LE: loop exit
PB: predicated region body
PF: predicated region fallthrough
CT: control target
= control target key end

     0   :  { %v17665_v1 = vmov 12   ;;  %s12182_s17 = smov 124   ;;  %s12183_s18 = smov 125   ;;  %v17661_v6 = vmov 14   ;;  %vm17851_vm2 = vcmask 1041408   ;;  %vm17867_vm3 = vcmask 31744   ;;  %s17654_s0 = inlined_call_operand.vmem [shape: f32[128,16], index: 0, kind: input, shape index: {}]   ;;  %s17655_s2 = inlined_call_operand.vmem [shape: bf16[612,32], index: 2, kind: input, shape index: {}]   ;;  %s17656_s1 = inlined_call_operand.vmem [shape: f32[12,32], index: 1, kind: input, shape index: {}]   ;;  %s17657_s3 = inlined_call_operand.vmem [shape: bf16[288,4], index: 3, kind: input, shape index: {}]   ;;  %s17658_s4 = inlined_call_operand.vmem [shape: f32[128,4], index: 4, kind: output, shape index: {}]  }
   0x1   :  { %v12232_v0 = vld [vmem:[%s17654_s0] sm:$0xff]  ;;  %10810 = vset.pattern.permute.xlu1 %v17665_v1  ;;  %v12242_v2 = vld [vmem:[%s17654_s0 + $0x8] sm:$0xff]  ;;  %v12251_v3 = vld [vmem:[%s17654_s0 + $0x10] sm:$0xff]  ;;  %10811 = vset.pattern.permute.xlu0 %v17661_v6  ;;  %s12185_s27 = smov 127   ;;  %s12186_s30 = smov 126   ;;  %vm17868_vm4 = vcmask 64512  }
   0x2   :  { %550 = vrot.lane.b32.xlu1 %v12232_v0, %s12182_s17  ;;  %203 = vrot.lane.b32.xlu0 %v12232_v0, %s12183_s18  ;;  %v12256_v4 = vld [vmem:[%s17654_s0 + $0x78] sm:$0xff]  ;;  %v12279_v7 = vld [vmem:[%s17654_s0 + $0x20] sm:$0xff]  ;;  %v471_v17 = vmax.f32 %v12242_v2, -30.0  ;;  %v470_v18 = vmax.f32 %v12232_v0, -30.0  ;;  %v472_v21 = vmax.f32 %v12251_v3, -30.0  ;;  %s12189_s9 = smov 4  }
   0x3   :  { %v12265_v5 = vld [vmem:[%s17654_s0 + $0x18] sm:$0xff]  ;;  %v12300_v8 = vld [vmem:[%s17654_s0 + $0x28] sm:$0xff]  ;;  %v12309_v9 = vld [vmem:[%s17654_s0 + $0x30] sm:$0xff]  ;;  %v485_v24 = vmax.f32 %v12256_v4, -30.0  ;;  %s12190_s12 = smov 8   ;;  %s12191_s13 = smov 12  }
   0x4   :  { %v12318_v10 = vld [vmem:[%s17654_s0 + $0x38] sm:$0xff]  ;;  %v12331_v11 = vld [vmem:[%s17654_s0 + $0x40] sm:$0xff]  ;;  %v12352_v12 = vld [vmem:[%s17654_s0 + $0x48] sm:$0xff]  ;;  %v487_v20 = vmin.f32 %v471_v17, 20.0  ;;  %v486_v22 = vmin.f32 %v470_v18, 20.0  ;;  %v488_v25 = vmin.f32 %v472_v21, 20.0 }
   0x5   :  { %v12361_v13 = vld [vmem:[%s17654_s0 + $0x50] sm:$0xff]  ;;  %v12370_v14 = vld [vmem:[%s17654_s0 + $0x58] sm:$0xff]  ;;  %v12383_v15 = vld [vmem:[%s17654_s0 + $0x60] sm:$0xff]  ;;  %v501_v28 = vmin.f32 %v485_v24, 20.0  ;;  %v473_v36 = vmax.f32 %v12265_v5, -30.0  ;;  %v475_v42 = vmax.f32 %v12300_v8, -30.0 }
   0x6   :  { %552 = vrot.lane.b32.xlu1 %v12242_v2, %s12182_s17  ;;  %205 = vrot.lane.b32.xlu0 %v12242_v2, %s12183_s18  ;;  %v12404_v16 = vld [vmem:[%s17654_s0 + $0x68] sm:$0xff]  ;;  %v12415_v19 = vld [vmem:[%s17654_s0 + $0x70] sm:$0xff]  ;;  %v503_v23 = vmul.f32 0.5, %v487_v20  ;;  %v502_v26 = vmul.f32 0.5, %v486_v22  ;;  %v504_v29 = vmul.f32 0.5, %v488_v25  ;;  %v476_v57 = vmax.f32 %v12309_v9, -30.0 }
   0x7   :  { %v517_v31 = vmul.f32 0.5, %v501_v28  ;;  %v489_v39 = vmin.f32 %v473_v36, 20.0  ;;  %v491_v49 = vmin.f32 %v475_v42, 20.0  ;;  %v474_v21 = vmax.f32 %v12279_v7, -30.0  ;;  %s12192_s14 = smov 16   ;;  %s12193_s15 = smov 20  }
   0x8   :  { %v520_v27 = vmul.f32 1.442695, %v503_v23  ;;  %v518_v30 = vmul.f32 1.442695, %v502_v26  ;;  %v522_v32 = vmul.f32 1.442695, %v504_v29 }
   0x9   :  { %v548_v35 = vmul.f32 1.442695, %v517_v31  ;;  %v505_v44 = vmul.f32 0.5, %v489_v39  ;;  %v507_v56 = vmul.f32 0.5, %v491_v49  ;;  %v492_v63 = vmin.f32 %v476_v57, 20.0  ;;  %s12194_s16 = smov 24  }
   0xa   :  { %207 = vrot.lane.b32.xlu1 %v12251_v3, %s12183_s18  ;;  %580 = vrot.lane.b32.xlu0 %v12256_v4, %s12182_s17  ;;  %11935 = vpow2.f32 %v520_v27  ;;  %v490_v27 = vmin.f32 %v474_v21, 20.0  ;;  %v479_v42 = vmax.f32 %v12352_v12, -30.0  ;;  %s12195_s21 = smov 28   ;;  %vm2010_vm5 = vcmask 97280   ;;  %s12202_s29 = smov 96  }
   0xb   :  { %11937 = vpow2.f32 %v518_v30  ;;  %v524_v51 = vmul.f32 1.442695, %v505_v44  ;;  %v528_v62 = vmul.f32 1.442695, %v507_v56  ;;  %v508_v20 = vmul.f32 0.5, %v492_v63  ;;  %s12203_s8 = smov 64  }
   0xc   :  { %11939 = vpow2.f32 %v522_v32  ;;  %v506_v31 = vmul.f32 0.5, %v490_v27  ;;  %vm2027_vm6 = vcmask 130048   ;;  %vm2044_vm7 = vcmask 162816  }
   0xd   :  { %11941 = vpow2.f32 %v548_v35  ;;  %v530_v25 = vmul.f32 1.442695, %v508_v20  ;;  %vm2061_vm8 = vcmask 195584   ;;  %vm2078_vm9 = vcmask 228352  }
   0xe   :  { %554 = vrot.lane.b32.xlu1 %v12251_v3, %s12182_s17  ;;  %209 = vrot.lane.b32.xlu0 %v12265_v5, %s12183_s18  ;;  %11943 = vpow2.f32 %v524_v51  ;;  %v480_v51 = vmax.f32 %v12361_v13, -30.0  ;;  %vm17871_vm10 = vcmask 261120   ;;  %vm17866_vm12 = vcmask 293888  }
   0xf   :  { %11945 = vpow2.f32 %v528_v62 }
  0x10   :  { %11947 = vpow2.f32 %v530_v25 }
  0x12   :  { %267 = vrot.lane.b32.xlu1 %v12232_v0, %s12185_s27  ;;  %556 = vrot.lane.b32.xlu0 %v12265_v5, %s12182_s17 }
  0x14   :  { %v11936_v43 = vpop.eup %11935 }
  0x15   :  { %v11938_v45 = vpop.eup %11937 }
  0x16   :  { %558 = vrot.lane.b32.xlu1 %v12279_v7, %s12182_s17  ;;  %269 = vrot.lane.b32.xlu0 %v12242_v2, %s12185_s27  ;;  %v11940_v50 = vpop.eup %11939 }
  0x17   :  { %v11942_v58 = vpop.eup %11941 }
  0x18   :  { %v11944_v26 = vpop.eup %11943 }
  0x19   :  { %v11946_v32 = vpop.eup %11945 }
  0x1a   :  { %273 = vrot.lane.b32.xlu1 %v12265_v5, %s12185_s27  ;;  %271 = vrot.lane.b32.xlu0 %v12251_v3, %s12185_s27 }
  0x1e   :  { %141 = vrot.lane.b32.xlu1 %v12242_v2, %s12186_s30  ;;  %139 = vrot.lane.b32.xlu0 %v12232_v0, %s12186_s30 }
  0x22   :  { %145 = vrot.lane.b32.xlu1 %v12265_v5, %s12186_s30  ;;  %143 = vrot.lane.b32.xlu0 %v12251_v3, %s12186_s30 }
  0x26   :  { %211 = vrot.lane.b32.xlu1 %v12279_v7, %s12183_s18  ;;  %560 = vrot.lane.b32.xlu0 %v12300_v8, %s12182_s17 }
  0x2a   :  { %215 = vrot.lane.b32.xlu1 %v12309_v9, %s12183_s18  ;;  %213 = vrot.lane.b32.xlu0 %v12300_v8, %s12183_s18 }
  0x2e   :  { %562 = vrot.lane.b32.xlu1 %v12309_v9, %s12182_s17  ;;  %217 = vrot.lane.b32.xlu0 %v12318_v10, %s12183_s18 }
  0x32   :  { %275 = vrot.lane.b32.xlu1 %v12279_v7, %s12185_s27  ;;  %564 = vrot.lane.b32.xlu0 %v12318_v10, %s12182_s17 }
  0x36   :  { %566 = vrot.lane.b32.xlu1 %v12331_v11, %s12182_s17  ;;  %277 = vrot.lane.b32.xlu0 %v12300_v8, %s12185_s27 }
  0x3a   :  { %281 = vrot.lane.b32.xlu1 %v12318_v10, %s12185_s27  ;;  %279 = vrot.lane.b32.xlu0 %v12309_v9, %s12185_s27 }
  0x3e   :  { %149 = vrot.lane.b32.xlu1 %v12300_v8, %s12186_s30  ;;  %147 = vrot.lane.b32.xlu0 %v12279_v7, %s12186_s30 }
  0x42   :  { %153 = vrot.lane.b32.xlu1 %v12318_v10, %s12186_s30  ;;  %151 = vrot.lane.b32.xlu0 %v12309_v9, %s12186_s30 }
  0x46   :  { %219 = vrot.lane.b32.xlu1 %v12331_v11, %s12183_s18  ;;  %568 = vrot.lane.b32.xlu0 %v12352_v12, %s12182_s17 }
  0x4a   :  { %223 = vrot.lane.b32.xlu1 %v12361_v13, %s12183_s18  ;;  %221 = vrot.lane.b32.xlu0 %v12352_v12, %s12183_s18 }
  0x4e   :  { %570 = vrot.lane.b32.xlu1 %v12361_v13, %s12182_s17  ;;  %225 = vrot.lane.b32.xlu0 %v12370_v14, %s12183_s18 }
  0x52   :  { %283 = vrot.lane.b32.xlu1 %v12331_v11, %s12185_s27  ;;  %572 = vrot.lane.b32.xlu0 %v12370_v14, %s12182_s17 }
  0x56   :  { %574 = vrot.lane.b32.xlu1 %v12383_v15, %s12182_s17  ;;  %285 = vrot.lane.b32.xlu0 %v12352_v12, %s12185_s27 }
  0x5a   :  { %289 = vrot.lane.b32.xlu1 %v12370_v14, %s12185_s27  ;;  %287 = vrot.lane.b32.xlu0 %v12361_v13, %s12185_s27 }
  0x5e   :  { %157 = vrot.lane.b32.xlu1 %v12352_v12, %s12186_s30  ;;  %155 = vrot.lane.b32.xlu0 %v12331_v11, %s12186_s30 }
  0x62   :  { %161 = vrot.lane.b32.xlu1 %v12370_v14, %s12186_s30  ;;  %159 = vrot.lane.b32.xlu0 %v12361_v13, %s12186_s30 }
  0x66   :  { %227 = vrot.lane.b32.xlu1 %v12383_v15, %s12183_s18  ;;  %576 = vrot.lane.b32.xlu0 %v12404_v16, %s12182_s17 }
  0x6a   :  { %231 = vrot.lane.b32.xlu1 %v12415_v19, %s12183_s18  ;;  %229 = vrot.lane.b32.xlu0 %v12404_v16, %s12183_s18 }
  0x6e   :  { %578 = vrot.lane.b32.xlu1 %v12415_v19, %s12182_s17  ;;  %233 = vrot.lane.b32.xlu0 %v12256_v4, %s12183_s18  ;;  %s12196_s18 = smov 32  }
  0x72   :  { %293 = vrot.lane.b32.xlu1 %v12404_v16, %s12185_s27  ;;  %291 = vrot.lane.b32.xlu0 %v12383_v15, %s12185_s27 }
  0x74   :  { %v551_v33 = vpop.permute.xlu1 %550  ;;  %v12431_v34 = vpop.permute.xlu0 %203 }
  0x75   :  { %v598_v52 = vmul.f32 %v11938_v45, %v551_v33 }
  0x76   :  { %297 = vrot.lane.b32.xlu1 %v12256_v4, %s12185_s27  ;;  %295 = vrot.lane.b32.xlu0 %v12415_v19, %s12185_s27 }
  0x78   :  { %v553_v37 = vpop.permute.xlu1 %552  ;;  %v206_v38 = vpop.permute.xlu0 %205 }
  0x79   :  { %v599_v46 = vmul.f32 %v11936_v43, %v553_v37  ;;  %v252_v22 = vmul.f32 %v206_v38, %v12242_v2  ;;  %v526_v37 = vmul.f32 1.442695, %v506_v31  ;;  %v11948_v43 = vpop.eup %11947 }
  0x7a   :  { %165 = vrot.lane.b32.xlu1 %v12404_v16, %s12186_s30  ;;  %163 = vrot.lane.b32.xlu0 %v12383_v15, %s12186_s30 }
  0x7b   :  { %11949 = vpow2.f32 %v526_v37 }
  0x7c   :  { %v12442_v40 = vpop.permute.xlu1 %207  ;;  %v581_v41 = vpop.permute.xlu0 %580 }
  0x7d   :  { %v613_v59 = vmul.f32 %v11942_v58, %v581_v41  ;;  %v496_v58 = vmin.f32 %v480_v51, 20.0 }
  0x7e   :  { %169 = vrot.lane.b32.xlu1 %v12256_v4, %s12186_s30  ;;  %167 = vrot.lane.b32.xlu0 %v12415_v19, %s12186_s30 }
  0x7f   :  { %v512_v20 = vmul.f32 0.5, %v496_v58  ;;  %v477_v58 = vmax.f32 %v12318_v10, -30.0 }
  0x80   :  { %v555_v47 = vpop.permute.xlu1 %554  ;;  %v210_v48 = vpop.permute.xlu0 %209 }
  0x81   :  { %v600_v53 = vmul.f32 %v11940_v50, %v555_v47  ;;  %v254_v33 = vmul.f32 %v210_v48, %v12265_v5  ;;  %v538_v25 = vmul.f32 1.442695, %v512_v20 }
  0x82   :  { %844 = vperm.xlu1 %10810, %v12242_v2   ;;  %632 = vrot.lane.b32.xlu0 %v599_v46, %s12182_s17  ;;  %v495_v46 = vmin.f32 %v479_v42, 20.0 }
  0x84   :  { %v12451_v54 = vpop.permute.xlu1 %267  ;;  %v557_v55 = vpop.permute.xlu0 %556  ;;  %v511_v50 = vmul.f32 0.5, %v495_v46 }
  0x85   :  { %v601_v28 = vmul.f32 %v11944_v26, %v557_v55 }
  0x86   :  { %634 = vrot.lane.b32.xlu0 %v600_v53, %s12182_s17  ;;  %630 = vrot.lane.b32.xlu1 %v598_v52, %s12182_s17  ;;  %v11950_v52 = vpop.eup %11949  ;;  %v17663_v53 = vmov 15   ;;  %v536_v57 = vmul.f32 1.442695, %v511_v50 }
  0x88   :  { %v559_v60 = vpop.permute.xlu1 %558  ;;  %v12456_v61 = vpop.permute.xlu0 %269  ;;  %11951 = vpow2.f32 %v536_v57  ;;  %v484_v57 = vmax.f32 %v12415_v19, -30.0 }
  0x89   :  { %11953 = vpow2.f32 %v538_v25 }
  0x8a   :  { %1049 = vperm.xlu0 %10811, %v12232_v0   ;;  %660 = vrot.lane.b32.xlu1 %v613_v59, %s12182_s17  ;;  %v602_v59 = vmul.f32 %v11950_v52, %v559_v60  ;;  %v315_v60 = vmul.f32 %v12451_v54, %v12232_v0 }
  0x8c   :  { %v12460_v17 = vpop.permute.xlu1 %273  ;;  %v12462_v18 = vpop.permute.xlu0 %271 }
  0x8d   :  { %v318_v54 = vmul.f32 %v12460_v17, %v12265_v5 }
  0x8e   :  { %1061 = vperm.xlu0 %10811, %v12265_v5   ;;  %852 = vperm.xlu1 %10810, %v12265_v5  }
  0x90   :  { %v12468_v23 = vpop.permute.xlu1 %141  ;;  %v12470_v24 = vpop.permute.xlu0 %139 }
  0x92   :  { %959 = vperm.xlu1 %10810, %v252_v22   ;;  %v11952_v31 = vpop.eup %11951 }
  0x94   :  { %v12472_v29 = vpop.permute.xlu1 %145  ;;  %v12474_v30 = vpop.permute.xlu0 %143 }
  0x96   :  { %636 = vrot.lane.b32.xlu1 %v601_v28, %s12182_s17  ;;  %v17659_v28 = vmov 13  }
  0x98   :  { %v12478_v35 = vpop.permute.xlu1 %211  ;;  %v561_v36 = vpop.permute.xlu0 %560 }
  0x99   :  { %v603_v38 = vmul.f32 %v11946_v32, %v561_v36  ;;  %v317_v32 = vmul.f32 %v12462_v18, %v12251_v3 }
  0x9a   :  { %969 = vperm.xlu1 %10810, %v254_v33  }
  0x9b   :  { %640 = vrot.lane.b32.xlu0 %v603_v38, %s12182_s17 }
  0x9c   :  { %v12481_v39 = vpop.permute.xlu1 %215  ;;  %v12483_v41 = vpop.permute.xlu0 %213 }
  0x9e   :  { %10812 = vset.pattern.permute.xlu1 %v17661_v6 }
  0x9f   :  { %1053 = vperm.xlu1 %10812, %v12242_v2  }
  0xa0   :  { %v563_v44 = vpop.permute.xlu1 %562  ;;  %v12488_v45 = vpop.permute.xlu0 %217 }
  0xa1   :  { %v604_v47 = vmul.f32 %v11948_v43, %v563_v44  ;;  %v483_v43 = vmax.f32 %v12404_v16, -30.0  ;;  %v11954_v44 = vpop.eup %11953 }
  0xa3   :  { %642 = vrot.lane.b32.xlu0 %v604_v47, %s12182_s17  ;;  %1057 = vperm.xlu1 %10812, %v12251_v3   ;;  %v499_v47 = vmin.f32 %v483_v43, 20.0 }
  0xa4   :  { %v12492_v48 = vpop.permute.xlu1 %275  ;;  %v12494_v49 = vpop.permute.xlu0 %564 }
  0xa5   :  { %v515_v52 = vmul.f32 0.5, %v499_v47  ;;  %v12568_v47 = vmul.f32 %v12474_v30, %v12251_v3 }
  0xa7   :  { %10813 = vset.pattern.permute.xlu1 %v17663_v53  ;;  %1065 = vperm.xlu0 %10811, %v12279_v7   ;;  %18015 = vst [vmem:[#allocation2_spill] sm:$0xff] %v12568_v47 }
  0xa8   :  { %v12499_v55 = vpop.permute.xlu1 %566  ;;  %v12501_v56 = vpop.permute.xlu0 %277  ;;  %1129 = vperm.xlu1 %10813, %v12232_v0  }
  0xab   :  { %1077 = vperm.xlu0 %10811, %v12318_v10  }
  0xac   :  { %v12505_v62 = vpop.permute.xlu1 %281  ;;  %v12507_v63 = vpop.permute.xlu0 %279  ;;  %638 = vrot.lane.b32.xlu1 %v602_v59, %s12182_s17  ;;  %v12547_v59 = vmul.f32 %v12468_v23, %v12242_v2 }
  0xb0   :  { %v12510_v21 = vpop.permute.xlu1 %149  ;;  %v12512_v22 = vpop.permute.xlu0 %147  ;;  %1137 = vperm.xlu1 %10813, %v12251_v3  }
  0xb4   :  { %v12517_v26 = vpop.permute.xlu1 %153  ;;  %v12519_v27 = vpop.permute.xlu0 %151  ;;  %10814 = vset.pattern.permute.xlu1 %v17659_v28 }
  0xb5   :  { %1210 = vperm.xlu1 %10814, %v315_v60   ;;  %v544_v60 = vmul.f32 1.442695, %v515_v52 }
  0xb7   :  { %11955 = vpow2.f32 %v544_v60 }
  0xb8   :  { %v12524_v33 = vpop.permute.xlu1 %219  ;;  %v569_v36 = vpop.permute.xlu0 %568 }
  0xb9   :  { %v607_v37 = vmul.f32 %v11952_v31, %v569_v36  ;;  %1220 = vperm.xlu1 %10814, %v317_v32   ;;  %v500_v31 = vmin.f32 %v484_v57, 20.0  ;;  %v493_v32 = vmin.f32 %v477_v58, 20.0  ;;  %v12578_v58 = vmul.f32 %v12472_v29, %v12265_v5 }
  0xbb   :  { %648 = vrot.lane.b32.xlu0 %v607_v37, %s12182_s17  ;;  %v516_v23 = vmul.f32 0.5, %v500_v31 }
  0xbc   :  { %v12529_v38 = vpop.permute.xlu1 %223  ;;  %v12531_v42 = vpop.permute.xlu0 %221 }
  0xbd   :  { %1225 = vperm.xlu1 %10814, %v318_v54   ;;  %v509_v54 = vmul.f32 0.5, %v493_v32 }
  0xc0   :  { %v571_v46 = vpop.permute.xlu1 %570  ;;  %v12534_v18 = vpop.permute.xlu0 %225 }
  0xc1   :  { %v608_v50 = vmul.f32 %v11954_v44, %v571_v46  ;;  %1309 = vperm.xlu1 %10814, %v12242_v2   ;;  %v546_v46 = vmul.f32 1.442695, %v516_v23  ;;  %v11956_v60 = vpop.eup %11955  ;;  %v478_v23 = vmax.f32 %v12331_v11, -30.0 }
  0xc3   :  { %650 = vrot.lane.b32.xlu0 %v608_v50, %s12182_s17  ;;  %v532_v50 = vmul.f32 1.442695, %v509_v54  ;;  %11957 = vpow2.f32 %v546_v46  ;;  %v256_v46 = vmul.f32 %v12483_v41, %v12300_v8 }
  0xc4   :  { %v12538_v17 = vpop.permute.xlu1 %283  ;;  %v12540_v51 = vpop.permute.xlu0 %572 }
  0xc5   :  { %1317 = vperm.xlu1 %10814, %v12265_v5   ;;  %11959 = vpow2.f32 %v532_v50 }
  0xc7   :  { %1081 = vperm.xlu0 %10811, %v12331_v11  }
  0xc8   :  { %v12550_v20 = vpop.permute.xlu1 %574  ;;  %v12552_v25 = vpop.permute.xlu0 %285 }
  0xc9   :  { %1389 = vperm.xlu1 %10814, %v12547_v59  }
  0xcb   :  { %1093 = vperm.xlu0 %10811, %v12370_v14  }
  0xcc   :  { %v12556_v36 = vpop.permute.xlu1 %289  ;;  %v12558_v37 = vpop.permute.xlu0 %287 }
  0xcd   :  { %10815 = vset.pattern.permute.xlu1 %v17665_v1  ;;  %v11958_v29 = vpop.eup %11957 }
  0xce   :  { %856 = vperm.xlu1 %10815, %v12279_v7  }
  0xcf   :  { %v11960_v50 = vpop.eup %11959 }
  0xd0   :  { %v12562_v43 = vpop.permute.xlu1 %157  ;;  %v12564_v44 = vpop.permute.xlu0 %155 }
  0xd2   :  { %10816 = vset.pattern.permute.xlu1 %v17659_v28  ;;  %v494_v28 = vmin.f32 %v478_v23, 20.0  ;;  %v18016_v23 = vmov 15  }
  0xd3   :  { %1393 = vperm.xlu1 %10816, %v12568_v47  }
  0xd4   :  { %v12572_v52 = vpop.permute.xlu1 %161  ;;  %v12574_v57 = vpop.permute.xlu0 %159 }
  0xd7   :  { %1397 = vperm.xlu1 %10816, %v12578_v58  }
  0xd8   :  { %v12581_v30 = vpop.permute.xlu1 %227  ;;  %v577_v31 = vpop.permute.xlu0 %576 }
  0xd9   :  { %v611_v32 = vmul.f32 %v11956_v60, %v577_v31  ;;  %v605_v60 = vmul.f32 %v11960_v50, %v12494_v49  ;;  %v510_v31 = vmul.f32 0.5, %v494_v28  ;;  %v18019_v50 = vmov 13  }
  0xdb   :  { %10817 = vset.pattern.permute.xlu1 %v17665_v1  ;;  %656 = vrot.lane.b32.xlu0 %v611_v32, %s12182_s17  ;;  %v258_v32 = vmul.f32 %v12488_v45, %v12318_v10  ;;  %v534_v1 = vmul.f32 1.442695, %v510_v31  ;;  %v321_v31 = vmul.f32 %v12507_v63, %v12309_v9 }
  0xdc   :  { %v12586_v54 = vpop.permute.xlu1 %231  ;;  %868 = vperm.xlu1 %10817, %v12318_v10   ;;  %v12613_v28 = vpop.permute.xlu0 %229 }
  0xdd   :  { %11961 = vpow2.f32 %v534_v1 }
  0xe0   :  { %v579_v6 = vpop.permute.xlu1 %578  ;;  %979 = vperm.xlu1 %10817, %v256_v46   ;;  %v319_v46 = vmul.f32 %v12492_v48, %v12279_v7  ;;  %v322_v48 = vmul.f32 %v12505_v62, %v12318_v10 }
  0xe1   :  { %v612_v53 = vmul.f32 %v11958_v29, %v579_v6  ;;  %v18017_v6 = vmov 14   ;;  %v12620_v29 = vpop.permute.xlu0 %233 }
  0xe3   :  { %658 = vrot.lane.b32.xlu0 %v612_v53, %s12182_s17 }
  0xe4   :  { %644 = vrot.lane.b32.xlu1 %v605_v60, %s12182_s17  ;;  %v12597_v41 = vpop.permute.xlu1 %293 }
  0xe5   :  { %v12629_v60 = vpop.permute.xlu0 %291 }
  0xe7   :  { %1101 = vperm.xlu0 %10811, %v12404_v16   ;;  %v11962_v45 = vpop.eup %11961 }
  0xe8   :  { %989 = vperm.xlu1 %10817, %v258_v32   ;;  %v12603_v49 = vpop.permute.xlu1 %297  ;;  %v606_v53 = vmul.f32 %v11962_v45, %v12499_v55 }
  0xeb   :  { %10831 = vset.pattern.permute.xlu0 %v18016_v23 }
  0xec   :  { %1133 = vperm.xlu0 %10831, %v12242_v2   ;;  %10818 = vset.pattern.permute.xlu1 %v18017_v6  ;;  %v12609_v1 = vpop.permute.xlu1 %165 }
  0xed   :  { %1069 = vperm.xlu1 %10818, %v12300_v8  }
  0xf0   :  { %1141 = vperm.xlu0 %10831, %v12265_v5   ;;  %v12617_v5 = vpop.permute.xlu1 %169 }
  0xf1   :  { %1073 = vperm.xlu1 %10818, %v12309_v9  }
  0xf4   :  { %1149 = vperm.xlu0 %10831, %v12300_v8  }
  0xf5   :  { %10819 = vset.pattern.permute.xlu1 %v18016_v23 }
  0xf6   :  { %1145 = vperm.xlu1 %10819, %v12279_v7  }
  0xf8   :  { %1157 = vperm.xlu0 %10831, %v12318_v10  }
  0xfa   :  { %646 = vrot.lane.b32.xlu1 %v606_v53, %s12182_s17  ;;  %v12641_v53 = vpop.permute.xlu0 %295 }
  0xfc   :  { %1165 = vperm.xlu0 %10831, %v12352_v12  }
  0xfe   :  { %1153 = vperm.xlu1 %10819, %v12309_v9  }
 0x100   :  { %1173 = vperm.xlu0 %10831, %v12370_v14  }
 0x101   :  { %v12626_v55 = vpop.permute.xlu1 %844 }
 0x102   :  { %18018 = vst [vmem:[#allocation3_spill] sm:$0xff] %v12626_v55  ;;  %10820 = vset.pattern.permute.xlu1 %v18019_v50  ;;  %v481_v55 = vmax.f32 %v12370_v14, -30.0 }
 0x103   :  { %1230 = vperm.xlu1 %10820, %v319_v46   ;;  %v316_v46 = vmul.f32 %v12456_v61, %v12242_v2  ;;  %v12658_v2 = vmul.f32 %v12510_v21, %v12300_v8  ;;  %v320_v21 = vmul.f32 %v12501_v56, %v12300_v8 }
 0x104   :  { %1177 = vperm.xlu0 %10831, %v12383_v15  }
 0x105   :  { %v12634_v32 = vpop.permute.xlu1 %630 }
 0x106   :  { %18020 = vst [vmem:[#allocation4_spill] sm:$0xff] %v12634_v32  ;;  %v18026_v32 = vmov 12  }
 0x107   :  { %1240 = vperm.xlu1 %10820, %v321_v31   ;;  %v12649_v31 = vpop.permute.xlu0 %163 }
 0x108   :  { %1189 = vperm.xlu0 %10831, %v12256_v4  }
 0x109   :  { %v12639_v45 = vpop.permute.xlu1 %660 }
 0x10a   :  { %18021 = vst [vmem:[#allocation5_spill] sm:$0xff] %v12639_v45 }
 0x10b   :  { %1245 = vperm.xlu1 %10820, %v322_v48   ;;  %v12663_v48 = vpop.permute.xlu0 %167 }
 0x10c   :  { %10833 = vset.pattern.permute.xlu0 %v18019_v50 }
 0x10d   :  { %1215 = vperm.xlu0 %10833, %v316_v46   ;;  %v12646_v63 = vpop.permute.xlu1 %852  ;;  %v12667_v46 = vmul.f32 %v12470_v24, %v12232_v0 }
 0x10e   :  { %18022 = vst [vmem:[#allocation6_spill] sm:$0xff] %v12646_v63  ;;  %v497_v63 = vmin.f32 %v481_v55, 20.0  ;;  %v12683_v55 = vmul.f32 %v12519_v27, %v12309_v9 }
 0x10f   :  { %1325 = vperm.xlu1 %10820, %v12300_v8  }
 0x110   :  { %v513_v45 = vmul.f32 0.5, %v497_v63  ;;  %18029 = vst [vmem:[#allocation12_spill] sm:$0xff] %v12683_v55 }
 0x111   :  { %1305 = vperm.xlu0 %10833, %v12232_v0   ;;  %v12652_v62 = vpop.permute.xlu1 %959 }
 0x112   :  { %18023 = vst [vmem:[#allocation7_spill] sm:$0xff] %v12652_v62  ;;  %v540_v47 = vmul.f32 1.442695, %v513_v45  ;;  %v12702_v45 = vmul.f32 %v12512_v22, %v12279_v7 }
 0x113   :  { %1333 = vperm.xlu1 %10820, %v12318_v10  }
 0x114   :  { %11963 = vpow2.f32 %v540_v47  ;;  %v260_v47 = vmul.f32 %v12531_v42, %v12352_v12  ;;  %v262_v42 = vmul.f32 %v12534_v18, %v12370_v14  ;;  %v328_v18 = vmul.f32 %v12597_v41, %v12404_v16 }
 0x115   :  { %1313 = vperm.xlu0 %10833, %v12251_v3   ;;  %v12661_v61 = vpop.permute.xlu1 %636 }
 0x116   :  { %18024 = vst [vmem:[#allocation8_spill] sm:$0xff] %v12661_v61  ;;  %v12676_v61 = vpop.permute.xlu0 %632 }
 0x117   :  { %1405 = vperm.xlu1 %10820, %v12658_v2   ;;  %18027 = vst [vmem:[#allocation10_spill] sm:$0xff] %v12676_v61 }
 0x119   :  { %1385 = vperm.xlu0 %10833, %v12667_v46   ;;  %v12671_v62 = vpop.permute.xlu1 %969 }
 0x11a   :  { %18025 = vst [vmem:[#allocation9_spill] sm:$0xff] %v12671_v62  ;;  %v12688_v56 = vpop.permute.xlu0 %634 }
 0x11b   :  { %10821 = vset.pattern.permute.xlu1 %v18026_v32  ;;  %18030 = vst [vmem:[#allocation13_spill] sm:$0xff] %v12688_v56 }
 0x11c   :  { %872 = vperm.xlu1 %10821, %v12331_v11  }
 0x11d   :  { %1235 = vperm.xlu0 %10833, %v320_v21   ;;  %v12694_v21 = vmul.f32 %v12517_v26, %v12318_v10  ;;  %v324_v10 = vmul.f32 %v12552_v25, %v12352_v12 }
 0x11e   :  { %v12679_v24 = vpop.permute.xlu1 %1053  ;;  %v12698_v27 = vpop.permute.xlu0 %1049 }
 0x11f   :  { %18028 = vst [vmem:[#allocation11_spill] sm:$0xff] %v12679_v24  ;;  %18032 = vst [vmem:[#allocation15_spill] sm:$0xff] %v12698_v27  ;;  %v482_v24 = vmax.f32 %v12383_v15, -30.0 }
 0x120   :  { %10822 = vset.pattern.permute.xlu1 %v18019_v50 }
 0x121   :  { %1321 = vperm.xlu0 %10833, %v12279_v7   ;;  %1409 = vperm.xlu1 %10822, %v12683_v55  }
 0x122   :  { %v12690_v63 = vpop.permute.xlu1 %1057  ;;  %v12716_v22 = vpop.permute.xlu0 %1061 }
 0x123   :  { %18031 = vst [vmem:[#allocation14_spill] sm:$0xff] %v12690_v63  ;;  %18034 = vst [vmem:[#allocation17_spill] sm:$0xff] %v12716_v22  ;;  %v11964_v63 = vpop.eup %11963 }
 0x124   :  { %v609_v56 = vmul.f32 %v11964_v63, %v12540_v51 }
 0x125   :  { %1329 = vperm.xlu0 %10833, %v12309_v9   ;;  %1413 = vperm.xlu1 %10822, %v12694_v21  }
 0x126   :  { %v12722_v55 = vpop.permute.xlu0 %640 }
 0x127   :  { %v12704_v62 = vpop.permute.xlu1 %1129 }
 0x128   :  { %18033 = vst [vmem:[#allocation16_spill] sm:$0xff] %v12704_v62  ;;  %v498_v62 = vmin.f32 %v482_v24, 20.0  ;;  %v12732_v24 = vmul.f32 %v12564_v44, %v12331_v11 }
 0x129   :  { %1401 = vperm.xlu0 %10833, %v12702_v45   ;;  %10823 = vset.pattern.permute.xlu1 %v18026_v32 }
 0x12a   :  { %884 = vperm.xlu1 %10823, %v12370_v14   ;;  %v514_v61 = vmul.f32 0.5, %v498_v62  ;;  %v12734_v51 = vpop.permute.xlu0 %642 }
 0x12b   :  { %v12712_v26 = vpop.permute.xlu1 %638 }
 0x12c   :  { %v542_v22 = vmul.f32 1.442695, %v514_v61 }
 0x12d   :  { %1255 = vperm.xlu0 %10833, %v324_v10  }
 0x12e   :  { %999 = vperm.xlu1 %10823, %v260_v47   ;;  %11965 = vpow2.f32 %v542_v22  ;;  %v12743_v61 = vpop.permute.xlu0 %1065  ;;  %v12761_v22 = vmul.f32 %v12649_v31, %v12383_v15 }
 0x12f   :  { %v12718_v27 = vpop.permute.xlu1 %1137  ;;  %18038 = vst [vmem:[#allocation21_spill] sm:$0xff] %v12743_v61 }
 0x130   :  { %18035 = vst [vmem:[#allocation18_spill] sm:$0xff] %v12718_v27  ;;  %18043 = vst [vmem:[#allocation26_spill] sm:$0xff] %v12761_v22 }
 0x131   :  { %1337 = vperm.xlu0 %10833, %v12331_v11  }
 0x132   :  { %652 = vrot.lane.b32.xlu1 %v609_v56, %s12182_s17  ;;  %v12751_v63 = vpop.permute.xlu0 %1077 }
 0x133   :  { %18041 = vst [vmem:[#allocation24_spill] sm:$0xff] %v12751_v63  ;;  %v12771_v63 = vmul.f32 %v12663_v48, %v12415_v19 }
 0x134   :  { %v12727_v25 = vpop.permute.xlu1 %1210 }
 0x135   :  { %18036 = vst [vmem:[#allocation19_spill] sm:$0xff] %v12727_v25  ;;  %1345 = vperm.xlu0 %10833, %v12361_v13   ;;  %18046 = vst [vmem:[#allocation29_spill] sm:$0xff] %v12771_v63 }
 0x136   :  { %1009 = vperm.xlu1 %10823, %v262_v42   ;;  %v12763_v42 = vpop.permute.xlu0 %648 }
 0x137   :  { %18044 = vst [vmem:[#allocation27_spill] sm:$0xff] %v12763_v42 }
 0x138   :  { %v12736_v62 = vpop.permute.xlu1 %1220  ;;  %v11966_v10 = vpop.eup %11965 }
 0x139   :  { %18037 = vst [vmem:[#allocation20_spill] sm:$0xff] %v12736_v62  ;;  %1417 = vperm.xlu0 %10833, %v12732_v24   ;;  %v610_v47 = vmul.f32 %v11966_v10, %v12550_v20  ;;  %v323_v10 = vmul.f32 %v12538_v17, %v12331_v11  ;;  %v326_v17 = vmul.f32 %v12556_v36, %v12370_v14 }
 0x13a   :  { %10824 = vset.pattern.permute.xlu1 %v18017_v6  ;;  %v12777_v31 = vpop.permute.xlu0 %650 }
 0x13b   :  { %1085 = vperm.xlu1 %10824, %v12352_v12   ;;  %18048 = vst [vmem:[#allocation31_spill] sm:$0xff] %v12777_v31 }
 0x13c   :  { %v12745_v56 = vpop.permute.xlu1 %1225 }
 0x13d   :  { %18039 = vst [vmem:[#allocation22_spill] sm:$0xff] %v12745_v56  ;;  %1275 = vperm.xlu0 %10833, %v328_v18  }
 0x13f   :  { %1089 = vperm.xlu1 %10824, %v12361_v13  }
 0x140   :  { %v12748_v44 = vpop.permute.xlu1 %1309 }
 0x141   :  { %18040 = vst [vmem:[#allocation23_spill] sm:$0xff] %v12748_v44  ;;  %1353 = vperm.xlu0 %10833, %v12383_v15  }
 0x143   :  { %10825 = vset.pattern.permute.xlu1 %v18016_v23 }
 0x144   :  { %1161 = vperm.xlu1 %10825, %v12331_v11   ;;  %v12755_v41 = vpop.permute.xlu1 %1317 }
 0x145   :  { %18042 = vst [vmem:[#allocation25_spill] sm:$0xff] %v12755_v41  ;;  %1361 = vperm.xlu0 %10833, %v12415_v19  }
 0x148   :  { %654 = vrot.lane.b32.xlu1 %v610_v47, %s12182_s17  ;;  %v12766_v18 = vpop.permute.xlu1 %1389  ;;  %v12783_v47 = vpop.permute.xlu0 %1081 }
 0x149   :  { %18045 = vst [vmem:[#allocation28_spill] sm:$0xff] %v12766_v18  ;;  %1433 = vperm.xlu0 %10833, %v12761_v22   ;;  %18049 = vst [vmem:[#allocation32_spill] sm:$0xff] %v12783_v47 }
 0x14c   :  { %1169 = vperm.xlu1 %10825, %v12361_v13   ;;  %v12797_v22 = vpop.permute.xlu0 %1093 }
 0x14d   :  { %1441 = vperm.xlu0 %10833, %v12771_v63   ;;  %v12775_v20 = vpop.permute.xlu1 %856  ;;  %v325_v63 = vmul.f32 %v12558_v37, %v12361_v13  ;;  %18052 = vst [vmem:[#allocation35_spill] sm:$0xff] %v12797_v22  ;;  %v253_v37 = vmul.f32 %v12442_v40, %v12251_v3 }
 0x14e   :  { %18047 = vst [vmem:[#allocation30_spill] sm:$0xff] %v12775_v20 }
 0x150   :  { %10826 = vset.pattern.permute.xlu1 %v18019_v50 }
 0x151   :  { %10835 = vset.pattern.permute.xlu0 %v18026_v32  ;;  %1250 = vperm.xlu1 %10826, %v323_v10   ;;  %v251_v10 = vmul.f32 %v12431_v34, %v12232_v0 }
 0x152   :  { %840 = vperm.xlu0 %10835, %v12232_v0   ;;  %v12786_v48 = vpop.permute.xlu1 %1393  ;;  %v12814_v0 = vmul.f32 %v12562_v43, %v12352_v12  ;;  %v257_v43 = vmul.f32 %v12481_v39, %v12309_v9 }
 0x153   :  { %18050 = vst [vmem:[#allocation33_spill] sm:$0xff] %v12786_v48 }
 0x155   :  { %1260 = vperm.xlu1 %10826, %v325_v63   ;;  %v12803_v63 = vpop.permute.xlu0 %656 }
 0x156   :  { %848 = vperm.xlu0 %10835, %v12251_v3   ;;  %v12791_v31 = vpop.permute.xlu1 %1397  ;;  %18054 = vst [vmem:[#allocation37_spill] sm:$0xff] %v12803_v63  ;;  %v265_v63 = vmul.f32 %v12586_v54, %v12415_v19  ;;  %v263_v54 = vmul.f32 %v12581_v30, %v12383_v15 }
 0x157   :  { %18051 = vst [vmem:[#allocation34_spill] sm:$0xff] %v12791_v31 }
 0x159   :  { %1265 = vperm.xlu1 %10826, %v326_v17   ;;  %v12809_v36 = vpop.permute.xlu0 %658  ;;  %v255_v17 = vmul.f32 %v12478_v35, %v12279_v7 }
 0x15a   :  { %954 = vperm.xlu0 %10835, %v251_v10   ;;  %18056 = vst [vmem:[#allocation39_spill] sm:$0xff] %v12809_v36 }
 0x15b   :  { %v12799_v47 = vpop.permute.xlu1 %868 }
 0x15c   :  { %18053 = vst [vmem:[#allocation36_spill] sm:$0xff] %v12799_v47 }
 0x15d   :  { %1341 = vperm.xlu1 %10826, %v12352_v12  }
 0x15e   :  { %964 = vperm.xlu0 %10835, %v253_v37   ;;  %v12836_v37 = vmul.f32 %v12574_v57, %v12361_v13 }
 0x15f   :  { %v12806_v42 = vpop.permute.xlu1 %979 }
 0x160   :  { %18055 = vst [vmem:[#allocation38_spill] sm:$0xff] %v12806_v42 }
 0x161   :  { %1349 = vperm.xlu1 %10826, %v12370_v14  }
 0x162   :  { %860 = vperm.xlu0 %10835, %v12300_v8  }
 0x163   :  { %v12816_v34 = vpop.permute.xlu1 %644 }
 0x165   :  { %1421 = vperm.xlu1 %10826, %v12814_v0  }
 0x166   :  { %864 = vperm.xlu0 %10835, %v12309_v9   ;;  %v12820_v3 = vpop.permute.xlu0 %1101 }
 0x167   :  { %18057 = vst [vmem:[#allocation40_spill] sm:$0xff] %v12820_v3  ;;  %v12822_v40 = vpop.permute.xlu1 %989  ;;  %v261_v3 = vmul.f32 %v12529_v38, %v12361_v13 }
 0x168   :  { %18058 = vst [vmem:[#allocation41_spill] sm:$0xff] %v12822_v40 }
 0x169   :  { %10827 = vset.pattern.permute.xlu1 %v18026_v32 }
 0x16a   :  { %974 = vperm.xlu0 %10835, %v255_v17   ;;  %888 = vperm.xlu1 %10827, %v12383_v15   ;;  %v12846_v17 = vmul.f32 %v12572_v52, %v12370_v14 }
 0x16b   :  { %v12828_v8 = vpop.permute.xlu0 %1133 }
 0x16c   :  { %18059 = vst [vmem:[#allocation42_spill] sm:$0xff] %v12828_v8  ;;  %v12832_v10 = vpop.permute.xlu1 %1069 }
 0x16d   :  { %18060 = vst [vmem:[#allocation43_spill] sm:$0xff] %v12832_v10 }
 0x16e   :  { %984 = vperm.xlu0 %10835, %v257_v43   ;;  %10828 = vset.pattern.permute.xlu1 %v18019_v50  ;;  %v259_v43 = vmul.f32 %v12524_v33, %v12331_v11 }
 0x16f   :  { %v12839_v7 = vpop.permute.xlu0 %1141  ;;  %1425 = vperm.xlu1 %10828, %v12836_v37  }
 0x170   :  { %18061 = vst [vmem:[#allocation44_spill] sm:$0xff] %v12839_v7  ;;  %v12842_v35 = vpop.permute.xlu1 %1073 }
 0x171   :  { %18062 = vst [vmem:[#allocation45_spill] sm:$0xff] %v12842_v35 }
 0x172   :  { %876 = vperm.xlu0 %10835, %v12352_v12   ;;  %v264_v12 = vmul.f32 %v12613_v28, %v12404_v16 }
 0x173   :  { %v12849_v9 = vpop.permute.xlu0 %1149  ;;  %1429 = vperm.xlu1 %10828, %v12846_v17  }
 0x174   :  { %18063 = vst [vmem:[#allocation46_spill] sm:$0xff] %v12849_v9 }
 0x175   :  { %v12852_v39 = vpop.permute.xlu1 %1145 }
 0x176   :  { %18064 = vst [vmem:[#allocation47_spill] sm:$0xff] %v12852_v39  ;;  %880 = vperm.xlu0 %10835, %v12361_v13  }
 0x177   :  { %v12855_v57 = vpop.permute.xlu0 %1157  ;;  %10829 = vset.pattern.permute.xlu1 %v18026_v32 }
 0x178   :  { %18065 = vst [vmem:[#allocation48_spill] sm:$0xff] %v12855_v57  ;;  %900 = vperm.xlu1 %10829, %v12256_v4  }
 0x179   :  { %v12861_v14 = vpop.permute.xlu1 %646 }
 0x17a   :  { %994 = vperm.xlu0 %10835, %v259_v43  }
 0x17b   :  { %v12865_v52 = vpop.permute.xlu0 %1165 }
 0x17c   :  { %18066 = vst [vmem:[#allocation49_spill] sm:$0xff] %v12865_v52  ;;  %1019 = vperm.xlu1 %10829, %v264_v12  }
 0x17d   :  { %v12869_v36 = vpop.permute.xlu1 %1153 }
 0x17e   :  { %18067 = vst [vmem:[#allocation50_spill] sm:$0xff] %v12869_v36  ;;  %1004 = vperm.xlu0 %10835, %v261_v3   ;;  %v266_v3 = vmul.f32 %v12620_v29, %v12256_v4  ;;  %v18132_v36 = vld [vmem:[#allocation9_spill] sm:$0xff] }
 0x17f   :  { %v12873_v11 = vpop.permute.xlu0 %1173 }
 0x180   :  { %18068 = vst [vmem:[#allocation51_spill] sm:$0xff] %v12873_v11  ;;  %1024 = vperm.xlu1 %10829, %v265_v63  }
 0x182   :  { %892 = vperm.xlu0 %10835, %v12404_v16   ;;  %v12876_v33 = vpop.permute.xlu1 %1230 }
 0x183   :  { %18069 = vst [vmem:[#allocation52_spill] sm:$0xff] %v12876_v33  ;;  %v12878_v28 = vpop.permute.xlu0 %1177 }
 0x184   :  { %18070 = vst [vmem:[#allocation53_spill] sm:$0xff] %v12878_v28  ;;  %10830 = vset.pattern.permute.xlu1 %v18017_v6 }
 0x185   :  { %1097 = vperm.xlu1 %10830, %v12383_v15  }
 0x186   :  { %896 = vperm.xlu0 %10835, %v12415_v19   ;;  %v12883_v13 = vpop.permute.xlu1 %1240 }
 0x187   :  { %18071 = vst [vmem:[#allocation54_spill] sm:$0xff] %v12883_v13  ;;  %v12885_v38 = vpop.permute.xlu0 %1189 }
 0x188   :  { %18072 = vst [vmem:[#allocation55_spill] sm:$0xff] %v12885_v38 }
 0x189   :  { %1105 = vperm.xlu1 %10830, %v12415_v19  }
 0x18a   :  { %1014 = vperm.xlu0 %10835, %v263_v54   ;;  %v12890_v63 = vpop.permute.xlu1 %1245 }
 0x18b   :  { %18073 = vst [vmem:[#allocation56_spill] sm:$0xff] %v12890_v63 }
 0x18c   :  { %v12894_v6 = vpop.permute.xlu0 %1215 }
 0x18d   :  { %18074 = vst [vmem:[#allocation57_spill] sm:$0xff] %v12894_v6  ;;  %1109 = vperm.xlu1 %10830, %v12256_v4  }
 0x18e   :  { %1029 = vperm.xlu0 %10835, %v266_v3   ;;  %v12897_v43 = vpop.permute.xlu1 %1325  ;;  %v327_v3 = vmul.f32 %v12629_v60, %v12383_v15  ;;  %v12165_v15 = vld [vmem:[%s17654_s0 + $0x78] sm:$0xff] }
 0x18f   :  { %18075 = vst [vmem:[#allocation58_spill] sm:$0xff] %v12897_v43  ;;  %v330_v60 = vmul.f32 %v12165_v15, %v12603_v49 }
 0x190   :  { %v12899_v12 = vpop.permute.xlu0 %1305 }
 0x191   :  { %18076 = vst [vmem:[#allocation59_spill] sm:$0xff] %v12899_v12  ;;  %10832 = vset.pattern.permute.xlu1 %v18016_v23 }
 0x192   :  { %745 = vperm.xlu0 %10835, %v12667_v46   ;;  %1181 = vperm.xlu1 %10832, %v12404_v16   ;;  %v12904_v30 = vpop.permute.xlu1 %1333 }
 0x193   :  { %18077 = vst [vmem:[#allocation60_spill] sm:$0xff] %v12904_v30 }
 0x194   :  { %v12906_v54 = vpop.permute.xlu0 %1313 }
 0x195   :  { %18078 = vst [vmem:[#allocation61_spill] sm:$0xff] %v12906_v54 }
 0x196   :  { %760 = vperm.xlu0 %10835, %v12578_v58   ;;  %1185 = vperm.xlu1 %10832, %v12415_v19   ;;  %v12910_v4 = vpop.permute.xlu1 %1405  ;;  %v329_v58 = vmul.f32 %v12641_v53, %v12415_v19 }
 0x197   :  { %18079 = vst [vmem:[#allocation62_spill] sm:$0xff] %v12910_v4 }
 0x198   :  { %v12912_v29 = vpop.permute.xlu0 %1385 }
 0x199   :  { %18080 = vst [vmem:[#allocation63_spill] sm:$0xff] %v12912_v29 }
 0x19a   :  { %770 = vperm.xlu0 %10835, %v12658_v2   ;;  %10834 = vset.pattern.permute.xlu1 %v18019_v50 }
 0x19b   :  { %1270 = vperm.xlu1 %10834, %v327_v3   ;;  %v12918_v23 = vpop.permute.xlu1 %872 }
 0x19c   :  { %18081 = vst [vmem:[#allocation64_spill] sm:$0xff] %v12918_v23  ;;  %v12920_v46 = vpop.permute.xlu0 %1235 }
 0x19d   :  { %18082 = vst [vmem:[#allocation65_spill] sm:$0xff] %v12920_v46 }
 0x19e   :  { %780 = vperm.xlu0 %10835, %v12694_v21  }
 0x19f   :  { %1280 = vperm.xlu1 %10834, %v329_v58   ;;  %v12946_v58 = vmul.f32 %v12609_v1, %v12404_v16 }
 0x1a0   :  { %v12925_v38 = vpop.permute.xlu0 %1321  ;;  %v12927_v28 = vpop.permute.xlu1 %1409 }
 0x1a1   :  { %18083 = vst [vmem:[#allocation66_spill] sm:$0xff] %v12925_v38  ;;  %18084 = vst [vmem:[#allocation67_spill] sm:$0xff] %v12927_v28 }
 0x1a2   :  { %18090 = vst [vmem:[#allocation73_spill] sm:$0xff] %v12946_v58 }
 0x1a3   :  { %1285 = vperm.xlu1 %10834, %v330_v60   ;;  %v12954_v60 = vmul.f32 %v12165_v15, %v12617_v5  ;;  %v18100_v5 = vld [vmem:[#allocation2_spill] sm:$0xff] }
 0x1a4   :  { %v12933_v2 = vpop.permute.xlu0 %1329  ;;  %v12935_v3 = vpop.permute.xlu1 %1413 }
 0x1a5   :  { %18085 = vst [vmem:[#allocation68_spill] sm:$0xff] %v12933_v2  ;;  %18086 = vst [vmem:[#allocation69_spill] sm:$0xff] %v12935_v3 }
 0x1a6   :  { %18093 = vst [vmem:[#allocation76_spill] sm:$0xff] %v12954_v60 }
 0x1a7   :  { %1357 = vperm.xlu1 %10834, %v12404_v16  }
 0x1a8   :  { %v12938_v19 = vpop.permute.xlu0 %1401 }
 0x1a9   :  { %18087 = vst [vmem:[#allocation70_spill] sm:$0xff] %v12938_v19  ;;  %v12940_v53 = vpop.permute.xlu1 %884 }
 0x1aa   :  { %18088 = vst [vmem:[#allocation71_spill] sm:$0xff] %v12940_v53 }
 0x1ab   :  { %1365 = vperm.xlu1 %10834, %v12165_v15  }
 0x1ac   :  { %v12942_v21 = vpop.permute.xlu0 %1255 }
 0x1ad   :  { %18089 = vst [vmem:[#allocation72_spill] sm:$0xff] %v12942_v21  ;;  %v12948_v11 = vpop.permute.xlu1 %999 }
 0x1ae   :  { %18091 = vst [vmem:[#allocation74_spill] sm:$0xff] %v12948_v11 }
 0x1af   :  { %1437 = vperm.xlu1 %10834, %v12946_v58  }
 0x1b0   :  { %v12951_v49 = vpop.permute.xlu0 %1337 }
 0x1b1   :  { %18092 = vst [vmem:[#allocation75_spill] sm:$0xff] %v12951_v49  ;;  %v12956_v52 = vpop.permute.xlu1 %652 }
 0x1b2   :  { %18094 = vst [vmem:[#allocation77_spill] sm:$0xff] %v12956_v52 }
 0x1b3   :  { %1445 = vperm.xlu1 %10834, %v12954_v60   ;;  %v18113_v60 = vld [vmem:[#allocation8_spill] sm:$0xff] }
 0x1b4   :  { %v12959_v22 = vpop.permute.xlu0 %1345 }
 0x1b5   :  { %18095 = vst [vmem:[#allocation78_spill] sm:$0xff] %v12959_v22  ;;  %v12961_v21 = vpop.permute.xlu1 %1009 }
 0x1b6   :  { %18096 = vst [vmem:[#allocation79_spill] sm:$0xff] %v12961_v21 }
 0x1b7   :  { %10836 = vset.pattern.permute.xlu1 %v18026_v32  ;;  %v18105_v32 = vld [vmem:[#allocation12_spill] sm:$0xff] }
 0x1b8   :  { %v12964_v16 = vpop.permute.xlu0 %1417  ;;  %750 = vperm.xlu1 %10836, %v12547_v59  }
 0x1b9   :  { %18097 = vst [vmem:[#allocation80_spill] sm:$0xff] %v12964_v16 }
 0x1ba   :  { %v12967_v1 = vpop.permute.xlu1 %1085 }
 0x1bb   :  { %18098 = vst [vmem:[#allocation81_spill] sm:$0xff] %v12967_v1 }
 0x1bc   :  { %v12969_v49 = vpop.permute.xlu0 %1275  ;;  %755 = vperm.xlu1 %10836, %v18100_v5   ;;  %v12166_v5 = vld [vmem:[%s17654_s0] sm:$0xff] }
 0x1bd   :  { %18099 = vst [vmem:[#allocation82_spill] sm:$0xff] %v12969_v49  ;;  %v18108_v49 = vld [vmem:[#allocation4_spill] sm:$0xff] }
 0x1be   :  { %v12972_v50 = vpop.permute.xlu1 %1089 }
 0x1bf   :  { %18101 = vst [vmem:[#allocation2_spill] sm:$0xff] %v12972_v50  ;;  %v678_v50 = vadd.f32 %v12166_v5, %v18108_v49 }
 0x1c0   :  { %v12974_v11 = vpop.permute.xlu0 %1353  ;;  %765 = vperm.xlu1 %10836, %v12702_v45  }
 0x1c1   :  { %18102 = vst [vmem:[#allocation83_spill] sm:$0xff] %v12974_v11  ;;  %v18110_v11 = vld [vmem:[#allocation5_spill] sm:$0xff] }
 0x1c2   :  { %v693_v45 = vadd.f32 %v12165_v15, %v18110_v11  ;;  %v12169_v11 = vld [vmem:[%s17654_s0 + $0x10] sm:$0xff]  ;;  %v18114_v15 = vld [vmem:[#allocation13_spill] sm:$0xff] }
 0x1c3   :  { %v12977_v22 = vpop.permute.xlu1 %1161  ;;  %v680_v5 = vadd.f32 %v12169_v11, %v18114_v15 }
 0x1c4   :  { %18103 = vst [vmem:[#allocation84_spill] sm:$0xff] %v12977_v22  ;;  %v12979_v21 = vpop.permute.xlu0 %1361  ;;  %775 = vperm.xlu1 %10836, %v18105_v32   ;;  %v12995_v22 = vmul.f32 0.18215, %v678_v50  ;;  %v12167_v32 = vld [vmem:[%s17654_s0 + $0x8] sm:$0xff]  ;;  %v13009_v50 = vmul.f32 0.18215, %v693_v45 }
 0x1c5   :  { %18104 = vst [vmem:[#allocation85_spill] sm:$0xff] %v12979_v21  ;;  %v18112_v21 = vld [vmem:[#allocation10_spill] sm:$0xff]  ;;  %v13023_v3 = vmul.f32 0.18215, %v680_v5 }
 0x1c6   :  { %18115 = vst [vmem:[#allocation10_spill] sm:$0xff] %v13009_v50  ;;  %v18127_v43 = vrot.slane %v13009_v50, 7 }
 0x1c7   :  { %v12982_v16 = vpop.permute.xlu1 %654  ;;  %v712_v30 = vrot.slane %v13023_v3, 7 }
 0x1c8   :  { %18106 = vst [vmem:[#allocation12_spill] sm:$0xff] %v12982_v16  ;;  %v12984_v59 = vpop.permute.xlu0 %1433  ;;  %v12168_v16 = vld [vmem:[%s17654_s0 + $0x18] sm:$0xff] }
 0x1c9   :  { %18107 = vst [vmem:[#allocation86_spill] sm:$0xff] %v12984_v59  ;;  %v679_v59 = vadd.f32 %v12167_v32, %v18112_v21  ;;  %v681_v49 = vadd.f32 %v12168_v16, %v18113_v60  ;;  %v18118_v32 = vld [vmem:[#allocation3_spill] sm:$0xff] }
 0x1ca   :  { %v904_v23 = vmul.f32 %v18118_v32, %v12995_v22  ;;  %v710_v32 = vrot.slane %v12995_v22, 7 }
 0x1cb   :  { %v12990_v1 = vpop.permute.xlu1 %1169  ;;  %v13019_v60 = vmul.f32 0.18215, %v679_v59  ;;  %v13021_v16 = vmul.f32 0.18215, %v681_v49  ;;  %v18121_v59 = vld [vmem:[#allocation6_spill] sm:$0xff] }
 0x1cc   :  { %18109 = vst [vmem:[#allocation4_spill] sm:$0xff] %v12990_v1  ;;  %v12993_v53 = vpop.permute.xlu0 %1441  ;;  %v906_v49 = vmul.f32 %v18121_v59, %v13023_v3  ;;  %v921_v59 = vrot.slane %v13023_v3, 1 }
 0x1cd   :  { %18111 = vst [vmem:[#allocation5_spill] sm:$0xff] %v12993_v53  ;;  %v17712_v53 = vlaneseq  ;;  %v711_v52 = vrot.slane %v13019_v60, 7  ;;  %v713_v2 = vrot.slane %v13021_v16, 7 }
 0x1cf   :  { %v13026_v45 = vshrl.u32 %v17712_v53, 7  ;;  %v920_v53 = vrot.slane %v13019_v60, 1 }
 0x1d0   :  { %v13011_v1 = vpop.permute.xlu1 %1250 }
 0x1d1   :  { %18116 = vst [vmem:[#allocation8_spill] sm:$0xff] %v13011_v1  ;;  %v13013_v28 = vpop.permute.xlu0 %840  ;;  %v919_v1 = vrot.slane %v12995_v22, 1  ;;  %vm17848_vm0 = vcmp.lt.s32.totalorder %v13026_v45, 7  ;;  %vm17841_vm1 = vcmp.lt.s32.totalorder %v13026_v45, 1 }
 0x1d2   :  { %18117 = vst [vmem:[#allocation13_spill] sm:$0xff] %v13013_v28  ;;  %v903_v21 = vmul.f32 %v13013_v28, %v13009_v50  ;;  %v13084_v13 = vsel %vm17841_vm1, %v18127_v43, %v710_v32  ;;  %v949_v63 = vsel %vm17848_vm0, %v920_v53, %v921_v59  ;;  %v18133_v43 = vld [vmem:[#allocation15_spill] sm:$0xff] }
 0x1d3   :  { %18128 = vst [vmem:[#allocation92_spill] sm:$0xff] %v13084_v13 }
 0x1d4   :  { %v13028_v11 = vpop.permute.xlu1 %1260  ;;  %v10837_v15 = vpack.i.bf16 %v904_v23, %v903_v21  ;;  %v922_v21 = vrot.slane %v13021_v16, 1 }
 0x1d5   :  { %18119 = vst [vmem:[#allocation87_spill] sm:$0xff] %v13028_v11  ;;  %v13032_v28 = vpop.permute.xlu0 %848 }
 0x1d6   :  { %18120 = vst [vmem:[#allocation88_spill] sm:$0xff] %v13032_v28  ;;  %v905_v5 = vmul.f32 %v13032_v28, %v13019_v60  ;;  %10838 = vrot.lane.b32.xlu1 %v10837_v15, %s12189_s9  ;;  %v13050_v28 = vsel %vm17848_vm0, %v919_v1, %v920_v53  ;;  %v18123_v15 = vrot.slane %v13009_v50, 1  ;;  %v13108_v53 = vsel %vm17841_vm1, %v712_v30, %v713_v2 }
 0x1d8   :  { %v13045_v11 = vpop.permute.xlu1 %1265  ;;  %v10842_v58 = vpack.i.bf16 %v906_v49, %v905_v5  ;;  %v13057_v23 = vsel %vm17848_vm0, %v18123_v15, %v919_v1  ;;  %v18126_v49 = vld [vmem:[#allocation7_spill] sm:$0xff]  ;;  %v13074_v1 = vsel %vm17848_vm0, %v921_v59, %v922_v21  ;;  %v12170_v15 = vld [vmem:[%s17654_s0 + $0x20] sm:$0xff] }
 0x1d9   :  { %18122 = vst [vmem:[#allocation89_spill] sm:$0xff] %v13045_v11  ;;  %18124 = vst [vmem:[#allocation90_spill] sm:$0xff] %v13057_v23  ;;  %v13059_v4 = vpop.permute.xlu0 %954  ;;  %v1033_v5 = vmul.f32 %v18126_v49, %v13050_v28  ;;  %v13066_v11 = vsel %vm17841_vm1, %v710_v32, %v711_v52  ;;  %v682_v49 = vadd.f32 %v12170_v15, %v12712_v26  ;;  %v18134_v59 = vld [vmem:[#allocation14_spill] sm:$0xff] }
 0x1da   :  { %18125 = vst [vmem:[#allocation91_spill] sm:$0xff] %v13059_v4  ;;  %v1032_v19 = vmul.f32 %v13059_v4, %v13057_v23  ;;  %10843 = vrot.lane.b32.xlu0 %v10842_v58, %s12189_s9  ;;  %v18129_v58 = vld [vmem:[#allocation11_spill] sm:$0xff]  ;;  %v1035_v26 = vmul.f32 %v18132_v36, %v13074_v1  ;;  %v1112_v32 = vmul.f32 %v18133_v43, %v13084_v13 }
 0x1db   :  { %v1113_v4 = vmul.f32 %v18129_v58, %v13066_v11  ;;  %v13102_v58 = vsel %vm17841_vm1, %v711_v52, %v712_v30  ;;  %v18136_v52 = vld [vmem:[#allocation17_spill] sm:$0xff]  ;;  %v1193_v30 = vmul.f32 %v12828_v8, %v949_v63 }
 0x1dc   :  { %v13088_v23 = vpop.permute.xlu1 %1341  ;;  %v10847_v38 = vpack.i.bf16 %v1033_v5, %v1032_v19  ;;  %v13104_v19 = vmul.f32 0.18215, %v682_v49  ;;  %v1114_v5 = vmul.f32 %v18134_v59, %v13102_v58  ;;  %v1115_v49 = vmul.f32 %v18136_v52, %v13108_v53 }
 0x1dd   :  { %18130 = vst [vmem:[#allocation93_spill] sm:$0xff] %v13088_v23  ;;  %v13092_v33 = vpop.permute.xlu0 %964  ;;  %v10867_v59 = vpack.i.bf16 %v13019_v60, %v12995_v22 }
 0x1de   :  { %18131 = vst [vmem:[#allocation94_spill] sm:$0xff] %v13092_v33  ;;  %v1034_v15 = vmul.f32 %v13092_v33, %v949_v63  ;;  %10848 = vrot.lane.b32.xlu1 %v10847_v38, %s12190_s12  ;;  %v10857_v38 = vpack.i.bf16 %v1113_v4, %v1112_v32  ;;  %v17738_v43 = vrot.slane %v13104_v19, 1  ;;  %v10862_v50 = vpack.i.bf16 %v1115_v49, %v1114_v5  ;;  %v18138_v4 = vld [vmem:[#allocation16_spill] sm:$0xff] }
 0x1df   :  { %v1289_v5 = vmul.f32 %v12894_v6, %v13102_v58  ;;  %v18191_v6 = vld [vmem:[#allocation71_spill] sm:$0xff] }
 0x1e0   :  { %v13112_v36 = vpop.permute.xlu1 %1349  ;;  %v10852_v33 = vpack.i.bf16 %v1035_v26, %v1034_v15  ;;  %v1192_v26 = vmul.f32 %v18138_v4, %v13050_v28  ;;  %v13133_v15 = vsel %vm17848_vm0, %v922_v21, %v17738_v43  ;;  %v18140_v21 = vrot.slane %v13104_v19, 7 }
 0x1e1   :  { %18135 = vst [vmem:[#allocation95_spill] sm:$0xff] %v13112_v36  ;;  %v1195_v32 = vmul.f32 %v12839_v7, %v13133_v15 }
 0x1e2   :  { %10853 = vrot.lane.b32.xlu0 %v10852_v33, %s12190_s12  ;;  %10858 = vrot.lane.b32.xlu1 %v10857_v38, %s12191_s13  ;;  %v10877_v38 = vpack.i.bf16 %v1193_v30, %v1192_v26  ;;  %v1288_v33 = vmul.f32 %v12727_v25, %v13066_v11  ;;  %v13153_v43 = vsel %vm17841_vm1, %v713_v2, %v18140_v21  ;;  %v13167_v21 = vpop.permute.xlu0 %860 }
 0x1e3   :  { %v1291_v30 = vmul.f32 %v12745_v56, %v13153_v43  ;;  %v1368_v26 = vmul.f32 %v12899_v12, %v13019_v60  ;;  %18142 = vst [vmem:[#allocation99_spill] sm:$0xff] %v13167_v21  ;;  %v12171_v60 = vld [vmem:[%s17654_s0 + $0x28] sm:$0xff] }
 0x1e4   :  { %v13120_v13 = vpop.permute.xlu1 %1421 }
 0x1e5   :  { %18137 = vst [vmem:[#allocation96_spill] sm:$0xff] %v13120_v13 }
 0x1e6   :  { %10863 = vrot.lane.b32.xlu0 %v10862_v50, %s12191_s13  ;;  %10868 = vrot.lane.b32.xlu1 %v10867_v59, %s12192_s14  ;;  %v10872_v50 = vpack.i.bf16 %v13021_v16, %v13023_v3  ;;  %v1194_v59 = vmul.f32 %v12718_v27, %v13074_v1  ;;  %v10887_v27 = vpack.i.bf16 %v1289_v5, %v1288_v33 }
 0x1e7   :  { %v683_v33 = vadd.f32 %v12171_v60, %v12722_v55  ;;  %v1448_v5 = vmul.f32 %v12912_v29, %v949_v63  ;;  %v13186_v55 = vpop.permute.xlu0 %864 }
 0x1e8   :  { %v10882_v7 = vpack.i.bf16 %v1195_v32, %v1194_v59  ;;  %v1370_v32 = vmul.f32 %v12906_v54, %v13021_v16  ;;  %18144 = vst [vmem:[#allocation101_spill] sm:$0xff] %v13186_v55 }
 0x1e9   :  { %v13141_v49 = vpop.permute.xlu1 %888  ;;  %v13184_v59 = vmul.f32 0.18215, %v683_v33 }
 0x1ea   :  { %18139 = vst [vmem:[#allocation97_spill] sm:$0xff] %v13141_v49  ;;  %10873 = vrot.lane.b32.xlu0 %v10872_v50, %s12192_s14  ;;  %10878 = vrot.lane.b32.xlu1 %v10877_v38, %s12193_s15  ;;  %v1290_v50 = vmul.f32 %v12736_v62, %v13108_v53  ;;  %v1369_v38 = vmul.f32 %v12748_v44, %v13023_v3  ;;  %v18215_v44 = vld [vmem:[#allocation4_spill] sm:$0xff] }
 0x1eb   :  { %v715_v33 = vrot.slane %v13184_v59, 7 }
 0x1ec   :  { %v10892_v56 = vpack.i.bf16 %v1291_v30, %v1290_v50  ;;  %v10897_v52 = vpack.i.bf16 %v1369_v38, %v1368_v26  ;;  %v12173_v30 = vld [vmem:[%s17654_s0 + $0x38] sm:$0xff]  ;;  %v12174_v50 = vld [vmem:[%s17654_s0 + $0x40] sm:$0xff] }
 0x1ee   :  { %10883 = vrot.lane.b32.xlu0 %v10882_v7, %s12193_s15  ;;  %10888 = vrot.lane.b32.xlu1 %v10887_v27, %s12194_s16  ;;  %v13165_v2 = vpop.permute.xlu1 %1425  ;;  %v12172_v27 = vld [vmem:[%s17654_s0 + $0x30] sm:$0xff] }
 0x1ef   :  { %18141 = vst [vmem:[#allocation98_spill] sm:$0xff] %v13165_v2  ;;  %v684_v3 = vadd.f32 %v12172_v27, %v12734_v51  ;;  %v685_v51 = vadd.f32 %v12173_v30, %v12816_v34  ;;  %v924_v34 = vrot.slane %v13184_v59, 1  ;;  %v908_v30 = vmul.f32 %v13167_v21, %v13104_v19 }
 0x1f1   :  { %v13198_v63 = vmul.f32 0.18215, %v684_v3  ;;  %v13208_v27 = vmul.f32 0.18215, %v685_v51  ;;  %v13217_v3 = vpop.permute.xlu0 %974  ;;  %v907_v51 = vmul.f32 %v12775_v20, %v13021_v16 }
 0x1f2   :  { %10893 = vrot.lane.b32.xlu0 %v10892_v56, %s12194_s16  ;;  %10898 = vrot.lane.b32.xlu1 %v10897_v52, %s12195_s21  ;;  %v13175_v7 = vpop.permute.xlu1 %1429  ;;  %v1371_v56 = vmul.f32 %v12755_v41, %v13104_v19  ;;  %v1449_v52 = vmul.f32 %v12766_v18, %v13074_v1  ;;  %v686_v1 = vadd.f32 %v12174_v50, %v12861_v14 }
 0x1f3   :  { %18143 = vst [vmem:[#allocation100_spill] sm:$0xff] %v13175_v7  ;;  %18147 = vst [vmem:[#allocation103_spill] sm:$0xff] %v13217_v3  ;;  %v1450_v50 = vmul.f32 %v12786_v48, %v13133_v15  ;;  %v1036_v16 = vmul.f32 %v13217_v3, %v13133_v15  ;;  %v10912_v62 = vpack.i.bf16 %v908_v30, %v907_v51  ;;  %v716_v20 = vrot.slane %v13198_v63, 7  ;;  %v18187_v3 = vld [vmem:[#allocation76_spill] sm:$0xff]  ;;  %v18192_v48 = vld [vmem:[#allocation74_spill] sm:$0xff] }
 0x1f4   :  { %v10902_v38 = vpack.i.bf16 %v1371_v56, %v1370_v32  ;;  %v10907_v60 = vpack.i.bf16 %v1449_v52, %v1448_v5  ;;  %v11878_v5 = vld [vmem:[%s17655_s2 + $0x120] sm:$0xff]   ;;  %v13225_v52 = vmul.f32 0.18215, %v686_v1  ;;  %v11879_v1 = vld [vmem:[%s17655_s2 + $0x128] sm:$0xff]  }
 0x1f5   :  { %9924 = vmatprep.subr.bf16.mxu0 %v11878_v5 }
 0x1f6   :  { %785 = vperm.xlu0 %10835, %v12732_v24   ;;  %790 = vperm.xlu1 %10836, %v12814_v0   ;;  %v925_v24 = vrot.slane %v13198_v63, 1  ;;  %v18146_v0 = vrot.slane %v13104_v19, 1 }
 0x1f7   :  { %v13200_v26 = vpop.permute.xlu1 %900  ;;  %9925 = vmatpush3.bf16.msra.mxu0 %v11878_v5  ;;  %v910_v5 = vmul.f32 %v12799_v47, %v13198_v63 }
 0x1f8   :  { %18145 = vst [vmem:[#allocation102_spill] sm:$0xff] %v13200_v26  ;;  %v946_v14 = vsel %vm17848_vm0, %v18146_v0, %v924_v34  ;;  %v909_v0 = vmul.f32 %v13186_v55, %v13184_v59  ;;  %9926 = vmatprep.subr.bf16.mxu0 %v11879_v1  ;;  %v18151_v55 = vrot.slane %v13104_v19, 7 }
 0x1f9   :  { %v1451_v56 = vmul.f32 %v12791_v31, %v946_v14  ;;  %v1037_v41 = vmul.f32 %v12806_v42, %v946_v14  ;;  %v1196_v42 = vmul.f32 %v12852_v39, %v946_v14  ;;  %v18167_v39 = vld [vmem:[#allocation58_spill] sm:$0xff] }
 0x1fa   :  { %10903 = vrot.lane.b32.xlu0 %v10902_v38, %s12195_s21  ;;  %10908 = vrot.lane.b32.xlu1 %v10907_v60, %s12196_s18  ;;  %v926_v38 = vrot.slane %v13208_v27, 1  ;;  %v13259_v15 = vsel %vm17841_vm1, %v18151_v55, %v715_v33 }
 0x1fb   :  { %v13219_v32 = vpop.permute.xlu1 %1019  ;;  %v10917_v21 = vpack.i.bf16 %v1451_v56, %v1450_v50  ;;  %v717_v56 = vrot.slane %v13208_v27, 7  ;;  %v1117_v51 = vmul.f32 %v12832_v10, %v13259_v15  ;;  %9927 = vmatpush3.bf16.msra.mxu0 %v11879_v1  ;;  %v10927_v50 = vpack.i.bf16 %v1037_v41, %v1036_v16 }
 0x1fc   :  { %18148 = vst [vmem:[#allocation104_spill] sm:$0xff] %v13219_v32  ;;  %v13269_v30 = vsel %vm17848_vm0, %v925_v24, %v926_v38  ;;  %v1116_v1 = vmul.f32 %v12743_v61, %v13153_v43 }
 0x1fd   :  { %v13292_v41 = vsel %vm17841_vm1, %v716_v20, %v717_v56 }
 0x1fe   :  { %795 = vperm.xlu0 %10835, %v12836_v37   ;;  %800 = vperm.xlu1 %10836, %v12846_v17   ;;  %v13247_v37 = vsel %vm17848_vm0, %v924_v34, %v925_v24  ;;  %v13249_v17 = vpop.permute.xlu0 %984  ;;  %v11880_v34 = vld [vmem:[%s17655_s2 + $0x130] ss:$0 sps:$4 sm:$0x33]   ;;  %v1039_v24 = vmul.f32 %v12822_v40, %v13269_v30 }
 0x1ff   :  { %v13239_v60 = vpop.permute.xlu1 %1024  ;;  %18150 = vst [vmem:[#allocation106_spill] sm:$0xff] %v13249_v17  ;;  %10786 = vmatprep.subr.msk.bf16.mxu0 %vm17851_vm2, %v11880_v34  ;;  %v2166_v47 = vsel %vm17851_vm2, %v11880_v34, 0 }
 0x200   :  { %18149 = vst [vmem:[#allocation105_spill] sm:$0xff] %v13239_v60  ;;  %9929 = vmatpush3.bf16.msra.mxu0 %v2166_v47  ;;  %v10947_v47 = vpack.i.bf16 %v13184_v59, %v13104_v19 }
 0x202   :  { %10913 = vrot.lane.b32.xlu0 %v10912_v62, %s12189_s9  ;;  %10918 = vrot.lane.b32.xlu1 %v10917_v21, %s12196_s18  ;;  %v1038_v62 = vmul.f32 %v13249_v17, %v13247_v37  ;;  %v10922_v21 = vpack.i.bf16 %v910_v5, %v909_v0  ;;  %v13288_v0 = vsel %vm17841_vm1, %v715_v33, %v716_v20  ;;  %v13318_v14 = vpop.permute.xlu0 %876 }
 0x203   :  { %v1118_v16 = vmul.f32 %v12842_v35, %v13288_v0  ;;  %v18156_v35 = vrot.slane %v13225_v52, 1  ;;  %18157 = vst [vmem:[#allocation110_spill] sm:$0xff] %v13318_v14  ;;  %v1293_v19 = vmul.f32 %v12920_v46, %v13288_v0 }
 0x204   :  { %v13275_v55 = vpop.permute.xlu1 %1097  ;;  %v10932_v34 = vpack.i.bf16 %v1039_v24, %v1038_v62  ;;  %v1197_v62 = vmul.f32 %v12849_v9, %v13247_v37  ;;  %v17773_v24 = vrot.slane %v13225_v52, 7  ;;  %v1373_v9 = vmul.f32 %v18167_v39, %v13198_v63 }
 0x205   :  { %18152 = vst [vmem:[#allocation107_spill] sm:$0xff] %v13275_v55 }
 0x206   :  { %10923 = vrot.lane.b32.xlu0 %v10922_v21, %s12189_s9  ;;  %10928 = vrot.lane.b32.xlu1 %v10927_v50, %s12190_s12  ;;  %v10937_v21 = vpack.i.bf16 %v1117_v51, %v1116_v1  ;;  %v18154_v50 = vld [vmem:[#allocation24_spill] sm:$0xff]  ;;  %v13311_v51 = vsel %vm17848_vm0, %v926_v38, %v18156_v35  ;;  %v10952_v1 = vpack.i.bf16 %v13208_v27, %v13198_v63  ;;  %v13344_v46 = vpop.permute.xlu0 %880 }
 0x207   :  { %v1119_v33 = vmul.f32 %v18154_v50, %v13292_v41  ;;  %v1199_v35 = vmul.f32 %v12855_v57, %v13311_v51  ;;  %v18163_v50 = vld [vmem:[#allocation66_spill] sm:$0xff]  ;;  %18164 = vst [vmem:[#allocation113_spill] sm:$0xff] %v13344_v46  ;;  %v18171_v63 = vld [vmem:[#allocation68_spill] sm:$0xff] }
 0x208   :  { %v13296_v5 = vpop.permute.xlu1 %1105  ;;  %v1372_v17 = vmul.f32 %v18163_v50, %v13184_v59  ;;  %v12175_v59 = vld [vmem:[%s17654_s0 + $0x48] sm:$0xff] }
 0x209   :  { %18153 = vst [vmem:[#allocation108_spill] sm:$0xff] %v13296_v5  ;;  %v10942_v20 = vpack.i.bf16 %v1119_v33, %v1118_v16  ;;  %v10957_v16 = vpack.i.bf16 %v1197_v62, %v1196_v42  ;;  %v18160_v33 = vld [vmem:[#allocation52_spill] sm:$0xff]  ;;  %v13338_v42 = vsel %vm17841_vm1, %v717_v56, %v17773_v24 }
 0x20a   :  { %10933 = vrot.lane.b32.xlu0 %v10932_v34, %s12190_s12  ;;  %10938 = vrot.lane.b32.xlu1 %v10937_v21, %s12191_s13  ;;  %v18159_v34 = vld [vmem:[#allocation50_spill] sm:$0xff]  ;;  %18161 = vst [vmem:[#allocation112_spill] sm:$0xff] %v13338_v42  ;;  %v10977_v24 = vpack.i.bf16 %v1373_v9, %v1372_v17 }
 0x20b   :  { %v1198_v21 = vmul.f32 %v18159_v34, %v13269_v30 }
 0x20c   :  { %v13303_v40 = vpop.permute.xlu1 %1109 }
 0x20d   :  { %18155 = vst [vmem:[#allocation109_spill] sm:$0xff] %v13303_v40  ;;  %v10962_v34 = vpack.i.bf16 %v1199_v35, %v1198_v21 }
 0x20e   :  { %10943 = vrot.lane.b32.xlu0 %v10942_v20, %s12191_s13  ;;  %10948 = vrot.lane.b32.xlu1 %v10947_v47, %s12192_s14  ;;  %v1292_v20 = vmul.f32 %v18160_v33, %v13259_v15  ;;  %v18162_v47 = vld [vmem:[#allocation56_spill] sm:$0xff] }
 0x20f   :  { %v1295_v62 = vmul.f32 %v18162_v47, %v13338_v42  ;;  %v18178_v47 = vld [vmem:[#allocation31_spill] sm:$0xff] }
 0x210   :  { %v10967_v57 = vpack.i.bf16 %v1293_v19, %v1292_v20  ;;  %v18168_v19 = vld [vmem:[#allocation27_spill] sm:$0xff]  ;;  %v13362_v20 = vpop.permute.xlu0 %994 }
 0x211   :  { %v13326_v38 = vpop.permute.xlu1 %1181  ;;  %v687_v35 = vadd.f32 %v12175_v59, %v18168_v19  ;;  %18170 = vst [vmem:[#allocation115_spill] sm:$0xff] %v13362_v20  ;;  %v18174_v59 = vld [vmem:[#allocation62_spill] sm:$0xff] }
 0x212   :  { %18158 = vst [vmem:[#allocation111_spill] sm:$0xff] %v13326_v38  ;;  %10953 = vrot.lane.b32.xlu0 %v10952_v1, %s12192_s14  ;;  %10958 = vrot.lane.b32.xlu1 %v10957_v16, %s12193_s15  ;;  %v18166_v1 = vld [vmem:[#allocation54_spill] sm:$0xff] }
 0x213   :  { %v1294_v16 = vmul.f32 %v18166_v1, %v13292_v41  ;;  %v13368_v17 = vmul.f32 0.18215, %v687_v35  ;;  %v18175_v19 = vld [vmem:[#allocation26_spill] sm:$0xff]  ;;  %v12177_v35 = vld [vmem:[%s17654_s0 + $0x58] sm:$0xff] }
 0x214   :  { %v13387_v10 = vpop.permute.xlu0 %1004 }
 0x215   :  { %v13346_v33 = vpop.permute.xlu1 %1185  ;;  %v10972_v56 = vpack.i.bf16 %v1295_v62, %v1294_v16  ;;  %v18173_v62 = vld [vmem:[#allocation60_spill] sm:$0xff] }
 0x216   :  { %18165 = vst [vmem:[#allocation114_spill] sm:$0xff] %v13346_v33  ;;  %10963 = vrot.lane.b32.xlu0 %v10962_v34, %s12193_s15  ;;  %10968 = vrot.lane.b32.xlu1 %v10967_v57, %s12194_s16  ;;  %v1374_v34 = vmul.f32 %v18171_v63, %v13208_v27  ;;  %v18172_v57 = vld [vmem:[#allocation70_spill] sm:$0xff]  ;;  %v1375_v16 = vmul.f32 %v18173_v62, %v13225_v52  ;;  %v12176_v63 = vld [vmem:[%s17654_s0 + $0x50] sm:$0xff]  ;;  %v18179_v62 = vld [vmem:[#allocation77_spill] sm:$0xff] }
 0x217   :  { %v1452_v9 = vmul.f32 %v18172_v57, %v13247_v37  ;;  %v688_v37 = vadd.f32 %v12176_v63, %v18178_v47  ;;  %v689_v50 = vadd.f32 %v12177_v35, %v18179_v62  ;;  %v18182_v47 = vrot.slane %v13225_v52, 1  ;;  %v18185_v35 = vld [vmem:[#allocation67_spill] sm:$0xff] }
 0x218   :  { %v10982_v39 = vpack.i.bf16 %v1375_v16, %v1374_v34  ;;  %v18183_v34 = vld [vmem:[#allocation69_spill] sm:$0xff]  ;;  %v912_v16 = vmul.f32 %v13318_v14, %v13225_v52  ;;  %v913_v14 = vmul.f32 %v13344_v46, %v13368_v17 }
 0x219   :  { %v13393_v61 = vmul.f32 0.18215, %v688_v37  ;;  %v13399_v62 = vmul.f32 0.18215, %v689_v50  ;;  %v18186_v37 = vld [vmem:[#allocation29_spill] sm:$0xff] }
 0x21a   :  { %10973 = vrot.lane.b32.xlu0 %v10972_v56, %s12194_s16  ;;  %10978 = vrot.lane.b32.xlu1 %v10977_v24, %s12195_s21  ;;  %v13360_v21 = vpop.permute.xlu1 %1270  ;;  %v1453_v56 = vmul.f32 %v18174_v59, %v13269_v30  ;;  %v18176_v24 = vld [vmem:[#allocation73_spill] sm:$0xff]  ;;  %v18190_v59 = vld [vmem:[#allocation12_spill] sm:$0xff] }
 0x21b   :  { %18169 = vst [vmem:[#allocation27_spill] sm:$0xff] %v13360_v21  ;;  %18180 = vst [vmem:[#allocation73_spill] sm:$0xff] %v13387_v10  ;;  %v929_v50 = vrot.slane %v13393_v61, 1  ;;  %v720_v25 = vrot.slane %v13393_v61, 7  ;;  %v914_v31 = vmul.f32 %v18191_v6, %v13393_v61 }
 0x21c   :  { %v10987_v30 = vpack.i.bf16 %v1453_v56, %v1452_v9 }
 0x21d   :  { %v11002_v6 = vpack.i.bf16 %v914_v31, %v913_v14 }
 0x21e   :  { %805 = vperm.xlu0 %10835, %v18175_v19   ;;  %810 = vperm.xlu1 %10836, %v18176_v24   ;;  %v13376_v1 = vpop.permute.xlu1 %1280  ;;  %v928_v19 = vrot.slane %v13368_v17, 1 }
 0x21f   :  { %18177 = vst [vmem:[#allocation26_spill] sm:$0xff] %v13376_v1 }
 0x220   :  { %v942_v63 = vsel %vm17848_vm0, %v18182_v47, %v928_v19  ;;  %v930_v47 = vrot.slane %v13399_v62, 1 }
 0x221   :  { %v1455_v9 = vmul.f32 %v18183_v34, %v942_v63  ;;  %v13414_v34 = vpop.permute.xlu0 %892  ;;  %v1041_v46 = vmul.f32 %v18192_v48, %v942_v63 }
 0x222   :  { %10983 = vrot.lane.b32.xlu0 %v10982_v39, %s12195_s21  ;;  %10988 = vrot.lane.b32.xlu1 %v10987_v30, %s12196_s18  ;;  %v13391_v24 = vpop.permute.xlu1 %1285  ;;  %v18184_v39 = vld [vmem:[#allocation64_spill] sm:$0xff]  ;;  %v1454_v30 = vmul.f32 %v18185_v35, %v13311_v51  ;;  %18189 = vst [vmem:[#allocation29_spill] sm:$0xff] %v13414_v34 }
 0x223   :  { %18181 = vst [vmem:[#allocation31_spill] sm:$0xff] %v13391_v24  ;;  %v911_v56 = vmul.f32 %v18184_v39, %v13208_v27  ;;  %v1040_v27 = vmul.f32 %v13362_v20, %v13311_v51 }
 0x224   :  { %v10997_v35 = vpack.i.bf16 %v1455_v9, %v1454_v30  ;;  %v13435_v9 = vsel %vm17848_vm0, %v928_v19, %v929_v50 }
 0x225   :  { %v10992_v39 = vpack.i.bf16 %v912_v16, %v911_v56  ;;  %v721_v16 = vrot.slane %v13399_v62, 7  ;;  %v18194_v56 = vrot.slane %v13225_v52, 7  ;;  %v1042_v19 = vmul.f32 %v13387_v10, %v13435_v9  ;;  %v13453_v8 = vpop.permute.xlu0 %896 }
 0x226   :  { %815 = vperm.xlu0 %10835, %v18186_v37   ;;  %820 = vperm.xlu1 %10836, %v18187_v3   ;;  %v13410_v54 = vpop.permute.xlu1 %1357  ;;  %v719_v37 = vrot.slane %v13368_v17, 7  ;;  %v12178_v3 = vld [vmem:[%s17654_s0 + $0x60] sm:$0xff]  ;;  %v11007_v48 = vpack.i.bf16 %v1041_v46, %v1040_v27  ;;  %18198 = vst [vmem:[#allocation116_spill] sm:$0xff] %v13453_v8 }
 0x227   :  { %18188 = vst [vmem:[#allocation77_spill] sm:$0xff] %v13410_v54  ;;  %v690_v57 = vadd.f32 %v12178_v3, %v18190_v59  ;;  %v940_v59 = vsel %vm17848_vm0, %v929_v50, %v930_v47  ;;  %v18199_v50 = vld [vmem:[#allocation79_spill] sm:$0xff]  ;;  %v13468_v31 = vsel %vm17841_vm1, %v720_v25, %v721_v16  ;;  %v18203_v46 = vld [vmem:[#allocation2_spill] sm:$0xff] }
 0x228   :  { %v13444_v30 = vsel %vm17841_vm1, %v18194_v56, %v719_v37  ;;  %v1043_v4 = vmul.f32 %v18199_v50, %v940_v59  ;;  %v13464_v10 = vsel %vm17841_vm1, %v719_v37, %v720_v25  ;;  %v18205_v37 = vld [vmem:[#allocation35_spill] sm:$0xff]  ;;  %v18207_v25 = vld [vmem:[#allocation84_spill] sm:$0xff]  ;;  %v1202_v12 = vmul.f32 %v18215_v44, %v940_v59 }
 0x229   :  { %18195 = vst [vmem:[#allocation12_spill] sm:$0xff] %v13444_v30  ;;  %v13451_v20 = vmul.f32 0.18215, %v690_v57  ;;  %18202 = vst [vmem:[#allocation118_spill] sm:$0xff] %v13464_v10  ;;  %v1122_v14 = vmul.f32 %v18203_v46, %v13464_v10  ;;  %v1123_v50 = vmul.f32 %v18205_v37, %v13468_v31  ;;  %v1200_v18 = vmul.f32 %v18207_v25, %v942_v63  ;;  %v18210_v63 = vld [vmem:[#allocation8_spill] sm:$0xff]  ;;  %v18211_v37 = vld [vmem:[#allocation51_spill] sm:$0xff] }
 0x22a   :  { %10993 = vrot.lane.b32.xlu0 %v10992_v39, %s12189_s9  ;;  %10998 = vrot.lane.b32.xlu1 %v10997_v35, %s12196_s18  ;;  %v13431_v51 = vpop.permute.xlu1 %1365  ;;  %v18196_v39 = vmov 13   ;;  %v18197_v35 = vld [vmem:[#allocation81_spill] sm:$0xff]  ;;  %v11012_v57 = vpack.i.bf16 %v1043_v4, %v1042_v19  ;;  %v11027_v4 = vpack.i.bf16 %v13368_v17, %v13225_v52  ;;  %v11032_v52 = vpack.i.bf16 %v13399_v62, %v13393_v61  ;;  %v12179_v46 = vld [vmem:[%s17654_s0 + $0x68] sm:$0xff] }
 0x22b   :  { %18193 = vst [vmem:[#allocation76_spill] sm:$0xff] %v13431_v51  ;;  %11877 = vset.pattern.permute.xlu0 %v18196_v39  ;;  %v1121_v3 = vmul.f32 %v18197_v35, %v13444_v30  ;;  %v18201_v39 = vld [vmem:[#allocation32_spill] sm:$0xff]  ;;  %v11022_v29 = vpack.i.bf16 %v1123_v50, %v1122_v14  ;;  %v1296_v50 = vmul.f32 %v18210_v63, %v13444_v30  ;;  %v18220_v30 = vld [vmem:[#allocation87_spill] sm:$0xff] }
 0x22c   :  { %v1120_v35 = vmul.f32 %v18201_v39, %v13338_v42  ;;  %v13479_v39 = vpop.permute.xlu0 %1014  ;;  %v1298_v42 = vmul.f32 %v18220_v30, %v13468_v31  ;;  %v18224_v30 = vld [vmem:[#allocation80_spill] sm:$0xff] }
 0x22d   :  { %18206 = vst [vmem:[#allocation120_spill] sm:$0xff] %v13479_v39 }
 0x22e   :  { %11003 = vrot.lane.b32.xlu0 %v11002_v6, %s12189_s9  ;;  %11008 = vrot.lane.b32.xlu1 %v11007_v48, %s12190_s12  ;;  %v13458_v56 = vpop.permute.xlu1 %1437  ;;  %v11017_v6 = vpack.i.bf16 %v1121_v3, %v1120_v35  ;;  %v931_v48 = vrot.slane %v13451_v20, 1  ;;  %v18208_v3 = vld [vmem:[#allocation49_spill] sm:$0xff] }
 0x22f   :  { %18200 = vst [vmem:[#allocation117_spill] sm:$0xff] %v13458_v56  ;;  %v1201_v19 = vmul.f32 %v18208_v3, %v13435_v9 }
 0x230   :  { %v939_v35 = vsel %vm17848_vm0, %v930_v47, %v931_v48 }
 0x231   :  { %v11037_v14 = vpack.i.bf16 %v1201_v19, %v1200_v18  ;;  %v1203_v47 = vmul.f32 %v18211_v37, %v939_v35  ;;  %v18216_v18 = vrot.slane %v13451_v20, 7  ;;  %v18217_v37 = vld [vmem:[#allocation89_spill] sm:$0xff] }
 0x232   :  { %11013 = vrot.lane.b32.xlu0 %v11012_v57, %s12190_s12  ;;  %11018 = vrot.lane.b32.xlu1 %v11017_v6, %s12191_s13  ;;  %v13475_v27 = vpop.permute.xlu1 %1445  ;;  %v18214_v57 = vld [vmem:[#allocation72_spill] sm:$0xff] }
 0x233   :  { %18204 = vst [vmem:[#allocation119_spill] sm:$0xff] %v13475_v27  ;;  %v1297_v3 = vmul.f32 %v18214_v57, %v13464_v10  ;;  %v13513_v19 = vsel %vm17841_vm1, %v721_v16, %v18216_v18  ;;  %v11042_v63 = vpack.i.bf16 %v1203_v47, %v1202_v12  ;;  %v18221_v12 = vld [vmem:[#allocation39_spill] sm:$0xff] }
 0x235   :  { %v11047_v57 = vpack.i.bf16 %v1297_v3, %v1296_v50  ;;  %v1379_v3 = vmul.f32 %v13112_v36, %v13451_v20 }
 0x236   :  { %11023 = vrot.lane.b32.xlu0 %v11022_v29, %s12191_s13  ;;  %11028 = vrot.lane.b32.xlu1 %v11027_v4, %s12192_s14  ;;  %v18212_v29 = vld [vmem:[#allocation37_spill] sm:$0xff]  ;;  %v13502_v4 = vpop.permute.xlu0 %1029 }
 0x237   :  { %v13491_v6 = vpop.permute.xlu1 %750  ;;  %v691_v25 = vadd.f32 %v12179_v46, %v18212_v29  ;;  %18213 = vst [vmem:[#allocation37_spill] sm:$0xff] %v13502_v4  ;;  %v1299_v46 = vmul.f32 %v18217_v37, %v13513_v19  ;;  %v1377_v29 = vmul.f32 %v13088_v23, %v13393_v61  ;;  %v12180_v61 = vld [vmem:[%s17654_s0 + $0x70] sm:$0xff]  ;;  %v1456_v37 = vmul.f32 %v18224_v30, %v13435_v9 }
 0x238   :  { %18209 = vst [vmem:[#allocation121_spill] sm:$0xff] %v13491_v6  ;;  %v692_v16 = vadd.f32 %v12180_v61, %v18221_v12  ;;  %v915_v9 = vmul.f32 %v13141_v49, %v13399_v62 }
 0x239   :  { %v13519_v10 = vmul.f32 0.18215, %v691_v25  ;;  %v11052_v50 = vpack.i.bf16 %v1299_v46, %v1298_v42  ;;  %v916_v46 = vmul.f32 %v13414_v34, %v13451_v20 }
 0x23a   :  { %11033 = vrot.lane.b32.xlu0 %v11032_v52, %s12192_s14  ;;  %11038 = vrot.lane.b32.xlu1 %v11037_v14, %s12193_s15  ;;  %v18219_v52 = vld [vmem:[#allocation75_spill] sm:$0xff]  ;;  %v13533_v25 = vpop.permute.xlu0 %745  ;;  %v13545_v61 = vmul.f32 0.18215, %v692_v16  ;;  %v1458_v16 = vmul.f32 %v13165_v2, %v939_v35 }
 0x23b   :  { %v13521_v44 = vpop.permute.xlu1 %755  ;;  %v1376_v14 = vmul.f32 %v18219_v52, %v13368_v17  ;;  %18222 = vst [vmem:[#allocation39_spill] sm:$0xff] %v13533_v25  ;;  %v1457_v17 = vmul.f32 %v13120_v13, %v940_v59  ;;  %v932_v18 = vrot.slane %v13519_v10, 1 }
 0x23c   :  { %18218 = vst [vmem:[#allocation122_spill] sm:$0xff] %v13521_v44 }
 0x23d   :  { %v11057_v47 = vpack.i.bf16 %v1377_v29, %v1376_v14  ;;  %v938_v12 = vsel %vm17848_vm0, %v931_v48, %v932_v18  ;;  %v11067_v14 = vpack.i.bf16 %v1457_v17, %v1456_v37  ;;  %v933_v48 = vrot.slane %v13545_v61, 1 }
 0x23e   :  { %11043 = vrot.lane.b32.xlu0 %v11042_v63, %s12193_s15  ;;  %11048 = vrot.lane.b32.xlu1 %v11047_v57, %s12194_s16  ;;  %v18223_v63 = vld [vmem:[#allocation78_spill] sm:$0xff]  ;;  %v1459_v42 = vmul.f32 %v13175_v7, %v938_v12  ;;  %v723_v17 = vrot.slane %v13519_v10, 7 }
 0x23f   :  { %v1378_v57 = vmul.f32 %v18223_v63, %v13399_v62  ;;  %v13549_v59 = vpop.permute.xlu1 %765  ;;  %v13554_v63 = vpop.permute.xlu0 %760  ;;  %v918_v62 = vmul.f32 %v13200_v26, %v13545_v61 }
 0x240   :  { %18225 = vst [vmem:[#allocation123_spill] sm:$0xff] %v13549_v59  ;;  %18226 = vst [vmem:[#allocation124_spill] sm:$0xff] %v13554_v63  ;;  %v11077_v37 = vpack.i.bf16 %v1459_v42, %v1458_v16  ;;  %v1124_v16 = vmul.f32 %v13275_v55, %v13513_v19 }
 0x241   :  { %v11062_v29 = vpack.i.bf16 %v1379_v3, %v1378_v57  ;;  %v11072_v3 = vpack.i.bf16 %v916_v46, %v915_v9  ;;  %v18231_v46 = vrot.slane %v13451_v20, 7 }
 0x242   :  { %11053 = vrot.lane.b32.xlu0 %v11052_v50, %s12194_s16  ;;  %11058 = vrot.lane.b32.xlu1 %v11057_v47, %s12195_s21  ;;  %v917_v50 = vmul.f32 %v13453_v8, %v13519_v10  ;;  %v1044_v47 = vmul.f32 %v13479_v39, %v939_v35  ;;  %v18228_v8 = vld [vmem:[#allocation10_spill] sm:$0xff]  ;;  %v18232_v39 = vld [vmem:[#allocation40_spill] sm:$0xff] }
 0x243   :  { %v13566_v57 = vpop.permute.xlu1 %775  ;;  %v18229_v49 = vrot.slane %v18228_v8, 1  ;;  %v13578_v42 = vpop.permute.xlu0 %770  ;;  %v13584_v9 = vsel %vm17841_vm1, %v18231_v46, %v723_v17  ;;  %v18233_v34 = vrot.slane %v18228_v8, 7 }
 0x244   :  { %18227 = vst [vmem:[#allocation125_spill] sm:$0xff] %v13566_v57  ;;  %18230 = vst [vmem:[#allocation10_spill] sm:$0xff] %v13578_v42  ;;  %v1125_v46 = vmul.f32 %v18232_v39, %v13584_v9 }
 0x245   :  { %v936_v35 = vsel %vm17848_vm0, %v933_v48, %v18229_v49 }
 0x246   :  { %11063 = vrot.lane.b32.xlu0 %v11062_v29, %s12195_s21  ;;  %11068 = vrot.lane.b32.xlu1 %v11067_v14, %s12196_s18  ;;  %v1045_v29 = vmul.f32 %v13219_v32, %v938_v12  ;;  %v724_v14 = vrot.slane %v13545_v61, 7  ;;  %v937_v32 = vsel %vm17848_vm0, %v932_v18, %v933_v48 }
 0x247   :  { %v1046_v49 = vmul.f32 %v13239_v60, %v937_v32 }
 0x248   :  { %v11087_v26 = vpack.i.bf16 %v1045_v29, %v1044_v47  ;;  %v13600_v55 = vsel %vm17841_vm1, %v724_v14, %v18233_v34  ;;  %v11097_v47 = vpack.i.bf16 %v1125_v46, %v1124_v16  ;;  %v11107_v16 = vpack.i.bf16 %v13519_v10, %v13451_v20 }
 0x249   :  { %v1127_v18 = vmul.f32 %v13303_v40, %v13600_v55  ;;  %v1206_v46 = vmul.f32 %v13346_v33, %v936_v35 }
 0x24a   :  { %11073 = vrot.lane.b32.xlu0 %v11072_v3, %s12189_s9  ;;  %11078 = vrot.lane.b32.xlu1 %v11077_v37, %s12196_s18  ;;  %v1047_v3 = vmul.f32 %v13502_v4, %v936_v35  ;;  %v11082_v37 = vpack.i.bf16 %v918_v62, %v917_v50  ;;  %v13602_v50 = vpop.permute.xlu1 %10838  ;;  %v13608_v62 = vsel %vm17841_vm1, %v723_v17, %v724_v14  ;;  %v18235_v17 = vld [vmem:[#allocation53_spill] sm:$0xff] }
 0x24b   :  { %v1126_v29 = vmul.f32 %v13296_v5, %v13608_v62  ;;  %v1204_v14 = vmul.f32 %v18235_v17, %v938_v12  ;;  %v18239_v12 = vld [vmem:[#allocation92_spill] sm:$0xff]  ;;  %v18240_v17 = vld [vmem:[#allocation83_spill] sm:$0xff] }
 0x24c   :  { %v11092_v48 = vpack.i.bf16 %v1047_v3, %v1046_v49  ;;  %v1303_v33 = vmul.f32 %v13391_v24, %v18239_v12  ;;  %v1383_v24 = vmul.f32 %v13431_v51, %v12995_v22 }
 0x24d   :  { %v11102_v3 = vpack.i.bf16 %v1127_v18, %v1126_v29  ;;  %v18236_v18 = vld [vmem:[#allocation90_spill] sm:$0xff]  ;;  %v18237_v29 = vld [vmem:[#allocation55_spill] sm:$0xff] }
 0x24e   :  { %11083 = vrot.lane.b32.xlu0 %v11082_v37, %s12189_s9  ;;  %11088 = vrot.lane.b32.xlu1 %v11087_v26, %s12190_s12  ;;  %v13610_v26 = vpop.permute.xlu0 %780  ;;  %v1205_v37 = vmul.f32 %v13326_v38, %v937_v32  ;;  %v1380_v38 = vmul.f32 %v18240_v17, %v13519_v10  ;;  %v18241_v10 = vld [vmem:[#allocation85_spill] sm:$0xff] }
 0x24f   :  { %18234 = vst [vmem:[#allocation126_spill] sm:$0xff] %v13610_v26 }
 0x250   :  { %v13616_v34 = vpop.permute.xlu1 %10848  ;;  %v11117_v40 = vpack.i.bf16 %v1205_v37, %v1204_v14  ;;  %v1381_v37 = vmul.f32 %v13410_v54, %v13545_v61 }
 0x252   :  { %11093 = vrot.lane.b32.xlu0 %v11092_v48, %s12190_s12  ;;  %11098 = vrot.lane.b32.xlu1 %v11097_v47, %s12191_s13  ;;  %v13621_v49 = vpop.permute.xlu0 %10843  ;;  %v1300_v48 = vmul.f32 %v13360_v21, %v13584_v9  ;;  %v11112_v47 = vpack.i.bf16 %v18228_v8, %v13545_v61  ;;  %v1461_v61 = vmul.f32 %v13458_v56, %v936_v35 }
 0x254   :  { %v13633_v20 = vpop.permute.xlu1 %10858 }
 0x256   :  { %11108 = vrot.lane.b32.xlu1 %v11107_v16, %s12192_s14  ;;  %11103 = vrot.lane.b32.xlu0 %v11102_v3, %s12191_s13  ;;  %v13631_v5 = vpop.permute.xlu0 %10853  ;;  %v1207_v16 = vmul.f32 %v18237_v29, %v18236_v18  ;;  %v18238_v3 = vld [vmem:[#allocation82_spill] sm:$0xff]  ;;  %v1302_v29 = vmul.f32 %v13376_v1, %v13600_v55 }
 0x257   :  { %v1301_v39 = vmul.f32 %v18238_v3, %v13608_v62 }
 0x258   :  { %v11122_v14 = vpack.i.bf16 %v1207_v16, %v1206_v46  ;;  %v11137_v46 = vpack.i.bf16 %v1381_v37, %v1380_v38  ;;  %v18242_v16 = vld [vmem:[#allocation86_spill] sm:$0xff]  ;;  %v18243_v38 = vld [vmem:[#allocation5_spill] sm:$0xff]  ;;  %v10850_v37 = vunpack.i.l.bf16 %v13616_v34 }
 0x259   :  { %v11127_v21 = vpack.i.bf16 %v1301_v39, %v1300_v48  ;;  %v11132_v39 = vpack.i.bf16 %v1303_v33, %v1302_v29  ;;  %v1382_v48 = vmul.f32 %v18241_v10, %v18228_v8  ;;  %v1460_v1 = vmul.f32 %v18242_v16, %v937_v32 }
 0x25a   :  { %11113 = vrot.lane.b32.xlu0 %v11112_v47, %s12192_s14  ;;  %11118 = vrot.lane.b32.xlu1 %v11117_v40, %s12193_s15  ;;  %v13651_v47 = vpop.permute.xlu0 %10863  ;;  %v13653_v40 = vpop.permute.xlu1 %10868  ;;  %v1462_v33 = vmul.f32 %v18243_v38, %v18236_v18  ;;  %v823_v29 = vmul.f32 %v13533_v25, %v13600_v55  ;;  %v18247_v10 = vmov 0 }
 0x25b   :  { %v11147_v3 = vpack.i.bf16 %v1461_v61, %v1460_v1  ;;  %v10840_v1 = vunpack.i.l.bf16 %v13602_v50  ;;  %v13689_v61 = vadd.s32 8, %v13026_v45 }
 0x25e   :  { %11123 = vrot.lane.b32.xlu0 %v11122_v14, %s12193_s15  ;;  %11128 = vrot.lane.b32.xlu1 %v11127_v21, %s12194_s16  ;;  %v1463_v21 = vmul.f32 %v13475_v27, %v13050_v28  ;;  %v11142_v14 = vpack.i.bf16 %v1383_v24, %v1382_v48  ;;  %v13665_v17 = vpop.permute.xlu0 %10873  ;;  %v13667_v22 = vpop.permute.xlu1 %10878  ;;  %v10841_v28 = vunpack.i.h.bf16 %v13602_v50  ;;  %v18244_v24 = vlaneseq }
 0x25f   :  { %v826_v50 = vmul.f32 %v13554_v63, %v13102_v58  ;;  %v10851_v58 = vunpack.i.h.bf16 %v13616_v34  ;;  %v10881_v34 = vunpack.i.h.bf16 %v13667_v22 }
 0x260   :  { %v11152_v8 = vpack.i.bf16 %v1463_v21, %v1462_v33  ;;  %v13681_v18 = vand.u32 127, %v18244_v24  ;;  %v10846_v33 = vunpack.i.h.bf16 %v13621_v49 }
 0x262   :  { %11133 = vrot.lane.b32.xlu0 %v11132_v39, %s12194_s16  ;;  %11138 = vrot.lane.b32.xlu1 %v11137_v46, %s12195_s21  ;;  %v13674_v32 = vpop.permute.xlu0 %10883  ;;  %v13676_v35 = vpop.permute.xlu1 %10888  ;;  %v825_v39 = vmul.f32 %v13521_v44, %v13066_v11  ;;  %v13698_v55 = vadd.s32 1, %v13681_v18  ;;  %v10861_v11 = vunpack.i.h.bf16 %v13633_v20 }
 0x264   :  { %v13712_v24 = vmul.u32 4, %v13698_v55 }
 0x266   :  { %11143 = vrot.lane.b32.xlu0 %v11142_v14, %s12195_s21  ;;  %11148 = vrot.lane.b32.xlu1 %v11147_v3, %s12196_s18  ;;  %v824_v3 = vmul.f32 %v13491_v6, %v18239_v12  ;;  %v13695_v46 = vpop.permute.xlu0 %10893  ;;  %v10899_v48 = vpop.permute.xlu1 %10898  ;;  %v13701_v12 = vmul.u32 4, %v13681_v18  ;;  %v1977_v14 = vsel %vm17867_vm3, %v823_v29, %v10840_v1  ;;  %v10870_v1 = vunpack.i.l.bf16 %v13653_v40 }
 0x267   :  { %v1994_v6 = vsel %vm17868_vm4, %v1977_v14, %v10850_v37  ;;  %vm447_vm14 = vcmp.lt.s32.totalorder %v13026_v45, %v13712_v24  ;;  %vm448_vm15 = vcmp.lt.s32.totalorder %v13689_v61, %v13712_v24  ;;  %v10891_v37 = vunpack.i.h.bf16 %v13676_v35 }
 0x268   :  { %v1978_v21 = vsel %vm17867_vm3, %v824_v3, %v10841_v28  ;;  %vm442_vm11 = vcmp.ge.s32.totalorder %v13026_v45, %v13701_v12  ;;  %v10871_v28 = vunpack.i.h.bf16 %v13653_v40  ;;  %vm443_vm13 = vcmp.ge.s32.totalorder %v13689_v61, %v13701_v12 }
 0x269   :  { %v1995_v40 = vsel %vm17868_vm4, %v1978_v21, %v10851_v58  ;;  %v10890_v14 = vunpack.i.l.bf16 %v13676_v35  ;;  %vm451_vm1 = vmand %vm442_vm11, %vm447_vm14  ;;  %v10901_v63 = vunpack.i.h.bf16 %v10899_v48  ;;  %v10900_v44 = vunpack.i.l.bf16 %v10899_v48 }
 0x26a   :  { %11153 = vrot.lane.b32.xlu0 %v11152_v8, %s12196_s18  ;;  %v10860_v8 = vunpack.i.l.bf16 %v13633_v20  ;;  %v10880_v20 = vunpack.i.l.bf16 %v13667_v22  ;;  %v2012_v25 = vsel %vm2010_vm5, %v1995_v40, %v10861_v11  ;;  %vm452_vm0 = vmand %vm443_vm13, %vm448_vm15  ;;  %v1980_v21 = vsel %vm17867_vm3, %v826_v50, %v10846_v33 }
 0x26b   :  { %v10845_v58 = vunpack.i.l.bf16 %v13621_v49  ;;  %v2029_v51 = vsel %vm2027_vm6, %v2012_v25, %v10871_v28  ;;  %vm13744_vm2 = vmpackc.low %vm452_vm0, %vm451_vm1  ;;  %v10855_v48 = vunpack.i.l.bf16 %v13631_v5  ;;  %v17852_v33 = vmov 1.0|1.0  }
 0x26c   :  { %v2011_v22 = vsel %vm2010_vm5, %v1994_v6, %v10860_v8  ;;  %v18248_v10 = vsel %vm13744_vm2, 4294967295, %v18247_v10  ;;  %v10856_v6 = vunpack.i.h.bf16 %v13631_v5  ;;  %v2046_v8 = vsel %vm2044_vm7, %v2029_v51, %v10881_v34  ;;  %10595 = vmatprep.subr.msk.bf16.mxu1 %vm13744_vm2, %v17852_v33 }
 0x26d   :  { %v2028_v35 = vsel %vm2027_vm6, %v2011_v22, %v10870_v1  ;;  %v2063_v1 = vsel %vm2061_vm8, %v2046_v8, %v10891_v37  ;;  %10597 = vmatpush3.bf16.msk.msra.mxu1 %vm13744_vm2, %v17852_v33  ;;  %v10866_v5 = vunpack.i.h.bf16 %v13651_v47  ;;  %v10865_v51 = vunpack.i.l.bf16 %v13651_v47 }
 0x26e   :  { %v2045_v11 = vsel %vm2044_vm7, %v2028_v35, %v10880_v20  ;;  %v2080_v20 = vsel %vm2078_vm9, %v2063_v1, %v10901_v63  ;;  %v10876_v22 = vunpack.i.h.bf16 %v13665_v17  ;;  %v10875_v35 = vunpack.i.l.bf16 %v13665_v17 }
 0x26f   :  { %v2062_v28 = vsel %vm2061_vm8, %v2045_v11, %v10890_v14  ;;  %v1979_v11 = vsel %vm17867_vm3, %v825_v39, %v10845_v58  ;;  %v10886_v8 = vunpack.i.h.bf16 %v13674_v32  ;;  %v1997_v63 = vsel %vm17868_vm4, %v1980_v21, %v10856_v6 }
 0x270   :  { %v2079_v34 = vsel %vm2078_vm9, %v2062_v28, %v10900_v44  ;;  %v1996_v28 = vsel %vm17868_vm4, %v1979_v11, %v10855_v48  ;;  %v10896_v17 = vunpack.i.h.bf16 %v13695_v46 }
 0x271   :  { %v2013_v39 = vsel %vm2010_vm5, %v1996_v28, %v10865_v51 }
 0x275   :  { %v13721_v29 = vpop.permute.xlu0 %785  ;;  %v13723_v3 = vpop.permute.xlu1 %790 }
 0x276   :  { %18245 = vst [vmem:[#allocation90_spill] sm:$0xff] %v13721_v29  ;;  %18246 = vst [vmem:[#allocation92_spill] sm:$0xff] %v13723_v3 }
 0x279   :  { %v10904_v40 = vpop.permute.xlu0 %10903  ;;  %v10909_v50 = vpop.permute.xlu1 %10908 }
 0x27a   :  { %v10911_v25 = vunpack.i.h.bf16 %v10909_v50  ;;  %v10910_v49 = vunpack.i.l.bf16 %v10909_v50  ;;  %v10885_v50 = vunpack.i.l.bf16 %v13674_v32  ;;  %v10906_v58 = vunpack.i.h.bf16 %v10904_v40 }
 0x27b   :  { %v10905_v1 = vunpack.i.l.bf16 %v10904_v40  ;;  %v2030_v32 = vsel %vm2027_vm6, %v2013_v39, %v10875_v35 }
 0x27c   :  { %v2096_v14 = vsel %vm17871_vm10, %v2079_v34, %v10910_v49  ;;  %v2097_v37 = vsel %vm17871_vm10, %v2080_v20, %v10911_v25  ;;  %v10895_v49 = vunpack.i.l.bf16 %v13695_v46  ;;  %v2014_v25 = vsel %vm2010_vm5, %v1997_v63, %v10866_v5 }
 0x27d   :  { %v13771_v33 = vpop.permute.xlu0 %795  ;;  %v13773_v47 = vpop.permute.xlu1 %800  ;;  %v2112_v44 = vpack.c.bf16 %v2097_v37, %v2096_v14  ;;  %v2031_v34 = vsel %vm2027_vm6, %v2014_v25, %v10876_v22  ;;  %v2047_v6 = vsel %vm2044_vm7, %v2030_v32, %v10885_v50 }
 0x27e   :  { %18249 = vst [vmem:[#allocation127_spill] sm:$0xff] %v13771_v33  ;;  %18250 = vst [vmem:[#allocation128_spill] sm:$0xff] %v13773_v47  ;;  %v2048_v21 = vsel %vm2044_vm7, %v2031_v34, %v10886_v8  ;;  %v2064_v5 = vsel %vm2061_vm8, %v2047_v6, %v10895_v49  ;;  %v828_v6 = vmul.f32 %v13578_v42, %v13153_v43 }
 0x27f   :  { %9930 = vmatprep.mubr.msk.bf16.mxu0 %vm17866_vm12, %v2112_v44  ;;  %v2065_v46 = vsel %vm2061_vm8, %v2048_v21, %v10896_v17  ;;  %v2081_v37 = vsel %vm2078_vm9, %v2064_v5, %v10905_v1  ;;  %v830_v5 = vmul.f32 %v13610_v26, %v13288_v0 }
 0x280   :  { %v2082_v40 = vsel %vm2078_vm9, %v2065_v46, %v10906_v58 }
 0x281   :  { %v10914_v48 = vpop.permute.xlu0 %10913  ;;  %v10919_v20 = vpop.permute.xlu1 %10918 }
 0x282   :  { %v10921_v14 = vunpack.i.h.bf16 %v10919_v20  ;;  %v10920_v51 = vunpack.i.l.bf16 %v10919_v20  ;;  %v10916_v1 = vunpack.i.h.bf16 %v10914_v48  ;;  %v10915_v32 = vunpack.i.l.bf16 %v10914_v48 }
 0x284   :  { %v2099_v35 = vsel %vm17871_vm10, %v2082_v40, %v10921_v14  ;;  %v2098_v22 = vsel %vm17871_vm10, %v2081_v37, %v10920_v51  ;;  %v827_v14 = vmul.f32 %v13549_v59, %v13108_v53  ;;  %v829_v37 = vmul.f32 %v13566_v57, %v13259_v15 }
 0x285   :  { %v13792_v11 = vpop.permute.xlu0 %10923  ;;  %v10929_v8 = vpop.permute.xlu1 %10928  ;;  %v2113_v50 = vpack.c.bf16 %v2099_v35, %v2098_v22 }
 0x286   :  { %v10931_v20 = vunpack.i.h.bf16 %v10929_v8  ;;  %v10930_v46 = vunpack.i.l.bf16 %v10929_v8  ;;  %v10926_v48 = vunpack.i.h.bf16 %v13792_v11  ;;  %v1981_v43 = vsel %vm17867_vm3, %v827_v14, %v10915_v32 }
 0x287   :  { %9931 = vmatmul.mubr.msk.bf16.vlgmr.msra.gmra.mrb[0].mxu0 %vm17866_vm12, %v2113_v50  ;;  %v1982_v50 = vsel %vm17867_vm3, %v828_v6, %v10916_v1 }
 0x288   :  { %v1999_v53 = vsel %vm17868_vm4, %v1982_v50, %v10931_v20  ;;  %v1984_v32 = vsel %vm17867_vm3, %v830_v5, %v10926_v48 }
 0x289   :  { %v13795_v44 = vpop.permute.xlu0 %10933  ;;  %v10939_v63 = vpop.permute.xlu1 %10938 }
 0x28a   :  { %v10941_v51 = vunpack.i.h.bf16 %v10939_v63  ;;  %v10940_v40 = vunpack.i.l.bf16 %v10939_v63  ;;  %v1998_v63 = vsel %vm17868_vm4, %v1981_v43, %v10930_v46  ;;  %v10936_v20 = vunpack.i.h.bf16 %v13795_v44 }
 0x28b   :  { %v10935_v46 = vunpack.i.l.bf16 %v13795_v44 }
 0x28c   :  { %v2015_v57 = vsel %vm2010_vm5, %v1998_v63, %v10940_v40 }
 0x28d   :  { %v13797_v28 = vpop.permute.xlu0 %10943  ;;  %v10949_v17 = vpop.permute.xlu1 %10948 }
 0x28e   :  { %v10951_v35 = vunpack.i.h.bf16 %v10949_v17  ;;  %v10950_v22 = vunpack.i.l.bf16 %v10949_v17  ;;  %v2016_v17 = vsel %vm2010_vm5, %v1999_v53, %v10941_v51 }
 0x290   :  { %v2032_v6 = vsel %vm2027_vm6, %v2015_v57, %v10950_v22  ;;  %v2033_v14 = vsel %vm2027_vm6, %v2016_v17, %v10951_v35  ;;  %v10946_v57 = vunpack.i.h.bf16 %v13797_v28  ;;  %v10945_v35 = vunpack.i.l.bf16 %v13797_v28 }
 0x291   :  { %v13799_v49 = vpop.permute.xlu0 %10953  ;;  %v10959_v25 = vpop.permute.xlu1 %10958 }
 0x292   :  { %v10961_v8 = vunpack.i.h.bf16 %v10959_v25  ;;  %v10960_v42 = vunpack.i.l.bf16 %v10959_v25  ;;  %v10925_v25 = vunpack.i.l.bf16 %v13792_v11  ;;  %v10955_v43 = vunpack.i.l.bf16 %v13799_v49 }
 0x294   :  { %v2050_v40 = vsel %vm2044_vm7, %v2033_v14, %v10961_v8 }
 0x295   :  { %v13801_v39 = vpop.permute.xlu0 %10963  ;;  %v10969_v58 = vpop.permute.xlu1 %10968 }
 0x296   :  { %v10971_v26 = vunpack.i.h.bf16 %v10969_v58  ;;  %v10970_v15 = vunpack.i.l.bf16 %v10969_v58  ;;  %v2049_v58 = vsel %vm2044_vm7, %v2032_v6, %v10960_v42  ;;  %v10956_v42 = vunpack.i.h.bf16 %v13799_v49 }
 0x297   :  { %v10966_v63 = vunpack.i.h.bf16 %v13801_v39 }
 0x298   :  { %v2067_v5 = vsel %vm2061_vm8, %v2050_v40, %v10971_v26  ;;  %v1983_v26 = vsel %vm17867_vm3, %v829_v37, %v10925_v25 }
 0x299   :  { %v13803_v34 = vpop.permute.xlu0 %10973  ;;  %v10979_v21 = vpop.permute.xlu1 %10978  ;;  %v2000_v6 = vsel %vm17868_vm4, %v1983_v26, %v10935_v46 }
 0x29a   :  { %v10981_v59 = vunpack.i.h.bf16 %v10979_v21  ;;  %v10980_v1 = vunpack.i.l.bf16 %v10979_v21  ;;  %v2066_v21 = vsel %vm2061_vm8, %v2049_v58, %v10970_v15  ;;  %v10965_v15 = vunpack.i.l.bf16 %v13801_v39 }
 0x29b   :  { %v10976_v49 = vunpack.i.h.bf16 %v13803_v34  ;;  %v10975_v14 = vunpack.i.l.bf16 %v13803_v34  ;;  %v2017_v37 = vsel %vm2010_vm5, %v2000_v6, %v10945_v35 }
 0x29c   :  { %v2083_v22 = vsel %vm2078_vm9, %v2066_v21, %v10980_v1  ;;  %v2084_v44 = vsel %vm2078_vm9, %v2067_v5, %v10981_v59  ;;  %v2001_v59 = vsel %vm17868_vm4, %v1984_v32, %v10936_v20  ;;  %v2034_v39 = vsel %vm2027_vm6, %v2017_v37, %v10955_v43 }
 0x29d   :  { %v13816_v54 = vpop.permute.xlu0 %805  ;;  %v13818_v0 = vpop.permute.xlu1 %810  ;;  %v2018_v58 = vsel %vm2010_vm5, %v2001_v59, %v10946_v57  ;;  %v2051_v20 = vsel %vm2044_vm7, %v2034_v39, %v10965_v15 }
 0x29e   :  { %18251 = vst [vmem:[#allocation129_spill] sm:$0xff] %v13816_v54  ;;  %18252 = vst [vmem:[#allocation130_spill] sm:$0xff] %v13818_v0  ;;  %v2068_v5 = vsel %vm2061_vm8, %v2051_v20, %v10975_v14  ;;  %v18255_v14 = vld [vmem:[#allocation112_spill] sm:$0xff] }
 0x2a1   :  { %v10984_v50 = vpop.permute.xlu0 %10983  ;;  %v10989_v51 = vpop.permute.xlu1 %10988 }
 0x2a2   :  { %v10991_v48 = vunpack.i.h.bf16 %v10989_v51  ;;  %v10990_v11 = vunpack.i.l.bf16 %v10989_v51  ;;  %v10986_v25 = vunpack.i.h.bf16 %v10984_v50  ;;  %v10985_v40 = vunpack.i.l.bf16 %v10984_v50 }
 0x2a3   :  { %v2035_v51 = vsel %vm2027_vm6, %v2018_v58, %v10956_v42  ;;  %v832_v58 = vmul.f32 %v13723_v3, %v18255_v14  ;;  %v18418_v3 = vld [vmem:[#allocation18_spill] sm:$0xff] }
 0x2a4   :  { %v2100_v8 = vsel %vm17871_vm10, %v2083_v22, %v10990_v11  ;;  %v2101_v53 = vsel %vm17871_vm10, %v2084_v44, %v10991_v48  ;;  %v2052_v32 = vsel %vm2044_vm7, %v2035_v51, %v10966_v63  ;;  %v2085_v57 = vsel %vm2078_vm9, %v2068_v5, %v10985_v40  ;;  %v18256_v40 = vld [vmem:[#allocation12_spill] sm:$0xff]  ;;  %v18257_v51 = vld [vmem:[#allocation118_spill] sm:$0xff] }
 0x2a5   :  { %v13845_v17 = vpop.permute.xlu0 %815  ;;  %v13847_v28 = vpop.permute.xlu1 %820  ;;  %v2114_v1 = vpack.c.bf16 %v2101_v53, %v2100_v8  ;;  %v2069_v34 = vsel %vm2061_vm8, %v2052_v32, %v10976_v49  ;;  %v831_v49 = vmul.f32 %v13721_v29, %v13292_v41  ;;  %v833_v39 = vmul.f32 %v13771_v33, %v18256_v40  ;;  %v18417_v33 = vld [vmem:[#allocation67_spill] sm:$0xff] }
 0x2a6   :  { %18253 = vst [vmem:[#allocation131_spill] sm:$0xff] %v13845_v17  ;;  %18254 = vst [vmem:[#allocation132_spill] sm:$0xff] %v13847_v28  ;;  %v2086_v50 = vsel %vm2078_vm9, %v2069_v34, %v10986_v25  ;;  %v834_v32 = vmul.f32 %v13773_v47, %v18257_v51 }
 0x2a7   :  { %9934 = vmatprep.mubr.msk.bf16.mxu0 %vm17866_vm12, %v2114_v1 }
 0x2a9   :  { %v10994_v46 = vpop.permute.xlu0 %10993  ;;  %v10999_v21 = vpop.permute.xlu1 %10998 }
 0x2aa   :  { %v11001_v48 = vunpack.i.h.bf16 %v10999_v21  ;;  %v11000_v11 = vunpack.i.l.bf16 %v10999_v21  ;;  %v10996_v15 = vunpack.i.h.bf16 %v10994_v46  ;;  %v10995_v1 = vunpack.i.l.bf16 %v10994_v46 }
 0x2ac   :  { %v2103_v35 = vsel %vm17871_vm10, %v2086_v50, %v11001_v48  ;;  %v2102_v22 = vsel %vm17871_vm10, %v2085_v57, %v11000_v11  ;;  %v1985_v46 = vsel %vm17867_vm3, %v831_v49, %v10995_v1  ;;  %v1986_v34 = vsel %vm17867_vm3, %v832_v58, %v10996_v15 }
 0x2ad   :  { %v11004_v44 = vpop.permute.xlu0 %11003  ;;  %v11009_v42 = vpop.permute.xlu1 %11008  ;;  %v2115_v43 = vpack.c.bf16 %v2103_v35, %v2102_v22 }
 0x2ae   :  { %v11006_v37 = vunpack.i.h.bf16 %v11004_v44  ;;  %v11005_v25 = vunpack.i.l.bf16 %v11004_v44  ;;  %v11011_v20 = vunpack.i.h.bf16 %v11009_v42  ;;  %v11010_v21 = vunpack.i.l.bf16 %v11009_v42 }
 0x2af   :  { %9935 = vmatmul.mubr.msk.bf16.gmra.mrb[4].mxu0 %vm17866_vm12, %v2115_v43 }
 0x2b0   :  { %v1987_v44 = vsel %vm17867_vm3, %v833_v39, %v11005_v25  ;;  %v1988_v43 = vsel %vm17867_vm3, %v834_v32, %v11006_v37  ;;  %v2003_v42 = vsel %vm17868_vm4, %v1986_v34, %v11011_v20  ;;  %v2002_v1 = vsel %vm17868_vm4, %v1985_v46, %v11010_v21 }
 0x2b1   :  { %v11014_v8 = vpop.permute.xlu0 %11013  ;;  %v11019_v53 = vpop.permute.xlu1 %11018 }
 0x2b2   :  { %v11016_v5 = vunpack.i.h.bf16 %v11014_v8  ;;  %v11015_v48 = vunpack.i.l.bf16 %v11014_v8  ;;  %v11021_v50 = vunpack.i.h.bf16 %v11019_v53  ;;  %v11020_v57 = vunpack.i.l.bf16 %v11019_v53 }
 0x2b4   :  { %v2004_v8 = vsel %vm17868_vm4, %v1987_v44, %v11015_v48  ;;  %v2005_v58 = vsel %vm17868_vm4, %v1988_v43, %v11016_v5  ;;  %v2019_v25 = vsel %vm2010_vm5, %v2002_v1, %v11020_v57  ;;  %v2020_v37 = vsel %vm2010_vm5, %v2003_v42, %v11021_v50 }
 0x2b5   :  { %v11024_v26 = vpop.permute.xlu0 %11023  ;;  %v11029_v63 = vpop.permute.xlu1 %11028 }
 0x2b6   :  { %v11026_v35 = vunpack.i.h.bf16 %v11024_v26  ;;  %v11025_v22 = vunpack.i.l.bf16 %v11024_v26  ;;  %v11031_v14 = vunpack.i.h.bf16 %v11029_v63  ;;  %v11030_v40 = vunpack.i.l.bf16 %v11029_v63 }
 0x2b8   :  { %v2021_v63 = vsel %vm2010_vm5, %v2004_v8, %v11025_v22  ;;  %v2022_v39 = vsel %vm2010_vm5, %v2005_v58, %v11026_v35  ;;  %v2036_v32 = vsel %vm2027_vm6, %v2019_v25, %v11030_v40 }
 0x2b9   :  { %v13867_v59 = vpop.permute.xlu0 %11033  ;;  %v11039_v6 = vpop.permute.xlu1 %11038 }
 0x2ba   :  { %v11041_v49 = vunpack.i.h.bf16 %v11039_v6  ;;  %v11040_v15 = vunpack.i.l.bf16 %v11039_v6  ;;  %v2037_v6 = vsel %vm2027_vm6, %v2020_v37, %v11031_v14  ;;  %v11036_v46 = vunpack.i.h.bf16 %v13867_v59 }
 0x2bb   :  { %v11035_v34 = vunpack.i.l.bf16 %v13867_v59 }
 0x2bc   :  { %v2053_v5 = vsel %vm2044_vm7, %v2036_v32, %v11040_v15  ;;  %v2054_v48 = vsel %vm2044_vm7, %v2037_v6, %v11041_v49 }
 0x2bd   :  { %v11044_v41 = vpop.permute.xlu0 %11043  ;;  %v11049_v11 = vpop.permute.xlu1 %11048  ;;  %v2038_v49 = vsel %vm2027_vm6, %v2021_v63, %v11035_v34 }
 0x2be   :  { %v11051_v51 = vunpack.i.h.bf16 %v11049_v11  ;;  %v11050_v53 = vunpack.i.l.bf16 %v11049_v11  ;;  %v11046_v11 = vunpack.i.h.bf16 %v11044_v41  ;;  %v11045_v50 = vunpack.i.l.bf16 %v11044_v41 }
 0x2bf   :  { %v2039_v41 = vsel %vm2027_vm6, %v2022_v39, %v11036_v46 }
 0x2c0   :  { %v2070_v57 = vsel %vm2061_vm8, %v2053_v5, %v11050_v53  ;;  %v2071_v35 = vsel %vm2061_vm8, %v2054_v48, %v11051_v51  ;;  %v2055_v53 = vsel %vm2044_vm7, %v2038_v49, %v11045_v50 }
 0x2c1   :  { %v11054_v47 = vpop.permute.xlu0 %11053  ;;  %v11059_v26 = vpop.permute.xlu1 %11058 }
 0x2c2   :  { %v11061_v20 = vunpack.i.h.bf16 %v11059_v26  ;;  %v11060_v21 = vunpack.i.l.bf16 %v11059_v26  ;;  %v11056_v43 = vunpack.i.h.bf16 %v11054_v47  ;;  %v11055_v14 = vunpack.i.l.bf16 %v11054_v47 }
 0x2c3   :  { %v2056_v47 = vsel %vm2044_vm7, %v2039_v41, %v11046_v11 }
 0x2c4   :  { %v2087_v1 = vsel %vm2078_vm9, %v2070_v57, %v11060_v21  ;;  %v2088_v59 = vsel %vm2078_vm9, %v2071_v35, %v11061_v20  ;;  %v2072_v32 = vsel %vm2061_vm8, %v2055_v53, %v11055_v14  ;;  %v2073_v6 = vsel %vm2061_vm8, %v2056_v47, %v11056_v43 }
 0x2c5   :  { %v11064_v22 = vpop.permute.xlu0 %11063  ;;  %v11069_v44 = vpop.permute.xlu1 %11068 }
 0x2c6   :  { %v11071_v40 = vunpack.i.h.bf16 %v11069_v44  ;;  %v11070_v42 = vunpack.i.l.bf16 %v11069_v44  ;;  %v11066_v8 = vunpack.i.h.bf16 %v11064_v22  ;;  %v11065_v15 = vunpack.i.l.bf16 %v11064_v22 }
 0x2c8   :  { %v2104_v58 = vsel %vm17871_vm10, %v2087_v1, %v11070_v42  ;;  %v2105_v51 = vsel %vm17871_vm10, %v2088_v59, %v11071_v40  ;;  %v2089_v63 = vsel %vm2078_vm9, %v2072_v32, %v11065_v15  ;;  %v2090_v39 = vsel %vm2078_vm9, %v2073_v6, %v11066_v8 }
 0x2c9   :  { %v11074_v26 = vpop.permute.xlu0 %11073  ;;  %v11079_v25 = vpop.permute.xlu1 %11078  ;;  %v2116_v37 = vpack.c.bf16 %v2105_v51, %v2104_v58  ;;  %v13916_v42 = vadd.s32 16, %v13026_v45  ;;  %v13919_v1 = vadd.s32 24, %v13026_v45  ;;  %v835_v59 = vmul.f32 %v13816_v54, %v13468_v31 }
 0x2ca   :  { %v11081_v20 = vunpack.i.h.bf16 %v11079_v25  ;;  %v11080_v21 = vunpack.i.l.bf16 %v11079_v25  ;;  %v11076_v44 = vunpack.i.h.bf16 %v11074_v26  ;;  %v11075_v43 = vunpack.i.l.bf16 %v11074_v26 }
 0x2cb   :  { %9938 = vmatprep.mubr.msk.bf16.mxu0 %vm17866_vm12, %v2116_v37  ;;  %v836_v8 = vmul.f32 %v13818_v0, %v13513_v19  ;;  %vm444_vm0 = vcmp.ge.s32.totalorder %v13916_v42, %v13701_v12  ;;  %vm445_vm1 = vcmp.ge.s32.totalorder %v13919_v1, %v13701_v12  ;;  %vm449_vm11 = vcmp.lt.s32.totalorder %v13916_v42, %v13712_v24 }
 0x2cc   :  { %v2107_v46 = vsel %vm17871_vm10, %v2090_v39, %v11081_v20  ;;  %v2106_v34 = vsel %vm17871_vm10, %v2089_v63, %v11080_v21  ;;  %vm450_vm13 = vcmp.lt.s32.totalorder %v13919_v1, %v13712_v24  ;;  %v837_v31 = vmul.f32 %v13845_v17, %v13584_v9  ;;  %vm453_vm14 = vmand %vm444_vm0, %vm449_vm11 }
 0x2cd   :  { %v11084_v5 = vpop.permute.xlu0 %11083  ;;  %v11089_v48 = vpop.permute.xlu1 %11088  ;;  %v2117_v11 = vpack.c.bf16 %v2107_v46, %v2106_v34  ;;  %v838_v19 = vmul.f32 %v13847_v28, %v13608_v62  ;;  %v1989_v51 = vsel %vm17867_vm3, %v835_v59, %v11075_v43  ;;  %v1990_v53 = vsel %vm17867_vm3, %v836_v8, %v11076_v44  ;;  %vm454_vm15 = vmand %vm445_vm1, %vm450_vm13  ;;  %v9025_v28 = vld [vmem:[%s17656_s1 + $0x2] ss:$0 sm:$0xff] }
 0x2ce   :  { %v11086_v15 = vunpack.i.h.bf16 %v11084_v5  ;;  %v11085_v49 = vunpack.i.l.bf16 %v11084_v5  ;;  %v11091_v41 = vunpack.i.h.bf16 %v11089_v48  ;;  %v11090_v58 = vunpack.i.l.bf16 %v11089_v48 }
 0x2cf   :  { %9939 = vmatmul.mubr.msk.bf16.gmra.mrb[8].mxu0 %vm17866_vm12, %v2117_v11  ;;  %vm13939_vm12 = vmpackc.low %vm454_vm15, %vm453_vm14  ;;  %v18258_v9 = vmov 0  ;;  %v18261_v39 = vmov 1.0|1.0  }
 0x2d0   :  { %v18259_v9 = vsel %vm13939_vm12, 4294967295, %v18258_v9  ;;  %v1991_v62 = vsel %vm17867_vm3, %v837_v31, %v11085_v49  ;;  %v1992_v20 = vsel %vm17867_vm3, %v838_v19, %v11086_v15  ;;  %10599 = vmatprep.subr.msk.bf16.mxu1 %vm13939_vm12, %v18261_v39  ;;  %v2007_v46 = vsel %vm17868_vm4, %v1990_v53, %v11091_v41 }
 0x2d1   :  { %v11094_v50 = vpop.permute.xlu0 %11093  ;;  %v11099_v57 = vpop.permute.xlu1 %11098  ;;  %18260 = vst [vmem:[#allocation112_spill] sm:$0xff] %v18259_v9  ;;  %v2006_v34 = vsel %vm17868_vm4, %v1989_v51, %v11090_v58  ;;  %10601 = vmatpush3.bf16.msk.msra.mxu1 %vm13939_vm12, %v18261_v39 }
 0x2d2   :  { %v11096_v12 = vunpack.i.h.bf16 %v11094_v50  ;;  %v11095_v47 = vunpack.i.l.bf16 %v11094_v50  ;;  %v11101_v37 = vunpack.i.h.bf16 %v11099_v57  ;;  %v11100_v24 = vunpack.i.l.bf16 %v11099_v57  ;;  %10603 = vmatprep.subr.msk.bf16.mxu1 %vm13744_vm2, %v18261_v39 }
 0x2d4   :  { %v2008_v11 = vsel %vm17868_vm4, %v1991_v62, %v11095_v47  ;;  %v2009_v50 = vsel %vm17868_vm4, %v1992_v20, %v11096_v12  ;;  %v2023_v43 = vsel %vm2010_vm5, %v2006_v34, %v11100_v24 }
 0x2d5   :  { %v11104_v35 = vpop.permute.xlu0 %11103  ;;  %v11109_v22 = vpop.permute.xlu1 %11108 }
 0x2d6   :  { %v11106_v32 = vunpack.i.h.bf16 %v11104_v35  ;;  %v11105_v6 = vunpack.i.l.bf16 %v11104_v35  ;;  %v11111_v21 = vunpack.i.h.bf16 %v11109_v22  ;;  %v11110_v63 = vunpack.i.l.bf16 %v11109_v22 }
 0x2d8   :  { %v2025_v59 = vsel %vm2010_vm5, %v2008_v11, %v11105_v6  ;;  %v2026_v8 = vsel %vm2010_vm5, %v2009_v50, %v11106_v32  ;;  %v2040_v15 = vsel %vm2027_vm6, %v2023_v43, %v11110_v63 }
 0x2d9   :  { %v13913_v14 = vpop.permute.xlu0 %11113  ;;  %v11119_v40 = vpop.permute.xlu1 %11118 }
 0x2da   :  { %v11121_v5 = vunpack.i.h.bf16 %v11119_v40  ;;  %v11120_v48 = vunpack.i.l.bf16 %v11119_v40  ;;  %v2024_v40 = vsel %vm2010_vm5, %v2007_v46, %v11101_v37  ;;  %v11116_v41 = vunpack.i.h.bf16 %v13913_v14 }
 0x2db   :  { %v2041_v49 = vsel %vm2027_vm6, %v2024_v40, %v11111_v21  ;;  %v11115_v58 = vunpack.i.l.bf16 %v13913_v14  ;;  %vm18262_vm5 = vcmask 293888  }
 0x2dc   :  { %v2057_v51 = vsel %vm2044_vm7, %v2040_v15, %v11120_v48  ;;  %v2058_v53 = vsel %vm2044_vm7, %v2041_v49, %v11121_v5 }
 0x2dd   :  { %v11124_v26 = vpop.permute.xlu0 %11123  ;;  %v11129_v25 = vpop.permute.xlu1 %11128  ;;  %v2042_v5 = vsel %vm2027_vm6, %v2025_v59, %v11115_v58 }
 0x2de   :  { %v11131_v57 = vunpack.i.h.bf16 %v11129_v25  ;;  %v11130_v35 = vunpack.i.l.bf16 %v11129_v25  ;;  %v11126_v12 = vunpack.i.h.bf16 %v11124_v26  ;;  %v11125_v47 = vunpack.i.l.bf16 %v11124_v26 }
 0x2df   :  { %v2043_v26 = vsel %vm2027_vm6, %v2026_v8, %v11116_v41  ;;  %vm18263_vm6 = vmmov %vm18262_vm5  ;;  %v8966_v41 = vld [vmem:[%s17656_s1] ss:$0 sm:$0xff] }
 0x2e0   :  { %v2074_v25 = vsel %vm2061_vm8, %v2057_v51, %v11130_v35  ;;  %v2075_v37 = vsel %vm2061_vm8, %v2058_v53, %v11131_v57  ;;  %v2059_v50 = vsel %vm2044_vm7, %v2042_v5, %v11125_v47  ;;  %v2060_v57 = vsel %vm2044_vm7, %v2043_v26, %v11126_v12 }
 0x2e1   :  { %v11134_v22 = vpop.permute.xlu0 %11133  ;;  %v11139_v44 = vpop.permute.xlu1 %11138  ;;  %vm17869_vm7 = vmmov 0  }
 0x2e2   :  { %v11141_v31 = vunpack.i.h.bf16 %v11139_v44  ;;  %v11140_v19 = vunpack.i.l.bf16 %v11139_v44  ;;  %v11136_v6 = vunpack.i.h.bf16 %v11134_v22  ;;  %v11135_v62 = vunpack.i.l.bf16 %v11134_v22 }
 0x2e4   :  { %v2091_v63 = vsel %vm2078_vm9, %v2074_v25, %v11140_v19  ;;  %v2092_v14 = vsel %vm2078_vm9, %v2075_v37, %v11141_v31  ;;  %v2076_v44 = vsel %vm2061_vm8, %v2059_v50, %v11135_v62  ;;  %v2077_v43 = vsel %vm2061_vm8, %v2060_v57, %v11136_v6 }
 0x2e5   :  { %v11144_v24 = vpop.permute.xlu0 %11143  ;;  %v11149_v32 = vpop.permute.xlu1 %11148 }
 0x2e6   :  { %v11151_v20 = vunpack.i.h.bf16 %v11149_v32  ;;  %v11150_v21 = vunpack.i.l.bf16 %v11149_v32  ;;  %v11146_v46 = vunpack.i.h.bf16 %v11144_v24  ;;  %v11145_v34 = vunpack.i.l.bf16 %v11144_v24 }
 0x2e8   :  { %v2108_v48 = vsel %vm17871_vm10, %v2091_v63, %v11150_v21  ;;  %v2109_v11 = vsel %vm17871_vm10, %v2092_v14, %v11151_v20  ;;  %v2093_v59 = vsel %vm2078_vm9, %v2076_v44, %v11145_v34  ;;  %v2094_v8 = vsel %vm2078_vm9, %v2077_v43, %v11146_v46 }
 0x2e9   :  { %v11154_v35 = vpop.permute.xlu0 %11153  ;;  %v2118_v22 = vpack.c.bf16 %v2109_v11, %v2108_v48 }
 0x2ea   :  { %v11156_v40 = vunpack.i.h.bf16 %v11154_v35  ;;  %v11155_v15 = vunpack.i.l.bf16 %v11154_v35 }
 0x2eb   :  { %9942 = vmatprep.mubr.msk.bf16.mxu0 %vm18262_vm5, %v2118_v22  ;;  %v17883_v22 = vmov 0.0|0.0  }
 0x2ec   :  { %v2110_v49 = vsel %vm17871_vm10, %v2093_v59, %v11155_v15  ;;  %v2111_v31 = vsel %vm17871_vm10, %v2094_v8, %v11156_v40  ;;  %10610 = vmatprep.subr.bf16.mxu0 %v17883_v22 }
 0x2ed   :  { %v2119_v19 = vpack.c.bf16 %v2111_v31, %v2110_v49 }
 0x2ef   :  { %9943 = vmatmul.mubr.msk.bf16.gmra.mrb[12].mxu0 %vm18263_vm6, %v2119_v19 }
 0x35a   :  { %v9932_v58 = vpop.f32.mrb[0].mxu0 }
 0x35b   :  { %v2202_v51 = vpop.f32.mrb[1].mxu0  ;;  %v13995_v37 = vadd.f32 %v9932_v58, %v8966_v41 }
 0x35c   :  { %v13989_v53 = vadd.f32 %v8966_v41, %v2202_v51  ;;  %v9933_v12 = vpop.f32.mrb[2].mxu0 }
 0x35d   :  { %v2205_v47 = vpop.f32.mrb[3].mxu0  ;;  %18266 = vst [vmem:[#allocation133_spill] sm:$0xff] %v13995_v37  ;;  %v14004_v24 = vadd.f32 %v9933_v12, %v8966_v41  ;;  %v2460_v51 = vmul.f32 %v13995_v37, %v13995_v37 }
 0x35e   :  { %18264 = vst [vmem:[#allocation12_spill] sm:$0xff] %v13989_v53  ;;  %v13991_v25 = vadd.f32 %v8966_v41, %v2205_v47  ;;  %9954 = vmatprep.mubr.msk.f32.mxu1 %vm17871_vm10, %v13989_v53  ;;  %v2458_v19 = vmul.f32 %v13989_v53, %v13989_v53 }
 0x35f   :  { %18267 = vst [vmem:[#allocation134_spill] sm:$0xff] %v14004_v24 }
 0x360   :  { %18265 = vst [vmem:[#allocation118_spill] sm:$0xff] %v13991_v25  ;;  %9955 = vmatmul.mubr.msk.f32.vlgmr.msra.gmra.mrb[0].mxu1 %vm17871_vm10, %v13991_v25  ;;  %v2459_v58 = vmul.f32 %v13991_v25, %v13991_v25 }
 0x361   :  { %9957 = vmatprep.mubr.msk.f32.mxu1 %vm17871_vm10, %v13995_v37  ;;  %10605 = vmatpush3.bf16.msk.msra.mxu1 %vm13744_vm2, %v18261_v39 }
 0x362   :  { %10607 = vmatprep.subr.msk.bf16.mxu1 %vm13939_vm12, %v18261_v39 }
 0x364   :  { %9958 = vmatmul.mubr.msk.f32.gmra.mrb[2].mxu1 %vm17871_vm10, %v14004_v24 }
 0x365   :  { %10609 = vmatpush3.bf16.msk.msra.mxu1 %vm13939_vm12, %v18261_v39 }
 0x366   :  { %10634 = vmatprep.subr.bf16.mxu1 %v17883_v22 }
 0x382   :  { %v9936_v32 = vpop.f32.mrb[4].mxu0 }
 0x383   :  { %v2218_v6 = vpop.f32.mrb[5].mxu0  ;;  %v14020_v14 = vadd.f32 %v9936_v32, %v8966_v41 }
 0x384   :  { %v14014_v62 = vadd.f32 %v8966_v41, %v2218_v6  ;;  %v9937_v20 = vpop.f32.mrb[6].mxu0 }
 0x385   :  { %v2221_v21 = vpop.f32.mrb[7].mxu0  ;;  %18270 = vst [vmem:[#allocation137_spill] sm:$0xff] %v14020_v14  ;;  %v14026_v46 = vadd.f32 %v9937_v20, %v8966_v41  ;;  %v2464_v32 = vmul.f32 %v14020_v14, %v14020_v14 }
 0x386   :  { %18268 = vst [vmem:[#allocation135_spill] sm:$0xff] %v14014_v62  ;;  %v14016_v63 = vadd.f32 %v8966_v41, %v2221_v21  ;;  %9960 = vmatprep.mubr.msk.f32.mxu1 %vm17871_vm10, %v14014_v62  ;;  %v2462_v12 = vmul.f32 %v14014_v62, %v14014_v62 }
 0x387   :  { %18271 = vst [vmem:[#allocation138_spill] sm:$0xff] %v14026_v46  ;;  %v2465_v6 = vmul.f32 %v14026_v46, %v14026_v46 }
 0x388   :  { %18269 = vst [vmem:[#allocation136_spill] sm:$0xff] %v14016_v63  ;;  %9961 = vmatmul.mubr.msk.f32.gmra.mrb[4].mxu1 %vm17871_vm10, %v14016_v63  ;;  %v2463_v47 = vmul.f32 %v14016_v63, %v14016_v63 }
 0x389   :  { %9963 = vmatprep.mubr.msk.f32.mxu1 %vm17871_vm10, %v14020_v14 }
 0x38c   :  { %9964 = vmatmul.mubr.msk.f32.gmra.mrb[6].mxu1 %vm17871_vm10, %v14026_v46 }
 0x3a2   :  { %v9940_v34 = vpop.f32.mrb[8].mxu0 }
 0x3a3   :  { %v2234_v5 = vpop.f32.mrb[9].mxu0  ;;  %v14036_v57 = vadd.f32 %v9940_v34, %v8966_v41 }
 0x3a4   :  { %v14030_v26 = vadd.f32 %v8966_v41, %v2234_v5  ;;  %v9941_v48 = vpop.f32.mrb[10].mxu0 }
 0x3a5   :  { %v2237_v11 = vpop.f32.mrb[11].mxu0  ;;  %18274 = vst [vmem:[#allocation141_spill] sm:$0xff] %v14036_v57  ;;  %v14042_v35 = vadd.f32 %v9941_v48, %v8966_v41  ;;  %v2468_v34 = vmul.f32 %v14036_v57, %v14036_v57 }
 0x3a6   :  { %18272 = vst [vmem:[#allocation139_spill] sm:$0xff] %v14030_v26  ;;  %v14032_v50 = vadd.f32 %v8966_v41, %v2237_v11  ;;  %9966 = vmatprep.mubr.msk.f32.mxu1 %vm17871_vm10, %v14030_v26  ;;  %v2466_v20 = vmul.f32 %v14030_v26, %v14030_v26 }
 0x3a7   :  { %18275 = vst [vmem:[#allocation142_spill] sm:$0xff] %v14042_v35  ;;  %v2469_v5 = vmul.f32 %v14042_v35, %v14042_v35 }
 0x3a8   :  { %18273 = vst [vmem:[#allocation140_spill] sm:$0xff] %v14032_v50  ;;  %9967 = vmatmul.mubr.msk.f32.gmra.mrb[8].mxu1 %vm17871_vm10, %v14032_v50  ;;  %v2467_v21 = vmul.f32 %v14032_v50, %v14032_v50 }
 0x3a9   :  { %9969 = vmatprep.mubr.msk.f32.mxu1 %vm17871_vm10, %v14036_v57 }
 0x3ac   :  { %9970 = vmatmul.mubr.msk.f32.gmra.mrb[10].mxu1 %vm17871_vm10, %v14042_v35 }
 0x3c2   :  { %v9944_v44 = vpop.f32.mrb[12].mxu0 }
 0x3c3   :  { %v2250_v43 = vpop.f32.mrb[13].mxu0  ;;  %v14054_v49 = vadd.f32 %v9944_v44, %v8966_v41 }
 0x3c4   :  { %v14048_v40 = vadd.f32 %v8966_v41, %v2250_v43  ;;  %v9945_v15 = vpop.f32.mrb[14].mxu0 }
 0x3c5   :  { %v2253_v59 = vpop.f32.mrb[15].mxu0  ;;  %18278 = vst [vmem:[#allocation145_spill] sm:$0xff] %v14054_v49  ;;  %v14060_v31 = vadd.f32 %v9945_v15, %v8966_v41  ;;  %v2472_v44 = vmul.f32 %v14054_v49, %v14054_v49 }
 0x3c6   :  { %18276 = vst [vmem:[#allocation143_spill] sm:$0xff] %v14048_v40  ;;  %v14050_v8 = vadd.f32 %v8966_v41, %v2253_v59  ;;  %9972 = vmatprep.mubr.msk.f32.mxu1 %vm17871_vm10, %v14048_v40  ;;  %v2461_v41 = vmul.f32 %v14004_v24, %v14004_v24  ;;  %v2470_v48 = vmul.f32 %v14048_v40, %v14048_v40 }
 0x3c7   :  { %18279 = vst [vmem:[#allocation146_spill] sm:$0xff] %v14060_v31  ;;  %v2473_v43 = vmul.f32 %v14060_v31, %v14060_v31 }
 0x3c8   :  { %18277 = vst [vmem:[#allocation144_spill] sm:$0xff] %v14050_v8  ;;  %9973 = vmatmul.mubr.msk.f32.gmra.mrb[12].mxu1 %vm17871_vm10, %v14050_v8  ;;  %v2471_v11 = vmul.f32 %v14050_v8, %v14050_v8 }
 0x3c9   :  { %9975 = vmatprep.mubr.msk.f32.mxu1 %vm17871_vm10, %v14054_v49 }
 0x3cc   :  { %9976 = vmatmul.mubr.msk.f32.gmra.mrb[14].mxu1 %vm17871_vm10, %v14060_v31 }
 0x3cd   :  { %9986 = vmatprep.mubr.msk.f32.mxu1 %vm17871_vm10, %v2458_v19 }
 0x3d0   :  { %9987 = vmatmul.mubr.msk.f32.vlgmr.msra.gmra.mrb[16].mxu1 %vm17871_vm10, %v2459_v58 }
 0x3d1   :  { %9989 = vmatprep.mubr.msk.f32.mxu1 %vm17871_vm10, %v2460_v51 }
 0x3d4   :  { %9990 = vmatmul.mubr.msk.f32.gmra.mrb[18].mxu1 %vm17871_vm10, %v2461_v41 }
 0x3d5   :  { %9992 = vmatprep.mubr.msk.f32.mxu1 %vm17871_vm10, %v2462_v12  ;;  %v17885_v12 = vmov 0.0  }
 0x3d6   :  { %10042 = vmatprep.mubr.msk.f32.mxu0 %vm17869_vm7, %v17885_v12 }
 0x3d8   :  { %9993 = vmatmul.mubr.msk.f32.gmra.mrb[20].mxu1 %vm17871_vm10, %v2463_v47 }
 0x3d9   :  { %9995 = vmatprep.mubr.msk.f32.mxu1 %vm17871_vm10, %v2464_v32 }
 0x3dc   :  { %9996 = vmatmul.mubr.msk.f32.gmra.mrb[22].mxu1 %vm17871_vm10, %v2465_v6 }
 0x3dd   :  { %9998 = vmatprep.mubr.msk.f32.mxu1 %vm17871_vm10, %v2466_v20 }
 0x3e0   :  { %9999 = vmatmul.mubr.msk.f32.gmra.mrb[24].mxu1 %vm17871_vm10, %v2467_v21 }
 0x3e1   :  { %10001 = vmatprep.mubr.msk.f32.mxu1 %vm17871_vm10, %v2468_v34 }
 0x3e4   :  { %10002 = vmatmul.mubr.msk.f32.gmra.mrb[26].mxu1 %vm17871_vm10, %v2469_v5 }
 0x3e5   :  { %10004 = vmatprep.mubr.msk.f32.mxu1 %vm17871_vm10, %v2470_v48 }
 0x3e8   :  { %10005 = vmatmul.mubr.msk.f32.gmra.mrb[28].mxu1 %vm17871_vm10, %v2471_v11 }
 0x3e9   :  { %10007 = vmatprep.mubr.msk.f32.mxu1 %vm17871_vm10, %v2472_v44 }
 0x3ec   :  { %10008 = vmatmul.mubr.msk.f32.gmra.mrb[30].mxu1 %vm17871_vm10, %v2473_v43 }
 0x3ed   :  { %10077 = vmatprep.mubr.msk.f32.mxu1 %vm17869_vm7, %v17885_v12 }
 0x433   :  { %v9956_v15 = vpop.f32.mrb[0].mxu1 }
 0x434   :  { %v2379_v59 = vpop.f32.mrb[1].mxu1 }
 0x435   :  { %v10611_v19 = vpack.c.bf16 %v9956_v15, %v2379_v59  ;;  %v14123_v59 = vadd.s32 1, %v13026_v45 }
 0x437   :  { %v9959_v58 = vpop.f32.mrb[2].mxu1  ;;  %10612 = vmatpush3.bf16.msra.mxu0 %v10611_v19 }
 0x438   :  { %v2389_v51 = vpop.f32.mrb[3].mxu1  ;;  %10613 = vmatprep.subr.bf16.mxu0 %v17883_v22 }
 0x439   :  { %v10614_v41 = vpack.c.bf16 %v9959_v58, %v2389_v51  ;;  %v433_v51 = vmul.u32 64, %v13026_v45 }
 0x43b   :  { %10615 = vmatpush3.bf16.msra.mxu0 %v10614_v41  ;;  %v436_v41 = vmul.u32 64, %v14123_v59  ;;  %vm434_vm8 = vcmp.ge.s32.totalorder %v13681_v18, %v433_v51 }
 0x43c   :  { %10616 = vmatprep.subr.bf16.mxu0 %v17883_v22 }
 0x43d   :  { %vm437_vm9 = vcmp.lt.s32.totalorder %v13681_v18, %v436_v41 }
 0x43e   :  { %vm14130_vm0 = vmand %vm434_vm8, %vm437_vm9  ;;  %vm17872_vm9 = vcmask 15360  }
 0x45b   :  { %v9962_v47 = vpop.f32.mrb[4].mxu1 }
 0x45c   :  { %v2399_v32 = vpop.f32.mrb[5].mxu1 }
 0x45d   :  { %v10617_v6 = vpack.c.bf16 %v9962_v47, %v2399_v32 }
 0x45f   :  { %v9965_v20 = vpop.f32.mrb[6].mxu1  ;;  %10618 = vmatpush3.bf16.msra.mxu0 %v10617_v6 }
 0x460   :  { %v2409_v21 = vpop.f32.mrb[7].mxu1  ;;  %10619 = vmatprep.subr.bf16.mxu0 %v17883_v22 }
 0x461   :  { %v10620_v34 = vpack.c.bf16 %v9965_v20, %v2409_v21 }
 0x463   :  { %10621 = vmatpush3.bf16.msra.mxu0 %v10620_v34  ;;  %v18280_v34 = vmov 0 }
 0x464   :  { %10622 = vmatprep.subr.bf16.mxu0 %v17883_v22  ;;  %v18281_v34 = vsel %vm14130_vm0, 4294967295, %v18280_v34 }
 0x465   :  { %18282 = vst [vmem:[#allocation147_spill] sm:$0xff] %v18281_v34 }
 0x47b   :  { %v9968_v5 = vpop.f32.mrb[8].mxu1 }
 0x47c   :  { %v2419_v48 = vpop.f32.mrb[9].mxu1 }
 0x47d   :  { %v10623_v11 = vpack.c.bf16 %v9968_v5, %v2419_v48 }
 0x47f   :  { %v9971_v44 = vpop.f32.mrb[10].mxu1  ;;  %10624 = vmatpush3.bf16.msra.mxu0 %v10623_v11  ;;  %v17881_v11 = vmov 1.0  }
 0x480   :  { %v2429_v43 = vpop.f32.mrb[11].mxu1  ;;  %10625 = vmatprep.subr.bf16.mxu0 %v17883_v22 }
 0x481   :  { %v10626_v15 = vpack.c.bf16 %v9971_v44, %v2429_v43 }
 0x483   :  { %10627 = vmatpush3.bf16.msra.mxu0 %v10626_v15 }
 0x484   :  { %10628 = vmatprep.subr.bf16.mxu0 %v17883_v22 }
 0x49b   :  { %v9974_v19 = vpop.f32.mrb[12].mxu1 }
 0x49c   :  { %v2439_v58 = vpop.f32.mrb[13].mxu1 }
 0x49d   :  { %v10629_v47 = vpack.c.bf16 %v9974_v19, %v2439_v58 }
 0x49f   :  { %v9977_v32 = vpop.f32.mrb[14].mxu1  ;;  %10630 = vmatpush3.bf16.msra.mxu0 %v10629_v47 }
 0x4a0   :  { %v2449_v6 = vpop.f32.mrb[15].mxu1  ;;  %10631 = vmatprep.subr.bf16.mxu0 %v17883_v22 }
 0x4a1   :  { %v10632_v20 = vpack.c.bf16 %v9977_v32, %v2449_v6 }
 0x4a3   :  { %v9988_v21 = vpop.f32.mrb[16].mxu1  ;;  %10633 = vmatpush3.bf16.msra.mxu0 %v10632_v20 }
 0x4a4   :  { %v2588_v5 = vpop.f32.mrb[17].mxu1  ;;  %10085 = vmatprep.subr.mxu0 %v17885_v12 }
 0x4a5   :  { %v10635_v48 = vpack.c.bf16 %v9988_v21, %v2588_v5 }
 0x4a6   :  { %10043 = vmatmul.mubr.msk.f32.vlgmr.msra.gmra.mrb[16].mxu0 %vm14130_vm0, %v17881_v11 }
 0x4a7   :  { %v9991_v44 = vpop.f32.mrb[18].mxu1  ;;  %10636 = vmatpush3.bf16.msra.mxu1 %v10635_v48  ;;  %10087 = vmatprep.mubr.msk.f32.mxu0 %vm17869_vm7, %v17885_v12 }
 0x4a8   :  { %v2598_v43 = vpop.f32.mrb[19].mxu1  ;;  %10637 = vmatprep.subr.bf16.mxu1 %v17883_v22 }
 0x4a9   :  { %v10638_v15 = vpack.c.bf16 %v9991_v44, %v2598_v43 }
 0x4ab   :  { %v9994_v19 = vpop.f32.mrb[20].mxu1  ;;  %10639 = vmatpush3.bf16.msra.mxu1 %v10638_v15 }
 0x4ac   :  { %v2608_v58 = vpop.f32.mrb[21].mxu1  ;;  %10640 = vmatprep.subr.bf16.mxu1 %v17883_v22 }
 0x4ad   :  { %v10641_v51 = vpack.c.bf16 %v9994_v19, %v2608_v58 }
 0x4af   :  { %v9997_v41 = vpop.f32.mrb[22].mxu1  ;;  %10642 = vmatpush3.bf16.msra.mxu1 %v10641_v51 }
 0x4b0   :  { %v2618_v47 = vpop.f32.mrb[23].mxu1  ;;  %10643 = vmatprep.subr.bf16.mxu1 %v17883_v22 }
 0x4b1   :  { %v10644_v32 = vpack.c.bf16 %v9997_v41, %v2618_v47  ;;  %v463_v47 = vmul.u32 4, %v13026_v45 }
 0x4b3   :  { %v10000_v6 = vpop.f32.mrb[24].mxu1  ;;  %10645 = vmatpush3.bf16.msra.mxu1 %v10644_v32  ;;  %v465_v32 = vmul.u32 4, %v14123_v59  ;;  %vm464_vm1 = vcmp.ge.s32.totalorder %v13681_v18, %v463_v47  ;;  %v14173_v47 = vmul.u32 64, %v13698_v55 }
 0x4b4   :  { %v2628_v20 = vpop.f32.mrb[25].mxu1  ;;  %10646 = vmatprep.subr.bf16.mxu1 %v17883_v22 }
 0x4b5   :  { %v10647_v21 = vpack.c.bf16 %v10000_v6, %v2628_v20  ;;  %vm466_vm11 = vcmp.lt.s32.totalorder %v13681_v18, %v465_v32  ;;  %v18283_v6 = vmov 0  ;;  %vm369_vm15 = vcmp.lt.s32.totalorder %v13026_v45, %v14173_v47 }
 0x4b6   :  { %vm14157_vm13 = vmand %vm464_vm1, %vm466_vm11  ;;  %vm370_vm8 = vcmp.lt.s32.totalorder %v13689_v61, %v14173_v47 }
 0x4b7   :  { %v10003_v5 = vpop.f32.mrb[26].mxu1  ;;  %10648 = vmatpush3.bf16.msra.mxu1 %v10647_v21  ;;  %v18284_v6 = vsel %vm14157_vm13, 4294967295, %v18283_v6  ;;  %10086 = vmatpush3.msk.msra.mxu0 %vm14157_vm13, %v17881_v11 }
 0x4b8   :  { %v2638_v48 = vpop.f32.mrb[27].mxu1  ;;  %10649 = vmatprep.subr.bf16.mxu1 %v17883_v22  ;;  %18285 = vst [vmem:[#allocation148_spill] sm:$0xff] %v18284_v6 }
 0x4b9   :  { %v10650_v44 = vpack.c.bf16 %v10003_v5, %v2638_v48 }
 0x4bb   :  { %v10006_v43 = vpop.f32.mrb[28].mxu1  ;;  %10651 = vmatpush3.bf16.msra.mxu1 %v10650_v44 }
 0x4bc   :  { %v2648_v15 = vpop.f32.mrb[29].mxu1  ;;  %10652 = vmatprep.subr.bf16.mxu1 %v17883_v22 }
 0x4bd   :  { %v10653_v19 = vpack.c.bf16 %v10006_v43, %v2648_v15 }
 0x4bf   :  { %v10009_v58 = vpop.f32.mrb[30].mxu1  ;;  %10654 = vmatpush3.bf16.msra.mxu1 %v10653_v19 }
 0x4c0   :  { %v2658_v51 = vpop.f32.mrb[31].mxu1  ;;  %10655 = vmatprep.subr.bf16.mxu1 %v17883_v22 }
 0x4c1   :  { %v10656_v41 = vpack.c.bf16 %v10009_v58, %v2658_v51 }
 0x4c3   :  { %10657 = vmatpush3.bf16.msra.mxu1 %v10656_v41  ;;  %v14170_v41 = vmul.u32 64, %v13681_v18 }
 0x4c4   :  { %10080 = vmatprep.subr.mxu1 %v17885_v12 }
 0x4c5   :  { %vm351_vm14 = vcmp.ge.s32.totalorder %v13026_v45, %v14170_v41  ;;  %vm352_vm6 = vcmp.ge.s32.totalorder %v13689_v61, %v14170_v41  ;;  %vm353_vm11 = vcmp.ge.s32.totalorder %v13916_v42, %v14170_v41 }
 0x4c6   :  { %10078 = vmatmul.mubr.msk.f32.vlgmr.msra.gmra.mrb[32].mxu1 %vm14130_vm0, %v17881_v11  ;;  %vm385_vm5 = vmand %vm351_vm14, %vm369_vm15  ;;  %vm371_vm14 = vcmp.lt.s32.totalorder %v13916_v42, %v14173_v47 }
 0x4c7   :  { %10082 = vmatprep.mubr.msk.f32.mxu1 %vm17869_vm7, %v17885_v12  ;;  %10081 = vmatpush3.msk.msra.mxu1 %vm14157_vm13, %v17881_v11  ;;  %v14184_v32 = vsel %vm385_vm5, 1.0, %v17885_v12  ;;  %vm14186_vm1 = vmand %vm352_vm6, %vm370_vm8  ;;  %vm354_vm5 = vcmp.ge.s32.totalorder %v13919_v1, %v14170_v41  ;;  %vm372_vm6 = vcmp.lt.s32.totalorder %v13919_v1, %v14173_v47  ;;  %v347_v11 = vadd.s32 120, %v13026_v45 }
 0x4c8   :  { %18286 = vst [vmem:[#allocation149_spill] sm:$0xff] %v14184_v32  ;;  %vm14198_vm15 = vmand %vm353_vm11, %vm371_vm14 }
 0x4c9   :  { %vm14206_vm8 = vmand %vm354_vm5, %vm372_vm6 }
 0x579   :  { %v2733_v20 = vpop.f32.mrb[16].mxu0 }
 0x57a   :  { %v2737_v21 = vmul.f32 0.00390625, %v2733_v20  ;;  %v10044_v5 = vpop.f32.mrb[17].mxu0  ;;  %v336_v20 = vadd.s32 32, %v13026_v45 }
 0x57b   :  { %v338_v5 = vadd.s32 48, %v13026_v45 }
 0x57c   :  { %10088 = vmatmul.mubr.msk.f32.vlgmr.msra.gmra.mrb[18].mxu0 %vm17868_vm4, %v2737_v21  ;;  %v2809_v59 = vmul.f32 %v2737_v21, %v2737_v21  ;;  %v337_v21 = vadd.s32 40, %v13026_v45  ;;  %vm355_vm3 = vcmp.ge.s32.totalorder %v336_v20, %v14170_v41  ;;  %vm373_vm11 = vcmp.lt.s32.totalorder %v336_v20, %v14173_v47 }
 0x57d   :  { %10092 = vmatprep.mubr.msk.f32.mxu0 %vm17872_vm9, %v14184_v32  ;;  %vm14214_vm14 = vmand %vm355_vm3, %vm373_vm11  ;;  %vm357_vm6 = vcmp.ge.s32.totalorder %v338_v5, %v14170_v41  ;;  %vm375_vm10 = vcmp.lt.s32.totalorder %v338_v5, %v14173_v47  ;;  %v343_v20 = vadd.s32 88, %v13026_v45  ;;  %v18307_v5 = vmov 0 }
 0x57e   :  { %vm374_vm7 = vcmp.lt.s32.totalorder %v337_v21, %v14173_v47  ;;  %vm14228_vm3 = vmand %vm357_vm6, %vm375_vm10 }
 0x57f   :  { %vm380_vm2 = vcmp.lt.s32.totalorder %v343_v20, %v14173_v47 }
 0x599   :  { %v2804_v48 = vpop.f32.mrb[32].mxu1 }
 0x59a   :  { %v2808_v44 = vmul.f32 0.00390625, %v2804_v48  ;;  %v10079_v43 = vpop.f32.mrb[33].mxu1 }
 0x59b   :  { %v340_v43 = vadd.s32 64, %v13026_v45 }
 0x59c   :  { %v2810_v15 = vsub.f32 %v2808_v44, %v2809_v59  ;;  %v339_v59 = vadd.s32 56, %v13026_v45 }
 0x59d   :  { %vm377_vm13 = vcmp.lt.s32.totalorder %v340_v43, %v14173_v47 }
 0x59e   :  { %v2811_v19 = vmax.f32 %v2810_v15, 0.0  ;;  %vm358_vm11 = vcmp.ge.s32.totalorder %v339_v59, %v14170_v41  ;;  %v341_v15 = vadd.s32 72, %v13026_v45 }
 0x5a0   :  { %v2812_v58 = vadd.f32 1e-05, %v2811_v19  ;;  %vm360_vm6 = vcmp.ge.s32.totalorder %v341_v15, %v14170_v41  ;;  %vm378_vm0 = vcmp.lt.s32.totalorder %v341_v15, %v14173_v47  ;;  %v18309_v15 = vmov 0 }
 0x5a2   :  { %11967 = vrsqrt.f32 %v2812_v58  ;;  %v18303_v58 = vmov 0 }
 0x5ac   :  { %v11968_v51 = vpop.eup %11967 }
 0x5ad   :  { %10083 = vmatmul.mubr.msk.f32.vlgmr.msra.gmra.mrb[34].mxu1 %vm17868_vm4, %v11968_v51  ;;  %vm356_vm4 = vcmp.ge.s32.totalorder %v337_v21, %v14170_v41  ;;  %v342_v51 = vadd.s32 80, %v13026_v45  ;;  %v18305_v21 = vmov 0 }
 0x5ae   :  { %10118 = vmatprep.mubr.msk.f32.mxu1 %vm17872_vm9, %v14184_v32  ;;  %vm14220_vm5 = vmand %vm356_vm4, %vm374_vm7  ;;  %vm376_vm9 = vcmp.lt.s32.totalorder %v339_v59, %v14173_v47  ;;  %vm359_vm7 = vcmp.ge.s32.totalorder %v340_v43, %v14170_v41  ;;  %v344_v59 = vadd.s32 96, %v13026_v45  ;;  %v345_v43 = vadd.s32 104, %v13026_v45  ;;  %v9022_v32 = vld [vmem:[%s17656_s1 + $0x1] ss:$0 sm:$0xff] }
 0x5af   :  { %vm14234_vm4 = vmand %vm358_vm11, %vm376_vm9  ;;  %vm361_vm11 = vcmp.ge.s32.totalorder %v342_v51, %v14170_v41  ;;  %vm379_vm12 = vcmp.lt.s32.totalorder %v342_v51, %v14173_v47 }
 0x5b0   :  { %vm14242_vm10 = vmand %vm359_vm7, %vm377_vm13  ;;  %vm362_vm7 = vcmp.ge.s32.totalorder %v343_v20, %v14170_v41  ;;  %v346_v20 = vadd.s32 112, %v13026_v45 }
 0x5b1   :  { %vm14248_vm9 = vmand %vm360_vm6, %vm378_vm0  ;;  %vm363_vm6 = vcmp.ge.s32.totalorder %v344_v59, %v14170_v41 }
 0x5b2   :  { %v18304_v58 = vsel %vm14248_vm9, 4294967295, %v18303_v58  ;;  %vm14256_vm13 = vmand %vm361_vm11, %vm379_vm12  ;;  %vm381_vm9 = vcmp.lt.s32.totalorder %v344_v59, %v14173_v47  ;;  %vm364_vm11 = vcmp.ge.s32.totalorder %v345_v43, %v14170_v41 }
 0x5b3   :  { %v18306_v21 = vsel %vm14256_vm13, 4294967295, %v18305_v21  ;;  %vm14262_vm0 = vmand %vm362_vm7, %vm380_vm2  ;;  %vm382_vm13 = vcmp.lt.s32.totalorder %v345_v43, %v14173_v47  ;;  %vm365_vm7 = vcmp.ge.s32.totalorder %v346_v20, %v14170_v41 }
 0x5b4   :  { %v18308_v5 = vsel %vm14262_vm0, 4294967295, %v18307_v5  ;;  %vm14270_vm12 = vmand %vm363_vm6, %vm381_vm9  ;;  %vm383_vm0 = vcmp.lt.s32.totalorder %v346_v20, %v14173_v47  ;;  %vm366_vm6 = vcmp.ge.s32.totalorder %v347_v11, %v14170_v41  ;;  %v18317_v41 = vmov 0.0  }
 0x5b5   :  { %v18310_v15 = vsel %vm14270_vm12, 4294967295, %v18309_v15  ;;  %vm14276_vm2 = vmand %vm364_vm11, %vm382_vm13  ;;  %vm384_vm12 = vcmp.lt.s32.totalorder %v347_v11, %v14173_v47  ;;  %v14303_v11 = vsel %vm14186_vm1, 1.0, %v18317_v41  ;;  %vm18322_vm11 = vcmask 15360  }
 0x5b6   :  { %vm14284_vm9 = vmand %vm365_vm7, %vm383_vm0  ;;  %18318 = vst [vmem:[#allocation150_spill] sm:$0xff] %v14303_v11  ;;  %vm18319_vm0 = vcmask 1041408   ;;  %v14357_v18 = vsel %vm14234_vm4, 1.0, %v18317_v41  ;;  %v14362_v61 = vsel %vm14242_vm10, 1.0, %v18317_v41  ;;  %vm18344_vm4 = vnez %v18304_v58 }
 0x5b7   :  { %vm14290_vm13 = vmand %vm366_vm6, %vm384_vm12  ;;  %18338 = vst [vmem:[#allocation156_spill] sm:$0xff] %v14357_v18  ;;  %v14375_v55 = vsel %vm18344_vm4, 1.0, %v18317_v41  ;;  %vm18346_vm10 = vnez %v18306_v21  ;;  %v14411_v44 = vsel %vm14276_vm2, 1.0, %v18317_v41  ;;  %v14416_v19 = vsel %vm14284_vm9, 1.0, %v18317_v41  ;;  %v11881_v21 = vld [vmem:[%s17655_s2 + $0x80] sm:$0xff]  }
 0x5b8   :  { %vm18321_vm12 = vmmov %vm18319_vm0  ;;  %18339 = vst [vmem:[#allocation157_spill] sm:$0xff] %v14362_v61  ;;  %v14380_v42 = vsel %vm18346_vm10, 1.0, %v18317_v41  ;;  %v14429_v58 = vsel %vm14290_vm13, 1.0, %v18317_v41  ;;  %vm18369_vm13 = vnez %v18248_v10 }
 0x5b9   :  { %vm18323_vm7 = vmmov %vm18322_vm11  ;;  %18345 = vst [vmem:[#allocation158_spill] sm:$0xff] %v14375_v55 }
 0x5ba   :  { %vm18325_vm1 = vmmov %vm18319_vm0  ;;  %18347 = vst [vmem:[#allocation159_spill] sm:$0xff] %v14380_v42 }
 0x5bb   :  { %vm18328_vm6 = vmmov %vm18323_vm7  ;;  %18359 = vst [vmem:[#allocation162_spill] sm:$0xff] %v14411_v44 }
 0x5bc   :  { %18360 = vst [vmem:[#allocation163_spill] sm:$0xff] %v14416_v19  ;;  %18364 = vst [vmem:[#allocation164_spill] sm:$0xff] %v14429_v58 }
 0x64f   :  { %v2961_v22 = vpop.f32.mrb[18].mxu0 }
 0x650   :  { %v10089_v12 = vpop.f32.mrb[19].mxu0 }
 0x651   :  { %v14309_v12 = vsel %vm14198_vm15, 1.0, %v18317_v41  ;;  %vm18327_vm15 = vmmov %vm18319_vm0 }
 0x652   :  { %18320 = vst [vmem:[#allocation151_spill] sm:$0xff] %v14309_v12 }
 0x680   :  { %v2883_v6 = vpop.f32.mrb[34].mxu1 }
 0x681   :  { %v2891_v20 = vmul.f32 %v9022_v32, %v2883_v6  ;;  %v10084_v34 = vpop.f32.mrb[35].mxu1  ;;  %v14325_v6 = vsel %vm14214_vm14, 1.0, %v18317_v41  ;;  %v14344_v32 = vsel %vm14228_vm3, 1.0, %v18317_v41 }
 0x682   :  { %18326 = vst [vmem:[#allocation153_spill] sm:$0xff] %v14325_v6  ;;  %18333 = vst [vmem:[#allocation155_spill] sm:$0xff] %v14344_v32 }
 0x683   :  { %v2965_v47 = vmul.f32 %v2961_v22, %v2891_v20  ;;  %10090 = vmatprep.subr.msk.mxu0 %vm18319_vm0, %v2891_v20  ;;  %v14319_v22 = vsel %vm14206_vm8, 1.0, %v18317_v41  ;;  %vm18329_vm0 = vmmov %vm18328_vm6 }
 0x684   :  { %10091 = vmatpush3.msk.msra.mxu0 %vm18321_vm12, %v2891_v20  ;;  %18324 = vst [vmem:[#allocation152_spill] sm:$0xff] %v14319_v22  ;;  %vm18330_vm12 = vmmov %vm18329_vm0 }
 0x685   :  { %v2970_v34 = vsub.f32 %v9025_v28, %v2965_v47  ;;  %10093 = vmatmul.mubr.msk.f32.vlgmr.msra.gmra.mrb[20].mxu0 %vm18322_vm11, %v14303_v11  ;;  %vm18331_vm8 = vmmov %vm18329_vm0  ;;  %v14339_v28 = vsel %vm14220_vm5, 1.0, %v18317_v41 }
 0x686   :  { %10095 = vmatprep.mubr.msk.f32.mxu0 %vm18323_vm7, %v14309_v12  ;;  %18332 = vst [vmem:[#allocation154_spill] sm:$0xff] %v14339_v28  ;;  %vm18334_vm14 = vmmov %vm18329_vm0 }
 0x687   :  { %10116 = vmatprep.subr.msk.mxu1 %vm18325_vm1, %v2970_v34  ;;  %vm18335_vm11 = vmmov %vm18329_vm0 }
 0x688   :  { %10117 = vmatpush3.msk.msra.mxu1 %vm18327_vm15, %v2970_v34  ;;  %vm18336_vm7 = vmmov %vm18329_vm0 }
 0x689   :  { %10096 = vmatmul.mubr.msk.f32.gmra.mrb[22].mxu0 %vm18328_vm6, %v14319_v22  ;;  %10119 = vmatmul.mubr.msk.f32.vlgmr.msra.gmra.mrb[36].mxu1 %vm18329_vm0, %v14303_v11  ;;  %vm18337_vm1 = vmmov %vm18329_vm0 }
 0x68a   :  { %10098 = vmatprep.mubr.msk.f32.mxu0 %vm18330_vm12, %v14325_v6  ;;  %10121 = vmatprep.mubr.msk.f32.mxu1 %vm18331_vm8, %v14309_v12  ;;  %vm18340_vm5 = vmmov %vm18329_vm0  ;;  %v18386_v12 = vld [vmem:[#allocation94_spill] sm:$0xff] }
 0x68b   :  { %vm18341_vm3 = vmmov %vm18329_vm0  ;;  %10142 = vmatprep.subr.bf16.mxu1 %v11881_v21 }
 0x68c   :  { %vm18342_vm15 = vmmov %vm18329_vm0  ;;  %10143 = vmatpush3.bf16.msra.mxu1 %v11881_v21 }
 0x68d   :  { %10099 = vmatmul.mubr.msk.f32.gmra.mrb[24].mxu0 %vm18334_vm14, %v14339_v28  ;;  %10122 = vmatmul.mubr.msk.f32.gmra.mrb[38].mxu1 %vm18335_vm11, %v14319_v22  ;;  %vm18343_vm6 = vmmov %vm18329_vm0  ;;  %vm18351_vm11 = vnez %v18308_v5  ;;  %v11882_v5 = vld [vmem:[%s17655_s2 + $0x88] sm:$0xff]  }
 0x68e   :  { %10101 = vmatprep.mubr.msk.f32.mxu0 %vm18336_vm7, %v14344_v32  ;;  %10124 = vmatprep.mubr.msk.f32.mxu1 %vm18337_vm1, %v14325_v6  ;;  %vm18348_vm12 = vmmov %vm18329_vm0  ;;  %v14393_v1 = vsel %vm18351_vm11, 1.0, %v18317_v41  ;;  %vm18353_vm7 = vnez %v18310_v15 }
 0x68f   :  { %vm18349_vm8 = vmmov %vm18329_vm0  ;;  %18352 = vst [vmem:[#allocation160_spill] sm:$0xff] %v14393_v1  ;;  %v14398_v48 = vsel %vm18353_vm7, 1.0, %v18317_v41  ;;  %10144 = vmatprep.subr.bf16.mxu1 %v11882_v5 }
 0x690   :  { %vm18350_vm14 = vmmov %vm18329_vm0  ;;  %18354 = vst [vmem:[#allocation161_spill] sm:$0xff] %v14398_v48  ;;  %10145 = vmatpush3.bf16.msra.mxu1 %v11882_v5 }
 0x691   :  { %10102 = vmatmul.mubr.msk.f32.gmra.mrb[26].mxu0 %vm18340_vm5, %v14357_v18  ;;  %10125 = vmatmul.mubr.msk.f32.gmra.mrb[40].mxu1 %vm18341_vm3, %v14339_v28  ;;  %vm18355_vm1 = vmmov %vm18329_vm0 }
 0x692   :  { %10104 = vmatprep.mubr.msk.f32.mxu0 %vm18342_vm15, %v14362_v61  ;;  %10127 = vmatprep.mubr.msk.f32.mxu1 %vm18343_vm6, %v14344_v32  ;;  %vm18356_vm5 = vmmov %vm18329_vm0 }
 0x693   :  { %vm18357_vm3 = vmmov %vm18329_vm0  ;;  %10659 = vmatprep.subr.msk.bf16.mxu1 %vm18369_vm13, %v18261_v39 }
 0x694   :  { %vm18358_vm15 = vmmov %vm18329_vm0 }
 0x695   :  { %10105 = vmatmul.mubr.msk.f32.gmra.mrb[28].mxu0 %vm18329_vm0, %v14375_v55  ;;  %10128 = vmatmul.mubr.msk.f32.gmra.mrb[42].mxu1 %vm18348_vm12, %v14357_v18  ;;  %vm18361_vm6 = vmmov %vm18329_vm0 }
 0x696   :  { %10107 = vmatprep.mubr.msk.f32.mxu0 %vm18349_vm8, %v14380_v42  ;;  %10130 = vmatprep.mubr.msk.f32.mxu1 %vm18350_vm14, %v14362_v61  ;;  %vm18362_vm4 = vmmov %vm18329_vm0  ;;  %vm18376_vm14 = vcmp.lt.s32.totalorder %v13026_v45, 7 }
 0x697   :  { %vm18363_vm10 = vmmov %vm18329_vm0 }
 0x698   :  { %vm18365_vm2 = vmmov %vm18329_vm0 }
 0x699   :  { %10108 = vmatmul.mubr.msk.f32.gmra.mrb[30].mxu0 %vm18355_vm1, %v14393_v1  ;;  %10131 = vmatmul.mubr.msk.f32.gmra.mrb[44].mxu1 %vm18356_vm5, %v14375_v55  ;;  %vm18366_vm9 = vmmov %vm18329_vm0 }
 0x69a   :  { %10110 = vmatprep.mubr.msk.f32.mxu0 %vm18357_vm3, %v14398_v48  ;;  %10133 = vmatprep.mubr.msk.f32.mxu1 %vm18358_vm15, %v14380_v42  ;;  %vm18367_vm12 = vmmov %vm18329_vm0  ;;  %vm18387_vm3 = vcmask 261120   ;;  %vm18391_vm15 = vcmp.lt.s32.totalorder %v13026_v45, 1 }
 0x69b   :  { %vm18368_vm8 = vmmov %vm18329_vm0 }
 0x69c   :  { %vm18377_vm11 = vmmov %vm18376_vm14 }
 0x69d   :  { %10111 = vmatmul.mubr.msk.f32.gmra.mrb[32].mxu0 %vm18361_vm6, %v14411_v44  ;;  %10134 = vmatmul.mubr.msk.f32.gmra.mrb[46].mxu1 %vm18362_vm4, %v14393_v1  ;;  %vm18379_vm7 = vmmov %vm18377_vm11 }
 0x69e   :  { %10113 = vmatprep.mubr.msk.f32.mxu0 %vm18363_vm10, %v14416_v19  ;;  %10136 = vmatprep.mubr.msk.f32.mxu1 %vm18329_vm0, %v14398_v48  ;;  %vm18382_vm1 = vmmov %vm18379_vm7 }
 0x69f   :  { %vm18383_vm5 = vmmov %vm18382_vm1 }
 0x6a0   :  { %vm18393_vm6 = vmmov %vm18391_vm15 }
 0x6a1   :  { %10114 = vmatmul.mubr.msk.f32.gmra.mrb[34].mxu0 %vm18365_vm2, %v14429_v58  ;;  %10137 = vmatmul.mubr.msk.f32.gmra.mrb[48].mxu1 %vm18366_vm9, %v14411_v44  ;;  %vm18395_vm4 = vmmov %vm18387_vm3  ;;  %vm18408_vm9 = vnez %v18259_v9 }
 0x6a2   :  { %10139 = vmatprep.mubr.msk.f32.mxu1 %vm18367_vm12, %v14416_v19  ;;  %vm18398_vm10 = vmmov %vm18393_vm6 }
 0x6a3   :  { %vm18401_vm0 = vmmov %vm18382_vm1 }
 0x6a4   :  { %vm18403_vm2 = vmmov %vm18401_vm0 }
 0x6a5   :  { %10140 = vmatmul.mubr.msk.f32.gmra.mrb[50].mxu1 %vm18368_vm8, %v14429_v58  ;;  %vm18412_vm12 = vmmov %vm18401_vm0 }
 0x6a6   :  { %vm18413_vm8 = vmmov %vm18387_vm3 }
 0x758   :  { %v10094_v15 = vpop.f32.mrb[20].mxu0 }
 0x759   :  { %v3089_v51 = vpop.f32.mrb[21].mxu0  ;;  %v3169_v59 = vmul.f32 %v10094_v15, %v13991_v25 }
 0x75a   :  { %v3168_v43 = vmul.f32 %v3089_v51, %v13989_v53 }
 0x75c   :  { %v10097_v20 = vpop.f32.mrb[22].mxu0  ;;  %v10120_v47 = vpop.f32.mrb[36].mxu1 }
 0x75d   :  { %v14450_v34 = vadd.f32 %v10120_v47, %v3169_v59  ;;  %v3099_v21 = vpop.f32.mrb[23].mxu0  ;;  %v3253_v58 = vpop.f32.mrb[37].mxu1  ;;  %v3171_v5 = vmul.f32 %v10097_v20, %v14004_v24 }
 0x75e   :  { %v14452_v19 = vadd.f32 %v3253_v58, %v3168_v43  ;;  %v3170_v48 = vmul.f32 %v3099_v21, %v13995_v37 }
 0x75f   :  { %v9061_v44 = vmul.f32 -1.442695, %v14450_v34 }
 0x760   :  { %v9060_v1 = vmul.f32 -1.442695, %v14452_v19  ;;  %v10100_v42 = vpop.f32.mrb[24].mxu0  ;;  %v10123_v15 = vpop.f32.mrb[38].mxu1 }
 0x761   :  { %11969 = vpow2.f32 %v9061_v44  ;;  %v14458_v51 = vadd.f32 %v10123_v15, %v3171_v5  ;;  %v3109_v25 = vpop.f32.mrb[25].mxu0  ;;  %v3263_v59 = vpop.f32.mrb[39].mxu1  ;;  %v3173_v58 = vmul.f32 %v10100_v42, %v14016_v63 }
 0x762   :  { %11971 = vpow2.f32 %v9060_v1  ;;  %v14460_v47 = vadd.f32 %v3263_v59, %v3170_v48  ;;  %v3172_v20 = vmul.f32 %v3109_v25, %v14014_v62 }
 0x763   :  { %v9063_v43 = vmul.f32 -1.442695, %v14458_v51 }
 0x764   :  { %v9062_v21 = vmul.f32 -1.442695, %v14460_v47  ;;  %v10103_v24 = vpop.f32.mrb[26].mxu0  ;;  %v10126_v37 = vpop.f32.mrb[40].mxu1 }
 0x765   :  { %11973 = vpow2.f32 %v9063_v43  ;;  %v14466_v53 = vadd.f32 %v10126_v37, %v3173_v58  ;;  %v3119_v44 = vpop.f32.mrb[27].mxu0  ;;  %v3273_v5 = vpop.f32.mrb[41].mxu1  ;;  %v3175_v1 = vmul.f32 %v10103_v24, %v14026_v46 }
 0x766   :  { %11975 = vpow2.f32 %v9062_v21  ;;  %v14468_v15 = vadd.f32 %v3273_v5, %v3172_v20  ;;  %v3174_v48 = vmul.f32 %v3119_v44, %v14020_v14 }
 0x767   :  { %v9065_v42 = vmul.f32 -1.442695, %v14466_v53 }
 0x768   :  { %v9064_v25 = vmul.f32 -1.442695, %v14468_v15  ;;  %v10106_v59 = vpop.f32.mrb[28].mxu0  ;;  %v10129_v63 = vpop.f32.mrb[42].mxu1 }
 0x769   :  { %11977 = vpow2.f32 %v9065_v42  ;;  %v14474_v62 = vadd.f32 %v10129_v63, %v3175_v1  ;;  %v3129_v37 = vpop.f32.mrb[29].mxu0  ;;  %v3283_v58 = vpop.f32.mrb[43].mxu1  ;;  %v3177_v21 = vmul.f32 %v10106_v59, %v14032_v50 }
 0x76a   :  { %11979 = vpow2.f32 %v9064_v25  ;;  %v14476_v43 = vadd.f32 %v3283_v58, %v3174_v48  ;;  %v3176_v44 = vmul.f32 %v3129_v37, %v14030_v26 }
 0x76b   :  { %v11970_v20 = vpop.eup %11969  ;;  %v9067_v24 = vmul.f32 -1.442695, %v14474_v62 }
 0x76c   :  { %v11972_v5 = vpop.eup %11971  ;;  %v3397_v46 = vadd.f32 1.0, %v11970_v20  ;;  %v9066_v14 = vmul.f32 -1.442695, %v14476_v43  ;;  %v10109_v55 = vpop.f32.mrb[30].mxu0 }
 0x76d   :  { %v10132_v42 = vpop.f32.mrb[44].mxu1  ;;  %v3396_v63 = vadd.f32 1.0, %v11972_v5  ;;  %11981 = vpow2.f32 %v9067_v24  ;;  %v3139_v25 = vpop.f32.mrb[31].mxu0  ;;  %v3179_v50 = vmul.f32 %v10109_v55, %v14042_v35 }
 0x76e   :  { %v14482_v1 = vadd.f32 %v10132_v42, %v3177_v21  ;;  %v3293_v48 = vpop.f32.mrb[45].mxu1  ;;  %11983 = vrcp.f32 %v3397_v46  ;;  %v3178_v61 = vmul.f32 %v3139_v25, %v14036_v57 }
 0x76f   :  { %v14484_v58 = vadd.f32 %v3293_v48, %v3176_v44  ;;  %v11974_v59 = vpop.eup %11973  ;;  %11985 = vrcp.f32 %v3396_v63 }
 0x770   :  { %v9069_v20 = vmul.f32 -1.442695, %v14482_v1  ;;  %v11976_v37 = vpop.eup %11975  ;;  %v3399_v26 = vadd.f32 1.0, %v11974_v59  ;;  %11987 = vpow2.f32 %v9066_v14  ;;  %v10112_v21 = vpop.f32.mrb[32].mxu0 }
 0x771   :  { %v9068_v24 = vmul.f32 -1.442695, %v14484_v58  ;;  %v10135_v5 = vpop.f32.mrb[46].mxu1  ;;  %v3398_v42 = vadd.f32 1.0, %v11976_v37  ;;  %v3149_v44 = vpop.f32.mrb[33].mxu0  ;;  %v3181_v59 = vmul.f32 %v10112_v21, %v14050_v8 }
 0x772   :  { %11989 = vpow2.f32 %v9069_v20  ;;  %v14490_v46 = vadd.f32 %v10135_v5, %v3179_v50  ;;  %v3303_v48 = vpop.f32.mrb[47].mxu1  ;;  %v3180_v57 = vmul.f32 %v3149_v44, %v14048_v40 }
 0x773   :  { %11991 = vrcp.f32 %v3399_v26  ;;  %v14492_v63 = vadd.f32 %v3303_v48, %v3178_v61  ;;  %v11978_v55 = vpop.eup %11977 }
 0x774   :  { %11993 = vrcp.f32 %v3398_v42  ;;  %v9071_v14 = vmul.f32 -1.442695, %v14490_v46  ;;  %v11980_v25 = vpop.eup %11979  ;;  %v3401_v35 = vadd.f32 1.0, %v11978_v55  ;;  %v10115_v50 = vpop.f32.mrb[34].mxu0 }
 0x775   :  { %11995 = vpow2.f32 %v9068_v24  ;;  %v9070_v20 = vmul.f32 -1.442695, %v14492_v63  ;;  %v10138_v37 = vpop.f32.mrb[48].mxu1  ;;  %v3400_v5 = vadd.f32 1.0, %v11980_v25  ;;  %v3159_v61 = vpop.f32.mrb[35].mxu0  ;;  %v3183_v55 = vmul.f32 %v10115_v50, %v14060_v31 }
 0x776   :  { %11997 = vpow2.f32 %v9071_v14  ;;  %v14498_v26 = vadd.f32 %v10138_v37, %v3181_v59  ;;  %v3313_v48 = vpop.f32.mrb[49].mxu1  ;;  %v3182_v40 = vmul.f32 %v3159_v61, %v14054_v49  ;;  %v18372_v49 = vld [vmem:[#allocation88_spill] sm:$0xff] }
 0x777   :  { %11999 = vrcp.f32 %v3401_v35  ;;  %v14500_v42 = vadd.f32 %v3313_v48, %v3180_v57  ;;  %v11982_v21 = vpop.eup %11981 }
 0x778   :  { %12001 = vrcp.f32 %v3400_v5  ;;  %v9073_v24 = vmul.f32 -1.442695, %v14498_v26  ;;  %v11984_v44 = vpop.eup %11983  ;;  %v3403_v8 = vadd.f32 1.0, %v11982_v21  ;;  %v10141_v59 = vpop.f32.mrb[50].mxu1 }
 0x779   :  { %12003 = vpow2.f32 %v9070_v20  ;;  %v9072_v14 = vmul.f32 -1.442695, %v14500_v42  ;;  %v11986_v25 = vpop.eup %11985  ;;  %v14506_v37 = vadd.f32 %v10141_v59, %v3183_v55  ;;  %v3323_v57 = vpop.f32.mrb[51].mxu1  ;;  %v14509_v5 = vmul.f32 %v11984_v44, %v14450_v34 }
 0x77a   :  { %12005 = vpow2.f32 %v9073_v24  ;;  %v11988_v35 = vpop.eup %11987  ;;  %v14512_v50 = vmul.f32 %v11986_v25, %v14452_v19  ;;  %v14514_v48 = vadd.f32 %v3323_v57, %v3182_v40 }
 0x77b   :  { %12007 = vrcp.f32 %v3403_v8  ;;  %v3402_v61 = vadd.f32 1.0, %v11988_v35  ;;  %v9075_v24 = vmul.f32 -1.442695, %v14506_v37  ;;  %v3525_v19 = vrot.slane %v14509_v5, 1  ;;  %v18371_v35 = vld [vmem:[#allocation59_spill] sm:$0xff] }
 0x77c   :  { %v11990_v20 = vpop.eup %11989  ;;  %12009 = vpow2.f32 %v9072_v14  ;;  %v9074_v34 = vmul.f32 -1.442695, %v14514_v48  ;;  %v3510_v40 = vmul.f32 %v14509_v5, %v18372_v49  ;;  %v3461_v22 = vrot.slane %v14509_v5, 7 }
 0x77d   :  { %v11992_v21 = vpop.eup %11991  ;;  %v3405_v31 = vadd.f32 1.0, %v11990_v20  ;;  %12011 = vrcp.f32 %v3402_v61 }
 0x77e   :  { %v11994_v55 = vpop.eup %11993  ;;  %v14518_v59 = vmul.f32 %v11992_v21, %v14458_v51  ;;  %v3620_v51 = vmul.f32 %v14509_v5, %v18371_v35 }
 0x77f   :  { %v11996_v44 = vpop.eup %11995  ;;  %v14524_v8 = vmul.f32 %v11994_v55, %v14460_v47  ;;  %12013 = vrcp.f32 %v3405_v31  ;;  %v18373_v31 = vld [vmem:[#allocation23_spill] sm:$0xff] }
 0x780   :  { %v11998_v14 = vpop.eup %11997  ;;  %v3527_v25 = vrot.slane %v14518_v59, 1  ;;  %v3404_v57 = vadd.f32 1.0, %v11996_v44  ;;  %12015 = vpow2.f32 %v9075_v24  ;;  %v18374_v24 = vld [vmem:[#allocation6_spill] sm:$0xff] }
 0x781   :  { %18370 = vst [vmem:[#allocation165_spill] sm:$0xff] %v14524_v8  ;;  %v12000_v20 = vpop.eup %11999  ;;  %v3526_v61 = vrot.slane %v14524_v8, 1  ;;  %v3407_v21 = vadd.f32 1.0, %v11998_v14  ;;  %12017 = vpow2.f32 %v9074_v34  ;;  %v3621_v55 = vmul.f32 %v14524_v8, %v18373_v31 }
 0x782   :  { %v12002_v18 = vpop.eup %12001  ;;  %v14533_v47 = vmul.f32 %v12000_v20, %v14466_v53  ;;  %12019 = vrcp.f32 %v3404_v57  ;;  %v3511_v44 = vmul.f32 %v14524_v8, %v18374_v24 }
 0x783   :  { %v12004_v35 = vpop.eup %12003  ;;  %v14540_v32 = vmul.f32 %v12002_v18, %v14468_v15  ;;  %12021 = vrcp.f32 %v3407_v21  ;;  %v14544_v34 = vsel %vm18376_vm14, %v3526_v61, %v3527_v25  ;;  %v3553_v53 = vsel %vm18377_vm11, %v3525_v19, %v3526_v61  ;;  %v18381_v61 = vld [vmem:[#allocation28_spill] sm:$0xff]  ;;  %vm18415_vm14 = vmmov %vm18401_vm0 }
 0x784   :  { %v12006_v14 = vpop.eup %12005  ;;  %v17937_v57 = vrot.slane %v14533_v47, 1  ;;  %v3406_v20 = vadd.f32 1.0, %v12004_v35  ;;  %v11157_v31 = vpack.i.bf16 %v3621_v55, %v3620_v51  ;;  %v11162_v6 = vpack.i.bf16 %v3511_v44, %v3510_v40  ;;  %v18380_v35 = vld [vmem:[#allocation63_spill] sm:$0xff]  ;;  %vm18422_vm11 = vmmov %vm18401_vm0 }
 0x785   :  { %18375 = vst [vmem:[#allocation166_spill] sm:$0xff] %v14540_v32  ;;  %v12008_v49 = vpop.eup %12007  ;;  %v3528_v24 = vrot.slane %v14540_v32, 1  ;;  %v3409_v28 = vadd.f32 1.0, %v12006_v14  ;;  %v18378_v18 = vrot.slane %v14512_v50, 1  ;;  %v3636_v51 = vmul.f32 %v3553_v53, %v18380_v35  ;;  %v11884_v14 = vld [vmem:[%s17655_s2] sm:$0xff]  }
 0x786   :  { %v12010_v21 = vpop.eup %12009  ;;  %12023 = vrcp.f32 %v3406_v20  ;;  %11158 = vrot.lane.b32.xlu1 %v11157_v31, %s12202_s29  ;;  %v3637_v55 = vmul.f32 %v14544_v34, %v18381_v61  ;;  %11163 = vrot.lane.b32.xlu0 %v11162_v6, %s12196_s18  ;;  %v11883_v31 = vld [vmem:[%s17655_s2 + $0x40] sm:$0xff]   ;;  %v3558_v11 = vmul.f32 %v3553_v53, %v18386_v12  ;;  %v3590_v29 = vmul.f32 %v14544_v34, %v18418_v3 }
 0x787   :  { %v14554_v15 = vsel %vm18379_vm7, %v18378_v18, %v3525_v19  ;;  %v14565_v40 = vsel %vm18382_vm1, %v3528_v24, %v17937_v57  ;;  %v14569_v19 = vsel %vm18383_vm5, %v3527_v25, %v3528_v24  ;;  %12025 = vrcp.f32 %v3409_v28  ;;  %v12012_v20 = vpop.eup %12011  ;;  %v18384_v24 = vld [vmem:[#allocation16_spill] sm:$0xff]  ;;  %v18385_v61 = vld [vmem:[#allocation42_spill] sm:$0xff]  ;;  %9478 = vmatprep.subr.bf16.mxu0 %v11883_v31  ;;  %vm18425_vm7 = vmmov %vm18401_vm0 }
 0x788   :  { %v3408_v44 = vadd.f32 1.0, %v12010_v21  ;;  %v3462_v18 = vrot.slane %v14524_v8, 7  ;;  %v14580_v57 = vmul.f32 %v12008_v49, %v14474_v62  ;;  %v4136_v25 = vpack.c.bf16 %v3637_v55, %v3636_v51  ;;  %v18388_v62 = vld [vmem:[#allocation9_spill] sm:$0xff]  ;;  %9479 = vmatpush3.bf16.msra.mxu0 %v11884_v14  ;;  %v18421_v8 = vld [vmem:[#allocation38_spill] sm:$0xff]  ;;  %vm18426_vm1 = vmmov %vm18387_vm3 }
 0x789   :  { %v3588_v28 = vmul.f32 %v14554_v15, %v18384_v24  ;;  %v12014_v21 = vpop.eup %12013  ;;  %v14585_v6 = vmul.f32 %v12012_v20, %v14476_v43  ;;  %v3589_v35 = vmul.f32 %v3553_v53, %v18385_v61  ;;  %v3559_v49 = vmul.f32 %v14544_v34, %v18388_v62  ;;  %v18389_v51 = vld [vmem:[#allocation33_spill] sm:$0xff]  ;;  %v18390_v24 = vld [vmem:[#allocation34_spill] sm:$0xff]  ;;  %vm18428_vm5 = vmmov %vm18393_vm6 }
 0x78a   :  { %12027 = vrcp.f32 %v3408_v44  ;;  %v12016_v41 = vpop.eup %12015  ;;  %10146 = vmatprep.mubr.msk.bf16.mxu1 %vm18387_vm3, %v4136_v25  ;;  %v3638_v55 = vmul.f32 %v14569_v19, %v18389_v51  ;;  %v3639_v43 = vmul.f32 %v14565_v40, %v18390_v24  ;;  %v14599_v53 = vmul.f32 %v12014_v21, %v14482_v1  ;;  %vm18432_vm3 = vmmov %vm18428_vm5 }
 0x78b   :  { %v12018_v44 = vpop.eup %12017  ;;  %v3411_v31 = vadd.f32 1.0, %v12016_v41  ;;  %v11167_v12 = vpack.i.bf16 %v3589_v35, %v3588_v28  ;;  %v17949_v25 = vrot.slane %v14580_v57, 1  ;;  %v3530_v62 = vrot.slane %v14585_v6, 1  ;;  %v11886_v35 = vld [vmem:[%s17655_s2 + $0x8] sm:$0xff]  }
 0x78c   :  { %v12020_v17 = vpop.eup %12019  ;;  %v3410_v61 = vadd.f32 1.0, %v12018_v44  ;;  %v11177_v0 = vpack.i.bf16 %v3559_v49, %v3558_v11  ;;  %v4139_v20 = vpack.c.bf16 %v3639_v43, %v3638_v55  ;;  %v14609_v41 = vsel %vm18391_vm15, %v3461_v22, %v3462_v18  ;;  %v18399_v43 = vld [vmem:[#allocation14_spill] sm:$0xff]  ;;  %vm18435_vm15 = vmmov %vm18401_vm0 }
 0x78d   :  { %v12022_v51 = vpop.eup %12021  ;;  %v14604_v54 = vmul.f32 %v12020_v17, %v14484_v58  ;;  %12029 = vrcp.f32 %v3411_v31  ;;  %11168 = vrot.lane.b32.xlu1 %v11167_v12, %s12196_s18  ;;  %v18392_v1 = vrot.slane %v14512_v50, 7  ;;  %v18394_v17 = vld [vmem:[#allocation57_spill] sm:$0xff]  ;;  %v11885_v12 = vld [vmem:[%s17655_s2 + $0x48] sm:$0xff]   ;;  %v3574_v44 = vmul.f32 %v14609_v41, %v18399_v43 }
 0x78e   :  { %12031 = vrcp.f32 %v3410_v61  ;;  %11178 = vrot.lane.b32.xlu0 %v11177_v0, %s12203_s8  ;;  %v3605_v58 = vmul.f32 %v14609_v41, %v18394_v17  ;;  %10147 = vmatmul.mubr.msk.bf16.vlgmr.msra.gmra.mrb[52].mxu1 %vm18395_vm4, %v4139_v20  ;;  %v18396_v0 = vld [vmem:[#allocation19_spill] sm:$0xff]  ;;  %v14638_v55 = vmul.f32 %v12022_v51, %v14490_v46  ;;  %v18400_v31 = vld [vmem:[#allocation17_spill] sm:$0xff]  ;;  %v14657_v51 = vsel %vm18401_vm0, %v3530_v62, %v17949_v25  ;;  %v18405_v25 = vld [vmem:[#allocation62_spill] sm:$0xff] }
 0x78f   :  { %v14616_v11 = vsel %vm18393_vm6, %v18392_v1, %v3461_v22  ;;  %v18397_v22 = vrot.slane %v14518_v59, 7  ;;  %v3532_v49 = vrot.slane %v14604_v54, 1  ;;  %9480 = vmatprep.subr.bf16.mxu0 %v11885_v12  ;;  %v11887_v1 = vld [vmem:[%s17655_s2 + $0x50] sm:$0xff]   ;;  %10661 = vmatpush3.bf16.msk.msra.mxu1 %vm18369_vm13, %v18261_v39  ;;  %v18402_v12 = vrot.slane %v14533_v47, 1  ;;  %vm18436_vm6 = vmmov %vm18401_vm0 }
 0x790   :  { %v3604_v14 = vmul.f32 %v14616_v11, %v18396_v0  ;;  %v12024_v21 = vpop.eup %12023  ;;  %9481 = vmatpush3.bf16.msra.mxu0 %v11886_v35  ;;  %v3641_v43 = vmul.f32 %v14657_v51, %v18405_v25  ;;  %v3464_v35 = vrot.slane %v14540_v32, 7  ;;  %10663 = vmatprep.subr.msk.bf16.mxu1 %vm18408_vm9, %v18261_v39  ;;  %vm18437_vm4 = vmmov %vm18426_vm1 }
 0x791   :  { %v14634_v28 = vsel %vm18398_vm10, %v3462_v18, %v18397_v22  ;;  %v12026_v18 = vpop.eup %12025  ;;  %v14651_v22 = vmul.f32 %v12024_v21, %v14492_v63  ;;  %v14663_v61 = vsel %vm18403_vm2, %v18402_v12, %v3530_v62  ;;  %9482 = vmatprep.subr.bf16.mxu0 %v11887_v1  ;;  %v18406_v12 = vld [vmem:[#allocation61_spill] sm:$0xff]  ;;  %vm18441_vm10 = vmmov %vm18401_vm0 }
 0x792   :  { %v3575_v20 = vmul.f32 %v14634_v28, %v18400_v31  ;;  %v11172_v46 = vpack.i.bf16 %v3605_v58, %v3604_v14  ;;  %v11888_v31 = vld [vmem:[%s17655_s2 + $0x10] sm:$0xff]   ;;  %v14669_v63 = vmul.f32 %v12026_v18, %v14498_v26  ;;  %v18404_v14 = vld [vmem:[#allocation70_spill] sm:$0xff]  ;;  %v3622_v17 = vmul.f32 %v14518_v59, %v18406_v12  ;;  %v18407_v26 = vld [vmem:[#allocation25_spill] sm:$0xff] }
 0x793   :  { %v3640_v21 = vmul.f32 %v14663_v61, %v18404_v14  ;;  %v3534_v1 = vrot.slane %v14651_v22, 1  ;;  %v11889_v62 = vld [vmem:[%s17655_s2 + $0x58] sm:$0xff]   ;;  %10665 = vmatpush3.bf16.msk.msra.mxu1 %vm18408_vm9, %v18261_v39  ;;  %v18409_v12 = vld [vmem:[#allocation30_spill] sm:$0xff]  ;;  %v18410_v14 = vld [vmem:[#allocation99_spill] sm:$0xff] }
 0x794   :  { %v11182_v58 = vpack.i.bf16 %v3575_v20, %v3574_v44  ;;  %v12028_v0 = vpop.eup %12027  ;;  %11173 = vrot.lane.b32.xlu1 %v11172_v46, %s12203_s8  ;;  %v3623_v44 = vmul.f32 %v14540_v32, %v18407_v26  ;;  %v3535_v20 = vrot.slane %v14638_v55, 1  ;;  %v3512_v25 = vmul.f32 %v14518_v59, %v18409_v12  ;;  %9483 = vmatpush3.bf16.msra.mxu0 %v11888_v31  ;;  %v11890_v31 = vld [vmem:[%s17655_s2 + $0x18] sm:$0xff]   ;;  %vm18445_vm2 = vmmov %vm18401_vm0 }
 0x795   :  { %v14688_v18 = vmul.f32 %v12028_v0, %v14500_v42  ;;  %v4142_v46 = vpack.c.bf16 %v3641_v43, %v3640_v21  ;;  %v3513_v24 = vmul.f32 %v14540_v32, %v18410_v14  ;;  %v18411_v42 = vrot.slane %v14599_v53, 1  ;;  %9484 = vmatprep.subr.bf16.mxu0 %v11889_v62 }
 0x796   :  { %11183 = vrot.lane.b32.xlu0 %v11182_v58, %s12202_s29  ;;  %v11187_v26 = vpack.i.bf16 %v3623_v44, %v3622_v17  ;;  %v3537_v43 = vrot.slane %v14669_v63, 1  ;;  %v18414_v17 = vrot.slane %v14580_v57, 1  ;;  %v18416_v44 = vld [vmem:[#allocation69_spill] sm:$0xff] }
 0x797   :  { %v14705_v0 = vsel %vm18412_vm12, %v3532_v49, %v18411_v42  ;;  %v3536_v58 = vrot.slane %v14688_v18, 1  ;;  %10150 = vmatprep.mubr.msk.bf16.mxu1 %vm18413_vm8, %v4142_v46  ;;  %v12030_v42 = vpop.eup %12029  ;;  %v11192_v12 = vpack.i.bf16 %v3513_v24, %v3512_v25  ;;  %v14737_v24 = vsel %vm18422_vm11, %v3534_v1, %v3535_v20  ;;  %vm18446_vm12 = vmmov %vm18426_vm1 }
 0x798   :  { %v14714_v21 = vsel %vm18415_vm14, %v18414_v17, %v3532_v49  ;;  %v3643_v14 = vmul.f32 %v14705_v0, %v18416_v44  ;;  %11188 = vrot.lane.b32.xlu1 %v11187_v26, %s12202_s29  ;;  %v18419_v49 = vld [vmem:[#allocation44_spill] sm:$0xff]  ;;  %v12032_v9 = vpop.eup %12031  ;;  %v14729_v62 = vmul.f32 %v12030_v42, %v14506_v37  ;;  %v18420_v44 = vld [vmem:[#allocation103_spill] sm:$0xff]  ;;  %v3561_v26 = vmul.f32 %v14565_v40, %v18421_v8  ;;  %vm18449_vm8 = vmmov %vm18432_vm3 }
 0x799   :  { %v3642_v46 = vmul.f32 %v14714_v21, %v18417_v33  ;;  %v3591_v17 = vmul.f32 %v14569_v19, %v18419_v49  ;;  %v3560_v32 = vmul.f32 %v14569_v19, %v18420_v44  ;;  %v18423_v25 = vmov 0.0|0.0   ;;  %9485 = vmatpush3.bf16.msra.mxu0 %v11890_v31  ;;  %vm18451_vm14 = vmmov %vm18426_vm1 }
 0x79a   :  { %10674 = vmatprep.subr.bf16.mxu1 %v18423_v25  ;;  %v14741_v34 = vmul.f32 %v12032_v9, %v14514_v48  ;;  %11193 = vrot.lane.b32.xlu0 %v11192_v12, %s12196_s18  ;;  %v18424_v42 = vrot.slane %v14599_v53, 1  ;;  %v3539_v8 = vrot.slane %v14729_v62, 1  ;;  %v11891_v9 = vld [vmem:[%s17655_s2 + $0x60] sm:$0xff]   ;;  %v3645_v12 = vmul.f32 %v14737_v24, %v13120_v13  ;;  %v18434_v13 = vld [vmem:[#allocation43_spill] sm:$0xff]  ;;  %vm18458_vm11 = vmmov %vm18432_vm3 }
 0x79b   :  { %v4145_v49 = vpack.c.bf16 %v3643_v14, %v3642_v46  ;;  %v11197_v37 = vpack.i.bf16 %v3591_v17, %v3590_v29  ;;  %v11892_v29 = vld [vmem:[%s17655_s2 + $0x20] sm:$0xff]   ;;  %v11207_v14 = vpack.i.bf16 %v3561_v26, %v3560_v32  ;;  %v18429_v46 = vld [vmem:[#allocation20_spill] sm:$0xff]  ;;  %v18433_v26 = vld [vmem:[#allocation21_spill] sm:$0xff]  ;;  %9486 = vmatprep.subr.bf16.mxu0 %v11891_v9 }
 0x79c   :  { %v14748_v19 = vsel %vm18425_vm7, %v18424_v42, %v3534_v1  ;;  %v3538_v48 = vrot.slane %v14741_v34, 1  ;;  %v18427_v1 = vrot.slane %v14518_v59, 7  ;;  %v3606_v17 = vmul.f32 %v14634_v28, %v18429_v46  ;;  %v18430_v42 = vld [vmem:[#allocation22_spill] sm:$0xff]  ;;  %vm18461_vm7 = vmmov %vm18426_vm1 }
 0x79d   :  { %v3644_v44 = vmul.f32 %v14748_v19, %v18224_v30  ;;  %10151 = vmatmul.mubr.msk.bf16.gmra.mrb[56].mxu1 %vm18426_vm1, %v4145_v49  ;;  %11198 = vrot.lane.b32.xlu1 %v11197_v37, %s12196_s18  ;;  %v18431_v49 = vrot.slane %v14533_v47, 7  ;;  %v14787_v46 = vsel %vm18435_vm15, %v3536_v58, %v3537_v43  ;;  %vm18463_vm1 = vmmov %vm18432_vm3 }
 0x79e   :  { %v14768_v31 = vsel %vm18428_vm5, %v18427_v1, %v3464_v35  ;;  %11208 = vrot.lane.b32.xlu0 %v11207_v14, %s12203_s8  ;;  %v3647_v9 = vmul.f32 %v14787_v46, %v13175_v7  ;;  %9487 = vmatpush3.bf16.msra.mxu0 %v11892_v29  ;;  %v3466_v14 = vrot.slane %v14585_v6, 7  ;;  %v18440_v7 = vld [vmem:[#allocation66_spill] sm:$0xff]  ;;  %vm18466_vm5 = vmmov %vm18463_vm1 }
 0x79f   :  { %v3607_v30 = vmul.f32 %v14768_v31, %v18430_v42  ;;  %v14778_v32 = vsel %vm18432_vm3, %v3464_v35, %v18431_v49  ;;  %v3576_v37 = vmul.f32 %v14768_v31, %v18433_v26  ;;  %v4148_v1 = vpack.c.bf16 %v3645_v12, %v3644_v44  ;;  %v11893_v44 = vld [vmem:[%s17655_s2 + $0x68] sm:$0xff]   ;;  %vm18477_vm3 = vmmov %vm18463_vm1 }
 0x7a0   :  { %v3577_v3 = vmul.f32 %v14778_v32, %v18434_v13  ;;  %v14791_v42 = vsel %vm18436_vm6, %v3535_v20, %v3536_v58  ;;  %v18438_v13 = vld [vmem:[#allocation58_spill] sm:$0xff]  ;;  %v3624_v29 = vmul.f32 %v14533_v47, %v18440_v7  ;;  %9488 = vmatprep.subr.bf16.mxu0 %v11893_v44  ;;  %v18450_v44 = vld [vmem:[#allocation47_spill] sm:$0xff]  ;;  %vm18480_vm15 = vmmov %vm18463_vm1 }
 0x7a1   :  { %v11202_v35 = vpack.i.bf16 %v3607_v30, %v3606_v17  ;;  %v3646_v49 = vmul.f32 %v14791_v42, %v13165_v2  ;;  %10154 = vmatprep.mubr.msk.bf16.mxu1 %vm18437_vm4, %v4148_v1  ;;  %v3625_v20 = vmul.f32 %v14585_v6, %v18438_v13  ;;  %v18439_v30 = vld [vmem:[#allocation36_spill] sm:$0xff]  ;;  %v14811_v2 = vsel %vm18441_vm10, %v3538_v48, %v3539_v8  ;;  %v18443_v7 = vld [vmem:[#allocation46_spill] sm:$0xff]  ;;  %vm18489_vm6 = vmmov %vm18463_vm1 }
 0x7a2   :  { %v11212_v12 = vpack.i.bf16 %v3577_v3, %v3576_v37  ;;  %v3515_v58 = vmul.f32 %v14585_v6, %v18439_v30  ;;  %v14815_v1 = vsel %vm18401_vm0, %v3537_v43, %v3538_v48  ;;  %v18442_v3 = vld [vmem:[#allocation101_spill] sm:$0xff]  ;;  %v3593_v30 = vmul.f32 %v14663_v61, %v18443_v7  ;;  %v11894_v48 = vld [vmem:[%s17655_s2 + $0x28] sm:$0xff]   ;;  %vm18492_vm4 = vmmov %vm18463_vm1 }
 0x7a3   :  { %11203 = vrot.lane.b32.xlu1 %v11202_v35, %s12203_s8  ;;  %v4151_v17 = vpack.c.bf16 %v3647_v9, %v3646_v49  ;;  %v3514_v37 = vmul.f32 %v14533_v47, %v18442_v3  ;;  %v3648_v35 = vmul.f32 %v14815_v1, %v18242_v16  ;;  %v3649_v49 = vmul.f32 %v14811_v2, %v13458_v56  ;;  %v18447_v56 = vld [vmem:[#allocation13_spill] sm:$0xff]  ;;  %vm18507_vm10 = vmmov %vm18463_vm1 }
 0x7a4   :  { %11213 = vrot.lane.b32.xlu0 %v11212_v12, %s12202_s29  ;;  %v11217_v9 = vpack.i.bf16 %v3625_v20, %v3624_v29  ;;  %v18444_v13 = vrot.slane %v14512_v50, 1  ;;  %v3508_v20 = vmul.f32 %v14729_v62, %v18447_v56  ;;  %v18448_v29 = vrot.slane %v14533_v47, 7  ;;  %9489 = vmatpush3.bf16.msra.mxu0 %v11894_v48  ;;  %vm18509_vm0 = vmmov %vm18463_vm1 }
 0x7a5   :  { %10155 = vmatmul.mubr.msk.bf16.gmra.mrb[60].mxu1 %vm18446_vm12, %v4151_v17  ;;  %v11222_v12 = vpack.i.bf16 %v3515_v58, %v3514_v37  ;;  %v4154_v16 = vpack.c.bf16 %v3649_v49, %v3648_v35  ;;  %v3592_v58 = vmul.f32 %v14565_v40, %v18450_v44  ;;  %v18452_v17 = vld [vmem:[#allocation3_spill] sm:$0xff]  ;;  %v3468_v40 = vrot.slane %v14604_v54, 7  ;;  %v11897_v44 = vld [vmem:[%s17655_s2 + $0x78] sm:$0xff]  }
 0x7a6   :  { %v14830_v43 = vsel %vm18445_vm2, %v3539_v8, %v18444_v13  ;;  %v14842_v7 = vsel %vm18449_vm8, %v18448_v29, %v3466_v14  ;;  %v11895_v13 = vld [vmem:[%s17655_s2 + $0x70] sm:$0xff]   ;;  %v3509_v37 = vmul.f32 %v14512_v50, %v18452_v17  ;;  %v18453_v29 = vld [vmem:[#allocation65_spill] sm:$0xff]  ;;  %v18454_v8 = vld [vmem:[#allocation91_spill] sm:$0xff]  ;;  %v18456_v48 = vrot.slane %v14512_v50, 7 }
 0x7a7   :  { %11218 = vrot.lane.b32.xlu1 %v11217_v9, %s12202_s29  ;;  %10158 = vmatprep.mubr.msk.bf16.mxu1 %vm18451_vm14, %v4154_v16  ;;  %v3650_v35 = vmul.f32 %v14830_v43, %v18243_v38  ;;  %v11227_v49 = vpack.i.bf16 %v3593_v30, %v3592_v58  ;;  %v3609_v56 = vmul.f32 %v14842_v7, %v18453_v29  ;;  %v11896_v9 = vld [vmem:[%s17655_s2 + $0x30] sm:$0xff]   ;;  %v18457_v29 = vrot.slane %v14729_v62, 7  ;;  %vm18518_vm2 = vmmov %vm18509_vm0 }
 0x7a8   :  { %11223 = vrot.lane.b32.xlu0 %v11222_v12, %s12196_s18  ;;  %v11247_v12 = vpack.i.bf16 %v3509_v37, %v3508_v20  ;;  %v3651_v16 = vmul.f32 %v14554_v15, %v13475_v27  ;;  %v3556_v17 = vmul.f32 %v14830_v43, %v18454_v8  ;;  %9490 = vmatprep.subr.bf16.mxu0 %v11895_v13  ;;  %v18455_v30 = vld [vmem:[#allocation52_spill] sm:$0xff]  ;;  %v3467_v20 = vrot.slane %v14580_v57, 7  ;;  %v18459_v8 = vld [vmem:[#allocation7_spill] sm:$0xff]  ;;  %vm18529_vm14 = vmmov %vm18461_vm7 }
 0x7a9   :  { %v3608_v58 = vmul.f32 %v14778_v32, %v18455_v30  ;;  %v14876_v38 = vsel %vm18458_vm11, %v18457_v29, %v18456_v48  ;;  %v3557_v13 = vmul.f32 %v14554_v15, %v18459_v8  ;;  %v18460_v27 = vld [vmem:[#allocation48_spill] sm:$0xff]  ;;  %9491 = vmatpush3.bf16.msra.mxu0 %v11896_v9  ;;  %v18462_v48 = vld [vmem:[#allocation15_spill] sm:$0xff]  ;;  %v18464_v15 = vld [vmem:[#allocation50_spill] sm:$0xff]  ;;  %vm4052_vm12 = vcmask 523264  }
 0x7aa   :  { %v4157_v37 = vpack.c.bf16 %v3651_v16, %v3650_v35  ;;  %v3595_v30 = vmul.f32 %v14714_v21, %v18460_v27  ;;  %v3572_v3 = vmul.f32 %v14876_v38, %v18462_v48  ;;  %v14892_v35 = vsel %vm18463_vm1, %v3467_v20, %v3468_v40  ;;  %9492 = vmatprep.subr.bf16.mxu0 %v11897_v44  ;;  %v18468_v27 = vld [vmem:[#allocation106_spill] sm:$0xff]  ;;  %v18469_v8 = vld [vmem:[#allocation41_spill] sm:$0xff]  ;;  %vm18530_vm11 = vmmov %vm18461_vm7 }
 0x7ab   :  { %11228 = vrot.lane.b32.xlu1 %v11227_v49, %s12196_s18  ;;  %v11232_v49 = vpack.i.bf16 %v3609_v56, %v3608_v58  ;;  %v11252_v29 = vpack.i.bf16 %v3557_v13, %v3556_v17  ;;  %v11898_v56 = vld [vmem:[%s17655_s2 + $0x38] sm:$0xff]   ;;  %v3594_v9 = vmul.f32 %v14657_v51, %v18464_v15  ;;  %v14905_v16 = vsel %vm18466_vm5, %v3466_v14, %v3467_v20  ;;  %vm18531_vm1 = vmmov %vm18461_vm7 }
 0x7ac   :  { %11248 = vrot.lane.b32.xlu0 %v11247_v12, %s12196_s18  ;;  %v18465_v12 = vld [vmem:[#allocation11_spill] sm:$0xff]  ;;  %v3563_v15 = vmul.f32 %v14657_v51, %v18469_v8  ;;  %v18472_v51 = vld [vmem:[#allocation45_spill] sm:$0xff]  ;;  %v18483_v8 = vld [vmem:[#allocation74_spill] sm:$0xff]  ;;  %vm4069_vm8 = vcmask 785408  }
 0x7ad   :  { %10159 = vmatmul.mubr.msk.bf16.gmra.mrb[64].mxu1 %vm18461_vm7, %v4157_v37  ;;  %v3573_v17 = vmul.f32 %v14616_v11, %v18465_v12  ;;  %v11237_v58 = vpack.i.bf16 %v3595_v30, %v3594_v9  ;;  %v18467_v37 = vld [vmem:[#allocation56_spill] sm:$0xff]  ;;  %9493 = vmatpush3.bf16.msra.mxu0 %v11898_v56  ;;  %v3578_v44 = vmul.f32 %v14842_v7, %v18472_v51  ;;  %vm18534_vm5 = vmmov %vm18531_vm1 }
 0x7ae   :  { %v3611_v13 = vmul.f32 %v14892_v35, %v18467_v37  ;;  %v18471_v30 = vld [vmem:[#allocation60_spill] sm:$0xff]  ;;  %10667 = vmatprep.subr.msk.bf16.mxu0 %vm18369_vm13, %v18261_v39 }
 0x7af   :  { %11233 = vrot.lane.b32.xlu1 %v11232_v49, %s12203_s8  ;;  %v11257_v48 = vpack.i.bf16 %v3573_v17, %v3572_v3  ;;  %v3562_v49 = vmul.f32 %v14663_v61, %v18468_v27  ;;  %v3627_v20 = vmul.f32 %v14604_v54, %v18471_v30  ;;  %v3470_v61 = vrot.slane %v14651_v22, 7  ;;  %v18473_v56 = vld [vmem:[#allocation24_spill] sm:$0xff] }
 0x7b0   :  { %11253 = vrot.lane.b32.xlu0 %v11252_v29, %s12203_s8  ;;  %v18470_v29 = vld [vmem:[#allocation54_spill] sm:$0xff]  ;;  %v3579_v9 = vmul.f32 %v14905_v16, %v18473_v56  ;;  %v3469_v17 = vrot.slane %v14599_v53, 7 }
 0x7b1   :  { %v3610_v12 = vmul.f32 %v14905_v16, %v18470_v29  ;;  %v11262_v3 = vpack.i.bf16 %v3563_v15, %v3562_v49  ;;  %v18476_v49 = vld [vmem:[#allocation110_spill] sm:$0xff] }
 0x7b2   :  { %v11272_v15 = vpack.i.bf16 %v3579_v9, %v3578_v44  ;;  %v3517_v51 = vmul.f32 %v14604_v54, %v18476_v49  ;;  %v14938_v56 = vsel %vm18477_vm3, %v3469_v17, %v3470_v61  ;;  %v14948_v44 = vsel %vm18480_vm15, %v3468_v40, %v3469_v17  ;;  %v18484_v40 = vld [vmem:[#allocation8_spill] sm:$0xff]  ;;  %vm18535_vm3 = vmmov %vm18531_vm1 }
 0x7b3   :  { %11238 = vrot.lane.b32.xlu1 %v11237_v58, %s12196_s18  ;;  %v11242_v14 = vpack.i.bf16 %v3611_v13, %v3610_v12  ;;  %v18475_v13 = vld [vmem:[#allocation49_spill] sm:$0xff]  ;;  %vm18536_vm15 = vmmov %vm18531_vm1 }
 0x7b4   :  { %11258 = vrot.lane.b32.xlu0 %v11257_v48, %s12202_s29  ;;  %v18474_v48 = vld [vmem:[#allocation68_spill] sm:$0xff]  ;;  %v3597_v30 = vmul.f32 %v14748_v19, %v18475_v13  ;;  %v18482_v13 = vld [vmem:[#allocation115_spill] sm:$0xff] }
 0x7b5   :  { %v3626_v12 = vmul.f32 %v14580_v57, %v18474_v48  ;;  %v3564_v29 = vmul.f32 %v14714_v21, %v18482_v13  ;;  %v3471_v21 = vrot.slane %v14638_v55, 7 }
 0x7b7   :  { %11243 = vrot.lane.b32.xlu1 %v11242_v14, %s12203_s8  ;;  %v11267_v58 = vpack.i.bf16 %v3627_v20, %v3626_v12  ;;  %v18478_v14 = vld [vmem:[#allocation84_spill] sm:$0xff] }
 0x7b8   :  { %11263 = vrot.lane.b32.xlu0 %v11262_v3, %s12203_s8  ;;  %v3596_v48 = vmul.f32 %v14705_v0, %v18478_v14  ;;  %v18479_v3 = vld [vmem:[#allocation64_spill] sm:$0xff]  ;;  %v3565_v14 = vmul.f32 %v14705_v0, %v18483_v8  ;;  %v3629_v0 = vmul.f32 %v14651_v22, %v13088_v23  ;;  %v18495_v8 = vld [vmem:[#allocation79_spill] sm:$0xff] }
 0x7b9   :  { %v3516_v20 = vmul.f32 %v14580_v57, %v18479_v3  ;;  %v18481_v12 = vld [vmem:[#allocation72_spill] sm:$0xff]  ;;  %v14962_v3 = vmul.f32 %v14811_v2, %v13502_v4 }
 0x7ba   :  { %v11277_v9 = vpack.i.bf16 %v3597_v30, %v3596_v48  ;;  %v3613_v49 = vmul.f32 %v14938_v56, %v18481_v12  ;;  %v3612_v30 = vmul.f32 %v14948_v44, %v18484_v40  ;;  %v3472_v48 = vrot.slane %v14688_v18, 7  ;;  %v18494_v40 = vld [vmem:[#allocation73_spill] sm:$0xff] }
 0x7bb   :  { %11268 = vrot.lane.b32.xlu1 %v11267_v58, %s12202_s29  ;;  %v11282_v58 = vpack.i.bf16 %v3517_v51, %v3516_v20  ;;  %v11292_v17 = vpack.i.bf16 %v3565_v14, %v3564_v29  ;;  %v18485_v20 = vld [vmem:[#allocation32_spill] sm:$0xff]  ;;  %v18488_v14 = vld [vmem:[#allocation71_spill] sm:$0xff] }
 0x7bc   :  { %11273 = vrot.lane.b32.xlu0 %v11272_v15, %s12202_s29  ;;  %v14958_v15 = vmul.f32 %v14815_v1, %v13239_v60  ;;  %v11287_v51 = vpack.i.bf16 %v3613_v49, %v3612_v30  ;;  %v3580_v4 = vmul.f32 %v14892_v35, %v18485_v20  ;;  %v18486_v60 = vld [vmem:[#allocation81_spill] sm:$0xff]  ;;  %v18487_v30 = vld [vmem:[#allocation51_spill] sm:$0xff]  ;;  %v3519_v20 = vmul.f32 %v14651_v22, %v18488_v14 }
 0x7bd   :  { %v3599_v23 = vmul.f32 %v14791_v42, %v18487_v30 }
 0x7bf   :  { %11278 = vrot.lane.b32.xlu1 %v11277_v9, %s12196_s18  ;;  %v3581_v9 = vmul.f32 %v14948_v44, %v18486_v60  ;;  %v14988_v60 = vsel %vm18489_vm6, %v3471_v21, %v3472_v48  ;;  %vm18538_vm6 = vmmov %vm18531_vm1 }
 0x7c0   :  { %11283 = vrot.lane.b32.xlu0 %v11282_v58, %s12196_s18  ;;  %v3628_v58 = vmul.f32 %v14599_v53, %v18219_v52 }
 0x7c1   :  { %v11302_v29 = vpack.i.bf16 %v3581_v9, %v3580_v4  ;;  %v14998_v4 = vsel %vm18492_vm4, %v3470_v61, %v3471_v21  ;;  %v18497_v21 = vld [vmem:[#allocation2_spill] sm:$0xff]  ;;  %vm18541_vm4 = vmmov %vm18531_vm1 }
 0x7c2   :  { %v11297_v49 = vpack.i.bf16 %v3629_v0, %v3628_v58  ;;  %v18493_v58 = vld [vmem:[#allocation89_spill] sm:$0xff] }
 0x7c3   :  { %11288 = vrot.lane.b32.xlu1 %v11287_v51, %s12203_s8  ;;  %v18490_v51 = vld [vmem:[#allocation4_spill] sm:$0xff]  ;;  %v3615_v14 = vmul.f32 %v14988_v60, %v18493_v58 }
 0x7c4   :  { %11293 = vrot.lane.b32.xlu0 %v11292_v17, %s12203_s8  ;;  %v3598_v52 = vmul.f32 %v14737_v24, %v18490_v51  ;;  %v18491_v17 = vld [vmem:[#allocation113_spill] sm:$0xff]  ;;  %v3567_v51 = vmul.f32 %v14737_v24, %v18495_v8  ;;  %v18499_v24 = vld [vmem:[#allocation78_spill] sm:$0xff]  ;;  %v18506_v8 = vld [vmem:[#allocation104_spill] sm:$0xff] }
 0x7c5   :  { %v3518_v0 = vmul.f32 %v14599_v53, %v18491_v17 }
 0x7c6   :  { %v11307_v9 = vpack.i.bf16 %v3599_v23, %v3598_v52  ;;  %v3631_v23 = vmul.f32 %v14688_v18, %v13112_v36  ;;  %v3473_v36 = vrot.slane %v14669_v63, 7 }
 0x7c7   :  { %11298 = vrot.lane.b32.xlu1 %v11297_v49, %s12202_s29  ;;  %v11312_v30 = vpack.i.bf16 %v3519_v20, %v3518_v0  ;;  %v3566_v49 = vmul.f32 %v14748_v19, %v18494_v40  ;;  %v3582_v20 = vmul.f32 %v14938_v56, %v18497_v21  ;;  %v18498_v0 = vld [vmem:[#allocation35_spill] sm:$0xff]  ;;  %v3569_v40 = vmul.f32 %v14787_v46, %v18506_v8 }
 0x7c8   :  { %11303 = vrot.lane.b32.xlu0 %v11302_v29, %s12202_s29  ;;  %v18496_v29 = vld [vmem:[#allocation87_spill] sm:$0xff]  ;;  %v3583_v19 = vmul.f32 %v14998_v4, %v18498_v0 }
 0x7c9   :  { %v3614_v17 = vmul.f32 %v14998_v4, %v18496_v29  ;;  %v11322_v52 = vpack.i.bf16 %v3567_v51, %v3566_v49  ;;  %v18501_v49 = vld [vmem:[#allocation29_spill] sm:$0xff] }
 0x7ca   :  { %v11332_v51 = vpack.i.bf16 %v3583_v19, %v3582_v20  ;;  %v3521_v21 = vmul.f32 %v14688_v18, %v18501_v49  ;;  %v18505_v19 = vld [vmem:[#allocation120_spill] sm:$0xff] }
 0x7cb   :  { %11308 = vrot.lane.b32.xlu1 %v11307_v9, %s12196_s18  ;;  %v11317_v61 = vpack.i.bf16 %v3615_v14, %v3614_v17  ;;  %v3630_v9 = vmul.f32 %v14638_v55, %v18499_v24  ;;  %v3474_v17 = vrot.slane %v14741_v34, 7  ;;  %v3568_v49 = vmul.f32 %v14791_v42, %v18505_v19  ;;  %v18510_v42 = vld [vmem:[#allocation82_spill] sm:$0xff]  ;;  %v18512_v19 = vld [vmem:[#allocation40_spill] sm:$0xff] }
 0x7cc   :  { %11313 = vrot.lane.b32.xlu0 %v11312_v30, %s12196_s18  ;;  %v18500_v30 = vld [vmem:[#allocation77_spill] sm:$0xff] }
 0x7cd   :  { %v11327_v29 = vpack.i.bf16 %v3631_v23, %v3630_v9  ;;  %v3633_v14 = vmul.f32 %v14741_v34, %v18500_v30  ;;  %v18504_v30 = vld [vmem:[#allocation111_spill] sm:$0xff] }
 0x7ce   :  { %v3601_v24 = vmul.f32 %v14815_v1, %v18504_v30  ;;  %v18539_v30 = vld [vmem:[#allocation39_spill] sm:$0xff] }
 0x7cf   :  { %11318 = vrot.lane.b32.xlu1 %v11317_v61, %s12203_s8  ;;  %v18502_v61 = vld [vmem:[#allocation83_spill] sm:$0xff] }
 0x7d0   :  { %11323 = vrot.lane.b32.xlu0 %v11322_v52, %s12203_s8  ;;  %v3632_v0 = vmul.f32 %v14669_v63, %v18502_v61  ;;  %v18503_v52 = vld [vmem:[#allocation97_spill] sm:$0xff] }
 0x7d1   :  { %v3520_v23 = vmul.f32 %v14638_v55, %v18503_v52  ;;  %v18540_v61 = vld [vmem:[#allocation121_spill] sm:$0xff] }
 0x7d2   :  { %v11347_v9 = vpack.i.bf16 %v3633_v14, %v3632_v0  ;;  %v15047_v0 = vsel %vm18509_vm0, %v3472_v48, %v3473_v36  ;;  %v11342_v14 = vpack.i.bf16 %v3569_v40, %v3568_v49  ;;  %v18514_v48 = vld [vmem:[#allocation114_spill] sm:$0xff]  ;;  %vm18545_vm0 = vmmov %vm18531_vm1 }
 0x7d3   :  { %11328 = vrot.lane.b32.xlu1 %v11327_v29, %s12202_s29  ;;  %v11337_v20 = vpack.i.bf16 %v3521_v21, %v3520_v23  ;;  %v15040_v29 = vsel %vm18507_vm10, %v3473_v36, %v3474_v17  ;;  %v18511_v23 = vld [vmem:[#allocation107_spill] sm:$0xff]  ;;  %vm18542_vm10 = vmmov %vm18531_vm1 }
 0x7d4   :  { %11333 = vrot.lane.b32.xlu0 %v11332_v51, %s12202_s29  ;;  %v18508_v51 = vld [vmem:[#allocation53_spill] sm:$0xff]  ;;  %v3617_v21 = vmul.f32 %v15040_v29, %v18510_v42  ;;  %v3584_v8 = vmul.f32 %v14988_v60, %v18511_v23 }
 0x7d5   :  { %v3600_v52 = vmul.f32 %v14787_v46, %v18508_v51  ;;  %v18513_v46 = vld [vmem:[#allocation27_spill] sm:$0xff] }
 0x7d6   :  { %v3616_v51 = vmul.f32 %v15047_v0, %v18513_v46  ;;  %v18528_v46 = vld [vmem:[#allocation124_spill] sm:$0xff] }
 0x7d7   :  { %11348 = vrot.lane.b32.xlu1 %v11347_v9, %s12202_s29  ;;  %v11362_v1 = vpack.i.bf16 %v3601_v24, %v3600_v52  ;;  %v3585_v9 = vmul.f32 %v15047_v0, %v18512_v19  ;;  %v3602_v24 = vmul.f32 %v14811_v2, %v18514_v48  ;;  %v18515_v52 = vld [vmem:[#allocation55_spill] sm:$0xff]  ;;  %v18517_v19 = vrot.slane %v14729_v62, 7 }
 0x7d8   :  { %11338 = vrot.lane.b32.xlu0 %v11337_v20, %s12196_s18  ;;  %v11367_v36 = vpack.i.bf16 %v3617_v21, %v3616_v51  ;;  %v3603_v40 = vmul.f32 %v14830_v43, %v18515_v52  ;;  %v18516_v20 = vld [vmem:[#allocation102_spill] sm:$0xff]  ;;  %v18519_v51 = vld [vmem:[#allocation116_spill] sm:$0xff] }
 0x7d9   :  { %v11352_v49 = vpack.i.bf16 %v3585_v9, %v3584_v8  ;;  %v3523_v23 = vmul.f32 %v14741_v34, %v18516_v20  ;;  %v3522_v2 = vmul.f32 %v14669_v63, %v18519_v51  ;;  %v18521_v8 = vld [vmem:[#allocation31_spill] sm:$0xff]  ;;  %v18524_v51 = vld [vmem:[#allocation109_spill] sm:$0xff] }
 0x7da   :  { %v11372_v21 = vpack.i.bf16 %v3603_v40, %v3602_v24  ;;  %v3619_v9 = vmul.f32 %v14876_v38, %v18521_v8  ;;  %v18525_v40 = vld [vmem:[#allocation76_spill] sm:$0xff] }
 0x7db   :  { %11363 = vrot.lane.b32.xlu1 %v11362_v1, %s12196_s18  ;;  %v15070_v1 = vsel %vm18518_vm2, %v3474_v17, %v18517_v19  ;;  %v11357_v20 = vpack.i.bf16 %v3523_v23, %v3522_v2  ;;  %v18522_v19 = vld [vmem:[#allocation85_spill] sm:$0xff]  ;;  %v3635_v8 = vmul.f32 %v14512_v50, %v18525_v40  ;;  %v18526_v23 = vpack.i.bf16 %v14962_v3, %v14958_v15  ;;  %v18527_v40 = vld [vmem:[#allocation122_spill] sm:$0xff]  ;;  %vm18547_vm2 = vmmov %vm18545_vm0 }
 0x7dc   :  { %11343 = vrot.lane.b32.xlu0 %v11342_v14, %s12203_s8  ;;  %v18520_v14 = vld [vmem:[#allocation26_spill] sm:$0xff]  ;;  %v3587_v24 = vmul.f32 %v15070_v1, %v18524_v51  ;;  %v3494_v48 = vmul.f32 %v14616_v11, %v18527_v40  ;;  %v3495_v3 = vmul.f32 %v14609_v41, %v18528_v46 }
 0x7dd   :  { %v3618_v43 = vmul.f32 %v15070_v1, %v18520_v14 }
 0x7df   :  { %11368 = vrot.lane.b32.xlu1 %v11367_v36, %s12203_s8  ;;  %v11377_v17 = vpack.i.bf16 %v3619_v9, %v3618_v43  ;;  %v3634_v36 = vmul.f32 %v14729_v62, %v18522_v19 }
 0x7e0   :  { %11353 = vrot.lane.b32.xlu0 %v11352_v49, %s12202_s29  ;;  %v18523_v49 = vld [vmem:[#allocation108_spill] sm:$0xff] }
 0x7e1   :  { %v3586_v52 = vmul.f32 %v15040_v29, %v18523_v49 }
 0x7e3   :  { %11373 = vrot.lane.b32.xlu1 %v11372_v21, %s12196_s18  ;;  %v11392_v2 = vpack.i.bf16 %v3587_v24, %v3586_v52 }
 0x7e4   :  { %11358 = vrot.lane.b32.xlu0 %v11357_v20, %s12196_s18  ;;  %v11382_v20 = vpack.i.bf16 %v3635_v8, %v3634_v36 }
 0x7e7   :  { %11378 = vrot.lane.b32.xlu1 %v11377_v17, %s12203_s8 }
 0x7e8   :  { %11388 = vrot.lane.b32.xlu0 %v18526_v23, %s12203_s8 }
 0x7eb   :  { %11383 = vrot.lane.b32.xlu1 %v11382_v20, %s12202_s29 }
 0x7ec   :  { %11393 = vrot.lane.b32.xlu0 %v11392_v2, %s12202_s29 }
 0x7f8   :  { %v11159_v21 = vpop.permute.xlu1 %11158  ;;  %v11164_v43 = vpop.permute.xlu0 %11163 }
 0x7f9   :  { %v11166_v49 = vunpack.i.h.bf16 %v11164_v43  ;;  %v11165_v17 = vunpack.i.l.bf16 %v11164_v43  ;;  %v11161_v8 = vunpack.i.h.bf16 %v11159_v21  ;;  %v11160_v36 = vunpack.i.l.bf16 %v11159_v21 }
 0x7fb   :  { %v4038_v23 = vsel %vm18529_vm14, %v3494_v48, %v11165_v17  ;;  %v4039_v20 = vsel %vm18530_vm11, %v3495_v3, %v11166_v49  ;;  %vm18548_vm14 = vmmov %vm18545_vm0 }
 0x7fc   :  { %vm18549_vm11 = vmmov %vm18545_vm0 }
 0x7ff   :  { %v11169_v9 = vpop.permute.xlu1 %11168 }
 0x800   :  { %v11179_v51 = vpop.permute.xlu0 %11178  ;;  %v11171_v19 = vunpack.i.h.bf16 %v11169_v9  ;;  %v11170_v14 = vunpack.i.l.bf16 %v11169_v9 }
 0x801   :  { %v11181_v15 = vunpack.i.h.bf16 %v11179_v51  ;;  %v11180_v52 = vunpack.i.l.bf16 %v11179_v51 }
 0x802   :  { %v4087_v11 = vsel %vm18461_vm7, %v14509_v5, %v11171_v19  ;;  %v4086_v41 = vsel %vm18531_vm1, %v14512_v50, %v11170_v14  ;;  %vm18551_vm7 = vmmov %vm18545_vm0 }
 0x803   :  { %v4055_v42 = vsel %vm4052_vm12, %v4038_v23, %v11180_v52  ;;  %v4056_v48 = vsel %vm4052_vm12, %v4039_v20, %v11181_v15  ;;  %vm18552_vm1 = vmmov %vm18545_vm0 }
 0x806   :  { %v11174_v24 = vpop.permute.xlu1 %11173 }
 0x807   :  { %v11176_v2 = vunpack.i.h.bf16 %v11174_v24  ;;  %v11175_v43 = vunpack.i.l.bf16 %v11174_v24 }
 0x808   :  { %v11184_v9 = vpop.permute.xlu0 %11183 }
 0x809   :  { %v11186_v46 = vunpack.i.h.bf16 %v11184_v9  ;;  %v11185_v51 = vunpack.i.l.bf16 %v11184_v9  ;;  %v4102_v21 = vsel %vm4052_vm12, %v4086_v41, %v11175_v43  ;;  %v4103_v40 = vsel %vm4052_vm12, %v4087_v11, %v11176_v2  ;;  %v18532_v43 = vld [vmem:[#allocation123_spill] sm:$0xff] }
 0x80a   :  { %v11189_v49 = vpop.permute.xlu1 %11188  ;;  %v4118_v17 = vsel %vm4069_vm8, %v4102_v21, %v11160_v36  ;;  %v4119_v3 = vsel %vm4069_vm8, %v4103_v40, %v11161_v8  ;;  %v3496_v40 = vmul.f32 %v14634_v28, %v18532_v43 }
 0x80b   :  { %v15114_v5 = vsel %vm4069_vm8, %v4055_v42, %v11185_v51  ;;  %v15117_v50 = vsel %vm4069_vm8, %v4056_v48, %v11186_v46  ;;  %v4135_v14 = vpack.c.bf16 %v4119_v3, %v4118_v17  ;;  %v18533_v42 = vld [vmem:[#allocation10_spill] sm:$0xff]  ;;  %v11191_v19 = vunpack.i.h.bf16 %v11189_v49 }
 0x80c   :  { %v11194_v24 = vpop.permute.xlu0 %11193  ;;  %v3497_v8 = vmul.f32 %v14768_v31, %v18533_v42  ;;  %v11190_v42 = vunpack.i.l.bf16 %v11189_v49 }
 0x80d   :  { %4326 = vmatprep.mubr.bf16.mxu0 %v4135_v14  ;;  %v11196_v15 = vunpack.i.h.bf16 %v11194_v24  ;;  %v11195_v20 = vunpack.i.l.bf16 %v11194_v24 }
 0x80f   :  { %v11199_v52 = vpop.permute.xlu1 %11198  ;;  %v4040_v11 = vsel %vm18534_vm5, %v3496_v40, %v11195_v20  ;;  %v4041_v41 = vsel %vm18535_vm3, %v3497_v8, %v11196_v15  ;;  %vm18556_vm5 = vmmov %vm18545_vm0 }
 0x810   :  { %v11209_v23 = vpop.permute.xlu0 %11208  ;;  %v11201_v15 = vunpack.i.h.bf16 %v11199_v52  ;;  %v11200_v20 = vunpack.i.l.bf16 %v11199_v52  ;;  %vm18557_vm3 = vmmov %vm18545_vm0 }
 0x811   :  { %v11211_v2 = vunpack.i.h.bf16 %v11209_v23  ;;  %v11210_v36 = vunpack.i.l.bf16 %v11209_v23 }
 0x813   :  { %v4057_v48 = vsel %vm4052_vm12, %v4040_v11, %v11210_v36  ;;  %v4058_v17 = vsel %vm4052_vm12, %v4041_v41, %v11211_v2  ;;  %v4089_v2 = vsel %vm18536_vm15, %v14518_v59, %v11201_v15  ;;  %v18537_v11 = vld [vmem:[#allocation165_spill] sm:$0xff]  ;;  %v3493_v59 = vmul.f32 %v14876_v38, %v18540_v61  ;;  %vm18559_vm15 = vmmov %vm18545_vm0 }
 0x814   :  { %v4088_v41 = vsel %vm18538_vm6, %v18537_v11, %v11200_v20  ;;  %vm18560_vm6 = vmmov %vm18545_vm0 }
 0x815   :  { %v11204_v46 = vpop.permute.xlu1 %11203 }
 0x816   :  { %v11214_v9 = vpop.permute.xlu0 %11213  ;;  %v11206_v8 = vunpack.i.h.bf16 %v11204_v46  ;;  %v11205_v36 = vunpack.i.l.bf16 %v11204_v46  ;;  %v3492_v46 = vmul.f32 %v15070_v1, %v18539_v30 }
 0x817   :  { %v11216_v51 = vunpack.i.h.bf16 %v11214_v9  ;;  %v11215_v21 = vunpack.i.l.bf16 %v11214_v9 }
 0x818   :  { %v4105_v24 = vsel %vm4052_vm12, %v4089_v2, %v11206_v8 }
 0x819   :  { %v15129_v3 = vpop.permute.xlu1 %11218  ;;  %v15132_v14 = vsel %vm4069_vm8, %v4057_v48, %v11215_v21  ;;  %v15135_v28 = vsel %vm4069_vm8, %v4058_v17, %v11216_v51  ;;  %v4104_v17 = vsel %vm4052_vm12, %v4088_v41, %v11205_v36  ;;  %v4121_v36 = vsel %vm4069_vm8, %v4105_v24, %v11191_v19 }
 0x81a   :  { %v11224_v31 = vpop.permute.xlu0 %11223 }
 0x81b   :  { %v11226_v24 = vunpack.i.h.bf16 %v11224_v31 }
 0x81d   :  { %v11229_v23 = vpop.permute.xlu1 %11228 }
 0x81e   :  { %v11249_v40 = vpop.permute.xlu0 %11248  ;;  %v11231_v20 = vunpack.i.h.bf16 %v11229_v23  ;;  %v11230_v11 = vunpack.i.l.bf16 %v11229_v23 }
 0x81f   :  { %v11251_v51 = vunpack.i.h.bf16 %v11249_v40  ;;  %v11250_v48 = vunpack.i.l.bf16 %v11249_v40  ;;  %v4120_v40 = vsel %vm4069_vm8, %v4104_v17, %v11190_v42  ;;  %v18543_v42 = vld [vmem:[#allocation125_spill] sm:$0xff] }
 0x820   :  { %v3498_v19 = vmul.f32 %v14778_v32, %v18543_v42 }
 0x821   :  { %v11234_v9 = vpop.permute.xlu1 %11233  ;;  %v4036_v8 = vsel %vm18541_vm4, %v3492_v46, %v11250_v48  ;;  %v4037_v49 = vsel %vm18542_vm10, %v3493_v59, %v11251_v51  ;;  %v11225_v48 = vunpack.i.l.bf16 %v11224_v31  ;;  %v18544_v46 = vld [vmem:[#allocation126_spill] sm:$0xff]  ;;  %v11220_v31 = vunpack.i.l.bf16 %v15129_v3  ;;  %vm18563_vm4 = vmmov %vm18545_vm0 }
 0x822   :  { %v11254_v21 = vpop.permute.xlu0 %11253  ;;  %v11235_v1 = vunpack.i.l.bf16 %v11234_v9  ;;  %vm18564_vm10 = vmmov %vm18545_vm0 }
 0x823   :  { %v11256_v52 = vunpack.i.h.bf16 %v11254_v21  ;;  %v11255_v43 = vunpack.i.l.bf16 %v11254_v21  ;;  %v11236_v21 = vunpack.i.h.bf16 %v11234_v9  ;;  %v18546_v9 = vld [vmem:[#allocation166_spill] sm:$0xff] }
 0x825   :  { %v15149_v15 = vpop.permute.xlu1 %11238  ;;  %v4053_v30 = vsel %vm4052_vm12, %v4036_v8, %v11255_v43  ;;  %v4054_v38 = vsel %vm4052_vm12, %v4037_v49, %v11256_v52  ;;  %v4091_v43 = vsel %vm18545_vm0, %v14533_v47, %v11231_v20  ;;  %v4090_v52 = vsel %vm18547_vm2, %v18546_v9, %v11230_v11  ;;  %vm18565_vm2 = vmmov %vm18545_vm0 }
 0x826   :  { %v11259_v58 = vpop.permute.xlu0 %11258  ;;  %v4106_v49 = vsel %vm4052_vm12, %v4090_v52, %v11235_v1  ;;  %v4107_v32 = vsel %vm4052_vm12, %v4091_v43, %v11236_v21  ;;  %v4042_v47 = vsel %vm18548_vm14, %v3498_v19, %v11225_v48  ;;  %v11241_v21 = vunpack.i.h.bf16 %v15149_v15  ;;  %vm18568_vm14 = vmmov %vm18545_vm0 }
 0x827   :  { %v11261_v2 = vunpack.i.h.bf16 %v11259_v58  ;;  %v11260_v41 = vunpack.i.l.bf16 %v11259_v58  ;;  %v3499_v58 = vmul.f32 %v14842_v7, %v18544_v46  ;;  %v11240_v1 = vunpack.i.l.bf16 %v15149_v15 }
 0x828   :  { %v4093_v52 = vsel %vm18551_vm7, %v14580_v57, %v11241_v21  ;;  %vm18570_vm7 = vmmov %vm18545_vm0 }
 0x829   :  { %v4070_v61 = vsel %vm4069_vm8, %v4053_v30, %v11260_v41  ;;  %v4071_v23 = vsel %vm4069_vm8, %v4054_v38, %v11261_v2  ;;  %v11244_v13 = vpop.permute.xlu1 %11243  ;;  %v4138_v30 = vpack.c.bf16 %v4121_v36, %v4120_v40  ;;  %v4043_v20 = vsel %vm18549_vm11, %v3499_v58, %v11226_v24  ;;  %vm18569_vm11 = vmmov %vm18545_vm0 }
 0x82a   :  { %v4134_v17 = vpack.c.bf16 %v4071_v23, %v4070_v61  ;;  %v11264_v51 = vpop.permute.xlu0 %11263  ;;  %v11221_v61 = vunpack.i.h.bf16 %v15129_v3  ;;  %v4122_v41 = vsel %vm4069_vm8, %v4106_v49, %v11220_v31  ;;  %v11246_v19 = vunpack.i.h.bf16 %v11244_v13 }
 0x82b   :  { %v11266_v59 = vunpack.i.h.bf16 %v11264_v51  ;;  %v11265_v8 = vunpack.i.l.bf16 %v11264_v51  ;;  %v11245_v24 = vunpack.i.l.bf16 %v11244_v13 }
 0x82c   :  { %4327 = vmatmul.mubr.bf16.vlgmr.msra.gmra.mrb[36].mxu0 %v4134_v17  ;;  %v4123_v3 = vsel %vm4069_vm8, %v4107_v32, %v11221_v61  ;;  %v4109_v32 = vsel %vm4052_vm12, %v4093_v52, %v11246_v19 }
 0x82d   :  { %4334 = vmatprep.mubr.bf16.mxu0 %v4138_v30  ;;  %v11269_v7 = vpop.permute.xlu1 %11268  ;;  %10669 = vmatpush3.bf16.msk.msra.mxu0 %vm18369_vm13, %v18261_v39  ;;  %v4059_v38 = vsel %vm4052_vm12, %v4042_v47, %v11265_v8  ;;  %v4060_v23 = vsel %vm4052_vm12, %v4043_v20, %v11266_v59  ;;  %v4141_v13 = vpack.c.bf16 %v4123_v3, %v4122_v41  ;;  %v18554_v20 = vld [vmem:[#allocation90_spill] sm:$0xff] }
 0x82e   :  { %v11274_v11 = vpop.permute.xlu0 %11273  ;;  %10671 = vmatprep.subr.msk.bf16.mxu0 %vm18408_vm9, %v18261_v39  ;;  %v11271_v58 = vunpack.i.h.bf16 %v11269_v7  ;;  %v11270_v43 = vunpack.i.l.bf16 %v11269_v7  ;;  %v4092_v30 = vsel %vm18552_vm1, %v14585_v6, %v11240_v1  ;;  %v18553_v59 = vpack.c.bf16 %v15117_v50, %v15114_v5  ;;  %vm18571_vm1 = vmmov %vm18545_vm0 }
 0x82f   :  { %v11276_v36 = vunpack.i.h.bf16 %v11274_v11  ;;  %v11275_v2 = vunpack.i.l.bf16 %v11274_v11  ;;  %v4108_v49 = vsel %vm4052_vm12, %v4092_v30, %v11245_v24  ;;  %v3500_v6 = vmul.f32 %v14905_v16, %v18554_v20  ;;  %v18555_v11 = vld [vmem:[#allocation92_spill] sm:$0xff]  ;;  %v11915_v20 = vld [vmem:[%s17655_s2 + $0x108] sm:$0xff]  }
 0x830   :  { %v4124_v47 = vsel %vm4069_vm8, %v4108_v49, %v11270_v43  ;;  %v4125_v57 = vsel %vm4069_vm8, %v4109_v32, %v11271_v58  ;;  %v3501_v5 = vmul.f32 %v14892_v35, %v18555_v11  ;;  %v18558_v35 = vpack.c.bf16 %v15135_v28, %v15132_v14 }
 0x831   :  { %v11279_v48 = vpop.permute.xlu1 %11278  ;;  %v15186_v17 = vsel %vm4069_vm8, %v4059_v38, %v11275_v2  ;;  %v15189_v51 = vsel %vm4069_vm8, %v4060_v23, %v11276_v36  ;;  %10673 = vmatpush3.bf16.msk.msra.mxu0 %vm18408_vm9, %v18261_v39  ;;  %v4144_v41 = vpack.c.bf16 %v4125_v57, %v4124_v47 }
 0x832   :  { %v11284_v15 = vpop.permute.xlu0 %11283  ;;  %v4143_v9 = vpack.c.bf16 %v15189_v51, %v15186_v17  ;;  %10698 = vmatprep.subr.bf16.mxu0 %v18423_v25  ;;  %v11281_v3 = vunpack.i.h.bf16 %v11279_v48  ;;  %v11280_v21 = vunpack.i.l.bf16 %v11279_v48 }
 0x833   :  { %v11286_v61 = vunpack.i.h.bf16 %v11284_v15  ;;  %v11285_v31 = vunpack.i.l.bf16 %v11284_v15 }
 0x834   :  { %4335 = vmatmul.mubr.bf16.gmra.mrb[40].mxu0 %v18553_v59  ;;  %v4095_v30 = vsel %vm18559_vm15, %v14599_v53, %v11281_v3  ;;  %v4094_v59 = vsel %vm18560_vm6, %v14604_v54, %v11280_v21  ;;  %v18561_v54 = vld [vmem:[#allocation127_spill] sm:$0xff]  ;;  %vm18576_vm15 = vmmov %vm18545_vm0 }
 0x835   :  { %4342 = vmatprep.mubr.bf16.mxu0 %v4141_v13  ;;  %v11289_v8 = vpop.permute.xlu1 %11288  ;;  %v4045_v1 = vsel %vm18556_vm5, %v3501_v5, %v11286_v61  ;;  %v4044_v38 = vsel %vm18557_vm3, %v3500_v6, %v11285_v31  ;;  %vm18574_vm5 = vmmov %vm18545_vm0 }
 0x836   :  { %v11294_v7 = vpop.permute.xlu0 %11293  ;;  %v11291_v19 = vunpack.i.h.bf16 %v11289_v8  ;;  %v11290_v24 = vunpack.i.l.bf16 %v11289_v8  ;;  %vm18575_vm3 = vmmov %vm18545_vm0 }
 0x837   :  { %v11296_v50 = vunpack.i.h.bf16 %v11294_v7  ;;  %v11295_v36 = vunpack.i.l.bf16 %v11294_v7  ;;  %vm18577_vm6 = vmmov %vm18545_vm0 }
 0x838   :  { %v4110_v14 = vsel %vm4052_vm12, %v4094_v59, %v11290_v24  ;;  %v4111_v28 = vsel %vm4052_vm12, %v4095_v30, %v11291_v19 }
 0x839   :  { %v11299_v2 = vpop.permute.xlu1 %11298  ;;  %v4061_v43 = vsel %vm4052_vm12, %v4044_v38, %v11295_v36  ;;  %v4062_v15 = vsel %vm4052_vm12, %v4045_v1, %v11296_v50 }
 0x83a   :  { %v11304_v23 = vpop.permute.xlu0 %11303  ;;  %v11301_v58 = vunpack.i.h.bf16 %v11299_v2  ;;  %v11300_v16 = vunpack.i.l.bf16 %v11299_v2  ;;  %v3502_v2 = vmul.f32 %v14948_v44, %v18561_v54  ;;  %v18711_v54 = vld [vmem:[#allocation38_spill] sm:$0xff] }
 0x83b   :  { %v11306_v17 = vunpack.i.h.bf16 %v11304_v23  ;;  %v11305_v51 = vunpack.i.l.bf16 %v11304_v23 }
 0x83c   :  { %4343 = vmatmul.mubr.bf16.gmra.mrb[44].mxu0 %v18558_v35  ;;  %v4126_v32 = vsel %vm4069_vm8, %v4110_v14, %v11300_v16  ;;  %v4127_v61 = vsel %vm4069_vm8, %v4111_v28, %v11301_v58 }
 0x83d   :  { %4350 = vmatprep.mubr.bf16.mxu0 %v4144_v41  ;;  %v11309_v48 = vpop.permute.xlu1 %11308  ;;  %v4078_v13 = vsel %vm4069_vm8, %v4061_v43, %v11305_v51  ;;  %v4079_v52 = vsel %vm4069_vm8, %v4062_v15, %v11306_v17  ;;  %v4147_v36 = vpack.c.bf16 %v4127_v61, %v4126_v32  ;;  %v18562_v41 = vld [vmem:[#allocation128_spill] sm:$0xff] }
 0x83e   :  { %v11314_v8 = vpop.permute.xlu0 %11313  ;;  %v4146_v49 = vpack.c.bf16 %v4079_v52, %v4078_v13  ;;  %v11311_v31 = vunpack.i.h.bf16 %v11309_v48  ;;  %v11310_v7 = vunpack.i.l.bf16 %v11309_v48  ;;  %v3503_v3 = vmul.f32 %v14938_v56, %v18562_v41 }
 0x83f   :  { %v11316_v57 = vunpack.i.h.bf16 %v11314_v8  ;;  %v11315_v6 = vunpack.i.l.bf16 %v11314_v8 }
 0x840   :  { %v4097_v38 = vsel %vm18563_vm4, %v14638_v55, %v11311_v31  ;;  %v4096_v23 = vsel %vm18564_vm10, %v14651_v22, %v11310_v7  ;;  %vm18578_vm4 = vmmov %vm18545_vm0 }
 0x841   :  { %v11319_v47 = vpop.permute.xlu1 %11318  ;;  %v4047_v24 = vsel %vm18545_vm0, %v3503_v3, %v11316_v57  ;;  %v4046_v17 = vsel %vm18565_vm2, %v3502_v2, %v11315_v6  ;;  %v18567_v6 = vld [vmem:[#allocation130_spill] sm:$0xff]  ;;  %vm18579_vm10 = vmmov %vm18545_vm0 }
 0x842   :  { %v11324_v5 = vpop.permute.xlu0 %11323  ;;  %v11321_v53 = vunpack.i.h.bf16 %v11319_v47  ;;  %v11320_v50 = vunpack.i.l.bf16 %v11319_v47  ;;  %v18566_v47 = vld [vmem:[#allocation129_spill] sm:$0xff]  ;;  %vm18580_vm2 = vmmov %vm18545_vm0 }
 0x843   :  { %v11326_v21 = vunpack.i.h.bf16 %v11324_v5  ;;  %v11325_v1 = vunpack.i.l.bf16 %v11324_v5  ;;  %v3504_v57 = vmul.f32 %v14998_v4, %v18566_v47  ;;  %v3505_v5 = vmul.f32 %v14988_v60, %v18567_v6  ;;  %v18710_v47 = vld [vmem:[#allocation103_spill] sm:$0xff] }
 0x844   :  { %4351 = vmatmul.mubr.bf16.gmra.mrb[48].mxu0 %v4143_v9  ;;  %v4112_v35 = vsel %vm4052_vm12, %v4096_v23, %v11320_v50  ;;  %v4113_v9 = vsel %vm4052_vm12, %v4097_v38, %v11321_v53 }
 0x845   :  { %4358 = vmatprep.mubr.bf16.mxu0 %v4147_v36  ;;  %v11329_v19 = vpop.permute.xlu1 %11328  ;;  %v4063_v22 = vsel %vm4052_vm12, %v4046_v17, %v11325_v1  ;;  %v4064_v15 = vsel %vm4052_vm12, %v4047_v24, %v11326_v21 }
 0x846   :  { %v11331_v51 = vunpack.i.h.bf16 %v11329_v19  ;;  %v11330_v44 = vunpack.i.l.bf16 %v11329_v19  ;;  %v11334_v58 = vpop.permute.xlu0 %11333 }
 0x847   :  { %v11336_v16 = vunpack.i.h.bf16 %v11334_v58  ;;  %v11335_v56 = vunpack.i.l.bf16 %v11334_v58 }
 0x848   :  { %v4128_v55 = vsel %vm4069_vm8, %v4112_v35, %v11330_v44  ;;  %v4129_v43 = vsel %vm4069_vm8, %v4113_v9, %v11331_v51 }
 0x849   :  { %v11349_v48 = vpop.permute.xlu1 %11348  ;;  %v4150_v13 = vpack.c.bf16 %v4129_v43, %v4128_v55  ;;  %v4080_v52 = vsel %vm4069_vm8, %v4063_v22, %v11335_v56  ;;  %v4081_v30 = vsel %vm4069_vm8, %v4064_v15, %v11336_v16 }
 0x84a   :  { %v11339_v59 = vpop.permute.xlu0 %11338  ;;  %v4149_v8 = vpack.c.bf16 %v4081_v30, %v4080_v52  ;;  %v11351_v36 = vunpack.i.h.bf16 %v11349_v48  ;;  %v11350_v2 = vunpack.i.l.bf16 %v11349_v48 }
 0x84b   :  { %v11341_v28 = vunpack.i.h.bf16 %v11339_v59  ;;  %v11340_v32 = vunpack.i.l.bf16 %v11339_v59 }
 0x84c   :  { %4359 = vmatmul.mubr.bf16.gmra.mrb[52].mxu0 %v4146_v49 }
 0x84d   :  { %4366 = vmatprep.mubr.bf16.mxu0 %v4150_v13  ;;  %v11364_v14 = vpop.permute.xlu1 %11363  ;;  %v4049_v49 = vsel %vm18568_vm14, %v3505_v5, %v11341_v28  ;;  %v4048_v21 = vsel %vm18569_vm11, %v3504_v57, %v11340_v32  ;;  %v18573_v32 = vld [vmem:[#allocation132_spill] sm:$0xff]  ;;  %vm18581_vm14 = vmmov %vm18545_vm0 }
 0x84e   :  { %v11344_v61 = vpop.permute.xlu0 %11343  ;;  %v11366_v31 = vunpack.i.h.bf16 %v11364_v14  ;;  %v11365_v7 = vunpack.i.l.bf16 %v11364_v14  ;;  %v18572_v14 = vld [vmem:[#allocation131_spill] sm:$0xff]  ;;  %vm18582_vm11 = vmmov %vm18545_vm0 }
 0x84f   :  { %v11346_v53 = vunpack.i.h.bf16 %v11344_v61  ;;  %v11345_v50 = vunpack.i.l.bf16 %v11344_v61  ;;  %v3506_v28 = vmul.f32 %v15047_v0, %v18572_v14  ;;  %v3507_v61 = vmul.f32 %v15040_v29, %v18573_v32  ;;  %v18701_v32 = vld [vmem:[#allocation99_spill] sm:$0xff] }
 0x850   :  { %v4099_v19 = vsel %vm18570_vm7, %v14669_v63, %v11366_v31  ;;  %v4098_v4 = vsel %vm18571_vm1, %v14688_v18, %v11365_v7  ;;  %vm18583_vm7 = vmmov %vm18545_vm0 }
 0x851   :  { %v11369_v3 = vpop.permute.xlu1 %11368  ;;  %v4065_v44 = vsel %vm4052_vm12, %v4048_v21, %v11345_v50  ;;  %v4066_v58 = vsel %vm4052_vm12, %v4049_v49, %v11346_v53  ;;  %vm18584_vm1 = vmmov %vm18545_vm0 }
 0x852   :  { %v11354_v1 = vpop.permute.xlu0 %11353  ;;  %v11371_v38 = vunpack.i.h.bf16 %v11369_v3  ;;  %v11370_v23 = vunpack.i.l.bf16 %v11369_v3 }
 0x853   :  { %v11356_v24 = vunpack.i.h.bf16 %v11354_v1  ;;  %v11355_v60 = vunpack.i.l.bf16 %v11354_v1 }
 0x854   :  { %4367 = vmatmul.mubr.bf16.gmra.mrb[56].mxu0 %v4149_v8  ;;  %v4114_v17 = vsel %vm4052_vm12, %v4098_v4, %v11370_v23  ;;  %v4115_v51 = vsel %vm4052_vm12, %v4099_v19, %v11371_v38 }
 0x855   :  { %v11374_v16 = vpop.permute.xlu1 %11373  ;;  %v4130_v56 = vsel %vm4069_vm8, %v4114_v17, %v11350_v2  ;;  %v4131_v35 = vsel %vm4069_vm8, %v4115_v51, %v11351_v36  ;;  %v4082_v63 = vsel %vm4069_vm8, %v4065_v44, %v11355_v60  ;;  %v4083_v18 = vsel %vm4069_vm8, %v4066_v58, %v11356_v24 }
 0x856   :  { %v11359_v9 = vpop.permute.xlu0 %11358  ;;  %v4153_v55 = vpack.c.bf16 %v4131_v35, %v4130_v56  ;;  %v4152_v43 = vpack.c.bf16 %v4083_v18, %v4082_v63  ;;  %v11376_v22 = vunpack.i.h.bf16 %v11374_v16  ;;  %v11375_v15 = vunpack.i.l.bf16 %v11374_v16 }
 0x857   :  { %v11361_v13 = vunpack.i.h.bf16 %v11359_v9  ;;  %v11360_v52 = vunpack.i.l.bf16 %v11359_v9 }
 0x858   :  { %4374 = vmatprep.mubr.bf16.mxu0 %v4153_v55  ;;  %v4101_v57 = vsel %vm18574_vm5, %v14729_v62, %v11376_v22  ;;  %v4100_v5 = vsel %vm18575_vm3, %v14741_v34, %v11375_v15  ;;  %vm18585_vm5 = vmmov %vm18545_vm0 }
 0x859   :  { %v11379_v48 = vpop.permute.xlu1 %11378  ;;  %v4050_v50 = vsel %vm18576_vm15, %v3506_v28, %v11360_v52  ;;  %v4051_v36 = vsel %vm18577_vm6, %v3507_v61, %v11361_v13  ;;  %vm18586_vm3 = vmmov %vm18545_vm0 }
 0x85a   :  { %v11389_v30 = vpop.permute.xlu0 %11388  ;;  %v11381_v59 = vunpack.i.h.bf16 %v11379_v48  ;;  %v11380_v8 = vunpack.i.l.bf16 %v11379_v48  ;;  %vm18587_vm15 = vmmov %vm18545_vm0 }
 0x85b   :  { %v11391_v31 = vunpack.i.h.bf16 %v11389_v30  ;;  %v11390_v7 = vunpack.i.l.bf16 %v11389_v30  ;;  %v15306_v30 = vld [vmem:[%s17656_s1 + $0x3] ss:$0 sm:$0xff]  ;;  %vm18588_vm6 = vmmov %vm18545_vm0 }
 0x85c   :  { %4375 = vmatmul.mubr.bf16.gmra.mrb[60].mxu0 %v4152_v43  ;;  %v4116_v29 = vsel %vm4052_vm12, %v4100_v5, %v11380_v8  ;;  %v4117_v1 = vsel %vm4052_vm12, %v4101_v57, %v11381_v59  ;;  %v15312_v57 = vld [vmem:[%s17656_s1 + $0x4] ss:$0 sm:$0xff] }
 0x85d   :  { %v11384_v53 = vpop.permute.xlu1 %11383  ;;  %v4067_v34 = vsel %vm4052_vm12, %v4050_v50, %v11390_v7  ;;  %v4068_v23 = vsel %vm4052_vm12, %v4051_v36, %v11391_v31 }
 0x85e   :  { %v11386_v2 = vunpack.i.h.bf16 %v11384_v53  ;;  %v11385_v3 = vunpack.i.l.bf16 %v11384_v53  ;;  %v11394_v0 = vpop.permute.xlu0 %11393 }
 0x85f   :  { %v11396_v49 = vunpack.i.h.bf16 %v11394_v0  ;;  %v11395_v21 = vunpack.i.l.bf16 %v11394_v0 }
 0x860   :  { %v4132_v38 = vsel %vm4069_vm8, %v4116_v29, %v11385_v3  ;;  %v4133_v62 = vsel %vm4069_vm8, %v4117_v1, %v11386_v2 }
 0x861   :  { %v4156_v19 = vpack.c.bf16 %v4133_v62, %v4132_v38  ;;  %v4084_v4 = vsel %vm4069_vm8, %v4067_v34, %v11395_v21  ;;  %v4085_v24 = vsel %vm4069_vm8, %v4068_v23, %v11396_v49  ;;  %v10148_v17 = vpop.f32.mrb[52].mxu1 }
 0x862   :  { %v4155_v60 = vpack.c.bf16 %v4085_v24, %v4084_v4  ;;  %v4425_v51 = vpop.f32.mrb[53].mxu1 }
 0x863   :  { %4382 = vmatprep.mubr.bf16.mxu0 %v4156_v19  ;;  %v10149_v44 = vpop.f32.mrb[54].mxu1 }
 0x864   :  { %4383 = vmatmul.mubr.bf16.gmra.mrb[64].mxu0 %v4155_v60  ;;  %v4428_v58 = vpop.f32.mrb[55].mxu1 }
 0x870   :  { %v15283_v16 = vpop.f32.mrb[56].mxu1 }
 0x871   :  { %v4441_v56 = vpop.f32.mrb[57].mxu1 }
 0x872   :  { %v15285_v35 = vpop.f32.mrb[58].mxu1 }
 0x873   :  { %v4444_v63 = vpop.f32.mrb[59].mxu1 }
 0x878   :  { %v15287_v18 = vpop.f32.mrb[60].mxu1 }
 0x879   :  { %v15289_v9 = vpop.f32.mrb[61].mxu1 }
 0x87a   :  { %v15291_v55 = vpop.f32.mrb[62].mxu1 }
 0x87b   :  { %v15293_v43 = vpop.f32.mrb[63].mxu1 }
 0x880   :  { %v15295_v22 = vpop.f32.mrb[64].mxu1 }
 0x881   :  { %v15297_v15 = vpop.f32.mrb[65].mxu1 }
 0x882   :  { %v15299_v48 = vpop.f32.mrb[66].mxu1 }
 0x883   :  { %v15301_v13 = vpop.f32.mrb[67].mxu1 }
 0x8ff   :  { %v9494_v52 = vpop.f32.mrb[36].mxu0 }
 0x900   :  { %v9495_v59 = vpop.f32.mrb[37].mxu0 }
 0x901   :  { %v9496_v8 = vadd.f32 %v9495_v59, %v9494_v52  ;;  %v9497_v28 = vpop.f32.mrb[38].mxu0 }
 0x902   :  { %v9498_v61 = vpop.f32.mrb[39].mxu0 }
 0x903   :  { %v4329_v31 = vadd.f32 %v9496_v8, %v15306_v30  ;;  %v9499_v7 = vadd.f32 %v9498_v61, %v9497_v28 }
 0x905   :  { %v4426_v5 = vadd.f32 %v4425_v51, %v4329_v31  ;;  %v4332_v53 = vadd.f32 %v9499_v7, %v15306_v30 }
 0x907   :  { %v15316_v50 = vadd.f32 %v15312_v57, %v4426_v5  ;;  %v4429_v36 = vadd.f32 %v4428_v58, %v4332_v53  ;;  %v9500_v2 = vpop.f32.mrb[40].mxu0 }
 0x908   :  { %v9501_v3 = vpop.f32.mrb[41].mxu0 }
 0x909   :  { %v15319_v0 = vadd.f32 %v15312_v57, %v4429_v36  ;;  %v9502_v49 = vadd.f32 %v9501_v3, %v9500_v2  ;;  %v9503_v21 = vpop.f32.mrb[42].mxu0  ;;  %10170 = vmatprep.mubr.msk.f32.mxu1 %vm18578_vm4, %v15316_v50  ;;  %v4701_v29 = vmul.f32 %v15316_v50, %v15316_v50  ;;  %vm18589_vm4 = vmmov %vm18545_vm0 }
 0x90a   :  { %v9504_v1 = vpop.f32.mrb[43].mxu0 }
 0x90b   :  { %v4702_v38 = vmul.f32 %v15319_v0, %v15319_v0  ;;  %v4337_v62 = vadd.f32 %v9502_v49, %v15306_v30  ;;  %v9505_v34 = vadd.f32 %v9504_v1, %v9503_v21  ;;  %10171 = vmatmul.mubr.msk.f32.vlgmr.msra.gmra.mrb[68].mxu1 %vm18579_vm10, %v15319_v0  ;;  %10202 = vmatprep.mubr.msk.f32.mxu0 %vm18545_vm0, %v4701_v29  ;;  %vm18590_vm10 = vmmov %vm18545_vm0 }
 0x90d   :  { %v4434_v23 = vadd.f32 %v10148_v17, %v4337_v62  ;;  %v4340_v19 = vadd.f32 %v9505_v34, %v15306_v30  ;;  %10203 = vmatmul.mubr.msk.f32.vlgmr.msra.gmra.mrb[68].mxu0 %vm18580_vm2, %v4702_v38  ;;  %vm18591_vm2 = vmmov %vm18545_vm0 }
 0x90f   :  { %v15334_v4 = vadd.f32 %v15312_v57, %v4434_v23  ;;  %v4437_v24 = vadd.f32 %v10149_v44, %v4340_v19  ;;  %v9506_v60 = vpop.f32.mrb[44].mxu0 }
 0x910   :  { %v9507_v51 = vpop.f32.mrb[45].mxu0 }
 0x911   :  { %v15337_v58 = vadd.f32 %v15312_v57, %v4437_v24  ;;  %v9508_v52 = vadd.f32 %v9507_v51, %v9506_v60  ;;  %v9509_v59 = vpop.f32.mrb[46].mxu0  ;;  %10173 = vmatprep.mubr.msk.f32.mxu1 %vm18581_vm14, %v15334_v4  ;;  %v4703_v17 = vmul.f32 %v15334_v4, %v15334_v4  ;;  %vm18592_vm14 = vmmov %vm18545_vm0 }
 0x912   :  { %v9510_v8 = vpop.f32.mrb[47].mxu0 }
 0x913   :  { %v4345_v28 = vadd.f32 %v9508_v52, %v15306_v30  ;;  %v9511_v61 = vadd.f32 %v9510_v8, %v9509_v59  ;;  %10174 = vmatmul.mubr.msk.f32.gmra.mrb[70].mxu1 %vm18582_vm11, %v15337_v58  ;;  %10205 = vmatprep.mubr.msk.f32.mxu0 %vm18583_vm7, %v4703_v17  ;;  %v4704_v44 = vmul.f32 %v15337_v58, %v15337_v58  ;;  %vm18593_vm11 = vmmov %vm18545_vm0 }
 0x914   :  { %vm18594_vm7 = vmmov %vm18545_vm0 }
 0x915   :  { %v4442_v31 = vadd.f32 %v4441_v56, %v4345_v28  ;;  %v4348_v7 = vadd.f32 %v9511_v61, %v15306_v30  ;;  %10206 = vmatmul.mubr.msk.f32.gmra.mrb[70].mxu0 %vm18584_vm1, %v4704_v44  ;;  %vm18595_vm1 = vmmov %vm18545_vm0 }
 0x917   :  { %v15352_v5 = vadd.f32 %v15312_v57, %v4442_v31  ;;  %v4445_v53 = vadd.f32 %v4444_v63, %v4348_v7  ;;  %v9512_v36 = vpop.f32.mrb[48].mxu0 }
 0x918   :  { %v9513_v2 = vpop.f32.mrb[49].mxu0 }
 0x919   :  { %v15355_v3 = vadd.f32 %v15312_v57, %v4445_v53  ;;  %v9514_v49 = vadd.f32 %v9513_v2, %v9512_v36  ;;  %v9515_v21 = vpop.f32.mrb[50].mxu0  ;;  %10176 = vmatprep.mubr.msk.f32.mxu1 %vm18585_vm5, %v15352_v5  ;;  %v4705_v56 = vmul.f32 %v15352_v5, %v15352_v5  ;;  %vm18596_vm5 = vmmov %vm18545_vm0 }
 0x91a   :  { %v9516_v29 = vpop.f32.mrb[51].mxu0 }
 0x91b   :  { %v4353_v1 = vadd.f32 %v9514_v49, %v15306_v30  ;;  %v9517_v38 = vadd.f32 %v9516_v29, %v9515_v21  ;;  %10177 = vmatmul.mubr.msk.f32.gmra.mrb[72].mxu1 %vm18586_vm3, %v15355_v3  ;;  %10208 = vmatprep.mubr.msk.f32.mxu0 %vm18587_vm15, %v4705_v56  ;;  %v4706_v63 = vmul.f32 %v15355_v3, %v15355_v3  ;;  %vm18597_vm3 = vmmov %vm18545_vm0 }
 0x91c   :  { %vm18598_vm15 = vmmov %vm18545_vm0 }
 0x91d   :  { %v4450_v62 = vadd.f32 %v15283_v16, %v4353_v1  ;;  %v4356_v34 = vadd.f32 %v9517_v38, %v15306_v30  ;;  %10209 = vmatmul.mubr.msk.f32.gmra.mrb[72].mxu0 %vm18588_vm6, %v4706_v63  ;;  %vm18599_vm6 = vmmov %vm18545_vm0 }
 0x91f   :  { %v15371_v23 = vadd.f32 %v15312_v57, %v4450_v62  ;;  %v4453_v19 = vadd.f32 %v15285_v35, %v4356_v34  ;;  %v9518_v24 = vpop.f32.mrb[52].mxu0 }
 0x920   :  { %v9519_v60 = vpop.f32.mrb[53].mxu0 }
 0x921   :  { %v15375_v51 = vadd.f32 %v15312_v57, %v4453_v19  ;;  %v9520_v52 = vadd.f32 %v9519_v60, %v9518_v24  ;;  %v9521_v59 = vpop.f32.mrb[54].mxu0  ;;  %10179 = vmatprep.mubr.msk.f32.mxu1 %vm18589_vm4, %v15371_v23  ;;  %v4707_v16 = vmul.f32 %v15371_v23, %v15371_v23  ;;  %vm18600_vm4 = vmmov %vm18545_vm0 }
 0x922   :  { %v9522_v17 = vpop.f32.mrb[55].mxu0 }
 0x923   :  { %v4361_v8 = vadd.f32 %v9520_v52, %v15306_v30  ;;  %v9523_v28 = vadd.f32 %v9522_v17, %v9521_v59  ;;  %10180 = vmatmul.mubr.msk.f32.gmra.mrb[74].mxu1 %vm18590_vm10, %v15375_v51  ;;  %10211 = vmatprep.mubr.msk.f32.mxu0 %vm18545_vm0, %v4707_v16  ;;  %v4708_v35 = vmul.f32 %v15375_v51, %v15375_v51  ;;  %vm18601_vm10 = vmmov %vm18545_vm0 }
 0x925   :  { %v4458_v61 = vadd.f32 %v15289_v9, %v4361_v8  ;;  %v4364_v44 = vadd.f32 %v9523_v28, %v15306_v30  ;;  %10212 = vmatmul.mubr.msk.f32.gmra.mrb[74].mxu0 %vm18591_vm2, %v4708_v35  ;;  %vm18602_vm2 = vmmov %vm18545_vm0 }
 0x927   :  { %v15391_v31 = vadd.f32 %v15312_v57, %v4458_v61  ;;  %v4461_v7 = vadd.f32 %v15293_v43, %v4364_v44  ;;  %v9524_v53 = vpop.f32.mrb[56].mxu0 }
 0x928   :  { %v9525_v36 = vpop.f32.mrb[57].mxu0 }
 0x929   :  { %v15395_v2 = vadd.f32 %v15312_v57, %v4461_v7  ;;  %v9526_v49 = vadd.f32 %v9525_v36, %v9524_v53  ;;  %v9527_v21 = vpop.f32.mrb[58].mxu0  ;;  %10182 = vmatprep.mubr.msk.f32.mxu1 %vm18592_vm14, %v15391_v31  ;;  %v4709_v9 = vmul.f32 %v15391_v31, %v15391_v31  ;;  %vm18603_vm14 = vmmov %vm18545_vm0 }
 0x92a   :  { %v9528_v56 = vpop.f32.mrb[59].mxu0 }
 0x92b   :  { %v4369_v29 = vadd.f32 %v9526_v49, %v15306_v30  ;;  %v9529_v1 = vadd.f32 %v9528_v56, %v9527_v21  ;;  %10183 = vmatmul.mubr.msk.f32.gmra.mrb[76].mxu1 %vm18593_vm11, %v15395_v2  ;;  %10214 = vmatprep.mubr.msk.f32.mxu0 %vm18594_vm7, %v4709_v9  ;;  %v4710_v43 = vmul.f32 %v15395_v2, %v15395_v2  ;;  %vm18604_vm11 = vmmov %vm18545_vm0 }
 0x92c   :  { %vm18605_vm7 = vmmov %vm18545_vm0 }
 0x92d   :  { %v4466_v38 = vadd.f32 %v15287_v18, %v4369_v29  ;;  %v4372_v63 = vadd.f32 %v9529_v1, %v15306_v30  ;;  %10215 = vmatmul.mubr.msk.f32.gmra.mrb[76].mxu0 %vm18595_vm1, %v4710_v43  ;;  %vm18607_vm1 = vmmov 0  }
 0x92f   :  { %v15411_v62 = vadd.f32 %v15312_v57, %v4466_v38  ;;  %v4469_v34 = vadd.f32 %v15291_v55, %v4372_v63  ;;  %v9530_v19 = vpop.f32.mrb[60].mxu0 }
 0x930   :  { %v9531_v24 = vpop.f32.mrb[61].mxu0 }
 0x931   :  { %v15415_v60 = vadd.f32 %v15312_v57, %v4469_v34  ;;  %v9532_v52 = vadd.f32 %v9531_v24, %v9530_v19  ;;  %v9533_v59 = vpop.f32.mrb[62].mxu0  ;;  %10185 = vmatprep.mubr.msk.f32.mxu1 %vm18596_vm5, %v15411_v62  ;;  %v4711_v18 = vmul.f32 %v15411_v62, %v15411_v62  ;;  %vm18608_vm5 = vmmov %vm18545_vm0 }
 0x932   :  { %v9534_v16 = vpop.f32.mrb[63].mxu0 }
 0x933   :  { %v4377_v17 = vadd.f32 %v9532_v52, %v15306_v30  ;;  %v9535_v8 = vadd.f32 %v9534_v16, %v9533_v59  ;;  %10186 = vmatmul.mubr.msk.f32.gmra.mrb[78].mxu1 %vm18597_vm3, %v15415_v60  ;;  %10217 = vmatprep.mubr.msk.f32.mxu0 %vm18598_vm15, %v4711_v18  ;;  %v4712_v55 = vmul.f32 %v15415_v60, %v15415_v60 }
 0x935   :  { %v4474_v28 = vadd.f32 %v15297_v15, %v4377_v17  ;;  %v4380_v35 = vadd.f32 %v9535_v8, %v15306_v30  ;;  %10218 = vmatmul.mubr.msk.f32.gmra.mrb[78].mxu0 %vm18599_vm6, %v4712_v55  ;;  %vm18615_vm6 = vcmask 15360  }
 0x937   :  { %v15431_v61 = vadd.f32 %v15312_v57, %v4474_v28  ;;  %v4477_v44 = vadd.f32 %v15301_v13, %v4380_v35  ;;  %v9536_v7 = vpop.f32.mrb[64].mxu0 }
 0x938   :  { %v9537_v53 = vpop.f32.mrb[65].mxu0 }
 0x939   :  { %v15435_v36 = vadd.f32 %v15312_v57, %v4477_v44  ;;  %v9538_v49 = vadd.f32 %v9537_v53, %v9536_v7  ;;  %10188 = vmatprep.mubr.msk.f32.mxu1 %vm18600_vm4, %v15431_v61  ;;  %v9539_v21 = vpop.f32.mrb[66].mxu0  ;;  %v4713_v15 = vmul.f32 %v15431_v61, %v15431_v61  ;;  %vm18616_vm4 = vcmask 64512  }
 0x93a   :  { %v9540_v9 = vpop.f32.mrb[67].mxu0 }
 0x93b   :  { %v4385_v56 = vadd.f32 %v9538_v49, %v15306_v30  ;;  %v9541_v29 = vadd.f32 %v9540_v9, %v9539_v21  ;;  %10189 = vmatmul.mubr.msk.f32.gmra.mrb[80].mxu1 %vm18601_vm10, %v15435_v36  ;;  %10220 = vmatprep.mubr.msk.f32.mxu0 %vm18545_vm0, %v4713_v15  ;;  %v4714_v13 = vmul.f32 %v15435_v36, %v15435_v36  ;;  %vm18617_vm10 = vmmov %vm18616_vm4 }
 0x93c   :  { %vm18618_vm0 = vmmov %vm18615_vm6 }
 0x93d   :  { %v4482_v1 = vadd.f32 %v15295_v22, %v4385_v56  ;;  %v4388_v43 = vadd.f32 %v9541_v29, %v15306_v30  ;;  %10221 = vmatmul.mubr.msk.f32.gmra.mrb[80].mxu0 %vm18602_vm2, %v4714_v13  ;;  %v18606_v30 = vmov 0.0   ;;  %vm18619_vm2 = vcmask 1041408  }
 0x93f   :  { %v15451_v38 = vadd.f32 %v15312_v57, %v4482_v1  ;;  %v4485_v63 = vadd.f32 %v15299_v48, %v4388_v43 }
 0x941   :  { %v15455_v34 = vadd.f32 %v15312_v57, %v4485_v63  ;;  %10191 = vmatprep.mubr.msk.f32.mxu1 %vm18603_vm14, %v15451_v38  ;;  %v4715_v19 = vmul.f32 %v15451_v38, %v15451_v38  ;;  %vm18620_vm14 = vmmov %vm18619_vm2 }
 0x943   :  { %10192 = vmatmul.mubr.msk.f32.gmra.mrb[82].mxu1 %vm18604_vm11, %v15455_v34  ;;  %10223 = vmatprep.mubr.msk.f32.mxu0 %vm18605_vm7, %v4715_v19  ;;  %v4716_v22 = vmul.f32 %v15455_v34, %v15455_v34  ;;  %vm18622_vm11 = vmmov %vm18618_vm0 }
 0x944   :  { %10258 = vmatprep.mubr.msk.f32.mxu1 %vm18607_vm1, %v18606_v30  ;;  %vm18624_vm7 = vmmov %vm18618_vm0 }
 0x945   :  { %10224 = vmatmul.mubr.msk.f32.gmra.mrb[82].mxu0 %vm18608_vm5, %v4716_v22  ;;  %vm18626_vm5 = vmmov %vm18618_vm0 }
 0x946   :  { %10293 = vmatprep.mubr.msk.f32.mxu0 %vm18607_vm1, %v18606_v30 }
 0x9de   :  { %v10172_v48 = vpop.f32.mrb[68].mxu1 }
 0x9df   :  { %v4622_v57 = vpop.f32.mrb[69].mxu1 }
 0x9e0   :  { %v10675_v24 = vpack.c.bf16 %v10172_v48, %v4622_v57  ;;  %v10204_v52 = vpop.f32.mrb[68].mxu0 }
 0x9e1   :  { %v4831_v59 = vpop.f32.mrb[69].mxu0 }
 0x9e2   :  { %v10699_v18 = vpack.c.bf16 %v10204_v52, %v4831_v59  ;;  %10676 = vmatpush3.bf16.msra.mxu1 %v10675_v24 }
 0x9e3   :  { %10677 = vmatprep.subr.bf16.mxu1 %v18423_v25 }
 0x9e4   :  { %10700 = vmatpush3.bf16.msra.mxu0 %v10699_v18 }
 0x9e5   :  { %10701 = vmatprep.subr.bf16.mxu0 %v18423_v25 }
 0x9e6   :  { %v10175_v16 = vpop.f32.mrb[70].mxu1 }
 0x9e7   :  { %v4632_v17 = vpop.f32.mrb[71].mxu1 }
 0x9e8   :  { %v10678_v8 = vpack.c.bf16 %v10175_v16, %v4632_v17  ;;  %v10207_v55 = vpop.f32.mrb[70].mxu0 }
 0x9e9   :  { %v4841_v28 = vpop.f32.mrb[71].mxu0 }
 0x9ea   :  { %v10702_v35 = vpack.c.bf16 %v10207_v55, %v4841_v28  ;;  %10679 = vmatpush3.bf16.msra.mxu1 %v10678_v8 }
 0x9eb   :  { %10680 = vmatprep.subr.bf16.mxu1 %v18423_v25 }
 0x9ec   :  { %10703 = vmatpush3.bf16.msra.mxu0 %v10702_v35 }
 0x9ed   :  { %10704 = vmatprep.subr.bf16.mxu0 %v18423_v25 }
 0x9ee   :  { %v10178_v44 = vpop.f32.mrb[72].mxu1 }
 0x9ef   :  { %v4642_v7 = vpop.f32.mrb[73].mxu1 }
 0x9f0   :  { %v10681_v53 = vpack.c.bf16 %v10178_v44, %v4642_v7  ;;  %v10210_v49 = vpop.f32.mrb[72].mxu0 }
 0x9f1   :  { %v4851_v21 = vpop.f32.mrb[73].mxu0 }
 0x9f2   :  { %v10705_v15 = vpack.c.bf16 %v10210_v49, %v4851_v21  ;;  %10682 = vmatpush3.bf16.msra.mxu1 %v10681_v53 }
 0x9f3   :  { %10683 = vmatprep.subr.bf16.mxu1 %v18423_v25 }
 0x9f4   :  { %10706 = vmatpush3.bf16.msra.mxu0 %v10705_v15 }
 0x9f5   :  { %10707 = vmatprep.subr.bf16.mxu0 %v18423_v25 }
 0x9f6   :  { %v10181_v9 = vpop.f32.mrb[74].mxu1 }
 0x9f7   :  { %v4652_v56 = vpop.f32.mrb[75].mxu1 }
 0x9f8   :  { %v10684_v29 = vpack.c.bf16 %v10181_v9, %v4652_v56  ;;  %v10213_v13 = vpop.f32.mrb[74].mxu0 }
 0x9f9   :  { %v4861_v1 = vpop.f32.mrb[75].mxu0 }
 0x9fa   :  { %v10708_v43 = vpack.c.bf16 %v10213_v13, %v4861_v1  ;;  %10685 = vmatpush3.bf16.msra.mxu1 %v10684_v29  ;;  %v18609_v13 = vmov 1.0   ;;  %v18610_v1 = vld [vmem:[#allocation147_spill] sm:$0xff] }
 0x9fb   :  { %10686 = vmatprep.subr.bf16.mxu1 %v18423_v25  ;;  %vm18611_vm3 = vnez %v18610_v1  ;;  %v18684_v1 = vld [vmem:[#allocation34_spill] sm:$0xff] }
 0x9fc   :  { %10709 = vmatpush3.bf16.msra.mxu0 %v10708_v43  ;;  %v18612_v43 = vld [vmem:[#allocation148_spill] sm:$0xff] }
 0x9fd   :  { %10710 = vmatprep.subr.bf16.mxu0 %v18423_v25  ;;  %vm18613_vm15 = vnez %v18612_v43 }
 0x9fe   :  { %v10184_v63 = vpop.f32.mrb[76].mxu1 }
 0x9ff   :  { %v4662_v19 = vpop.f32.mrb[77].mxu1 }
 0xa00   :  { %v10687_v22 = vpack.c.bf16 %v10184_v63, %v4662_v19  ;;  %v10216_v48 = vpop.f32.mrb[76].mxu0  ;;  %v18614_v63 = vld [vmem:[#allocation149_spill] sm:$0xff] }
 0xa01   :  { %v4871_v57 = vpop.f32.mrb[77].mxu0 }
 0xa02   :  { %v10711_v24 = vpack.c.bf16 %v10216_v48, %v4871_v57  ;;  %10688 = vmatpush3.bf16.msra.mxu1 %v10687_v22 }
 0xa03   :  { %10689 = vmatprep.subr.bf16.mxu1 %v18423_v25 }
 0xa04   :  { %10712 = vmatpush3.bf16.msra.mxu0 %v10711_v24 }
 0xa05   :  { %10713 = vmatprep.subr.bf16.mxu0 %v18423_v25 }
 0xa06   :  { %v10187_v52 = vpop.f32.mrb[78].mxu1 }
 0xa07   :  { %v4672_v59 = vpop.f32.mrb[79].mxu1 }
 0xa08   :  { %v10690_v18 = vpack.c.bf16 %v10187_v52, %v4672_v59  ;;  %v10219_v16 = vpop.f32.mrb[78].mxu0 }
 0xa09   :  { %v4881_v17 = vpop.f32.mrb[79].mxu0 }
 0xa0a   :  { %v10714_v8 = vpack.c.bf16 %v10219_v16, %v4881_v17  ;;  %10691 = vmatpush3.bf16.msra.mxu1 %v10690_v18 }
 0xa0b   :  { %10692 = vmatprep.subr.bf16.mxu1 %v18423_v25 }
 0xa0c   :  { %10715 = vmatpush3.bf16.msra.mxu0 %v10714_v8 }
 0xa0d   :  { %10716 = vmatprep.subr.bf16.mxu0 %v18423_v25 }
 0xa0e   :  { %v10190_v55 = vpop.f32.mrb[80].mxu1 }
 0xa0f   :  { %v4682_v28 = vpop.f32.mrb[81].mxu1 }
 0xa10   :  { %v10693_v35 = vpack.c.bf16 %v10190_v55, %v4682_v28  ;;  %v10222_v44 = vpop.f32.mrb[80].mxu0  ;;  %v9148_v55 = vld [vmem:[%s17656_s1 + $0x5] ss:$0 sm:$0xff] }
 0xa11   :  { %v4891_v7 = vpop.f32.mrb[81].mxu0 }
 0xa12   :  { %v10717_v53 = vpack.c.bf16 %v10222_v44, %v4891_v7  ;;  %10694 = vmatpush3.bf16.msra.mxu1 %v10693_v35  ;;  %v9151_v7 = vld [vmem:[%s17656_s1 + $0x6] ss:$0 sm:$0xff] }
 0xa13   :  { %10695 = vmatprep.subr.bf16.mxu1 %v18423_v25 }
 0xa14   :  { %10718 = vmatpush3.bf16.msra.mxu0 %v10717_v53 }
 0xa15   :  { %10719 = vmatprep.subr.bf16.mxu0 %v18423_v25 }
 0xa16   :  { %v10193_v49 = vpop.f32.mrb[82].mxu1 }
 0xa17   :  { %v4692_v21 = vpop.f32.mrb[83].mxu1 }
 0xa18   :  { %v10696_v15 = vpack.c.bf16 %v10193_v49, %v4692_v21  ;;  %v10225_v9 = vpop.f32.mrb[82].mxu0 }
 0xa19   :  { %v4901_v56 = vpop.f32.mrb[83].mxu0 }
 0xa1a   :  { %v10720_v29 = vpack.c.bf16 %v10225_v9, %v4901_v56  ;;  %10697 = vmatpush3.bf16.msra.mxu1 %v10696_v15  ;;  %v18621_v15 = vld [vmem:[#allocation150_spill] sm:$0xff]  ;;  %v18623_v9 = vld [vmem:[#allocation151_spill] sm:$0xff] }
 0xa1b   :  { %10296 = vmatprep.subr.mxu1 %v18606_v30 }
 0xa1c   :  { %10721 = vmatpush3.bf16.msra.mxu0 %v10720_v29  ;;  %v18625_v29 = vld [vmem:[#allocation152_spill] sm:$0xff] }
 0xa1d   :  { %10259 = vmatmul.mubr.msk.f32.vlgmr.msra.gmra.mrb[84].mxu1 %vm18611_vm3, %v18609_v13 }
 0xa1e   :  { %10297 = vmatpush3.msk.msra.mxu1 %vm18613_vm15, %v18609_v13  ;;  %10298 = vmatprep.mubr.msk.f32.mxu1 %vm18607_vm1, %v18606_v30 }
 0xa1f   :  { %10294 = vmatmul.mubr.msk.f32.vlgmr.msra.gmra.mrb[84].mxu0 %vm18611_vm3, %v18609_v13  ;;  %10301 = vmatprep.subr.mxu1 %v18606_v30 }
 0xa20   :  { %10334 = vmatprep.mubr.msk.f32.mxu0 %vm18615_vm6, %v18614_v63  ;;  %vm18627_vm6 = vmmov %vm18619_vm2 }
 0xaf0   :  { %v4976_v19 = vpop.f32.mrb[84].mxu1 }
 0xaf1   :  { %v4980_v22 = vmul.f32 0.00390625, %v4976_v19  ;;  %v10260_v48 = vpop.f32.mrb[85].mxu1  ;;  %v18629_v19 = vld [vmem:[#allocation153_spill] sm:$0xff] }
 0xaf2   :  { %v5047_v57 = vpop.f32.mrb[84].mxu0  ;;  %v18634_v48 = vld [vmem:[#allocation155_spill] sm:$0xff] }
 0xaf3   :  { %v5052_v24 = vmul.f32 %v4980_v22, %v4980_v22  ;;  %v5051_v52 = vmul.f32 0.00390625, %v5047_v57  ;;  %v10295_v59 = vpop.f32.mrb[85].mxu0  ;;  %v18638_v57 = vld [vmem:[#allocation156_spill] sm:$0xff] }
 0xaf4   :  { %v18645_v59 = vld [vmem:[#allocation159_spill] sm:$0xff] }
 0xaf5   :  { %v5053_v18 = vsub.f32 %v5051_v52, %v5052_v24  ;;  %v18640_v24 = vld [vmem:[#allocation157_spill] sm:$0xff]  ;;  %v18643_v52 = vld [vmem:[#allocation158_spill] sm:$0xff] }
 0xaf7   :  { %v5054_v16 = vmax.f32 %v5053_v18, 0.0  ;;  %v18649_v18 = vld [vmem:[#allocation160_spill] sm:$0xff] }
 0xaf9   :  { %v5055_v17 = vadd.f32 1e-05, %v5054_v16  ;;  %v18651_v16 = vld [vmem:[#allocation161_spill] sm:$0xff] }
 0xafb   :  { %12033 = vrsqrt.f32 %v5055_v17  ;;  %v18655_v17 = vld [vmem:[#allocation162_spill] sm:$0xff] }
 0xb05   :  { %v12034_v8 = vpop.eup %12033 }
 0xb06   :  { %10299 = vmatmul.mubr.msk.f32.vlgmr.msra.gmra.mrb[86].mxu1 %vm18616_vm4, %v12034_v8  ;;  %vm18628_vm4 = vmmov %vm18619_vm2  ;;  %v18656_v8 = vld [vmem:[#allocation163_spill] sm:$0xff] }
 0xb07   :  { %10302 = vmatpush3.msk.msra.mxu1 %vm18613_vm15, %v18609_v13  ;;  %10303 = vmatprep.mubr.msk.f32.mxu1 %vm18607_vm1, %v18606_v30 }
 0xb0a   :  { %10304 = vmatmul.mubr.msk.f32.vlgmr.msra.gmra.mrb[88].mxu1 %vm18617_vm10, %v4980_v22  ;;  %vm18630_vm10 = vmmov %vm18618_vm0  ;;  %v18632_v22 = vld [vmem:[#allocation154_spill] sm:$0xff] }
 0xb0b   :  { %10308 = vmatprep.mubr.msk.f32.mxu1 %vm18618_vm0, %v18614_v63  ;;  %v18683_v63 = vld [vmem:[#allocation33_spill] sm:$0xff] }
 0xbd9   :  { %v5126_v28 = vpop.f32.mrb[86].mxu1 }
 0xbda   :  { %v5134_v35 = vmul.f32 %v9148_v55, %v5126_v28  ;;  %v10300_v44 = vpop.f32.mrb[87].mxu1  ;;  %v18660_v55 = vld [vmem:[#allocation164_spill] sm:$0xff] }
 0xbdb   :  { %v11899_v28 = vld [vmem:[%s17655_s2 + $0x110] sm:$0xff]  }
 0xbdc   :  { %10306 = vmatprep.subr.msk.mxu1 %vm18619_vm2, %v5134_v35  ;;  %vm18631_vm2 = vmmov %vm18618_vm0 }
 0xbdd   :  { %v5204_v53 = vpop.f32.mrb[88].mxu1  ;;  %10307 = vmatpush3.msk.msra.mxu1 %vm18620_vm14, %v5134_v35  ;;  %vm18633_vm14 = vmmov %vm18618_vm0 }
 0xbde   :  { %v5208_v49 = vmul.f32 %v5204_v53, %v5134_v35  ;;  %v10305_v21 = vpop.f32.mrb[89].mxu1  ;;  %10309 = vmatmul.mubr.msk.f32.vlgmr.msra.gmra.mrb[90].mxu1 %vm18622_vm11, %v18621_v15  ;;  %vm18635_vm11 = vmmov %vm18618_vm0  ;;  %v11900_v35 = vld [vmem:[%s17655_s2 + $0x118] sm:$0xff]  }
 0xbdf   :  { %10311 = vmatprep.mubr.msk.f32.mxu1 %vm18624_vm7, %v18623_v9  ;;  %vm18636_vm7 = vmmov %vm18618_vm0 }
 0xbe0   :  { %v5213_v56 = vsub.f32 %v9151_v7, %v5208_v49 }
 0xbe2   :  { %10312 = vmatmul.mubr.msk.f32.gmra.mrb[92].mxu1 %vm18626_vm5, %v18625_v29  ;;  %10332 = vmatprep.subr.msk.mxu0 %vm18627_vm6, %v5213_v56  ;;  %vm18637_vm5 = vmmov %vm18618_vm0 }
 0xbe3   :  { %10333 = vmatpush3.msk.msra.mxu0 %vm18628_vm4, %v5213_v56  ;;  %10314 = vmatprep.mubr.msk.f32.mxu1 %vm18630_vm10, %v18629_v19  ;;  %vm18639_vm6 = vmmov %vm18618_vm0 }
 0xbe4   :  { %10335 = vmatmul.mubr.msk.f32.vlgmr.msra.gmra.mrb[86].mxu0 %vm18618_vm0, %v18621_v15  ;;  %vm18641_vm4 = vmmov %vm18618_vm0  ;;  %10358 = vmatprep.subr.bf16.mxu0 %v11899_v28 }
 0xbe5   :  { %10337 = vmatprep.mubr.msk.f32.mxu0 %vm18631_vm2, %v18623_v9  ;;  %vm18642_vm10 = vmmov %vm18618_vm0  ;;  %10359 = vmatpush3.bf16.msra.mxu0 %v11899_v28 }
 0xbe6   :  { %10315 = vmatmul.mubr.msk.f32.gmra.mrb[94].mxu1 %vm18633_vm14, %v18632_v22  ;;  %vm18644_vm2 = vmmov %vm18618_vm0  ;;  %10360 = vmatprep.subr.bf16.mxu0 %v11900_v35 }
 0xbe7   :  { %10317 = vmatprep.mubr.msk.f32.mxu1 %vm18635_vm11, %v18634_v48  ;;  %vm18646_vm14 = vmmov %vm18618_vm0 }
 0xbe8   :  { %10338 = vmatmul.mubr.msk.f32.gmra.mrb[88].mxu0 %vm18636_vm7, %v18625_v29  ;;  %vm18647_vm11 = vmmov %vm18618_vm0 }
 0xbe9   :  { %10340 = vmatprep.mubr.msk.f32.mxu0 %vm18637_vm5, %v18629_v19  ;;  %vm18648_vm7 = vmmov %vm18618_vm0  ;;  %10361 = vmatpush3.bf16.msra.mxu0 %v11900_v35 }
 0xbea   :  { %10318 = vmatmul.mubr.msk.f32.gmra.mrb[96].mxu1 %vm18639_vm6, %v18638_v57  ;;  %vm18650_vm5 = vmmov %vm18618_vm0  ;;  %10723 = vmatprep.subr.msk.bf16.mxu0 %vm18369_vm13, %v18261_v39 }
 0xbeb   :  { %10320 = vmatprep.mubr.msk.f32.mxu1 %vm18641_vm4, %v18640_v24  ;;  %vm18652_vm6 = vmmov %vm18618_vm0 }
 0xbec   :  { %10341 = vmatmul.mubr.msk.f32.gmra.mrb[90].mxu0 %vm18642_vm10, %v18632_v22  ;;  %vm18653_vm4 = vmmov %vm18618_vm0 }
 0xbed   :  { %10343 = vmatprep.mubr.msk.f32.mxu0 %vm18618_vm0, %v18634_v48  ;;  %vm18654_vm10 = vmmov %vm18618_vm0 }
 0xbee   :  { %10321 = vmatmul.mubr.msk.f32.gmra.mrb[98].mxu1 %vm18644_vm2, %v18643_v52  ;;  %vm18657_vm2 = vmmov %vm18618_vm0 }
 0xbef   :  { %10323 = vmatprep.mubr.msk.f32.mxu1 %vm18646_vm14, %v18645_v59  ;;  %vm18658_vm14 = vmmov %vm18618_vm0 }
 0xbf0   :  { %10344 = vmatmul.mubr.msk.f32.gmra.mrb[92].mxu0 %vm18647_vm11, %v18638_v57  ;;  %vm18659_vm11 = vmmov %vm18618_vm0 }
 0xbf1   :  { %10346 = vmatprep.mubr.msk.f32.mxu0 %vm18648_vm7, %v18640_v24  ;;  %vm18661_vm7 = vmmov %vm18618_vm0 }
 0xbf2   :  { %10324 = vmatmul.mubr.msk.f32.gmra.mrb[100].mxu1 %vm18650_vm5, %v18649_v18  ;;  %vm18662_vm5 = vmmov %vm18618_vm0 }
 0xbf3   :  { %10326 = vmatprep.mubr.msk.f32.mxu1 %vm18652_vm6, %v18651_v16  ;;  %vm18663_vm6 = vmmov %vm18618_vm0 }
 0xbf4   :  { %10347 = vmatmul.mubr.msk.f32.gmra.mrb[94].mxu0 %vm18653_vm4, %v18643_v52  ;;  %vm18664_vm4 = vmmov %vm18618_vm0 }
 0xbf5   :  { %10349 = vmatprep.mubr.msk.f32.mxu0 %vm18654_vm10, %v18645_v59  ;;  %vm18669_vm10 = vcmp.lt.s32.totalorder %v13026_v45, 7 }
 0xbf6   :  { %10327 = vmatmul.mubr.msk.f32.gmra.mrb[102].mxu1 %vm18618_vm0, %v18655_v17  ;;  %vm18670_vm0 = vmmov %vm18669_vm10 }
 0xbf7   :  { %10329 = vmatprep.mubr.msk.f32.mxu1 %vm18657_vm2, %v18656_v8  ;;  %vm18672_vm2 = vmmov %vm18670_vm0 }
 0xbf8   :  { %10350 = vmatmul.mubr.msk.f32.gmra.mrb[96].mxu0 %vm18658_vm14, %v18649_v18  ;;  %vm18675_vm14 = vmmov %vm18670_vm0 }
 0xbf9   :  { %10352 = vmatprep.mubr.msk.f32.mxu0 %vm18659_vm11, %v18651_v16  ;;  %vm18676_vm11 = vmmov %vm18670_vm0 }
 0xbfa   :  { %10330 = vmatmul.mubr.msk.f32.gmra.mrb[104].mxu1 %vm18661_vm7, %v18660_v55  ;;  %vm18681_vm7 = vcmask 261120  }
 0xbfc   :  { %10353 = vmatmul.mubr.msk.f32.gmra.mrb[98].mxu0 %vm18662_vm5, %v18655_v17  ;;  %vm18685_vm5 = vcmp.lt.s32.totalorder %v13026_v45, 1 }
 0xbfd   :  { %10355 = vmatprep.mubr.msk.f32.mxu0 %vm18663_vm6, %v18656_v8  ;;  %vm18687_vm6 = vmmov %vm18685_vm5 }
 0xc00   :  { %10356 = vmatmul.mubr.msk.f32.gmra.mrb[100].mxu0 %vm18664_vm4, %v18660_v55  ;;  %vm18689_vm4 = vmmov %vm18681_vm7 }
 0xcb1   :  { %v10310_v44 = vpop.f32.mrb[90].mxu1 }
 0xcb2   :  { %v5283_v7 = vpop.f32.mrb[91].mxu1  ;;  %v5363_v49 = vmul.f32 %v10310_v44, %v15319_v0 }
 0xcb3   :  { %v5362_v56 = vmul.f32 %v5283_v7, %v15316_v50 }
 0xcb5   :  { %v10313_v53 = vpop.f32.mrb[92].mxu1 }
 0xcb6   :  { %v5293_v21 = vpop.f32.mrb[93].mxu1  ;;  %v5365_v35 = vmul.f32 %v10313_v53, %v15337_v58 }
 0xcb7   :  { %v10336_v55 = vpop.f32.mrb[86].mxu0  ;;  %v5364_v52 = vmul.f32 %v5293_v21, %v15334_v4 }
 0xcb8   :  { %v15590_v8 = vadd.f32 %v10336_v55, %v5363_v49  ;;  %v5447_v17 = vpop.f32.mrb[87].mxu0 }
 0xcb9   :  { %v15592_v16 = vadd.f32 %v5447_v17, %v5362_v56  ;;  %v10316_v28 = vpop.f32.mrb[94].mxu1 }
 0xcba   :  { %v9187_v18 = vmul.f32 -1.442695, %v15590_v8  ;;  %v5303_v59 = vpop.f32.mrb[95].mxu1  ;;  %v5367_v7 = vmul.f32 %v10316_v28, %v15355_v3 }
 0xcbb   :  { %v9186_v24 = vmul.f32 -1.442695, %v15592_v16  ;;  %v10339_v0 = vpop.f32.mrb[88].mxu0  ;;  %v5366_v49 = vmul.f32 %v5303_v59, %v15352_v5 }
 0xcbc   :  { %12035 = vpow2.f32 %v9187_v18  ;;  %v15598_v44 = vadd.f32 %v10339_v0, %v5365_v35  ;;  %v5457_v50 = vpop.f32.mrb[89].mxu0 }
 0xcbd   :  { %12037 = vpow2.f32 %v9186_v24  ;;  %v15600_v55 = vadd.f32 %v5457_v50, %v5364_v52  ;;  %v10319_v17 = vpop.f32.mrb[96].mxu1 }
 0xcbe   :  { %v9189_v58 = vmul.f32 -1.442695, %v15598_v44  ;;  %v5313_v53 = vpop.f32.mrb[97].mxu1  ;;  %v5369_v52 = vmul.f32 %v10319_v17, %v15375_v51 }
 0xcbf   :  { %v9188_v4 = vmul.f32 -1.442695, %v15600_v55  ;;  %v10342_v21 = vpop.f32.mrb[90].mxu0  ;;  %v5368_v0 = vmul.f32 %v5313_v53, %v15371_v23 }
 0xcc0   :  { %12039 = vpow2.f32 %v9189_v58  ;;  %v15606_v56 = vadd.f32 %v10342_v21, %v5367_v7  ;;  %v5467_v18 = vpop.f32.mrb[91].mxu0 }
 0xcc1   :  { %12041 = vpow2.f32 %v9188_v4  ;;  %v15608_v35 = vadd.f32 %v5467_v18, %v5366_v49  ;;  %v10322_v24 = vpop.f32.mrb[98].mxu1 }
 0xcc2   :  { %v9191_v3 = vmul.f32 -1.442695, %v15606_v56  ;;  %v5323_v28 = vpop.f32.mrb[99].mxu1  ;;  %v5371_v21 = vmul.f32 %v10322_v24, %v15395_v2 }
 0xcc3   :  { %v9190_v5 = vmul.f32 -1.442695, %v15608_v35  ;;  %v10345_v59 = vpop.f32.mrb[92].mxu0  ;;  %v5370_v23 = vmul.f32 %v5323_v28, %v15391_v31 }
 0xcc4   :  { %12043 = vpow2.f32 %v9191_v3  ;;  %v15614_v50 = vadd.f32 %v10345_v59, %v5369_v52  ;;  %v5477_v7 = vpop.f32.mrb[93].mxu0 }
 0xcc5   :  { %12045 = vpow2.f32 %v9190_v5  ;;  %v15616_v58 = vadd.f32 %v5477_v7, %v5368_v0  ;;  %v10325_v49 = vpop.f32.mrb[100].mxu1 }
 0xcc6   :  { %v12036_v4 = vpop.eup %12035  ;;  %v9193_v51 = vmul.f32 -1.442695, %v15614_v50  ;;  %v5333_v17 = vpop.f32.mrb[101].mxu1  ;;  %v5373_v24 = vmul.f32 %v10325_v49, %v15415_v60 }
 0xcc7   :  { %v12038_v18 = vpop.eup %12037  ;;  %v5591_v57 = vadd.f32 1.0, %v12036_v4  ;;  %v9192_v53 = vmul.f32 -1.442695, %v15616_v58  ;;  %v10348_v3 = vpop.f32.mrb[94].mxu0 }
 0xcc8   :  { %v5590_v52 = vadd.f32 1.0, %v12038_v18  ;;  %12047 = vpow2.f32 %v9193_v51  ;;  %v15622_v59 = vadd.f32 %v10348_v3, %v5371_v21  ;;  %v5487_v0 = vpop.f32.mrb[95].mxu0  ;;  %v5372_v18 = vmul.f32 %v5333_v17, %v15411_v62 }
 0xcc9   :  { %12049 = vrcp.f32 %v5591_v57  ;;  %v15624_v5 = vadd.f32 %v5487_v0, %v5370_v23  ;;  %v10328_v7 = vpop.f32.mrb[102].mxu1 }
 0xcca   :  { %v12040_v2 = vpop.eup %12039  ;;  %12051 = vrcp.f32 %v5590_v52  ;;  %v9195_v4 = vmul.f32 -1.442695, %v15622_v59  ;;  %v5343_v48 = vpop.f32.mrb[103].mxu1  ;;  %v5375_v0 = vmul.f32 %v10328_v7, %v15435_v36 }
 0xccb   :  { %v12042_v31 = vpop.eup %12041  ;;  %v5593_v28 = vadd.f32 1.0, %v12040_v2  ;;  %12053 = vpow2.f32 %v9192_v53  ;;  %v9194_v21 = vmul.f32 -1.442695, %v15624_v5  ;;  %v10351_v51 = vpop.f32.mrb[96].mxu0 }
 0xccc   :  { %v5592_v3 = vadd.f32 1.0, %v12042_v31  ;;  %12055 = vpow2.f32 %v9195_v4  ;;  %v15630_v57 = vadd.f32 %v10351_v51, %v5373_v24  ;;  %v5497_v23 = vpop.f32.mrb[97].mxu0  ;;  %v5374_v31 = vmul.f32 %v5343_v48, %v15431_v61 }
 0xccd   :  { %12057 = vrcp.f32 %v5593_v28  ;;  %v15632_v52 = vadd.f32 %v5497_v23, %v5372_v18  ;;  %v10331_v60 = vpop.f32.mrb[104].mxu1 }
 0xcce   :  { %v12044_v49 = vpop.eup %12043  ;;  %12059 = vrcp.f32 %v5592_v3  ;;  %v9197_v53 = vmul.f32 -1.442695, %v15630_v57  ;;  %v5353_v2 = vpop.f32.mrb[105].mxu1  ;;  %v5377_v7 = vmul.f32 %v10331_v60, %v15455_v34 }
 0xccf   :  { %v12046_v62 = vpop.eup %12045  ;;  %v5595_v17 = vadd.f32 1.0, %v12044_v49  ;;  %12061 = vpow2.f32 %v9194_v21  ;;  %v9196_v24 = vmul.f32 -1.442695, %v15632_v52  ;;  %v10354_v4 = vpop.f32.mrb[98].mxu0  ;;  %v5376_v61 = vmul.f32 %v5353_v2, %v15451_v38 }
 0xcd0   :  { %v5594_v51 = vadd.f32 1.0, %v12046_v62  ;;  %12063 = vpow2.f32 %v9197_v53  ;;  %v15638_v28 = vadd.f32 %v10354_v4, %v5375_v0  ;;  %v5507_v18 = vpop.f32.mrb[99].mxu0 }
 0xcd1   :  { %12065 = vrcp.f32 %v5595_v17  ;;  %v15640_v3 = vadd.f32 %v5507_v18, %v5374_v31 }
 0xcd2   :  { %v12048_v36 = vpop.eup %12047  ;;  %12067 = vrcp.f32 %v5594_v51  ;;  %v9199_v23 = vmul.f32 -1.442695, %v15638_v28 }
 0xcd3   :  { %v12050_v21 = vpop.eup %12049  ;;  %v5597_v49 = vadd.f32 1.0, %v12048_v36  ;;  %12069 = vpow2.f32 %v9196_v24  ;;  %v9198_v48 = vmul.f32 -1.442695, %v15640_v3  ;;  %v10357_v53 = vpop.f32.mrb[100].mxu0 }
 0xcd4   :  { %v12052_v0 = vpop.eup %12051  ;;  %12071 = vpow2.f32 %v9199_v23  ;;  %v15646_v62 = vadd.f32 %v10357_v53, %v5377_v7  ;;  %v5517_v17 = vpop.f32.mrb[101].mxu0  ;;  %v15649_v4 = vmul.f32 %v12050_v21, %v15590_v8 }
 0xcd5   :  { %v12054_v31 = vpop.eup %12053  ;;  %v15652_v34 = vmul.f32 %v12052_v0, %v15592_v16  ;;  %12073 = vrcp.f32 %v5597_v49  ;;  %v15654_v60 = vadd.f32 %v5517_v17, %v5376_v61  ;;  %v18665_v0 = vld [vmem:[#allocation59_spill] sm:$0xff] }
 0xcd6   :  { %v12056_v24 = vpop.eup %12055  ;;  %v5596_v38 = vadd.f32 1.0, %v12054_v31  ;;  %12075 = vpow2.f32 %v9198_v48  ;;  %v9201_v18 = vmul.f32 -1.442695, %v15646_v62  ;;  %v5719_v16 = vrot.slane %v15649_v4, 1 }
 0xcd7   :  { %v12058_v2 = vpop.eup %12057  ;;  %v5599_v51 = vadd.f32 1.0, %v12056_v24  ;;  %v9200_v8 = vmul.f32 -1.442695, %v15654_v60  ;;  %v5655_v9 = vrot.slane %v15649_v4, 7  ;;  %v18736_v11 = vrot.slane %v15652_v34, 1 }
 0xcd8   :  { %v12060_v36 = vpop.eup %12059  ;;  %v15658_v7 = vmul.f32 %v12058_v2, %v15598_v44  ;;  %12077 = vrcp.f32 %v5596_v38  ;;  %v5814_v44 = vmul.f32 %v15649_v4, %v18665_v0  ;;  %v18666_v38 = vld [vmem:[#allocation88_spill] sm:$0xff] }
 0xcd9   :  { %v12062_v23 = vpop.eup %12061  ;;  %v15664_v49 = vmul.f32 %v12060_v36, %v15600_v55  ;;  %12079 = vrcp.f32 %v5599_v51  ;;  %v5704_v2 = vmul.f32 %v15649_v4, %v18666_v38  ;;  %v18667_v51 = vld [vmem:[#allocation23_spill] sm:$0xff] }
 0xcda   :  { %v12064_v61 = vpop.eup %12063  ;;  %v5721_v48 = vrot.slane %v15658_v7, 1  ;;  %v5598_v53 = vadd.f32 1.0, %v12062_v23  ;;  %12081 = vpow2.f32 %v9201_v18  ;;  %v18668_v18 = vld [vmem:[#allocation6_spill] sm:$0xff] }
 0xcdb   :  { %v12066_v17 = vpop.eup %12065  ;;  %v5720_v31 = vrot.slane %v15664_v49, 1  ;;  %v5601_v24 = vadd.f32 1.0, %v12064_v61  ;;  %12083 = vpow2.f32 %v9200_v8  ;;  %v5815_v36 = vmul.f32 %v15664_v49, %v18667_v51 }
 0xcdc   :  { %v12068_v21 = vpop.eup %12067  ;;  %v15673_v55 = vmul.f32 %v12066_v17, %v15606_v56  ;;  %12085 = vrcp.f32 %v5598_v53  ;;  %v5705_v23 = vmul.f32 %v15664_v49, %v18668_v18 }
 0xcdd   :  { %v12070_v0 = vpop.eup %12069  ;;  %v15680_v22 = vmul.f32 %v12068_v21, %v15608_v35  ;;  %12087 = vrcp.f32 %v5601_v24  ;;  %v15684_v8 = vsel %vm18669_vm10, %v5720_v31, %v5721_v48  ;;  %v5747_v56 = vsel %vm18670_vm0, %v5719_v16, %v5720_v31  ;;  %v18673_v31 = vld [vmem:[#allocation63_spill] sm:$0xff]  ;;  %vm18691_vm10 = vmmov %vm18685_vm5 }
 0xcde   :  { %v12072_v61 = vpop.eup %12071  ;;  %v17996_v53 = vrot.slane %v15673_v55, 1  ;;  %v5600_v17 = vadd.f32 1.0, %v12070_v0  ;;  %v11397_v51 = vpack.i.bf16 %v5815_v36, %v5814_v44  ;;  %v11402_v29 = vpack.i.bf16 %v5705_v23, %v5704_v2  ;;  %v18674_v44 = vld [vmem:[#allocation28_spill] sm:$0xff] }
 0xcdf   :  { %v12074_v38 = vpop.eup %12073  ;;  %v5722_v18 = vrot.slane %v15680_v22, 1  ;;  %v5603_v19 = vadd.f32 1.0, %v12072_v61  ;;  %v18671_v35 = vrot.slane %v15652_v34, 1  ;;  %v5830_v0 = vmul.f32 %v5747_v56, %v18673_v31 }
 0xce0   :  { %v12076_v24 = vpop.eup %12075  ;;  %12089 = vrcp.f32 %v5600_v17  ;;  %11398 = vrot.lane.b32.xlu1 %v11397_v51, %s12202_s29  ;;  %v5831_v36 = vmul.f32 %v15684_v8, %v18674_v44  ;;  %11403 = vrot.lane.b32.xlu0 %v11402_v29, %s12196_s18  ;;  %v5656_v61 = vrot.slane %v15664_v49, 7  ;;  %v15714_v17 = vmul.f32 %v12074_v38, %v15614_v50  ;;  %v18677_v44 = vld [vmem:[#allocation16_spill] sm:$0xff]  ;;  %v18680_v38 = vld [vmem:[#allocation94_spill] sm:$0xff] }
 0xce1   :  { %v15694_v21 = vsel %vm18672_vm2, %v18671_v35, %v5719_v16  ;;  %v15705_v2 = vsel %vm18675_vm14, %v5722_v18, %v17996_v53  ;;  %v15709_v16 = vsel %vm18676_vm11, %v5721_v48, %v5722_v18  ;;  %12091 = vrcp.f32 %v5603_v19  ;;  %v11901_v53 = vld [vmem:[%s17655_s2 + $0xd0] sm:$0xff]   ;;  %v18679_v18 = vld [vmem:[#allocation42_spill] sm:$0xff]  ;;  %vm18695_vm2 = vmmov %vm18670_vm0 }
 0xce2   :  { %v5602_v23 = vadd.f32 1.0, %v12076_v24  ;;  %v12078_v51 = vpop.eup %12077  ;;  %v6328_v35 = vpack.c.bf16 %v5831_v36, %v5830_v0  ;;  %v5782_v31 = vmul.f32 %v15694_v21, %v18677_v44  ;;  %v11902_v19 = vld [vmem:[%s17655_s2 + $0x90] sm:$0xff]   ;;  %v5783_v50 = vmul.f32 %v5747_v56, %v18679_v18  ;;  %v18682_v44 = vld [vmem:[#allocation9_spill] sm:$0xff]  ;;  %9664 = vmatprep.subr.bf16.mxu1 %v11901_v53  ;;  %vm18703_vm14 = vmmov %vm18670_vm0 }
 0xce3   :  { %v12080_v48 = vpop.eup %12079  ;;  %v15725_v29 = vmul.f32 %v12078_v51, %v15616_v58  ;;  %v5752_v24 = vmul.f32 %v5747_v56, %v18680_v38  ;;  %v5753_v15 = vmul.f32 %v15684_v8, %v18682_v44  ;;  %v5832_v43 = vmul.f32 %v15709_v16, %v18683_v63  ;;  %9665 = vmatpush3.bf16.msra.mxu1 %v11902_v19  ;;  %v18688_v19 = vld [vmem:[#allocation57_spill] sm:$0xff]  ;;  %vm18704_vm11 = vmmov %vm18689_vm4 }
 0xce4   :  { %12093 = vrcp.f32 %v5602_v23  ;;  %v12082_v0 = vpop.eup %12081  ;;  %10362 = vmatprep.mubr.msk.bf16.mxu0 %vm18681_vm7, %v6328_v35  ;;  %v5833_v58 = vmul.f32 %v15705_v2, %v18684_v1  ;;  %v18003_v23 = vrot.slane %v15658_v7, 7  ;;  %v15739_v18 = vmul.f32 %v12080_v48, %v15622_v59  ;;  %v11904_v48 = vld [vmem:[%s17655_s2 + $0x98] sm:$0xff]   ;;  %vm18706_vm7 = vmmov %vm18670_vm0 }
 0xce5   :  { %18678 = vst [vmem:[#allocation165_spill] sm:$0xff] %v15725_v29  ;;  %v12084_v51 = vpop.eup %12083  ;;  %v5605_v56 = vadd.f32 1.0, %v12082_v0  ;;  %v11407_v38 = vpack.i.bf16 %v5783_v50, %v5782_v31  ;;  %v18004_v35 = vrot.slane %v15714_v17, 1  ;;  %v5724_v44 = vrot.slane %v15725_v29, 1 }
 0xce6   :  { %v12086_v36 = vpop.eup %12085  ;;  %v5604_v13 = vadd.f32 1.0, %v12084_v51  ;;  %v11417_v30 = vpack.i.bf16 %v5753_v15, %v5752_v24  ;;  %v6331_v59 = vpack.c.bf16 %v5833_v58, %v5832_v43  ;;  %v15749_v31 = vsel %vm18685_vm5, %v5655_v9, %v5656_v61  ;;  %v11903_v43 = vld [vmem:[%s17655_s2 + $0xd8] sm:$0xff]   ;;  %vm18712_vm5 = vmmov %vm18670_vm0 }
 0xce7   :  { %v12088_v63 = vpop.eup %12087  ;;  %v15744_v1 = vmul.f32 %v12086_v36, %v15624_v5  ;;  %12095 = vrcp.f32 %v5605_v56  ;;  %11408 = vrot.lane.b32.xlu1 %v11407_v38, %s12196_s18  ;;  %v18686_v53 = vrot.slane %v15652_v34, 7  ;;  %v5799_v5 = vmul.f32 %v15749_v31, %v18688_v19  ;;  %v18692_v36 = vld [vmem:[#allocation14_spill] sm:$0xff]  ;;  %v18693_v51 = vld [vmem:[#allocation17_spill] sm:$0xff]  ;;  %9666 = vmatprep.subr.bf16.mxu1 %v11903_v43 }
 0xce8   :  { %12097 = vrcp.f32 %v5604_v13  ;;  %11418 = vrot.lane.b32.xlu0 %v11417_v30, %s12203_s8  ;;  %10363 = vmatmul.mubr.msk.bf16.vlgmr.msra.gmra.mrb[104].mxu0 %vm18689_vm4, %v6331_v59  ;;  %v18690_v30 = vld [vmem:[#allocation19_spill] sm:$0xff]  ;;  %v15778_v0 = vmul.f32 %v12088_v63, %v15630_v57  ;;  %v5768_v58 = vmul.f32 %v15749_v31, %v18692_v36  ;;  %v15794_v63 = vsel %vm18670_vm0, %v5724_v44, %v18004_v35  ;;  %v11905_v35 = vld [vmem:[%s17655_s2 + $0xe0] sm:$0xff]  }
 0xce9   :  { %v15756_v15 = vsel %vm18687_vm6, %v18686_v53, %v5655_v9  ;;  %v15774_v9 = vsel %vm18691_vm10, %v5656_v61, %v18003_v23  ;;  %v5726_v24 = vrot.slane %v15744_v1, 1  ;;  %10725 = vmatpush3.bf16.msk.msra.mxu0 %vm18369_vm13, %v18261_v39  ;;  %v18694_v57 = vrot.slane %v15673_v55, 1  ;;  %9667 = vmatpush3.bf16.msra.mxu1 %v11904_v48  ;;  %v18700_v19 = vld [vmem:[#allocation30_spill] sm:$0xff]  ;;  %vm18714_vm6 = vmmov %vm18670_vm0 }
 0xcea   :  { %v5798_v50 = vmul.f32 %v15756_v15, %v18690_v30  ;;  %v12090_v38 = vpop.eup %12089  ;;  %v5769_v56 = vmul.f32 %v15774_v9, %v18693_v51  ;;  %10727 = vmatprep.subr.msk.bf16.mxu0 %vm18408_vm9, %v18261_v39  ;;  %9668 = vmatprep.subr.bf16.mxu1 %v11905_v35  ;;  %v5754_v41 = vmul.f32 %v15709_v16, %v18710_v47  ;;  %vm18721_vm0 = vmmov %vm18691_vm10 }
 0xceb   :  { %v12092_v59 = vpop.eup %12091  ;;  %v15788_v61 = vmul.f32 %v12090_v38, %v15632_v52  ;;  %v15800_v43 = vsel %vm18695_vm2, %v18694_v57, %v5724_v44  ;;  %v18696_v52 = vld [vmem:[#allocation70_spill] sm:$0xff]  ;;  %v18699_v57 = vld [vmem:[#allocation25_spill] sm:$0xff] }
 0xcec   :  { %v11412_v53 = vpack.i.bf16 %v5799_v5, %v5798_v50  ;;  %v15803_v23 = vmul.f32 %v12092_v59, %v15638_v28  ;;  %v11422_v13 = vpack.i.bf16 %v5769_v56, %v5768_v58  ;;  %v5834_v5 = vmul.f32 %v15800_v43, %v18696_v52  ;;  %v18697_v50 = vld [vmem:[#allocation62_spill] sm:$0xff]  ;;  %v18698_v56 = vld [vmem:[#allocation61_spill] sm:$0xff] }
 0xced   :  { %v5835_v38 = vmul.f32 %v15794_v63, %v18697_v50  ;;  %v11906_v44 = vld [vmem:[%s17655_s2 + $0xa0] sm:$0xff]   ;;  %v5658_v58 = vrot.slane %v15680_v22, 7  ;;  %v5816_v59 = vmul.f32 %v15658_v7, %v18698_v56  ;;  %v5817_v50 = vmul.f32 %v15680_v22, %v18699_v57  ;;  %10729 = vmatpush3.bf16.msk.msra.mxu0 %vm18408_vm9, %v18261_v39 }
 0xcee   :  { %v12094_v28 = vpop.eup %12093  ;;  %11413 = vrot.lane.b32.xlu1 %v11412_v53, %s12203_s8  ;;  %v5729_v52 = vrot.slane %v15778_v0, 1  ;;  %v5728_v51 = vrot.slane %v15788_v61, 1  ;;  %11423 = vrot.lane.b32.xlu0 %v11422_v13, %s12202_s29  ;;  %v5706_v53 = vmul.f32 %v15658_v7, %v18700_v19  ;;  %v5707_v56 = vmul.f32 %v15680_v22, %v18701_v32  ;;  %v18709_v32 = vld [vmem:[#allocation44_spill] sm:$0xff] }
 0xcef   :  { %v15828_v36 = vmul.f32 %v12094_v28, %v15640_v3  ;;  %v6334_v48 = vpack.c.bf16 %v5835_v38, %v5834_v5  ;;  %v11427_v30 = vpack.i.bf16 %v5817_v50, %v5816_v59  ;;  %v18702_v57 = vrot.slane %v15739_v18, 1  ;;  %9669 = vmatpush3.bf16.msra.mxu1 %v11906_v44  ;;  %v11907_v3 = vld [vmem:[%s17655_s2 + $0xe8] sm:$0xff]   ;;  %v18707_v38 = vld [vmem:[#allocation69_spill] sm:$0xff]  ;;  %10738 = vmatprep.subr.bf16.mxu0 %v18423_v25 }
 0xcf0   :  { %v5731_v35 = vrot.slane %v15803_v23, 1  ;;  %v18705_v5 = vrot.slane %v15714_v17, 1  ;;  %v11908_v44 = vld [vmem:[%s17655_s2 + $0xa8] sm:$0xff]   ;;  %9670 = vmatprep.subr.bf16.mxu1 %v11907_v3 }
 0xcf1   :  { %v15839_v14 = vsel %vm18703_vm14, %v5726_v24, %v18702_v57  ;;  %v5730_v13 = vrot.slane %v15828_v36, 1  ;;  %10366 = vmatprep.mubr.msk.bf16.mxu0 %vm18704_vm11, %v6334_v48  ;;  %v12096_v59 = vpop.eup %12095  ;;  %v11432_v48 = vpack.i.bf16 %v5707_v56, %v5706_v53  ;;  %v15877_v56 = vsel %vm18712_vm5, %v5728_v51, %v5729_v52  ;;  %vm18723_vm14 = vmmov %vm18695_vm2 }
 0xcf2   :  { %v15851_v50 = vsel %vm18706_vm7, %v18705_v5, %v5726_v24  ;;  %v5837_v28 = vmul.f32 %v15839_v14, %v18707_v38  ;;  %11428 = vrot.lane.b32.xlu1 %v11427_v30, %s12202_s29  ;;  %v18708_v24 = vld [vmem:[#allocation18_spill] sm:$0xff]  ;;  %v5785_v38 = vmul.f32 %v15709_v16, %v18709_v32  ;;  %v12098_v19 = vpop.eup %12097  ;;  %v15869_v6 = vmul.f32 %v12096_v59, %v15646_v62  ;;  %vm18726_vm11 = vmmov %vm18689_vm4 }
 0xcf3   :  { %v5836_v57 = vmul.f32 %v15851_v50, %v18417_v33  ;;  %v5784_v5 = vmul.f32 %v15684_v8, %v18708_v24  ;;  %v5755_v30 = vmul.f32 %v15705_v2, %v18711_v54  ;;  %v15880_v8 = vmul.f32 %v12098_v19, %v15654_v60  ;;  %11433 = vrot.lane.b32.xlu0 %v11432_v48, %s12196_s18  ;;  %v18715_v54 = vld [vmem:[#allocation80_spill] sm:$0xff]  ;;  %vm18730_vm7 = vmmov %vm18695_vm2 }
 0xcf4   :  { %v18713_v62 = vrot.slane %v15739_v18, 1  ;;  %v5733_v59 = vrot.slane %v15869_v6, 1  ;;  %9671 = vmatpush3.bf16.msra.mxu1 %v11908_v44  ;;  %v11909_v60 = vld [vmem:[%s17655_s2 + $0xf0] sm:$0xff]   ;;  %v18717_v44 = vrot.slane %v15658_v7, 7  ;;  %vm18731_vm5 = vmmov %vm18695_vm2 }
 0xcf5   :  { %v6337_v53 = vpack.c.bf16 %v5837_v28, %v5836_v57  ;;  %v11437_v32 = vpack.i.bf16 %v5785_v38, %v5784_v5  ;;  %v11910_v19 = vld [vmem:[%s17655_s2 + $0xb0] sm:$0xff]   ;;  %v5732_v3 = vrot.slane %v15880_v8, 1  ;;  %9672 = vmatprep.subr.bf16.mxu1 %v11909_v60 }
 0xcf6   :  { %v15887_v16 = vsel %vm18714_vm6, %v18713_v62, %v5728_v51  ;;  %v11447_v51 = vpack.i.bf16 %v5755_v30, %v5754_v41  ;;  %v18716_v38 = vld [vmem:[#allocation96_spill] sm:$0xff]  ;;  %v15908_v48 = vsel %vm18691_vm10, %v18717_v44, %v5658_v58  ;;  %v18719_v62 = vld [vmem:[#allocation22_spill] sm:$0xff]  ;;  %v18722_v44 = vld [vmem:[#allocation43_spill] sm:$0xff] }
 0xcf7   :  { %v5838_v47 = vmul.f32 %v15887_v16, %v18715_v54  ;;  %10367 = vmatmul.mubr.msk.bf16.gmra.mrb[108].mxu0 %vm18689_vm4, %v6337_v53  ;;  %11438 = vrot.lane.b32.xlu1 %v11437_v32, %s12196_s18  ;;  %v5839_v28 = vmul.f32 %v15877_v56, %v18716_v38  ;;  %v18718_v57 = vld [vmem:[#allocation20_spill] sm:$0xff]  ;;  %v5801_v54 = vmul.f32 %v15908_v48, %v18719_v62  ;;  %v18720_v53 = vrot.slane %v15673_v55, 7  ;;  %vm18737_vm6 = vmmov %vm18695_vm2 }
 0xcf8   :  { %v5800_v5 = vmul.f32 %v15774_v9, %v18718_v57  ;;  %v5770_v32 = vmul.f32 %v15908_v48, %v18433_v26  ;;  %11448 = vrot.lane.b32.xlu0 %v11447_v51, %s12203_s8  ;;  %v15927_v57 = vsel %vm18695_vm2, %v5730_v13, %v5731_v35  ;;  %v15931_v62 = vsel %vm18723_vm14, %v5729_v52, %v5730_v13  ;;  %v18725_v26 = vld [vmem:[#allocation100_spill] sm:$0xff]  ;;  %vm18740_vm10 = vmmov %vm18721_vm0 }
 0xcf9   :  { %v15918_v41 = vsel %vm18721_vm0, %v5658_v58, %v18720_v53  ;;  %v6340_v30 = vpack.c.bf16 %v5839_v28, %v5838_v47  ;;  %v18724_v53 = vld [vmem:[#allocation98_spill] sm:$0xff]  ;;  %v5841_v60 = vmul.f32 %v15927_v57, %v18725_v26  ;;  %9673 = vmatpush3.bf16.msra.mxu1 %v11910_v19  ;;  %v11911_v47 = vld [vmem:[%s17655_s2 + $0xf8] sm:$0xff]   ;;  %v5660_v51 = vrot.slane %v15725_v29, 7  ;;  %vm18742_vm0 = vmmov %vm18689_vm4 }
 0xcfa   :  { %v5771_v38 = vmul.f32 %v15918_v41, %v18722_v44  ;;  %v11442_v58 = vpack.i.bf16 %v5801_v54, %v5800_v5  ;;  %v5840_v24 = vmul.f32 %v15931_v62, %v18724_v53  ;;  %v18727_v44 = vld [vmem:[#allocation58_spill] sm:$0xff]  ;;  %v18728_v54 = vld [vmem:[#allocation36_spill] sm:$0xff]  ;;  %v15951_v53 = vsel %vm18730_vm7, %v5732_v3, %v5733_v59  ;;  %9674 = vmatprep.subr.bf16.mxu1 %v11911_v47  ;;  %v18741_v47 = vld [vmem:[#allocation47_spill] sm:$0xff] }
 0xcfb   :  { %10370 = vmatprep.mubr.msk.bf16.mxu0 %vm18726_vm11, %v6340_v30  ;;  %v5819_v52 = vmul.f32 %v15725_v29, %v18727_v44  ;;  %v5709_v13 = vmul.f32 %v15725_v29, %v18728_v54  ;;  %v18729_v26 = vld [vmem:[#allocation66_spill] sm:$0xff]  ;;  %v15955_v30 = vsel %vm18731_vm5, %v5731_v35, %v5732_v3  ;;  %v15970_v35 = vsel %vm18737_vm6, %v5733_v59, %v18736_v11  ;;  %v11912_v3 = vld [vmem:[%s17655_s2 + $0xb8] sm:$0xff]   ;;  %v18746_v59 = vld [vmem:[#allocation119_spill] sm:$0xff] }
 0xcfc   :  { %v11452_v28 = vpack.i.bf16 %v5771_v38, %v5770_v32  ;;  %11443 = vrot.lane.b32.xlu1 %v11442_v58, %s12203_s8  ;;  %v6343_v5 = vpack.c.bf16 %v5841_v60, %v5840_v24  ;;  %v5818_v19 = vmul.f32 %v15673_v55, %v18729_v26  ;;  %v18732_v38 = vld [vmem:[#allocation101_spill] sm:$0xff]  ;;  %v18733_v54 = vld [vmem:[#allocation86_spill] sm:$0xff]  ;;  %vm18751_vm2 = vmmov %vm18740_vm10 }
 0xcfd   :  { %v5708_v32 = vmul.f32 %v15673_v55, %v18732_v38  ;;  %v5842_v58 = vmul.f32 %v15955_v30, %v18733_v54  ;;  %v18734_v24 = vld [vmem:[#allocation117_spill] sm:$0xff]  ;;  %v18735_v44 = vld [vmem:[#allocation46_spill] sm:$0xff]  ;;  %9675 = vmatpush3.bf16.msra.mxu1 %v11912_v3  ;;  %v18749_v3 = vrot.slane %v15652_v34, 7  ;;  %vm18754_vm14 = vmmov %vm18742_vm0 }
 0xcfe   :  { %11453 = vrot.lane.b32.xlu0 %v11452_v28, %s12202_s29  ;;  %v5843_v60 = vmul.f32 %v15951_v53, %v18734_v24  ;;  %v11457_v26 = vpack.i.bf16 %v5819_v52, %v5818_v19  ;;  %v5787_v33 = vmul.f32 %v15800_v43, %v18735_v44  ;;  %v18738_v24 = vld [vmem:[#allocation13_spill] sm:$0xff]  ;;  %v18739_v19 = vrot.slane %v15673_v55, 7  ;;  %v11913_v11 = vld [vmem:[%s17655_s2 + $0x100] sm:$0xff]   ;;  %vm18756_vm11 = vmmov %vm18751_vm2 }
 0xcff   :  { %10371 = vmatmul.mubr.msk.bf16.gmra.mrb[112].mxu0 %vm18689_vm4, %v6343_v5  ;;  %v11462_v28 = vpack.i.bf16 %v5709_v13, %v5708_v32  ;;  %v5702_v52 = vmul.f32 %v15869_v6, %v18738_v24  ;;  %v5786_v13 = vmul.f32 %v15705_v2, %v18741_v47  ;;  %v18743_v5 = vld [vmem:[#allocation3_spill] sm:$0xff]  ;;  %v18745_v24 = vld [vmem:[#allocation65_spill] sm:$0xff]  ;;  %v5662_v2 = vrot.slane %v15744_v1, 7  ;;  %9676 = vmatprep.subr.bf16.mxu1 %v11913_v11  ;;  %vm18759_vm7 = vmmov %vm18751_vm2 }
 0xd00   :  { %v6346_v54 = vpack.c.bf16 %v5843_v60, %v5842_v58  ;;  %v15982_v44 = vsel %vm18740_vm10, %v18739_v19, %v5660_v51  ;;  %11458 = vrot.lane.b32.xlu1 %v11457_v26, %s12202_s29  ;;  %v5703_v32 = vmul.f32 %v15652_v34, %v18743_v5  ;;  %v18744_v58 = vld [vmem:[#allocation5_spill] sm:$0xff]  ;;  %v11914_v26 = vld [vmem:[%s17655_s2 + $0xc0] sm:$0xff]   ;;  %v18747_v47 = vld [vmem:[#allocation91_spill] sm:$0xff] }
 0xd01   :  { %v5844_v60 = vmul.f32 %v15970_v35, %v18744_v58  ;;  %v11467_v19 = vpack.i.bf16 %v5787_v33, %v5786_v13  ;;  %v5803_v38 = vmul.f32 %v15982_v44, %v18745_v24  ;;  %v5750_v5 = vmul.f32 %v15970_v35, %v18747_v47  ;;  %v18748_v33 = vld [vmem:[#allocation52_spill] sm:$0xff]  ;;  %v18752_v47 = vld [vmem:[#allocation7_spill] sm:$0xff]  ;;  %9677 = vmatpush3.bf16.msra.mxu1 %v11914_v26  ;;  %vm18768_vm5 = vmmov %vm18751_vm2 }
 0xd02   :  { %11463 = vrot.lane.b32.xlu0 %v11462_v28, %s12196_s18  ;;  %10374 = vmatprep.mubr.msk.bf16.mxu0 %vm18742_vm0, %v6346_v54  ;;  %v11487_v28 = vpack.i.bf16 %v5703_v32, %v5702_v52  ;;  %v5845_v54 = vmul.f32 %v15694_v21, %v18746_v59  ;;  %v5802_v13 = vmul.f32 %v15918_v41, %v18748_v33  ;;  %v18750_v24 = vrot.slane %v15869_v6, 7  ;;  %v18753_v59 = vld [vmem:[#allocation48_spill] sm:$0xff]  ;;  %vm18771_vm6 = vmmov %vm18751_vm2 }
 0xd03   :  { %v5661_v52 = vrot.slane %v15714_v17, 7  ;;  %v5751_v11 = vmul.f32 %v15694_v21, %v18752_v47  ;;  %v5789_v33 = vmul.f32 %v15851_v50, %v18753_v59  ;;  %v11916_v21 = vld [vmem:[%s17655_s2 + $0xc8] sm:$0xff]   ;;  %9678 = vmatprep.subr.bf16.mxu1 %v11915_v20  ;;  %v5664_v20 = vrot.slane %v15788_v61, 7  ;;  %vm18783_vm4 = vmmov %vm18751_vm2 }
 0xd04   :  { %11468 = vrot.lane.b32.xlu1 %v11467_v19, %s12196_s18  ;;  %v16016_v58 = vsel %vm18751_vm2, %v18750_v24, %v18749_v3  ;;  %v6349_v32 = vpack.c.bf16 %v5845_v54, %v5844_v60  ;;  %v11472_v19 = vpack.i.bf16 %v5803_v38, %v5802_v13  ;;  %v18755_v3 = vld [vmem:[#allocation15_spill] sm:$0xff]  ;;  %v18757_v38 = vld [vmem:[#allocation50_spill] sm:$0xff]  ;;  %vm18786_vm10 = vmmov %vm18751_vm2 }
 0xd05   :  { %v11492_v24 = vpack.i.bf16 %v5751_v11, %v5750_v5  ;;  %v5766_v29 = vmul.f32 %v16016_v58, %v18755_v3  ;;  %v16032_v60 = vsel %vm18756_vm11, %v5661_v52, %v5662_v2  ;;  %v5788_v26 = vmul.f32 %v15794_v63, %v18757_v38  ;;  %v18760_v3 = vld [vmem:[#allocation41_spill] sm:$0xff]  ;;  %9679 = vmatpush3.bf16.msra.mxu1 %v11916_v21  ;;  %v18764_v21 = vld [vmem:[#allocation24_spill] sm:$0xff]  ;;  %vm18802_vm0 = vmmov %vm18751_vm2 }
 0xd06   :  { %11488 = vrot.lane.b32.xlu0 %v11487_v28, %s12196_s18  ;;  %v18758_v28 = vld [vmem:[#allocation11_spill] sm:$0xff]  ;;  %v16045_v54 = vsel %vm18759_vm7, %v5660_v51, %v5661_v52  ;;  %v5757_v38 = vmul.f32 %v15794_v63, %v18760_v3  ;;  %10731 = vmatprep.subr.msk.bf16.mxu1 %vm18369_vm13, %v18261_v39  ;;  %v18763_v63 = vld [vmem:[#allocation45_spill] sm:$0xff]  ;;  %vm18804_vm2 = vmmov %vm18802_vm0  ;;  %vm18824_vm11 = vcmask 261120  }
 0xd07   :  { %10375 = vmatmul.mubr.msk.bf16.gmra.mrb[116].mxu0 %vm18754_vm14, %v6349_v32  ;;  %v5767_v5 = vmul.f32 %v15756_v15, %v18758_v28  ;;  %v11477_v13 = vpack.i.bf16 %v5789_v33, %v5788_v26  ;;  %v5805_v32 = vmul.f32 %v16032_v60, %v18467_v37  ;;  %v18762_v33 = vld [vmem:[#allocation60_spill] sm:$0xff]  ;;  %v5773_v26 = vmul.f32 %v16045_v54, %v18764_v21  ;;  %v18774_v3 = vld [vmem:[#allocation105_spill] sm:$0xff]  ;;  %vm18813_vm14 = vmmov %vm18802_vm0 }
 0xd08   :  { %11473 = vrot.lane.b32.xlu1 %v11472_v19, %s12203_s8  ;;  %v5756_v19 = vmul.f32 %v15800_v43, %v18468_v27  ;;  %v5821_v52 = vmul.f32 %v15744_v1, %v18762_v33  ;;  %v5772_v43 = vmul.f32 %v15982_v44, %v18763_v63  ;;  %vm18825_vm7 = vmmov %vm18824_vm11 }
 0xd09   :  { %v11497_v11 = vpack.i.bf16 %v5767_v5, %v5766_v29  ;;  %v18765_v5 = vld [vmem:[#allocation68_spill] sm:$0xff] }
 0xd0a   :  { %11493 = vrot.lane.b32.xlu0 %v11492_v24, %s12203_s8  ;;  %v18761_v24 = vld [vmem:[#allocation54_spill] sm:$0xff]  ;;  %v11502_v29 = vpack.i.bf16 %v5757_v38, %v5756_v19  ;;  %v11512_v38 = vpack.i.bf16 %v5773_v26, %v5772_v43 }
 0xd0b   :  { %v5804_v28 = vmul.f32 %v16045_v54, %v18761_v24  ;;  %v18767_v19 = vld [vmem:[#allocation110_spill] sm:$0xff] }
 0xd0c   :  { %11478 = vrot.lane.b32.xlu1 %v11477_v13, %s12196_s18  ;;  %v5663_v13 = vrot.slane %v15739_v18, 7  ;;  %v5711_v63 = vmul.f32 %v15744_v1, %v18767_v19  ;;  %v18772_v19 = vld [vmem:[#allocation115_spill] sm:$0xff]  ;;  %v18773_v24 = vld [vmem:[#allocation74_spill] sm:$0xff] }
 0xd0d   :  { %v11482_v51 = vpack.i.bf16 %v5805_v32, %v5804_v28  ;;  %v5820_v28 = vmul.f32 %v15714_v17, %v18765_v5 }
 0xd0e   :  { %11498 = vrot.lane.b32.xlu0 %v11497_v11, %s12202_s29  ;;  %v18766_v11 = vld [vmem:[#allocation49_spill] sm:$0xff]  ;;  %v16078_v21 = vsel %vm18768_vm5, %v5663_v13, %v5664_v20  ;;  %v16088_v43 = vsel %vm18771_vm6, %v5662_v2, %v5663_v13  ;;  %v18776_v2 = vld [vmem:[#allocation8_spill] sm:$0xff]  ;;  %v5666_v13 = vrot.slane %v15828_v36, 7  ;;  %vm18826_vm5 = vmmov %vm18825_vm7 }
 0xd0f   :  { %v11507_v32 = vpack.i.bf16 %v5821_v52, %v5820_v28  ;;  %v5791_v33 = vmul.f32 %v15887_v16, %v18766_v11  ;;  %v5807_v28 = vmul.f32 %v16078_v21, %v18481_v12  ;;  %v5758_v11 = vmul.f32 %v15851_v50, %v18772_v19  ;;  %v18788_v19 = vld [vmem:[#allocation73_spill] sm:$0xff]  ;;  %v18789_v12 = vld [vmem:[#allocation79_spill] sm:$0xff]  ;;  %vm18827_vm6 = vmmov %vm18826_vm5 }
 0xd10   :  { %11483 = vrot.lane.b32.xlu1 %v11482_v51, %s12203_s8  ;;  %v18769_v51 = vld [vmem:[#allocation84_spill] sm:$0xff]  ;;  %v5665_v50 = vrot.slane %v15778_v0, 7 }
 0xd11   :  { %v5790_v5 = vmul.f32 %v15839_v14, %v18769_v51  ;;  %v5759_v51 = vmul.f32 %v15839_v14, %v18773_v24  ;;  %v18777_v14 = vld [vmem:[#allocation93_spill] sm:$0xff] }
 0xd12   :  { %11503 = vrot.lane.b32.xlu0 %v11502_v29, %s12203_s8  ;;  %v18770_v29 = vld [vmem:[#allocation64_spill] sm:$0xff]  ;;  %v18779_v24 = vld [vmem:[#allocation81_spill] sm:$0xff] }
 0xd13   :  { %v5710_v52 = vmul.f32 %v15714_v17, %v18770_v29  ;;  %v11517_v26 = vpack.i.bf16 %v5791_v33, %v5790_v5  ;;  %v18775_v29 = vld [vmem:[#allocation37_spill] sm:$0xff]  ;;  %v5806_v33 = vmul.f32 %v16088_v43, %v18776_v2  ;;  %v5823_v5 = vmul.f32 %v15788_v61, %v18777_v14  ;;  %v18780_v2 = vld [vmem:[#allocation75_spill] sm:$0xff] }
 0xd14   :  { %11508 = vrot.lane.b32.xlu1 %v11507_v32, %s12202_s29  ;;  %v16102_v27 = vmul.f32 %v15951_v53, %v18775_v29 }
 0xd15   :  { %v11522_v32 = vpack.i.bf16 %v5711_v63, %v5710_v52  ;;  %v11527_v63 = vpack.i.bf16 %v5807_v28, %v5806_v33  ;;  %v11532_v52 = vpack.i.bf16 %v5759_v51, %v5758_v11  ;;  %v18781_v33 = vld [vmem:[#allocation51_spill] sm:$0xff] }
 0xd16   :  { %11513 = vrot.lane.b32.xlu0 %v11512_v38, %s12202_s29  ;;  %v16098_v38 = vmul.f32 %v15955_v30, %v18774_v3  ;;  %v18778_v3 = vld [vmem:[#allocation32_spill] sm:$0xff]  ;;  %v5793_v14 = vmul.f32 %v15931_v62, %v18781_v33  ;;  %v18782_v51 = vld [vmem:[#allocation71_spill] sm:$0xff] }
 0xd17   :  { %v5774_v29 = vmul.f32 %v16032_v60, %v18778_v3  ;;  %v5713_v3 = vmul.f32 %v15788_v61, %v18782_v51 }
 0xd18   :  { %11518 = vrot.lane.b32.xlu1 %v11517_v26, %s12196_s18  ;;  %v5775_v26 = vmul.f32 %v16088_v43, %v18779_v24  ;;  %v16128_v24 = vsel %vm18783_vm4, %v5665_v50, %v5666_v13  ;;  %vm18830_vm4 = vmmov %vm18826_vm5 }
 0xd1a   :  { %11523 = vrot.lane.b32.xlu0 %v11522_v32, %s12196_s18  ;;  %v5822_v32 = vmul.f32 %v15739_v18, %v18780_v2  ;;  %v11542_v11 = vpack.i.bf16 %v5775_v26, %v5774_v29  ;;  %v16138_v29 = vsel %vm18786_vm10, %v5664_v20, %v5665_v50  ;;  %v18791_v50 = vld [vmem:[#allocation95_spill] sm:$0xff]  ;;  %vm18831_vm10 = vmmov %vm18830_vm4 }
 0xd1c   :  { %11528 = vrot.lane.b32.xlu1 %v11527_v63, %s12203_s8  ;;  %v11537_v28 = vpack.i.bf16 %v5823_v5, %v5822_v32  ;;  %v18784_v63 = vld [vmem:[#allocation4_spill] sm:$0xff]  ;;  %v18787_v32 = vld [vmem:[#allocation89_spill] sm:$0xff] }
 0xd1d   :  { %v5792_v2 = vmul.f32 %v15877_v56, %v18784_v63  ;;  %v5809_v51 = vmul.f32 %v16128_v24, %v18787_v32  ;;  %v5761_v63 = vmul.f32 %v15877_v56, %v18789_v12  ;;  %v18792_v32 = vld [vmem:[#allocation2_spill] sm:$0xff]  ;;  %v18801_v12 = vld [vmem:[#allocation104_spill] sm:$0xff] }
 0xd1e   :  { %11533 = vrot.lane.b32.xlu0 %v11532_v52, %s12203_s8  ;;  %v18785_v52 = vld [vmem:[#allocation113_spill] sm:$0xff]  ;;  %v18794_v56 = vld [vmem:[#allocation78_spill] sm:$0xff] }
 0xd1f   :  { %v5712_v5 = vmul.f32 %v15739_v18, %v18785_v52  ;;  %v11547_v26 = vpack.i.bf16 %v5793_v14, %v5792_v2  ;;  %v5825_v2 = vmul.f32 %v15828_v36, %v18791_v50  ;;  %v5667_v50 = vrot.slane %v15803_v23, 7 }
 0xd20   :  { %11538 = vrot.lane.b32.xlu1 %v11537_v28, %s12202_s29  ;;  %v5760_v28 = vmul.f32 %v15887_v16, %v18788_v19  ;;  %v5763_v19 = vmul.f32 %v15927_v57, %v18801_v12 }
 0xd21   :  { %v11552_v33 = vpack.i.bf16 %v5713_v3, %v5712_v5  ;;  %v5776_v3 = vmul.f32 %v16078_v21, %v18792_v32  ;;  %v18793_v5 = vld [vmem:[#allocation35_spill] sm:$0xff] }
 0xd22   :  { %11543 = vrot.lane.b32.xlu0 %v11542_v11, %s12202_s29  ;;  %v18790_v11 = vld [vmem:[#allocation87_spill] sm:$0xff]  ;;  %v11562_v14 = vpack.i.bf16 %v5761_v63, %v5760_v28  ;;  %v5777_v16 = vmul.f32 %v16138_v29, %v18793_v5  ;;  %v18796_v28 = vld [vmem:[#allocation29_spill] sm:$0xff] }
 0xd23   :  { %v5808_v52 = vmul.f32 %v16138_v29, %v18790_v11  ;;  %v5715_v32 = vmul.f32 %v15828_v36, %v18796_v28 }
 0xd24   :  { %11548 = vrot.lane.b32.xlu1 %v11547_v26, %s12196_s18  ;;  %v5824_v26 = vmul.f32 %v15778_v0, %v18794_v56  ;;  %v11572_v63 = vpack.i.bf16 %v5777_v16, %v5776_v3  ;;  %v18800_v16 = vld [vmem:[#allocation120_spill] sm:$0xff] }
 0xd25   :  { %v11557_v20 = vpack.i.bf16 %v5809_v51, %v5808_v52  ;;  %v5668_v52 = vrot.slane %v15880_v8, 7  ;;  %v5762_v28 = vmul.f32 %v15931_v62, %v18800_v16  ;;  %v18805_v62 = vld [vmem:[#allocation82_spill] sm:$0xff]  ;;  %v18807_v16 = vld [vmem:[#allocation40_spill] sm:$0xff] }
 0xd26   :  { %11553 = vrot.lane.b32.xlu0 %v11552_v33, %s12196_s18  ;;  %v11567_v11 = vpack.i.bf16 %v5825_v2, %v5824_v26  ;;  %v18795_v33 = vld [vmem:[#allocation77_spill] sm:$0xff] }
 0xd27   :  { %v5827_v51 = vmul.f32 %v15880_v8, %v18795_v33  ;;  %v18799_v33 = vld [vmem:[#allocation111_spill] sm:$0xff] }
 0xd28   :  { %11558 = vrot.lane.b32.xlu1 %v11557_v20, %s12203_s8  ;;  %v18797_v20 = vld [vmem:[#allocation83_spill] sm:$0xff]  ;;  %v5795_v56 = vmul.f32 %v15955_v30, %v18799_v33  ;;  %v18835_v33 = vld [vmem:[#allocation121_spill] sm:$0xff] }
 0xd29   :  { %v5826_v5 = vmul.f32 %v15803_v23, %v18797_v20 }
 0xd2a   :  { %11563 = vrot.lane.b32.xlu0 %v11562_v14, %s12203_s8  ;;  %v18798_v14 = vld [vmem:[#allocation97_spill] sm:$0xff] }
 0xd2b   :  { %v5714_v2 = vmul.f32 %v15778_v0, %v18798_v14  ;;  %v11587_v26 = vpack.i.bf16 %v5827_v51, %v5826_v5  ;;  %v16187_v5 = vsel %vm18804_vm2, %v5666_v13, %v5667_v50  ;;  %v11582_v51 = vpack.i.bf16 %v5763_v19, %v5762_v28 }
 0xd2c   :  { %11568 = vrot.lane.b32.xlu1 %v11567_v11, %s12202_s29  ;;  %v16180_v11 = vsel %vm18802_vm0, %v5667_v50, %v5668_v52  ;;  %v18809_v50 = vld [vmem:[#allocation114_spill] sm:$0xff]  ;;  %vm18832_vm0 = vmmov %vm18830_vm4 }
 0xd2d   :  { %v11577_v3 = vpack.i.bf16 %v5715_v32, %v5714_v2  ;;  %v5811_v32 = vmul.f32 %v16180_v11, %v18805_v62  ;;  %v18806_v2 = vld [vmem:[#allocation107_spill] sm:$0xff]  ;;  %vm18833_vm2 = vmmov %vm18832_vm0 }
 0xd2e   :  { %11573 = vrot.lane.b32.xlu0 %v11572_v63, %s12202_s29  ;;  %v18803_v63 = vld [vmem:[#allocation53_spill] sm:$0xff]  ;;  %v5778_v12 = vmul.f32 %v16128_v24, %v18806_v2 }
 0xd2f   :  { %v5794_v14 = vmul.f32 %v15927_v57, %v18803_v63  ;;  %v18808_v57 = vld [vmem:[#allocation27_spill] sm:$0xff] }
 0xd30   :  { %11588 = vrot.lane.b32.xlu1 %v11587_v26, %s12202_s29  ;;  %v5779_v26 = vmul.f32 %v16187_v5, %v18807_v16  ;;  %v5810_v63 = vmul.f32 %v16187_v5, %v18808_v57  ;;  %v18812_v16 = vrot.slane %v15869_v6, 7  ;;  %v18823_v57 = vld [vmem:[#allocation124_spill] sm:$0xff] }
 0xd31   :  { %v11602_v30 = vpack.i.bf16 %v5795_v56, %v5794_v14  ;;  %v5796_v56 = vmul.f32 %v15951_v53, %v18809_v50  ;;  %v18810_v14 = vld [vmem:[#allocation55_spill] sm:$0xff] }
 0xd32   :  { %11578 = vrot.lane.b32.xlu0 %v11577_v3, %s12196_s18  ;;  %v11607_v13 = vpack.i.bf16 %v5811_v32, %v5810_v63  ;;  %v5797_v19 = vmul.f32 %v15970_v35, %v18810_v14  ;;  %v11592_v28 = vpack.i.bf16 %v5779_v26, %v5778_v12  ;;  %v18811_v3 = vld [vmem:[#allocation102_spill] sm:$0xff]  ;;  %v18814_v63 = vld [vmem:[#allocation116_spill] sm:$0xff]  ;;  %v18816_v35 = vld [vmem:[#allocation31_spill] sm:$0xff] }
 0xd33   :  { %v5717_v2 = vmul.f32 %v15880_v8, %v18811_v3  ;;  %v5716_v53 = vmul.f32 %v15803_v23, %v18814_v63  ;;  %v5813_v26 = vmul.f32 %v16016_v58, %v18816_v35  ;;  %v18819_v63 = vld [vmem:[#allocation109_spill] sm:$0xff] }
 0xd34   :  { %11603 = vrot.lane.b32.xlu1 %v11602_v30, %s12196_s18  ;;  %v16210_v30 = vsel %vm18813_vm14, %v5668_v52, %v18812_v16  ;;  %v11612_v32 = vpack.i.bf16 %v5797_v19, %v5796_v56  ;;  %v18817_v16 = vld [vmem:[#allocation85_spill] sm:$0xff]  ;;  %v18820_v19 = vld [vmem:[#allocation76_spill] sm:$0xff]  ;;  %vm18836_vm14 = vmmov %vm18832_vm0 }
 0xd35   :  { %v11597_v3 = vpack.i.bf16 %v5717_v2, %v5716_v53  ;;  %v5781_v56 = vmul.f32 %v16210_v30, %v18819_v63  ;;  %v5829_v35 = vmul.f32 %v15652_v34, %v18820_v19  ;;  %v18821_v2 = vpack.i.bf16 %v16102_v27, %v16098_v38  ;;  %v18822_v19 = vld [vmem:[#allocation122_spill] sm:$0xff] }
 0xd36   :  { %11583 = vrot.lane.b32.xlu0 %v11582_v51, %s12203_s8  ;;  %v18815_v51 = vld [vmem:[#allocation26_spill] sm:$0xff]  ;;  %v5688_v50 = vmul.f32 %v15756_v15, %v18822_v19  ;;  %v5689_v27 = vmul.f32 %v15749_v31, %v18823_v57 }
 0xd37   :  { %v5812_v12 = vmul.f32 %v16210_v30, %v18815_v51 }
 0xd38   :  { %11608 = vrot.lane.b32.xlu1 %v11607_v13, %s12203_s8  ;;  %v5828_v13 = vmul.f32 %v15869_v6, %v18817_v16 }
 0xd39   :  { %v11617_v52 = vpack.i.bf16 %v5813_v26, %v5812_v12 }
 0xd3a   :  { %11593 = vrot.lane.b32.xlu0 %v11592_v28, %s12202_s29  ;;  %v18818_v28 = vld [vmem:[#allocation108_spill] sm:$0xff] }
 0xd3b   :  { %v5780_v14 = vmul.f32 %v16180_v11, %v18818_v28 }
 0xd3c   :  { %11613 = vrot.lane.b32.xlu1 %v11612_v32, %s12196_s18 }
 0xd3d   :  { %v11632_v53 = vpack.i.bf16 %v5781_v56, %v5780_v14 }
 0xd3e   :  { %11598 = vrot.lane.b32.xlu0 %v11597_v3, %s12196_s18  ;;  %v11622_v3 = vpack.i.bf16 %v5829_v35, %v5828_v13 }
 0xd40   :  { %11618 = vrot.lane.b32.xlu1 %v11617_v52, %s12203_s8 }
 0xd42   :  { %11628 = vrot.lane.b32.xlu0 %v18821_v2, %s12203_s8 }
 0xd44   :  { %11623 = vrot.lane.b32.xlu1 %v11622_v3, %s12202_s29 }
 0xd46   :  { %11633 = vrot.lane.b32.xlu0 %v11632_v53, %s12202_s29 }
 0xd52   :  { %v11399_v32 = vpop.permute.xlu1 %11398  ;;  %v11404_v12 = vpop.permute.xlu0 %11403 }
 0xd53   :  { %v11406_v28 = vunpack.i.h.bf16 %v11404_v12  ;;  %v11405_v52 = vunpack.i.l.bf16 %v11404_v12  ;;  %v11401_v35 = vunpack.i.h.bf16 %v11399_v32  ;;  %v11400_v13 = vunpack.i.l.bf16 %v11399_v32 }
 0xd55   :  { %v6232_v2 = vsel %vm18824_vm11, %v5688_v50, %v11405_v52  ;;  %v6233_v3 = vsel %vm18825_vm7, %v5689_v27, %v11406_v28  ;;  %vm18837_vm11 = vmmov %vm18832_vm0 }
 0xd56   :  { %vm18838_vm7 = vmmov %vm18832_vm0 }
 0xd59   :  { %v11409_v26 = vpop.permute.xlu1 %11408 }
 0xd5a   :  { %v11419_v63 = vpop.permute.xlu0 %11418  ;;  %v11411_v16 = vunpack.i.h.bf16 %v11409_v26  ;;  %v11410_v51 = vunpack.i.l.bf16 %v11409_v26 }
 0xd5b   :  { %v11421_v38 = vunpack.i.h.bf16 %v11419_v63  ;;  %v11420_v14 = vunpack.i.l.bf16 %v11419_v63 }
 0xd5c   :  { %v6279_v26 = vsel %vm18826_vm5, %v15649_v4, %v11411_v16  ;;  %v6278_v15 = vsel %vm18827_vm6, %v15652_v34, %v11410_v51  ;;  %vm18839_vm5 = vmmov %vm18832_vm0 }
 0xd5d   :  { %v6248_v63 = vsel %vm4052_vm12, %v6232_v2, %v11420_v14  ;;  %v6249_v32 = vsel %vm4052_vm12, %v6233_v3, %v11421_v38  ;;  %vm18840_vm6 = vmmov %vm18832_vm0 }
 0xd60   :  { %v11414_v56 = vpop.permute.xlu1 %11413  ;;  %v11424_v12 = vpop.permute.xlu0 %11423 }
 0xd61   :  { %v11416_v53 = vunpack.i.h.bf16 %v11414_v56  ;;  %v11415_v62 = vunpack.i.l.bf16 %v11414_v56  ;;  %v11426_v19 = vunpack.i.h.bf16 %v11424_v12  ;;  %v11425_v31 = vunpack.i.l.bf16 %v11424_v12 }
 0xd63   :  { %v6295_v57 = vsel %vm4052_vm12, %v6279_v26, %v11416_v53  ;;  %v6294_v50 = vsel %vm4052_vm12, %v6278_v15, %v11415_v62  ;;  %v16254_v4 = vsel %vm4069_vm8, %v6248_v63, %v11425_v31  ;;  %v16257_v34 = vsel %vm4069_vm8, %v6249_v32, %v11426_v19  ;;  %v18828_v53 = vld [vmem:[#allocation123_spill] sm:$0xff] }
 0xd64   :  { %v11429_v28 = vpop.permute.xlu1 %11428  ;;  %v6310_v52 = vsel %vm4069_vm8, %v6294_v50, %v11400_v13  ;;  %v6311_v27 = vsel %vm4069_vm8, %v6295_v57, %v11401_v35  ;;  %v5690_v57 = vmul.f32 %v15774_v9, %v18828_v53  ;;  %v18829_v35 = vld [vmem:[#allocation10_spill] sm:$0xff]  ;;  %v18834_v53 = vld [vmem:[#allocation39_spill] sm:$0xff] }
 0xd65   :  { %v6327_v51 = vpack.c.bf16 %v6311_v27, %v6310_v52  ;;  %v11434_v38 = vpop.permute.xlu0 %11433  ;;  %v5691_v12 = vmul.f32 %v15908_v48, %v18829_v35  ;;  %v11430_v16 = vunpack.i.l.bf16 %v11429_v28 }
 0xd66   :  { %v11436_v62 = vunpack.i.h.bf16 %v11434_v38  ;;  %v11435_v2 = vunpack.i.l.bf16 %v11434_v38  ;;  %v11431_v38 = vunpack.i.h.bf16 %v11429_v28 }
 0xd67   :  { %6518 = vmatprep.mubr.bf16.mxu1 %v6327_v51 }
 0xd68   :  { %v6234_v15 = vsel %vm18830_vm4, %v5690_v57, %v11435_v2  ;;  %v6235_v31 = vsel %vm18831_vm10, %v5691_v12, %v11436_v62  ;;  %vm18841_vm4 = vmmov %vm18832_vm0 }
 0xd69   :  { %v11439_v14 = vpop.permute.xlu1 %11438  ;;  %vm18844_vm10 = vmmov %vm18832_vm0 }
 0xd6a   :  { %v11449_v56 = vpop.permute.xlu0 %11448  ;;  %v11441_v62 = vunpack.i.h.bf16 %v11439_v14  ;;  %v11440_v2 = vunpack.i.l.bf16 %v11439_v14 }
 0xd6b   :  { %v11451_v3 = vunpack.i.h.bf16 %v11449_v56  ;;  %v11450_v13 = vunpack.i.l.bf16 %v11449_v56 }
 0xd6d   :  { %v6250_v50 = vsel %vm4052_vm12, %v6234_v15, %v11450_v13  ;;  %v6251_v52 = vsel %vm4052_vm12, %v6235_v31, %v11451_v3  ;;  %v6281_v3 = vsel %vm18832_vm0, %v15658_v7, %v11441_v62  ;;  %v6280_v15 = vsel %vm18833_vm2, %v15664_v49, %v11440_v2  ;;  %vm18850_vm2 = vmmov %vm18832_vm0 }
 0xd6e   :  { %v11444_v19 = vpop.permute.xlu1 %11443  ;;  %v5687_v7 = vmul.f32 %v16016_v58, %v18835_v33 }
 0xd6f   :  { %v11446_v12 = vunpack.i.h.bf16 %v11444_v19  ;;  %v11445_v13 = vunpack.i.l.bf16 %v11444_v19  ;;  %v5686_v19 = vmul.f32 %v16210_v30, %v18834_v53 }
 0xd70   :  { %v11454_v26 = vpop.permute.xlu0 %11453 }
 0xd71   :  { %v11456_v63 = vunpack.i.h.bf16 %v11454_v26  ;;  %v11455_v32 = vunpack.i.l.bf16 %v11454_v26 }
 0xd72   :  { %v16269_v27 = vpop.permute.xlu1 %11458 }
 0xd73   :  { %v16272_v51 = vsel %vm4069_vm8, %v6250_v50, %v11455_v32  ;;  %v16275_v9 = vsel %vm4069_vm8, %v6251_v52, %v11456_v63  ;;  %v6297_v63 = vsel %vm4052_vm12, %v6281_v3, %v11446_v12  ;;  %v6296_v32 = vsel %vm4052_vm12, %v6280_v15, %v11445_v13 }
 0xd74   :  { %v11464_v48 = vpop.permute.xlu0 %11463  ;;  %v6312_v12 = vsel %vm4069_vm8, %v6296_v32, %v11430_v16  ;;  %v6313_v13 = vsel %vm4069_vm8, %v6297_v63, %v11431_v38  ;;  %v5692_v16 = vmul.f32 %v15918_v41, %v18543_v42 }
 0xd75   :  { %v11466_v38 = vunpack.i.h.bf16 %v11464_v48  ;;  %v11465_v63 = vunpack.i.l.bf16 %v11464_v48  ;;  %v11460_v48 = vunpack.i.l.bf16 %v16269_v27 }
 0xd76   :  { %v11469_v56 = vpop.permute.xlu1 %11468 }
 0xd77   :  { %v11471_v49 = vunpack.i.h.bf16 %v11469_v56  ;;  %v11470_v2 = vunpack.i.l.bf16 %v11469_v56 }
 0xd78   :  { %v11489_v57 = vpop.permute.xlu0 %11488 }
 0xd79   :  { %v11491_v50 = vunpack.i.h.bf16 %v11489_v57  ;;  %v11490_v52 = vunpack.i.l.bf16 %v11489_v57 }
 0xd7a   :  { %v11474_v26 = vpop.permute.xlu1 %11473 }
 0xd7b   :  { %v6230_v57 = vsel %vm18836_vm14, %v5686_v19, %v11490_v52  ;;  %v6231_v28 = vsel %vm18837_vm11, %v5687_v7, %v11491_v50  ;;  %v11475_v30 = vunpack.i.l.bf16 %v11474_v26  ;;  %vm18851_vm14 = vmmov %vm18832_vm0 }
 0xd7c   :  { %v11494_v31 = vpop.permute.xlu0 %11493  ;;  %vm18854_vm11 = vmmov %vm18832_vm0 }
 0xd7d   :  { %v11496_v14 = vunpack.i.h.bf16 %v11494_v31  ;;  %v11495_v35 = vunpack.i.l.bf16 %v11494_v31  ;;  %v11476_v31 = vunpack.i.h.bf16 %v11474_v26  ;;  %v6282_v26 = vsel %vm18839_vm5, %v15680_v22, %v11470_v2  ;;  %vm18856_vm5 = vmmov %vm18832_vm0 }
 0xd7e   :  { %v16289_v62 = vpop.permute.xlu1 %11478  ;;  %v6236_v22 = vsel %vm18840_vm6, %v5692_v16, %v11465_v63  ;;  %vm18857_vm6 = vmmov %vm18832_vm0 }
 0xd7f   :  { %v6246_v53 = vsel %vm4052_vm12, %v6230_v57, %v11495_v35  ;;  %v6247_v58 = vsel %vm4052_vm12, %v6231_v28, %v11496_v14  ;;  %v6283_v35 = vsel %vm18838_vm7, %v15673_v55, %v11471_v49  ;;  %v6298_v14 = vsel %vm4052_vm12, %v6282_v26, %v11475_v30  ;;  %vm18855_vm7 = vmmov %vm18832_vm0 }
 0xd80   :  { %v11499_v20 = vpop.permute.xlu0 %11498  ;;  %v6299_v52 = vsel %vm4052_vm12, %v6283_v35, %v11476_v31  ;;  %v11480_v10 = vunpack.i.l.bf16 %v16289_v62 }
 0xd81   :  { %v11501_v3 = vunpack.i.h.bf16 %v11499_v20  ;;  %v11500_v15 = vunpack.i.l.bf16 %v11499_v20  ;;  %v5693_v20 = vmul.f32 %v15982_v44, %v18544_v46 }
 0xd82   :  { %v11484_v37 = vpop.permute.xlu1 %11483 }
 0xd83   :  { %v6262_v33 = vsel %vm4069_vm8, %v6246_v53, %v11500_v15  ;;  %v6263_v56 = vsel %vm4069_vm8, %v6247_v58, %v11501_v3  ;;  %v6330_v53 = vpack.c.bf16 %v6313_v13, %v6312_v12  ;;  %v6237_v55 = vsel %vm18841_vm4, %v5693_v20, %v11466_v38  ;;  %vm18860_vm4 = vmmov %vm18832_vm0 }
 0xd84   :  { %v6326_v32 = vpack.c.bf16 %v6263_v56, %v6262_v33  ;;  %v11504_v50 = vpop.permute.xlu0 %11503  ;;  %v11461_v33 = vunpack.i.h.bf16 %v16269_v27  ;;  %v6314_v12 = vsel %vm4069_vm8, %v6298_v14, %v11460_v48  ;;  %v11481_v13 = vunpack.i.h.bf16 %v16289_v62 }
 0xd85   :  { %v11506_v19 = vunpack.i.h.bf16 %v11504_v50  ;;  %v11505_v41 = vunpack.i.l.bf16 %v11504_v50  ;;  %v11486_v3 = vunpack.i.h.bf16 %v11484_v37  ;;  %v11485_v15 = vunpack.i.l.bf16 %v11484_v37 }
 0xd86   :  { %6519 = vmatmul.mubr.bf16.vlgmr.msra.gmra.mrb[108].mxu1 %v6326_v32  ;;  %v11509_v44 = vpop.permute.xlu1 %11508  ;;  %v6315_v27 = vsel %vm4069_vm8, %v6299_v52, %v11461_v33  ;;  %v18843_v32 = vld [vmem:[#allocation165_spill] sm:$0xff]  ;;  %v18845_v20 = vpack.c.bf16 %v16257_v34, %v16254_v4  ;;  %v18847_v33 = vld [vmem:[#allocation92_spill] sm:$0xff] }
 0xd87   :  { %6526 = vmatprep.mubr.bf16.mxu1 %v6330_v53  ;;  %10733 = vmatpush3.bf16.msk.msra.mxu1 %vm18369_vm13, %v18261_v39  ;;  %v6253_v57 = vsel %vm4052_vm12, %v6237_v55, %v11506_v19  ;;  %v6252_v28 = vsel %vm4052_vm12, %v6236_v22, %v11505_v41  ;;  %v11511_v56 = vunpack.i.h.bf16 %v11509_v44  ;;  %v11510_v16 = vunpack.i.l.bf16 %v11509_v44  ;;  %vm18842_vm13 = vmmov %vm18832_vm0  ;;  %v18846_v19 = vld [vmem:[#allocation90_spill] sm:$0xff] }
 0xd88   :  { %v11514_v7 = vpop.permute.xlu0 %11513  ;;  %10735 = vmatprep.subr.msk.bf16.mxu1 %vm18408_vm9, %v18261_v39  ;;  %v6333_v37 = vpack.c.bf16 %v6315_v27, %v6314_v12  ;;  %v6285_v63 = vsel %vm18842_vm13, %v15714_v17, %v11481_v13  ;;  %v6284_v50 = vsel %vm18844_vm10, %v18843_v32, %v11480_v10  ;;  %v5694_v41 = vmul.f32 %v16045_v54, %v18846_v19  ;;  %vm18861_vm13 = vmmov %vm18832_vm0 }
 0xd89   :  { %v11516_v49 = vunpack.i.h.bf16 %v11514_v7  ;;  %v11515_v2 = vunpack.i.l.bf16 %v11514_v7  ;;  %v6300_v40 = vsel %vm4052_vm12, %v6284_v50, %v11485_v15  ;;  %v5695_v4 = vmul.f32 %v16032_v60, %v18847_v33  ;;  %vm18862_vm10 = vmmov %vm18832_vm0 }
 0xd8a   :  { %v11519_v31 = vpop.permute.xlu1 %11518  ;;  %v6316_v14 = vsel %vm4069_vm8, %v6300_v40, %v11510_v16  ;;  %v18849_v15 = vpack.c.bf16 %v16275_v9, %v16272_v51 }
 0xd8b   :  { %v16326_v30 = vsel %vm4069_vm8, %v6252_v28, %v11515_v2  ;;  %v16329_v58 = vsel %vm4069_vm8, %v6253_v57, %v11516_v49  ;;  %10737 = vmatpush3.bf16.msk.msra.mxu1 %vm18408_vm9, %v18261_v39  ;;  %v6301_v39 = vsel %vm4052_vm12, %v6285_v63, %v11486_v3  ;;  %v11521_v55 = vunpack.i.h.bf16 %v11519_v31  ;;  %vm18848_vm9 = vmmov %vm18832_vm0 }
 0xd8c   :  { %v11524_v62 = vpop.permute.xlu0 %11523  ;;  %v6335_v38 = vpack.c.bf16 %v16329_v58, %v16326_v30  ;;  %10762 = vmatprep.subr.bf16.mxu1 %v18423_v25  ;;  %v6317_v17 = vsel %vm4069_vm8, %v6301_v39, %v11511_v56  ;;  %v11520_v7 = vunpack.i.l.bf16 %v11519_v31 }
 0xd8d   :  { %v11526_v26 = vunpack.i.h.bf16 %v11524_v62  ;;  %v11525_v53 = vunpack.i.l.bf16 %v11524_v62  ;;  %v6336_v22 = vpack.c.bf16 %v6317_v17, %v6316_v14  ;;  %v6287_v56 = vsel %vm18850_vm2, %v15739_v18, %v11521_v55  ;;  %v18853_v17 = vld [vmem:[#allocation128_spill] sm:$0xff]  ;;  %vm18866_vm2 = vmmov %vm18832_vm0 }
 0xd8e   :  { %6527 = vmatmul.mubr.bf16.gmra.mrb[112].mxu1 %v18845_v20  ;;  %v11529_v35 = vpop.permute.xlu1 %11528  ;;  %v6286_v16 = vsel %vm18851_vm14, %v15744_v1, %v11520_v7  ;;  %v18852_v1 = vld [vmem:[#allocation127_spill] sm:$0xff]  ;;  %vm18867_vm14 = vmmov %vm18832_vm0 }
 0xd8f   :  { %6534 = vmatprep.mubr.bf16.mxu1 %v6333_v37  ;;  %v6239_v49 = vsel %vm18848_vm9, %v5695_v4, %v11526_v26  ;;  %v6238_v2 = vsel %vm18832_vm0, %v5694_v41, %v11525_v53  ;;  %v11531_v27 = vunpack.i.h.bf16 %v11529_v35  ;;  %v11530_v13 = vunpack.i.l.bf16 %v11529_v35  ;;  %vm18863_vm9 = vmmov %vm18832_vm0 }
 0xd90   :  { %v11534_v52 = vpop.permute.xlu0 %11533  ;;  %v5696_v14 = vmul.f32 %v16088_v43, %v18852_v1  ;;  %v5697_v41 = vmul.f32 %v16078_v21, %v18853_v17 }
 0xd91   :  { %v11536_v34 = vunpack.i.h.bf16 %v11534_v52  ;;  %v11535_v48 = vunpack.i.l.bf16 %v11534_v52  ;;  %v6303_v63 = vsel %vm4052_vm12, %v6287_v56, %v11531_v27  ;;  %v6302_v32 = vsel %vm4052_vm12, %v6286_v16, %v11530_v13 }
 0xd92   :  { %v11539_v44 = vpop.permute.xlu1 %11538 }
 0xd93   :  { %v6254_v54 = vsel %vm4052_vm12, %v6238_v2, %v11535_v48  ;;  %v6255_v28 = vsel %vm4052_vm12, %v6239_v49, %v11536_v34  ;;  %v11541_v60 = vunpack.i.h.bf16 %v11539_v44  ;;  %v11540_v3 = vunpack.i.l.bf16 %v11539_v44 }
 0xd94   :  { %v11544_v12 = vpop.permute.xlu0 %11543 }
 0xd95   :  { %v11546_v10 = vunpack.i.h.bf16 %v11544_v12  ;;  %v11545_v57 = vunpack.i.l.bf16 %v11544_v12  ;;  %v6318_v51 = vsel %vm4069_vm8, %v6302_v32, %v11540_v3  ;;  %v6319_v9 = vsel %vm4069_vm8, %v6303_v63, %v11541_v60  ;;  %v18858_v63 = vld [vmem:[#allocation129_spill] sm:$0xff] }
 0xd96   :  { %6535 = vmatmul.mubr.bf16.gmra.mrb[116].mxu1 %v18849_v15  ;;  %v11549_v31 = vpop.permute.xlu1 %11548  ;;  %v6339_v52 = vpack.c.bf16 %v6319_v9, %v6318_v51  ;;  %v5698_v32 = vmul.f32 %v16138_v29, %v18858_v63  ;;  %v18859_v51 = vld [vmem:[#allocation130_spill] sm:$0xff] }
 0xd97   :  { %6542 = vmatprep.mubr.bf16.mxu1 %v6336_v22  ;;  %v6270_v30 = vsel %vm4069_vm8, %v6254_v54, %v11545_v57  ;;  %v6271_v58 = vsel %vm4069_vm8, %v6255_v28, %v11546_v10  ;;  %v11551_v50 = vunpack.i.h.bf16 %v11549_v31  ;;  %v11550_v20 = vunpack.i.l.bf16 %v11549_v31 }
 0xd98   :  { %v11554_v62 = vpop.permute.xlu0 %11553  ;;  %v6338_v37 = vpack.c.bf16 %v6271_v58, %v6270_v30  ;;  %v5699_v9 = vmul.f32 %v16128_v24, %v18859_v51 }
 0xd99   :  { %v11556_v40 = vunpack.i.h.bf16 %v11554_v62  ;;  %v11555_v35 = vunpack.i.l.bf16 %v11554_v62  ;;  %v6289_v48 = vsel %vm18854_vm11, %v15778_v0, %v11551_v50  ;;  %v6288_v44 = vsel %vm18855_vm7, %v15788_v61, %v11550_v20  ;;  %vm18868_vm11 = vmmov %vm18832_vm0 }
 0xd9a   :  { %v11559_v39 = vpop.permute.xlu1 %11558  ;;  %vm18871_vm7 = vmmov %vm18832_vm0 }
 0xd9b   :  { %v11561_v18 = vunpack.i.h.bf16 %v11559_v39  ;;  %v11560_v53 = vunpack.i.l.bf16 %v11559_v39  ;;  %v6241_v55 = vsel %vm18856_vm5, %v5697_v41, %v11556_v40  ;;  %v6240_v7 = vsel %vm18857_vm6, %v5696_v14, %v11555_v35  ;;  %vm18872_vm5 = vmmov %vm18832_vm0 }
 0xd9c   :  { %v11564_v26 = vpop.permute.xlu0 %11563  ;;  %vm18873_vm6 = vmmov %vm18832_vm0 }
 0xd9d   :  { %v11566_v4 = vunpack.i.h.bf16 %v11564_v26  ;;  %v11565_v34 = vunpack.i.l.bf16 %v11564_v26  ;;  %v6305_v21 = vsel %vm4052_vm12, %v6289_v48, %v11561_v18  ;;  %v6304_v12 = vsel %vm4052_vm12, %v6288_v44, %v11560_v53 }
 0xd9e   :  { %6543 = vmatmul.mubr.bf16.gmra.mrb[120].mxu1 %v6335_v38  ;;  %v11569_v22 = vpop.permute.xlu1 %11568 }
 0xd9f   :  { %6550 = vmatprep.mubr.bf16.mxu1 %v6339_v52  ;;  %v11571_v49 = vunpack.i.h.bf16 %v11569_v22  ;;  %v11570_v43 = vunpack.i.l.bf16 %v11569_v22  ;;  %v6256_v0 = vsel %vm4052_vm12, %v6240_v7, %v11565_v34  ;;  %v6257_v13 = vsel %vm4052_vm12, %v6241_v55, %v11566_v4 }
 0xda0   :  { %v11574_v2 = vpop.permute.xlu0 %11573 }
 0xda1   :  { %v11576_v38 = vunpack.i.h.bf16 %v11574_v2  ;;  %v11575_v27 = vunpack.i.l.bf16 %v11574_v2  ;;  %v6320_v61 = vsel %vm4069_vm8, %v6304_v12, %v11570_v43  ;;  %v6321_v10 = vsel %vm4069_vm8, %v6305_v21, %v11571_v49 }
 0xda2   :  { %v11589_v57 = vpop.permute.xlu1 %11588  ;;  %v6342_v54 = vpack.c.bf16 %v6321_v10, %v6320_v61 }
 0xda3   :  { %v6272_v28 = vsel %vm4069_vm8, %v6256_v0, %v11575_v27  ;;  %v6273_v60 = vsel %vm4069_vm8, %v6257_v13, %v11576_v38  ;;  %v11591_v39 = vunpack.i.h.bf16 %v11589_v57  ;;  %v11590_v40 = vunpack.i.l.bf16 %v11589_v57  ;;  %v18864_v57 = vld [vmem:[#allocation131_spill] sm:$0xff] }
 0xda4   :  { %v11579_v3 = vpop.permute.xlu0 %11578  ;;  %v6341_v15 = vpack.c.bf16 %v6273_v60, %v6272_v28  ;;  %v18865_v28 = vld [vmem:[#allocation132_spill] sm:$0xff] }
 0xda5   :  { %v11581_v30 = vunpack.i.h.bf16 %v11579_v3  ;;  %v11580_v58 = vunpack.i.l.bf16 %v11579_v3  ;;  %v5701_v60 = vmul.f32 %v16180_v11, %v18865_v28 }
 0xda6   :  { %6551 = vmatmul.mubr.bf16.gmra.mrb[124].mxu1 %v6338_v37  ;;  %v11604_v31 = vpop.permute.xlu1 %11603 }
 0xda7   :  { %6558 = vmatprep.mubr.bf16.mxu1 %v6342_v54  ;;  %v11606_v16 = vunpack.i.h.bf16 %v11604_v31  ;;  %v11605_v62 = vunpack.i.l.bf16 %v11604_v31  ;;  %v6243_v37 = vsel %vm18860_vm4, %v5699_v9, %v11581_v30  ;;  %v6242_v26 = vsel %vm18861_vm13, %v5698_v32, %v11580_v58  ;;  %vm18875_vm4 = vmmov %vm18832_vm0 }
 0xda8   :  { %v11584_v56 = vpop.permute.xlu0 %11583  ;;  %v5700_v54 = vmul.f32 %v16187_v5, %v18864_v57  ;;  %vm18877_vm13 = vmmov %vm18832_vm0 }
 0xda9   :  { %v11586_v50 = vunpack.i.h.bf16 %v11584_v56  ;;  %v11585_v20 = vunpack.i.l.bf16 %v11584_v56  ;;  %v6291_v14 = vsel %vm18862_vm10, %v15803_v23, %v11606_v16  ;;  %v6290_v29 = vsel %vm18863_vm9, %v15828_v36, %v11605_v62  ;;  %vm18878_vm10 = vmmov %vm18832_vm0 }
 0xdaa   :  { %v11609_v35 = vpop.permute.xlu1 %11608  ;;  %vm18879_vm9 = vmmov %vm18832_vm0 }
 0xdab   :  { %v11611_v53 = vunpack.i.h.bf16 %v11609_v35  ;;  %v11610_v52 = vunpack.i.l.bf16 %v11609_v35  ;;  %v6258_v4 = vsel %vm4052_vm12, %v6242_v26, %v11585_v20  ;;  %v6259_v34 = vsel %vm4052_vm12, %v6243_v37, %v11586_v50 }
 0xdac   :  { %v11594_v18 = vpop.permute.xlu0 %11593 }
 0xdad   :  { %v11596_v41 = vunpack.i.h.bf16 %v11594_v18  ;;  %v11595_v24 = vunpack.i.l.bf16 %v11594_v18  ;;  %v6307_v48 = vsel %vm4052_vm12, %v6291_v14, %v11611_v53  ;;  %v6306_v44 = vsel %vm4052_vm12, %v6290_v29, %v11610_v52 }
 0xdae   :  { %6559 = vmatmul.mubr.bf16.gmra.mrb[128].mxu1 %v6341_v15  ;;  %v11614_v22 = vpop.permute.xlu1 %11613  ;;  %v6322_v55 = vsel %vm4069_vm8, %v6306_v44, %v11590_v40  ;;  %v6323_v7 = vsel %vm4069_vm8, %v6307_v48, %v11591_v39 }
 0xdaf   :  { %v6274_v23 = vsel %vm4069_vm8, %v6258_v4, %v11595_v24  ;;  %v6275_v36 = vsel %vm4069_vm8, %v6259_v34, %v11596_v41  ;;  %v6345_v43 = vpack.c.bf16 %v6323_v7, %v6322_v55  ;;  %v11616_v21 = vunpack.i.h.bf16 %v11614_v22 }
 0xdb0   :  { %v11599_v49 = vpop.permute.xlu0 %11598  ;;  %v6344_v2 = vpack.c.bf16 %v6275_v36, %v6274_v23  ;;  %v11615_v12 = vunpack.i.l.bf16 %v11614_v22 }
 0xdb1   :  { %6566 = vmatprep.mubr.bf16.mxu1 %v6345_v43  ;;  %v11601_v27 = vunpack.i.h.bf16 %v11599_v49  ;;  %v11600_v0 = vunpack.i.l.bf16 %v11599_v49  ;;  %v6293_v31 = vsel %vm18832_vm0, %v15869_v6, %v11616_v21 }
 0xdb2   :  { %v11619_v38 = vpop.permute.xlu1 %11618  ;;  %v6292_v30 = vsel %vm18866_vm2, %v15880_v8, %v11615_v12  ;;  %vm18882_vm2 = vmmov %vm18832_vm0 }
 0xdb3   :  { %v11621_v61 = vunpack.i.h.bf16 %v11619_v38  ;;  %v11620_v10 = vunpack.i.l.bf16 %v11619_v38  ;;  %v6244_v56 = vsel %vm18867_vm14, %v5700_v54, %v11600_v0  ;;  %v6245_v16 = vsel %vm18868_vm11, %v5701_v60, %v11601_v27  ;;  %v16453_v54 = vld [vmem:[%s17656_s1 + $0x8] ss:$0 sm:$0xff]  ;;  %v18869_v60 = vld [vmem:[#allocation12_spill] sm:$0xff]  ;;  %vm18883_vm14 = vmmov %vm18832_vm0 }
 0xdb4   :  { %v11629_v13 = vpop.permute.xlu0 %11628  ;;  %vm18884_vm11 = vmmov %vm18832_vm0 }
 0xdb5   :  { %v11631_v3 = vunpack.i.h.bf16 %v11629_v13  ;;  %v11630_v15 = vunpack.i.l.bf16 %v11629_v13  ;;  %v6309_v9 = vsel %vm4052_vm12, %v6293_v31, %v11621_v61  ;;  %v6308_v11 = vsel %vm4052_vm12, %v6292_v30, %v11620_v10 }
 0xdb6   :  { %6567 = vmatmul.mubr.bf16.gmra.mrb[132].mxu1 %v6344_v2  ;;  %v11624_v58 = vpop.permute.xlu1 %11623  ;;  %v16446_v2 = vld [vmem:[%s17656_s1 + $0x7] ss:$0 sm:$0xff] }
 0xdb7   :  { %v11626_v62 = vunpack.i.h.bf16 %v11624_v58  ;;  %v11625_v32 = vunpack.i.l.bf16 %v11624_v58  ;;  %v6260_v39 = vsel %vm4052_vm12, %v6244_v56, %v11630_v15  ;;  %v6261_v6 = vsel %vm4052_vm12, %v6245_v16, %v11631_v3  ;;  %v18870_v58 = vld [vmem:[#allocation118_spill] sm:$0xff] }
 0xdb8   :  { %v11634_v5 = vpop.permute.xlu0 %11633 }
 0xdb9   :  { %v11636_v50 = vunpack.i.h.bf16 %v11634_v5  ;;  %v11635_v20 = vunpack.i.l.bf16 %v11634_v5  ;;  %v6324_v8 = vsel %vm4069_vm8, %v6308_v11, %v11625_v32  ;;  %v6325_v40 = vsel %vm4069_vm8, %v6309_v9, %v11626_v62 }
 0xdba   :  { %v6348_v35 = vpack.c.bf16 %v6325_v40, %v6324_v8  ;;  %v18874_v40 = vld [vmem:[#allocation133_spill] sm:$0xff] }
 0xdbb   :  { %v6276_v37 = vsel %vm4069_vm8, %v6260_v39, %v11635_v20  ;;  %v6277_v26 = vsel %vm4069_vm8, %v6261_v6, %v11636_v50  ;;  %v10364_v53 = vpop.f32.mrb[104].mxu0 }
 0xdbc   :  { %v6347_v18 = vpack.c.bf16 %v6277_v26, %v6276_v37  ;;  %6574 = vmatprep.mubr.bf16.mxu1 %v6348_v35  ;;  %v6617_v52 = vpop.f32.mrb[105].mxu0 }
 0xdbd   :  { %v10365_v14 = vpop.f32.mrb[106].mxu0 }
 0xdbe   :  { %6575 = vmatmul.mubr.bf16.gmra.mrb[136].mxu1 %v6347_v18  ;;  %v6620_v29 = vpop.f32.mrb[107].mxu0 }
 0xdca   :  { %v16423_v41 = vpop.f32.mrb[108].mxu0 }
 0xdcb   :  { %v6633_v24 = vpop.f32.mrb[109].mxu0 }
 0xdcc   :  { %v16425_v4 = vpop.f32.mrb[110].mxu0 }
 0xdcd   :  { %v6636_v34 = vpop.f32.mrb[111].mxu0 }
 0xdd2   :  { %v16427_v48 = vpop.f32.mrb[112].mxu0 }
 0xdd3   :  { %v16429_v44 = vpop.f32.mrb[113].mxu0 }
 0xdd4   :  { %v16431_v22 = vpop.f32.mrb[114].mxu0 }
 0xdd5   :  { %v16433_v55 = vpop.f32.mrb[115].mxu0 }
 0xdda   :  { %v16435_v7 = vpop.f32.mrb[116].mxu0 }
 0xddb   :  { %v16437_v23 = vpop.f32.mrb[117].mxu0 }
 0xddc   :  { %v16439_v36 = vpop.f32.mrb[118].mxu0 }
 0xddd   :  { %v16441_v49 = vpop.f32.mrb[119].mxu0 }
 0xe59   :  { %v9680_v43 = vpop.f32.mrb[108].mxu1 }
 0xe5a   :  { %v9681_v21 = vpop.f32.mrb[109].mxu1 }
 0xe5b   :  { %v9682_v12 = vadd.f32 %v9681_v21, %v9680_v43  ;;  %v9683_v38 = vpop.f32.mrb[110].mxu1 }
 0xe5c   :  { %v9684_v27 = vpop.f32.mrb[111].mxu1 }
 0xe5d   :  { %v6521_v0 = vadd.f32 %v9682_v12, %v16446_v2  ;;  %v9685_v13 = vadd.f32 %v9684_v27, %v9683_v38 }
 0xe5f   :  { %v6618_v61 = vadd.f32 %v6617_v52, %v6521_v0  ;;  %v6524_v10 = vadd.f32 %v9685_v13, %v16446_v2  ;;  %v18876_v52 = vld [vmem:[#allocation134_spill] sm:$0xff] }
 0xe61   :  { %v6680_v3 = vadd.f32 %v6618_v61, %v18869_v60  ;;  %v6621_v15 = vadd.f32 %v6620_v29, %v6524_v10  ;;  %v9686_v31 = vpop.f32.mrb[112].mxu1  ;;  %v18880_v60 = vld [vmem:[#allocation135_spill] sm:$0xff] }
 0xe62   :  { %v9687_v30 = vpop.f32.mrb[113].mxu1 }
 0xe63   :  { %v6681_v56 = vadd.f32 %v6621_v15, %v18870_v58  ;;  %v9688_v16 = vadd.f32 %v9687_v30, %v9686_v31  ;;  %v9689_v62 = vpop.f32.mrb[114].mxu1  ;;  %v16458_v32 = vadd.f32 %v16453_v54, %v6680_v3  ;;  %v18881_v58 = vld [vmem:[#allocation136_spill] sm:$0xff] }
 0xe64   :  { %v9690_v5 = vpop.f32.mrb[115].mxu1 }
 0xe65   :  { %v16461_v9 = vadd.f32 %v16453_v54, %v6681_v56  ;;  %v6529_v11 = vadd.f32 %v9688_v16, %v16446_v2  ;;  %v9691_v50 = vadd.f32 %v9690_v5, %v9689_v62  ;;  %10386 = vmatprep.mubr.msk.f32.mxu0 %vm18871_vm7, %v16458_v32  ;;  %v6909_v20 = vmul.f32 %v16458_v32, %v16458_v32  ;;  %vm18886_vm7 = vmmov %vm18832_vm0 }
 0xe67   :  { %v6910_v39 = vmul.f32 %v16461_v9, %v16461_v9  ;;  %v6626_v6 = vadd.f32 %v10364_v53, %v6529_v11  ;;  %v6532_v8 = vadd.f32 %v9691_v50, %v16446_v2  ;;  %10387 = vmatmul.mubr.msk.f32.vlgmr.msra.gmra.mrb[102].mxu0 %vm18872_vm5, %v16461_v9  ;;  %10418 = vmatprep.mubr.msk.f32.mxu1 %vm18873_vm6, %v6909_v20  ;;  %vm18888_vm5 = vmmov %vm18832_vm0 }
 0xe68   :  { %vm18889_vm6 = vmmov %vm18832_vm0 }
 0xe69   :  { %v6682_v35 = vadd.f32 %v6626_v6, %v18874_v40  ;;  %v6629_v37 = vadd.f32 %v10365_v14, %v6532_v8  ;;  %v9692_v26 = vpop.f32.mrb[116].mxu1  ;;  %10419 = vmatmul.mubr.msk.f32.vlgmr.msra.gmra.mrb[106].mxu1 %vm18875_vm4, %v6910_v39  ;;  %v18885_v40 = vld [vmem:[#allocation137_spill] sm:$0xff]  ;;  %vm18890_vm4 = vmmov %vm18832_vm0 }
 0xe6a   :  { %v9693_v18 = vpop.f32.mrb[117].mxu1 }
 0xe6b   :  { %v6683_v29 = vadd.f32 %v6629_v37, %v18876_v52  ;;  %v9694_v43 = vadd.f32 %v9693_v18, %v9692_v26  ;;  %v9695_v21 = vpop.f32.mrb[118].mxu1  ;;  %v16478_v53 = vadd.f32 %v16453_v54, %v6682_v35  ;;  %v18887_v52 = vld [vmem:[#allocation138_spill] sm:$0xff] }
 0xe6c   :  { %v9696_v12 = vpop.f32.mrb[119].mxu1 }
 0xe6d   :  { %v6537_v38 = vadd.f32 %v9694_v43, %v16446_v2  ;;  %v9697_v27 = vadd.f32 %v9696_v12, %v9695_v21  ;;  %10389 = vmatprep.mubr.msk.f32.mxu0 %vm18877_vm13, %v16478_v53  ;;  %v16484_v14 = vadd.f32 %v16453_v54, %v6683_v29  ;;  %v6911_v0 = vmul.f32 %v16478_v53, %v16478_v53  ;;  %vm18892_vm13 = vmmov %vm18832_vm0 }
 0xe6f   :  { %v6634_v13 = vadd.f32 %v6633_v24, %v6537_v38  ;;  %v6540_v61 = vadd.f32 %v9697_v27, %v16446_v2  ;;  %10390 = vmatmul.mubr.msk.f32.gmra.mrb[120].mxu0 %vm18878_vm10, %v16484_v14  ;;  %10421 = vmatprep.mubr.msk.f32.mxu1 %vm18879_vm9, %v6911_v0  ;;  %v6912_v10 = vmul.f32 %v16484_v14, %v16484_v14  ;;  %vm18894_vm10 = vmmov %vm18832_vm0 }
 0xe70   :  { %vm18895_vm9 = vmmov %vm18832_vm0 }
 0xe71   :  { %v6684_v3 = vadd.f32 %v6634_v13, %v18880_v60  ;;  %v6637_v15 = vadd.f32 %v6636_v34, %v6540_v61  ;;  %v9698_v31 = vpop.f32.mrb[120].mxu1  ;;  %10422 = vmatmul.mubr.msk.f32.gmra.mrb[140].mxu1 %vm18832_vm0, %v6912_v10  ;;  %v18891_v60 = vld [vmem:[#allocation139_spill] sm:$0xff] }
 0xe72   :  { %v9699_v30 = vpop.f32.mrb[121].mxu1 }
 0xe73   :  { %v6685_v56 = vadd.f32 %v6637_v15, %v18881_v58  ;;  %v9700_v24 = vadd.f32 %v9699_v30, %v9698_v31  ;;  %v9701_v16 = vpop.f32.mrb[122].mxu1  ;;  %v16498_v62 = vadd.f32 %v16453_v54, %v6684_v3  ;;  %v18893_v58 = vld [vmem:[#allocation140_spill] sm:$0xff] }
 0xe74   :  { %v9702_v5 = vpop.f32.mrb[123].mxu1 }
 0xe75   :  { %v6545_v11 = vadd.f32 %v9700_v24, %v16446_v2  ;;  %v9703_v50 = vadd.f32 %v9702_v5, %v9701_v16  ;;  %10392 = vmatprep.mubr.msk.f32.mxu0 %vm18882_vm2, %v16498_v62  ;;  %v16504_v34 = vadd.f32 %v16453_v54, %v6685_v56  ;;  %v6913_v20 = vmul.f32 %v16498_v62, %v16498_v62  ;;  %vm18897_vm2 = vmmov %vm18832_vm0 }
 0xe77   :  { %v6642_v39 = vadd.f32 %v16423_v41, %v6545_v11  ;;  %v6548_v6 = vadd.f32 %v9703_v50, %v16446_v2  ;;  %10393 = vmatmul.mubr.msk.f32.gmra.mrb[122].mxu0 %vm18883_vm14, %v16504_v34  ;;  %10424 = vmatprep.mubr.msk.f32.mxu1 %vm18884_vm11, %v6913_v20  ;;  %v6914_v8 = vmul.f32 %v16504_v34, %v16504_v34  ;;  %vm18899_vm14 = vmmov %vm18832_vm0 }
 0xe78   :  { %vm18900_vm11 = vmmov %vm18832_vm0 }
 0xe79   :  { %v6686_v35 = vadd.f32 %v6642_v39, %v18885_v40  ;;  %v6645_v37 = vadd.f32 %v16425_v4, %v6548_v6  ;;  %v9704_v26 = vpop.f32.mrb[124].mxu1  ;;  %10425 = vmatmul.mubr.msk.f32.gmra.mrb[142].mxu1 %vm18886_vm7, %v6914_v8  ;;  %v18896_v40 = vld [vmem:[#allocation141_spill] sm:$0xff]  ;;  %vm18901_vm7 = vmmov %vm18832_vm0 }
 0xe7a   :  { %v9705_v18 = vpop.f32.mrb[125].mxu1 }
 0xe7b   :  { %v6687_v41 = vadd.f32 %v6645_v37, %v18887_v52  ;;  %v9706_v29 = vadd.f32 %v9705_v18, %v9704_v26  ;;  %v9707_v43 = vpop.f32.mrb[126].mxu1  ;;  %v16520_v21 = vadd.f32 %v16453_v54, %v6686_v35  ;;  %v18898_v52 = vld [vmem:[#allocation142_spill] sm:$0xff] }
 0xe7c   :  { %v9708_v12 = vpop.f32.mrb[127].mxu1 }
 0xe7d   :  { %v6553_v38 = vadd.f32 %v9706_v29, %v16446_v2  ;;  %v9709_v27 = vadd.f32 %v9708_v12, %v9707_v43  ;;  %10395 = vmatprep.mubr.msk.f32.mxu0 %vm18888_vm5, %v16520_v21  ;;  %v16526_v4 = vadd.f32 %v16453_v54, %v6687_v41  ;;  %v6915_v0 = vmul.f32 %v16520_v21, %v16520_v21  ;;  %vm18903_vm5 = vmmov %vm18832_vm0 }
 0xe7f   :  { %v6650_v13 = vadd.f32 %v16429_v44, %v6553_v38  ;;  %v6556_v61 = vadd.f32 %v9709_v27, %v16446_v2  ;;  %10396 = vmatmul.mubr.msk.f32.gmra.mrb[124].mxu0 %vm18889_vm6, %v16526_v4  ;;  %10427 = vmatprep.mubr.msk.f32.mxu1 %vm18890_vm4, %v6915_v0  ;;  %v6916_v10 = vmul.f32 %v16526_v4, %v16526_v4  ;;  %vm18905_vm6 = vmmov %vm18832_vm0 }
 0xe80   :  { %vm18906_vm4 = vmmov %vm18832_vm0 }
 0xe81   :  { %v6688_v3 = vadd.f32 %v6650_v13, %v18891_v60  ;;  %v6653_v15 = vadd.f32 %v16433_v55, %v6556_v61  ;;  %v9710_v31 = vpop.f32.mrb[128].mxu1  ;;  %10428 = vmatmul.mubr.msk.f32.gmra.mrb[144].mxu1 %vm18892_vm13, %v6916_v10  ;;  %v18902_v60 = vld [vmem:[#allocation143_spill] sm:$0xff]  ;;  %vm18907_vm13 = vmmov %vm18832_vm0 }
 0xe82   :  { %v9711_v30 = vpop.f32.mrb[129].mxu1 }
 0xe83   :  { %v6689_v44 = vadd.f32 %v6653_v15, %v18893_v58  ;;  %v9712_v56 = vadd.f32 %v9711_v30, %v9710_v31  ;;  %v9713_v24 = vpop.f32.mrb[130].mxu1  ;;  %v16542_v16 = vadd.f32 %v16453_v54, %v6688_v3  ;;  %v18904_v58 = vld [vmem:[#allocation144_spill] sm:$0xff] }
 0xe84   :  { %v9714_v5 = vpop.f32.mrb[131].mxu1 }
 0xe85   :  { %v6561_v11 = vadd.f32 %v9712_v56, %v16446_v2  ;;  %v9715_v50 = vadd.f32 %v9714_v5, %v9713_v24  ;;  %10398 = vmatprep.mubr.msk.f32.mxu0 %vm18894_vm10, %v16542_v16  ;;  %v16548_v55 = vadd.f32 %v16453_v54, %v6689_v44  ;;  %v6917_v20 = vmul.f32 %v16542_v16, %v16542_v16  ;;  %vm18909_vm10 = vmmov %vm18832_vm0 }
 0xe87   :  { %v6658_v39 = vadd.f32 %v16427_v48, %v6561_v11  ;;  %v6564_v6 = vadd.f32 %v9715_v50, %v16446_v2  ;;  %10399 = vmatmul.mubr.msk.f32.gmra.mrb[126].mxu0 %vm18895_vm9, %v16548_v55  ;;  %10430 = vmatprep.mubr.msk.f32.mxu1 %vm18832_vm0, %v6917_v20  ;;  %v6918_v8 = vmul.f32 %v16548_v55, %v16548_v55  ;;  %vm18911_vm9 = vmmov %vm18832_vm0 }
 0xe89   :  { %v6690_v35 = vadd.f32 %v6658_v39, %v18896_v40  ;;  %v6661_v37 = vadd.f32 %v16431_v22, %v6564_v6  ;;  %v9716_v26 = vpop.f32.mrb[132].mxu1  ;;  %10431 = vmatmul.mubr.msk.f32.gmra.mrb[146].mxu1 %vm18897_vm2, %v6918_v8  ;;  %v18908_v40 = vld [vmem:[#allocation145_spill] sm:$0xff]  ;;  %vm18912_vm2 = vmmov %vm18832_vm0 }
 0xe8a   :  { %v9717_v18 = vpop.f32.mrb[133].mxu1 }
 0xe8b   :  { %v6691_v48 = vadd.f32 %v6661_v37, %v18898_v52  ;;  %v9718_v41 = vadd.f32 %v9717_v18, %v9716_v26  ;;  %v9719_v29 = vpop.f32.mrb[134].mxu1  ;;  %v16564_v43 = vadd.f32 %v16453_v54, %v6690_v35  ;;  %v18910_v26 = vld [vmem:[#allocation146_spill] sm:$0xff] }
 0xe8c   :  { %v9720_v12 = vpop.f32.mrb[135].mxu1 }
 0xe8d   :  { %v6569_v38 = vadd.f32 %v9718_v41, %v16446_v2  ;;  %v9721_v27 = vadd.f32 %v9720_v12, %v9719_v29  ;;  %10401 = vmatprep.mubr.msk.f32.mxu0 %vm18899_vm14, %v16564_v43  ;;  %v16570_v22 = vadd.f32 %v16453_v54, %v6691_v48  ;;  %v6919_v0 = vmul.f32 %v16564_v43, %v16564_v43  ;;  %vm18914_vm14 = vmmov %vm18832_vm0 }
 0xe8e   :  { %v18913_v48 = vmov 0.0  }
 0xe8f   :  { %v6666_v13 = vadd.f32 %v16437_v23, %v6569_v38  ;;  %v6572_v61 = vadd.f32 %v9721_v27, %v16446_v2  ;;  %10402 = vmatmul.mubr.msk.f32.gmra.mrb[128].mxu0 %vm18900_vm11, %v16570_v22  ;;  %10433 = vmatprep.mubr.msk.f32.mxu1 %vm18901_vm7, %v6919_v0  ;;  %v6920_v10 = vmul.f32 %v16570_v22, %v16570_v22  ;;  %vm18919_vm11 = vcmask 15360  }
 0xe90   :  { %vm18920_vm7 = vcmask 64512  }
 0xe91   :  { %v6692_v3 = vadd.f32 %v6666_v13, %v18902_v60  ;;  %v6669_v15 = vadd.f32 %v16441_v49, %v6572_v61  ;;  %10434 = vmatmul.mubr.msk.f32.gmra.mrb[148].mxu1 %vm18903_vm5, %v6920_v10  ;;  %v9722_v31 = vpop.f32.mrb[136].mxu1  ;;  %vm18922_vm5 = vmmov %vm18919_vm11 }
 0xe92   :  { %v9723_v30 = vpop.f32.mrb[137].mxu1 }
 0xe93   :  { %v6693_v23 = vadd.f32 %v6669_v15, %v18904_v58  ;;  %v9724_v44 = vadd.f32 %v9723_v30, %v9722_v31  ;;  %v9725_v56 = vpop.f32.mrb[138].mxu1  ;;  %v16586_v24 = vadd.f32 %v16453_v54, %v6692_v3 }
 0xe94   :  { %v9726_v5 = vpop.f32.mrb[139].mxu1 }
 0xe95   :  { %v6577_v11 = vadd.f32 %v9724_v44, %v16446_v2  ;;  %v9727_v50 = vadd.f32 %v9726_v5, %v9725_v56  ;;  %10404 = vmatprep.mubr.msk.f32.mxu0 %vm18905_vm6, %v16586_v24  ;;  %v16592_v49 = vadd.f32 %v16453_v54, %v6693_v23  ;;  %v6921_v20 = vmul.f32 %v16586_v24, %v16586_v24 }
 0xe96   :  { %vm18923_vm6 = vcmask 1041408  }
 0xe97   :  { %v6674_v39 = vadd.f32 %v16435_v7, %v6577_v11  ;;  %v6580_v6 = vadd.f32 %v9727_v50, %v16446_v2  ;;  %10405 = vmatmul.mubr.msk.f32.gmra.mrb[130].mxu0 %vm18906_vm4, %v16592_v49  ;;  %10436 = vmatprep.mubr.msk.f32.mxu1 %vm18907_vm13, %v6921_v20  ;;  %v6922_v8 = vmul.f32 %v16592_v49, %v16592_v49  ;;  %vm18928_vm4 = vmmov %vm18922_vm5 }
 0xe98   :  { %vm18930_vm13 = vmmov %vm18928_vm4 }
 0xe99   :  { %v6694_v35 = vadd.f32 %v6674_v39, %v18908_v40  ;;  %v6677_v37 = vadd.f32 %v16439_v36, %v6580_v6  ;;  %10437 = vmatmul.mubr.msk.f32.gmra.mrb[150].mxu1 %vm18909_vm10, %v6922_v8 }
 0xe9b   :  { %v6695_v18 = vadd.f32 %v6677_v37, %v18910_v26  ;;  %v16608_v7 = vadd.f32 %v16453_v54, %v6694_v35 }
 0xe9d   :  { %10407 = vmatprep.mubr.msk.f32.mxu0 %vm18911_vm9, %v16608_v7  ;;  %v16613_v2 = vadd.f32 %v16453_v54, %v6695_v18  ;;  %v6923_v52 = vmul.f32 %v16608_v7, %v16608_v7 }
 0xe9f   :  { %10408 = vmatmul.mubr.msk.f32.gmra.mrb[132].mxu0 %vm18832_vm0, %v16613_v2  ;;  %10439 = vmatprep.mubr.msk.f32.mxu1 %vm18912_vm2, %v6923_v52  ;;  %v6924_v36 = vmul.f32 %v16613_v2, %v16613_v2  ;;  %vm18934_vm0 = vmmov %vm18928_vm4 }
 0xea0   :  { %10474 = vmatprep.mubr.msk.f32.mxu0 %vm18607_vm1, %v18913_v48  ;;  %vm18935_vm2 = vmmov %vm18934_vm0 }
 0xea1   :  { %10440 = vmatmul.mubr.msk.f32.gmra.mrb[152].mxu1 %vm18914_vm14, %v6924_v36  ;;  %vm18936_vm14 = vmmov %vm18934_vm0 }
 0xea2   :  { %10509 = vmatprep.mubr.msk.f32.mxu1 %vm18607_vm1, %v18913_v48 }
 0xf3a   :  { %v10388_v54 = vpop.f32.mrb[102].mxu0 }
 0xf3b   :  { %v6830_v41 = vpop.f32.mrb[103].mxu0 }
 0xf3c   :  { %v10739_v29 = vpack.c.bf16 %v10388_v54, %v6830_v41  ;;  %v10420_v12 = vpop.f32.mrb[106].mxu1 }
 0xf3d   :  { %v7039_v38 = vpop.f32.mrb[107].mxu1 }
 0xf3e   :  { %v10763_v27 = vpack.c.bf16 %v10420_v12, %v7039_v38  ;;  %10740 = vmatpush3.bf16.msra.mxu0 %v10739_v29 }
 0xf3f   :  { %10741 = vmatprep.subr.bf16.mxu0 %v18423_v25 }
 0xf40   :  { %10764 = vmatpush3.bf16.msra.mxu1 %v10763_v27 }
 0xf41   :  { %10765 = vmatprep.subr.bf16.mxu1 %v18423_v25 }
 0xf42   :  { %v10391_v0 = vpop.f32.mrb[120].mxu0 }
 0xf43   :  { %v6840_v13 = vpop.f32.mrb[121].mxu0 }
 0xf44   :  { %v10742_v61 = vpack.c.bf16 %v10391_v0, %v6840_v13  ;;  %v10423_v10 = vpop.f32.mrb[140].mxu1 }
 0xf45   :  { %v7049_v60 = vpop.f32.mrb[141].mxu1 }
 0xf46   :  { %v10766_v3 = vpack.c.bf16 %v10423_v10, %v7049_v60  ;;  %10743 = vmatpush3.bf16.msra.mxu0 %v10742_v61 }
 0xf47   :  { %10744 = vmatprep.subr.bf16.mxu0 %v18423_v25 }
 0xf48   :  { %10767 = vmatpush3.bf16.msra.mxu1 %v10766_v3 }
 0xf49   :  { %10768 = vmatprep.subr.bf16.mxu1 %v18423_v25 }
 0xf4a   :  { %v10394_v15 = vpop.f32.mrb[122].mxu0 }
 0xf4b   :  { %v6850_v31 = vpop.f32.mrb[123].mxu0 }
 0xf4c   :  { %v10745_v30 = vpack.c.bf16 %v10394_v15, %v6850_v31  ;;  %v10426_v58 = vpop.f32.mrb[142].mxu1 }
 0xf4d   :  { %v7059_v23 = vpop.f32.mrb[143].mxu1 }
 0xf4e   :  { %v10769_v44 = vpack.c.bf16 %v10426_v58, %v7059_v23  ;;  %10746 = vmatpush3.bf16.msra.mxu0 %v10745_v30  ;;  %v18915_v58 = vmov 1.0   ;;  %v18960_v23 = vld [vmem:[#allocation162_spill] sm:$0xff] }
 0xf4f   :  { %10747 = vmatprep.subr.bf16.mxu0 %v18423_v25 }
 0xf50   :  { %10770 = vmatpush3.bf16.msra.mxu1 %v10769_v44  ;;  %v18962_v44 = vld [vmem:[#allocation163_spill] sm:$0xff] }
 0xf51   :  { %10771 = vmatprep.subr.bf16.mxu1 %v18423_v25 }
 0xf52   :  { %v10397_v56 = vpop.f32.mrb[124].mxu0 }
 0xf53   :  { %v6860_v5 = vpop.f32.mrb[125].mxu0 }
 0xf54   :  { %v10748_v11 = vpack.c.bf16 %v10397_v56, %v6860_v5  ;;  %v10429_v50 = vpop.f32.mrb[144].mxu1 }
 0xf55   :  { %v7069_v20 = vpop.f32.mrb[145].mxu1 }
 0xf56   :  { %v10772_v39 = vpack.c.bf16 %v10429_v50, %v7069_v20  ;;  %10749 = vmatpush3.bf16.msra.mxu0 %v10748_v11 }
 0xf57   :  { %10750 = vmatprep.subr.bf16.mxu0 %v18423_v25 }
 0xf58   :  { %10773 = vmatpush3.bf16.msra.mxu1 %v10772_v39 }
 0xf59   :  { %10774 = vmatprep.subr.bf16.mxu1 %v18423_v25 }
 0xf5a   :  { %v10400_v6 = vpop.f32.mrb[126].mxu0 }
 0xf5b   :  { %v6870_v8 = vpop.f32.mrb[127].mxu0 }
 0xf5c   :  { %v10751_v40 = vpack.c.bf16 %v10400_v6, %v6870_v8  ;;  %v10432_v35 = vpop.f32.mrb[146].mxu1 }
 0xf5d   :  { %v7079_v37 = vpop.f32.mrb[147].mxu1 }
 0xf5e   :  { %v10775_v26 = vpack.c.bf16 %v10432_v35, %v7079_v37  ;;  %10752 = vmatpush3.bf16.msra.mxu0 %v10751_v40 }
 0xf5f   :  { %10753 = vmatprep.subr.bf16.mxu0 %v18423_v25 }
 0xf60   :  { %10776 = vmatpush3.bf16.msra.mxu1 %v10775_v26  ;;  %v9274_v26 = vld [vmem:[%s17656_s1 + $0x9] ss:$0 sm:$0xff] }
 0xf61   :  { %10777 = vmatprep.subr.bf16.mxu1 %v18423_v25 }
 0xf62   :  { %v10403_v18 = vpop.f32.mrb[128].mxu0 }
 0xf63   :  { %v6880_v52 = vpop.f32.mrb[129].mxu0 }
 0xf64   :  { %v10754_v36 = vpack.c.bf16 %v10403_v18, %v6880_v52  ;;  %v10435_v54 = vpop.f32.mrb[148].mxu1 }
 0xf65   :  { %v7089_v41 = vpop.f32.mrb[149].mxu1 }
 0xf66   :  { %v10778_v29 = vpack.c.bf16 %v10435_v54, %v7089_v41  ;;  %10755 = vmatpush3.bf16.msra.mxu0 %v10754_v36  ;;  %v9277_v54 = vld [vmem:[%s17656_s1 + $0xa] ss:$0 sm:$0xff] }
 0xf67   :  { %10756 = vmatprep.subr.bf16.mxu0 %v18423_v25 }
 0xf68   :  { %10779 = vmatpush3.bf16.msra.mxu1 %v10778_v29 }
 0xf69   :  { %10780 = vmatprep.subr.bf16.mxu1 %v18423_v25 }
 0xf6a   :  { %v10406_v12 = vpop.f32.mrb[130].mxu0 }
 0xf6b   :  { %v6890_v38 = vpop.f32.mrb[131].mxu0 }
 0xf6c   :  { %v10757_v27 = vpack.c.bf16 %v10406_v12, %v6890_v38  ;;  %v10438_v0 = vpop.f32.mrb[150].mxu1  ;;  %v18925_v12 = vld [vmem:[#allocation150_spill] sm:$0xff]  ;;  %v18927_v38 = vld [vmem:[#allocation151_spill] sm:$0xff] }
 0xf6d   :  { %v7099_v13 = vpop.f32.mrb[151].mxu1 }
 0xf6e   :  { %v10781_v61 = vpack.c.bf16 %v10438_v0, %v7099_v13  ;;  %10758 = vmatpush3.bf16.msra.mxu0 %v10757_v27  ;;  %v18929_v0 = vld [vmem:[#allocation152_spill] sm:$0xff]  ;;  %v18933_v13 = vld [vmem:[#allocation153_spill] sm:$0xff] }
 0xf6f   :  { %10759 = vmatprep.subr.bf16.mxu0 %v18423_v25 }
 0xf70   :  { %10782 = vmatpush3.bf16.msra.mxu1 %v10781_v61  ;;  %v18937_v61 = vld [vmem:[#allocation154_spill] sm:$0xff] }
 0xf71   :  { %10783 = vmatprep.subr.bf16.mxu1 %v18423_v25  ;;  %v18918_v25 = vld [vmem:[#allocation149_spill] sm:$0xff] }
 0xf72   :  { %v10409_v10 = vpop.f32.mrb[132].mxu0 }
 0xf73   :  { %v6900_v60 = vpop.f32.mrb[133].mxu0 }
 0xf74   :  { %v10760_v3 = vpack.c.bf16 %v10409_v10, %v6900_v60  ;;  %v10441_v15 = vpop.f32.mrb[152].mxu1  ;;  %v18939_v10 = vld [vmem:[#allocation155_spill] sm:$0xff]  ;;  %v18943_v60 = vld [vmem:[#allocation156_spill] sm:$0xff] }
 0xf75   :  { %v7109_v31 = vpop.f32.mrb[153].mxu1 }
 0xf76   :  { %v10784_v30 = vpack.c.bf16 %v10441_v15, %v7109_v31  ;;  %10761 = vmatpush3.bf16.msra.mxu0 %v10760_v3  ;;  %v18945_v3 = vld [vmem:[#allocation157_spill] sm:$0xff]  ;;  %v18949_v15 = vld [vmem:[#allocation158_spill] sm:$0xff]  ;;  %v18951_v31 = vld [vmem:[#allocation159_spill] sm:$0xff] }
 0xf77   :  { %10512 = vmatprep.subr.mxu0 %v18913_v48 }
 0xf78   :  { %10785 = vmatpush3.bf16.msra.mxu1 %v10784_v30  ;;  %v18954_v30 = vld [vmem:[#allocation160_spill] sm:$0xff] }
 0xf79   :  { %10475 = vmatmul.mubr.msk.f32.vlgmr.msra.gmra.mrb[134].mxu0 %vm18611_vm3, %v18915_v58 }
 0xf7a   :  { %10513 = vmatpush3.msk.msra.mxu0 %vm18613_vm15, %v18915_v58  ;;  %10514 = vmatprep.mubr.msk.f32.mxu0 %vm18607_vm1, %v18913_v48 }
 0xf7b   :  { %10510 = vmatmul.mubr.msk.f32.vlgmr.msra.gmra.mrb[154].mxu1 %vm18611_vm3, %v18915_v58  ;;  %10517 = vmatprep.subr.mxu0 %v18913_v48  ;;  %vm18921_vm3 = vmmov %vm18920_vm7 }
 0xf7c   :  { %10550 = vmatprep.mubr.msk.f32.mxu1 %vm18919_vm11, %v18918_v25  ;;  %vm18938_vm11 = vmmov %vm18934_vm0 }
0x104c   :  { %v7184_v56 = vpop.f32.mrb[134].mxu0 }
0x104d   :  { %v7188_v5 = vmul.f32 0.00390625, %v7184_v56  ;;  %v10476_v11 = vpop.f32.mrb[135].mxu0  ;;  %v11917_v56 = vld [vmem:[%s17657_s3 + $0x80] sm:$0xff]  }
0x104e   :  { %v7255_v50 = vpop.f32.mrb[154].mxu1 }
0x104f   :  { %v7260_v20 = vmul.f32 %v7188_v5, %v7188_v5  ;;  %v7259_v39 = vmul.f32 0.00390625, %v7255_v50  ;;  %v10511_v6 = vpop.f32.mrb[155].mxu1 }
0x1051   :  { %v7261_v8 = vsub.f32 %v7259_v39, %v7260_v20 }
0x1053   :  { %v7262_v40 = vmax.f32 %v7261_v8, 0.0 }
0x1055   :  { %v7263_v35 = vadd.f32 1e-05, %v7262_v40 }
0x1057   :  { %12099 = vrsqrt.f32 %v7263_v35 }
0x1061   :  { %v12100_v37 = vpop.eup %12099 }
0x1062   :  { %10515 = vmatmul.mubr.msk.f32.vlgmr.msra.gmra.mrb[136].mxu0 %vm18920_vm7, %v12100_v37  ;;  %vm18940_vm7 = vmmov %vm18934_vm0 }
0x1063   :  { %10518 = vmatpush3.msk.msra.mxu0 %vm18613_vm15, %v18915_v58  ;;  %10519 = vmatprep.mubr.msk.f32.mxu0 %vm18607_vm1, %v18913_v48  ;;  %vm18924_vm1 = vmmov %vm18923_vm6  ;;  %v18956_v58 = vld [vmem:[#allocation161_spill] sm:$0xff] }
0x1064   :  { %vm18926_vm15 = vmmov %vm18922_vm5 }
0x1065   :  { %vm18931_vm10 = vmmov %vm18924_vm1 }
0x1066   :  { %10520 = vmatmul.mubr.msk.f32.vlgmr.msra.gmra.mrb[138].mxu0 %vm18921_vm3, %v7188_v5  ;;  %vm18932_vm9 = vmmov %vm18924_vm1  ;;  %v11918_v5 = vld [vmem:[%s17657_s3 + $0x88] sm:$0xff]  }
0x1067   :  { %10524 = vmatprep.mubr.msk.f32.mxu0 %vm18922_vm5, %v18918_v25  ;;  %vm18941_vm3 = vmmov %vm18934_vm0  ;;  %v18966_v25 = vld [vmem:[#allocation164_spill] sm:$0xff] }
0x1068   :  { %vm18942_vm5 = vmmov %vm18934_vm0 }
0x1135   :  { %v7334_v18 = vpop.f32.mrb[136].mxu0 }
0x1136   :  { %v7342_v52 = vmul.f32 %v9274_v26, %v7334_v18  ;;  %v10516_v36 = vpop.f32.mrb[137].mxu0 }
0x1138   :  { %10522 = vmatprep.subr.msk.mxu0 %vm18923_vm6, %v7342_v52  ;;  %vm18944_vm6 = vmmov %vm18934_vm0 }
0x1139   :  { %v7412_v41 = vpop.f32.mrb[138].mxu0  ;;  %10523 = vmatpush3.msk.msra.mxu0 %vm18924_vm1, %v7342_v52  ;;  %vm18946_vm1 = vmmov %vm18934_vm0 }
0x113a   :  { %v7416_v48 = vmul.f32 %v7412_v41, %v7342_v52  ;;  %v10521_v29 = vpop.f32.mrb[139].mxu0  ;;  %10525 = vmatmul.mubr.msk.f32.vlgmr.msra.gmra.mrb[140].mxu0 %vm18926_vm15, %v18925_v12  ;;  %vm18947_vm15 = vmmov %vm18934_vm0 }
0x113b   :  { %10527 = vmatprep.mubr.msk.f32.mxu0 %vm18928_vm4, %v18927_v38  ;;  %vm18948_vm4 = vmmov %vm18934_vm0 }
0x113c   :  { %v7421_v27 = vsub.f32 %v9277_v54, %v7416_v48 }
0x113e   :  { %10528 = vmatmul.mubr.msk.f32.gmra.mrb[142].mxu0 %vm18930_vm13, %v18929_v0  ;;  %10548 = vmatprep.subr.msk.mxu1 %vm18931_vm10, %v7421_v27  ;;  %vm18950_vm13 = vmmov %vm18934_vm0 }
0x113f   :  { %10549 = vmatpush3.msk.msra.mxu1 %vm18932_vm9, %v7421_v27  ;;  %10530 = vmatprep.mubr.msk.f32.mxu0 %vm18934_vm0, %v18933_v13  ;;  %vm18952_vm10 = vmmov %vm18934_vm0 }
0x1140   :  { %10551 = vmatmul.mubr.msk.f32.vlgmr.msra.gmra.mrb[156].mxu1 %vm18935_vm2, %v18925_v12  ;;  %vm18953_vm9 = vmmov %vm18934_vm0  ;;  %10574 = vmatprep.subr.bf16.mxu1 %v11917_v56 }
0x1141   :  { %10553 = vmatprep.mubr.msk.f32.mxu1 %vm18936_vm14, %v18927_v38  ;;  %vm18955_vm2 = vmmov %vm18934_vm0  ;;  %10575 = vmatpush3.bf16.msra.mxu1 %v11917_v56 }
0x1142   :  { %10531 = vmatmul.mubr.msk.f32.gmra.mrb[144].mxu0 %vm18938_vm11, %v18937_v61  ;;  %vm18957_vm14 = vmmov %vm18934_vm0  ;;  %10576 = vmatprep.subr.bf16.mxu1 %v11918_v5 }
0x1143   :  { %10533 = vmatprep.mubr.msk.f32.mxu0 %vm18940_vm7, %v18939_v10  ;;  %vm18958_vm11 = vmmov %vm18934_vm0 }
0x1144   :  { %10554 = vmatmul.mubr.msk.f32.gmra.mrb[158].mxu1 %vm18941_vm3, %v18929_v0  ;;  %vm18959_vm7 = vmmov %vm18934_vm0 }
0x1145   :  { %10556 = vmatprep.mubr.msk.f32.mxu1 %vm18942_vm5, %v18933_v13  ;;  %vm18961_vm3 = vmmov %vm18934_vm0  ;;  %10577 = vmatpush3.bf16.msra.mxu1 %v11918_v5 }
0x1146   :  { %10534 = vmatmul.mubr.msk.f32.gmra.mrb[146].mxu0 %vm18944_vm6, %v18943_v60  ;;  %vm18963_vm5 = vmmov %vm18934_vm0 }
0x1147   :  { %10536 = vmatprep.mubr.msk.f32.mxu0 %vm18946_vm1, %v18945_v3  ;;  %vm18964_vm6 = vmmov %vm18934_vm0 }
0x1148   :  { %10557 = vmatmul.mubr.msk.f32.gmra.mrb[160].mxu1 %vm18947_vm15, %v18937_v61  ;;  %vm18965_vm1 = vmmov %vm18934_vm0 }
0x1149   :  { %10559 = vmatprep.mubr.msk.f32.mxu1 %vm18948_vm4, %v18939_v10  ;;  %vm18967_vm15 = vmmov %vm18934_vm0 }
0x114a   :  { %10537 = vmatmul.mubr.msk.f32.gmra.mrb[148].mxu0 %vm18950_vm13, %v18949_v15  ;;  %vm18968_vm4 = vmmov %vm18934_vm0 }
0x114b   :  { %10539 = vmatprep.mubr.msk.f32.mxu0 %vm18952_vm10, %v18951_v31  ;;  %vm18969_vm13 = vmmov %vm18934_vm0 }
0x114c   :  { %10560 = vmatmul.mubr.msk.f32.gmra.mrb[162].mxu1 %vm18953_vm9, %v18943_v60  ;;  %vm18970_vm10 = vmmov %vm18934_vm0  ;;  %vm18975_vm9 = vcmp.lt.s32.totalorder %v13026_v45, 7 }
0x114d   :  { %10562 = vmatprep.mubr.msk.f32.mxu1 %vm18934_vm0, %v18945_v3  ;;  %vm18976_vm0 = vmmov %vm18975_vm9 }
0x114e   :  { %10540 = vmatmul.mubr.msk.f32.gmra.mrb[150].mxu0 %vm18955_vm2, %v18954_v30  ;;  %vm18977_vm2 = vmmov %vm18976_vm0 }
0x114f   :  { %10542 = vmatprep.mubr.msk.f32.mxu0 %vm18957_vm14, %v18956_v58  ;;  %vm18980_vm14 = vmmov %vm18976_vm0 }
0x1150   :  { %10563 = vmatmul.mubr.msk.f32.gmra.mrb[164].mxu1 %vm18958_vm11, %v18949_v15  ;;  %vm18981_vm11 = vmmov %vm18976_vm0 }
0x1151   :  { %10565 = vmatprep.mubr.msk.f32.mxu1 %vm18959_vm7, %v18951_v31  ;;  %vm18985_vm7 = vcmask 261120  }
0x1152   :  { %10543 = vmatmul.mubr.msk.f32.gmra.mrb[152].mxu0 %vm18961_vm3, %v18960_v23  ;;  %vm18989_vm3 = vcmp.lt.s32.totalorder %v13026_v45, 1 }
0x1153   :  { %10545 = vmatprep.mubr.msk.f32.mxu0 %vm18963_vm5, %v18962_v44  ;;  %vm18990_vm5 = vmmov %vm18989_vm3 }
0x1154   :  { %10566 = vmatmul.mubr.msk.f32.gmra.mrb[166].mxu1 %vm18964_vm6, %v18954_v30  ;;  %vm18992_vm6 = vmmov %vm18985_vm7 }
0x1155   :  { %10568 = vmatprep.mubr.msk.f32.mxu1 %vm18965_vm1, %v18956_v58  ;;  %vm18994_vm1 = vmmov %vm18989_vm3 }
0x1156   :  { %10546 = vmatmul.mubr.msk.f32.gmra.mrb[154].mxu0 %vm18967_vm15, %v18966_v25  ;;  %vm18997_vm15 = vmmov %vm18976_vm0 }
0x1158   :  { %10569 = vmatmul.mubr.msk.f32.gmra.mrb[168].mxu1 %vm18968_vm4, %v18960_v23  ;;  %vm18998_vm4 = vmmov %vm18976_vm0 }
0x1159   :  { %10571 = vmatprep.mubr.msk.f32.mxu1 %vm18969_vm13, %v18962_v44  ;;  %vm19005_vm13 = vmmov %vm18976_vm0 }
0x115c   :  { %10572 = vmatmul.mubr.msk.f32.gmra.mrb[170].mxu1 %vm18970_vm10, %v18966_v25  ;;  %vm19006_vm10 = vmmov %vm18992_vm6 }
0x120d   :  { %v10526_v11 = vpop.f32.mrb[140].mxu0 }
0x120e   :  { %v7491_v50 = vpop.f32.mrb[141].mxu0  ;;  %v7571_v39 = vmul.f32 %v10526_v11, %v16461_v9 }
0x120f   :  { %v7570_v8 = vmul.f32 %v7491_v50, %v16458_v32 }
0x1211   :  { %v10529_v20 = vpop.f32.mrb[142].mxu0 }
0x1212   :  { %v7501_v6 = vpop.f32.mrb[143].mxu0  ;;  %v7573_v52 = vmul.f32 %v10529_v20, %v16484_v14 }
0x1213   :  { %v10552_v40 = vpop.f32.mrb[156].mxu1  ;;  %v7572_v41 = vmul.f32 %v7501_v6, %v16478_v53 }
0x1214   :  { %v16743_v35 = vadd.f32 %v10552_v40, %v7571_v39  ;;  %v7655_v37 = vpop.f32.mrb[157].mxu1 }
0x1215   :  { %v16745_v26 = vadd.f32 %v7655_v37, %v7570_v8  ;;  %v10532_v18 = vpop.f32.mrb[144].mxu0 }
0x1216   :  { %v9313_v36 = vmul.f32 -1.442695, %v16743_v35  ;;  %v7511_v54 = vpop.f32.mrb[145].mxu0  ;;  %v7575_v27 = vmul.f32 %v10532_v18, %v16504_v34 }
0x1217   :  { %v9312_v48 = vmul.f32 -1.442695, %v16745_v26  ;;  %v10555_v9 = vpop.f32.mrb[158].mxu1  ;;  %v7574_v13 = vmul.f32 %v7511_v54, %v16498_v62 }
0x1218   :  { %12101 = vpow2.f32 %v9313_v36  ;;  %v16751_v29 = vadd.f32 %v10555_v9, %v7573_v52  ;;  %v7665_v32 = vpop.f32.mrb[159].mxu1 }
0x1219   :  { %12103 = vpow2.f32 %v9312_v48  ;;  %v16753_v12 = vadd.f32 %v7665_v32, %v7572_v41  ;;  %v10535_v38 = vpop.f32.mrb[146].mxu0 }
0x121a   :  { %v9315_v14 = vmul.f32 -1.442695, %v16751_v29  ;;  %v7521_v0 = vpop.f32.mrb[147].mxu0  ;;  %v7577_v31 = vmul.f32 %v10535_v38, %v16526_v4 }
0x121b   :  { %v9314_v53 = vmul.f32 -1.442695, %v16753_v12  ;;  %v10558_v61 = vpop.f32.mrb[160].mxu1  ;;  %v7576_v58 = vmul.f32 %v7521_v0, %v16520_v21 }
0x121c   :  { %12105 = vpow2.f32 %v9315_v14  ;;  %v16759_v10 = vadd.f32 %v10558_v61, %v7575_v27  ;;  %v7675_v60 = vpop.f32.mrb[161].mxu1 }
0x121d   :  { %12107 = vpow2.f32 %v9314_v53  ;;  %v16761_v3 = vadd.f32 %v7675_v60, %v7574_v13  ;;  %v10538_v15 = vpop.f32.mrb[148].mxu0 }
0x121e   :  { %v9317_v34 = vmul.f32 -1.442695, %v16759_v10  ;;  %v7531_v30 = vpop.f32.mrb[149].mxu0  ;;  %v7579_v50 = vmul.f32 %v10538_v15, %v16548_v55 }
0x121f   :  { %v9316_v62 = vmul.f32 -1.442695, %v16761_v3  ;;  %v10561_v23 = vpop.f32.mrb[162].mxu1  ;;  %v7578_v21 = vmul.f32 %v7531_v30, %v16542_v16 }
0x1220   :  { %12109 = vpow2.f32 %v9317_v34  ;;  %v16767_v44 = vadd.f32 %v10561_v23, %v7577_v31  ;;  %v7685_v25 = vpop.f32.mrb[163].mxu1 }
0x1221   :  { %12111 = vpow2.f32 %v9316_v62  ;;  %v16769_v56 = vadd.f32 %v7685_v25, %v7576_v58  ;;  %v10541_v5 = vpop.f32.mrb[150].mxu0 }
0x1222   :  { %v12102_v11 = vpop.eup %12101  ;;  %v9319_v4 = vmul.f32 -1.442695, %v16767_v44  ;;  %v7541_v20 = vpop.f32.mrb[151].mxu0  ;;  %v7581_v41 = vmul.f32 %v10541_v5, %v16570_v22 }
0x1223   :  { %v12104_v39 = vpop.eup %12103  ;;  %v7799_v6 = vadd.f32 1.0, %v12102_v11  ;;  %v9318_v8 = vmul.f32 -1.442695, %v16769_v56  ;;  %v10564_v40 = vpop.f32.mrb[164].mxu1  ;;  %v7580_v38 = vmul.f32 %v7541_v20, %v16564_v43 }
0x1224   :  { %v7798_v37 = vadd.f32 1.0, %v12104_v39  ;;  %12113 = vpow2.f32 %v9319_v4  ;;  %v16775_v18 = vadd.f32 %v10564_v40, %v7579_v50  ;;  %v7695_v52 = vpop.f32.mrb[165].mxu1 }
0x1225   :  { %12115 = vrcp.f32 %v7799_v6  ;;  %v16777_v36 = vadd.f32 %v7695_v52, %v7578_v21  ;;  %v10544_v54 = vpop.f32.mrb[152].mxu0 }
0x1226   :  { %v12106_v55 = vpop.eup %12105  ;;  %12117 = vrcp.f32 %v7798_v37  ;;  %v9321_v48 = vmul.f32 -1.442695, %v16775_v18  ;;  %v7551_v9 = vpop.f32.mrb[153].mxu0  ;;  %v7583_v15 = vmul.f32 %v10544_v54, %v16592_v49 }
0x1227   :  { %v12108_v16 = vpop.eup %12107  ;;  %v7801_v32 = vadd.f32 1.0, %v12106_v55  ;;  %12119 = vpow2.f32 %v9318_v8  ;;  %v9320_v27 = vmul.f32 -1.442695, %v16777_v36  ;;  %v10567_v14 = vpop.f32.mrb[166].mxu1  ;;  %v7582_v58 = vmul.f32 %v7551_v9, %v16586_v24 }
0x1228   :  { %v7800_v0 = vadd.f32 1.0, %v12108_v16  ;;  %12121 = vpow2.f32 %v9321_v48  ;;  %v16783_v13 = vadd.f32 %v10567_v14, %v7581_v41  ;;  %v7705_v53 = vpop.f32.mrb[167].mxu1 }
0x1229   :  { %12123 = vrcp.f32 %v7801_v32  ;;  %v16785_v61 = vadd.f32 %v7705_v53, %v7580_v38  ;;  %v10547_v22 = vpop.f32.mrb[154].mxu0 }
0x122a   :  { %v12110_v60 = vpop.eup %12109  ;;  %12125 = vrcp.f32 %v7800_v0  ;;  %v9323_v31 = vmul.f32 -1.442695, %v16783_v13  ;;  %v7561_v34 = vpop.f32.mrb[155].mxu0  ;;  %v7585_v4 = vmul.f32 %v10547_v22, %v16613_v2 }
0x122b   :  { %v12112_v43 = vpop.eup %12111  ;;  %v7803_v30 = vadd.f32 1.0, %v12110_v60  ;;  %12127 = vpow2.f32 %v9320_v27  ;;  %v9322_v62 = vmul.f32 -1.442695, %v16785_v61  ;;  %v10570_v23 = vpop.f32.mrb[168].mxu1  ;;  %v7584_v24 = vmul.f32 %v7561_v34, %v16608_v7 }
0x122c   :  { %v7802_v25 = vadd.f32 1.0, %v12112_v43  ;;  %12129 = vpow2.f32 %v9323_v31  ;;  %v16791_v5 = vadd.f32 %v10570_v23, %v7583_v15  ;;  %v7715_v11 = vpop.f32.mrb[169].mxu1  ;;  %v18971_v31 = vld [vmem:[#allocation59_spill] sm:$0xff] }
0x122d   :  { %12131 = vrcp.f32 %v7803_v30  ;;  %v16793_v50 = vadd.f32 %v7715_v11, %v7582_v58  ;;  %v18972_v58 = vld [vmem:[#allocation88_spill] sm:$0xff] }
0x122e   :  { %v12114_v49 = vpop.eup %12113  ;;  %12133 = vrcp.f32 %v7802_v25  ;;  %v9325_v20 = vmul.f32 -1.442695, %v16791_v5  ;;  %v18973_v25 = vld [vmem:[#allocation23_spill] sm:$0xff] }
0x122f   :  { %v12116_v39 = vpop.eup %12115  ;;  %v7805_v6 = vadd.f32 1.0, %v12114_v49  ;;  %12135 = vpow2.f32 %v9322_v62  ;;  %v9324_v21 = vmul.f32 -1.442695, %v16793_v50  ;;  %v10573_v8 = vpop.f32.mrb[170].mxu1  ;;  %v18974_v49 = vld [vmem:[#allocation6_spill] sm:$0xff] }
0x1230   :  { %v12118_v40 = vpop.eup %12117  ;;  %12137 = vpow2.f32 %v9325_v20  ;;  %v16799_v37 = vadd.f32 %v10573_v8, %v7585_v4  ;;  %v7725_v52 = vpop.f32.mrb[171].mxu1  ;;  %v16802_v55 = vmul.f32 %v12116_v39, %v16743_v35 }
0x1231   :  { %v12120_v54 = vpop.eup %12119  ;;  %v16805_v2 = vmul.f32 %v12118_v40, %v16745_v26  ;;  %12139 = vrcp.f32 %v7805_v6  ;;  %v16807_v41 = vadd.f32 %v7725_v52, %v7584_v24 }
0x1232   :  { %v12122_v48 = vpop.eup %12121  ;;  %v7804_v7 = vadd.f32 1.0, %v12120_v54  ;;  %12141 = vpow2.f32 %v9324_v21  ;;  %v9327_v32 = vmul.f32 -1.442695, %v16799_v37  ;;  %v7963_v26 = vrot.slane %v16802_v55, 1 }
0x1233   :  { %v12124_v9 = vpop.eup %12123  ;;  %v7807_v16 = vadd.f32 1.0, %v12122_v48  ;;  %v9326_v35 = vmul.f32 -1.442695, %v16807_v41  ;;  %v18012_v0 = vrot.slane %v16805_v2, 1  ;;  %v7948_v62 = vmul.f32 %v16802_v55, %v18972_v58 }
0x1234   :  { %v12126_v38 = vpop.eup %12125  ;;  %v16811_v27 = vmul.f32 %v12124_v9, %v16751_v29  ;;  %12143 = vrcp.f32 %v7804_v7  ;;  %v8058_v29 = vmul.f32 %v16802_v55, %v18971_v31  ;;  %v19040_v57 = vrot.slane %v16805_v2, 1 }
0x1235   :  { %v12128_v14 = vpop.eup %12127  ;;  %v16817_v53 = vmul.f32 %v12126_v38, %v16753_v12  ;;  %12145 = vrcp.f32 %v7807_v16  ;;  %v7899_v16 = vrot.slane %v16802_v55, 7 }
0x1236   :  { %v12130_v22 = vpop.eup %12129  ;;  %v7965_v60 = vrot.slane %v16811_v27, 1  ;;  %v7806_v15 = vadd.f32 1.0, %v12128_v14  ;;  %12147 = vpow2.f32 %v9327_v32  ;;  %v18978_v32 = vld [vmem:[#allocation63_spill] sm:$0xff] }
0x1237   :  { %v12132_v34 = vpop.eup %12131  ;;  %v7964_v43 = vrot.slane %v16817_v53, 1  ;;  %v7809_v30 = vadd.f32 1.0, %v12130_v22  ;;  %12149 = vpow2.f32 %v9326_v35  ;;  %v8059_v11 = vmul.f32 %v16817_v53, %v18973_v25  ;;  %v18979_v35 = vld [vmem:[#allocation28_spill] sm:$0xff] }
0x1238   :  { %v12134_v23 = vpop.eup %12133  ;;  %v16826_v12 = vmul.f32 %v12132_v34, %v16759_v10  ;;  %12151 = vrcp.f32 %v7806_v15  ;;  %v7949_v4 = vmul.f32 %v16817_v53, %v18974_v49  ;;  %v18984_v49 = vld [vmem:[#allocation94_spill] sm:$0xff] }
0x1239   :  { %v12136_v20 = vpop.eup %12135  ;;  %v16833_v39 = vmul.f32 %v12134_v23, %v16761_v3  ;;  %12153 = vrcp.f32 %v7809_v30  ;;  %v16837_v6 = vsel %vm18975_vm9, %v7964_v43, %v7965_v60  ;;  %v7991_v10 = vsel %vm18976_vm0, %v7963_v26, %v7964_v43  ;;  %v18982_v30 = vld [vmem:[#allocation16_spill] sm:$0xff]  ;;  %vm19007_vm9 = vmmov %vm18976_vm0 }
0x123a   :  { %v12138_v24 = vpop.eup %12137  ;;  %v7967_v21 = vrot.slane %v16826_v12, 1  ;;  %v7808_v8 = vadd.f32 1.0, %v12136_v20  ;;  %v11637_v40 = vpack.i.bf16 %v8059_v11, %v8058_v29  ;;  %v11642_v7 = vpack.i.bf16 %v7949_v4, %v7948_v62  ;;  %v11919_v62 = vld [vmem:[%s17657_s3 + $0x40] sm:$0xff]  }
0x123b   :  { %v12140_v52 = vpop.eup %12139  ;;  %v7966_v54 = vrot.slane %v16833_v39, 1  ;;  %v7811_v48 = vadd.f32 1.0, %v12138_v24  ;;  %v16847_v3 = vsel %vm18977_vm2, %v18012_v0, %v7963_v26  ;;  %v8074_v38 = vmul.f32 %v7991_v10, %v18978_v32  ;;  %v18983_v11 = vld [vmem:[#allocation42_spill] sm:$0xff]  ;;  %9850 = vmatprep.subr.bf16.mxu0 %v11919_v62  ;;  %v19011_v0 = vld [vmem:[#allocation44_spill] sm:$0xff]  ;;  %vm19015_vm2 = vmmov %vm18976_vm0 }
0x123c   :  { %v12142_v9 = vpop.eup %12141  ;;  %12155 = vrcp.f32 %v7808_v8  ;;  %11638 = vrot.lane.b32.xlu1 %v11637_v40, %s12202_s29  ;;  %v8075_v14 = vmul.f32 %v16837_v6, %v18979_v35  ;;  %11643 = vrot.lane.b32.xlu0 %v11642_v7, %s12196_s18  ;;  %v7900_v29 = vrot.slane %v16817_v53, 7  ;;  %v16867_v34 = vmul.f32 %v12140_v52, %v16767_v44  ;;  %v18986_v8 = vld [vmem:[#allocation9_spill] sm:$0xff] }
0x123d   :  { %v16858_v22 = vsel %vm18980_vm14, %v7966_v54, %v7967_v21  ;;  %v16862_v26 = vsel %vm18981_vm11, %v7965_v60, %v7966_v54  ;;  %12157 = vrcp.f32 %v7811_v48  ;;  %v7810_v15 = vadd.f32 1.0, %v12142_v9  ;;  %v11920_v60 = vld [vmem:[%s17657_s3] sm:$0xff]   ;;  %v18987_v52 = vld [vmem:[#allocation33_spill] sm:$0xff]  ;;  %vm19017_vm14 = vmmov %vm18992_vm6 }
0x123e   :  { %v12144_v31 = vpop.eup %12143  ;;  %v8572_v43 = vpack.c.bf16 %v8075_v14, %v8074_v38  ;;  %v8026_v58 = vmul.f32 %v16847_v3, %v18982_v30  ;;  %v8027_v44 = vmul.f32 %v7991_v10, %v18983_v11  ;;  %v7996_v4 = vmul.f32 %v7991_v10, %v18984_v49  ;;  %v18988_v48 = vld [vmem:[#allocation34_spill] sm:$0xff]  ;;  %9851 = vmatpush3.bf16.msra.mxu0 %v11920_v60  ;;  %v18991_v60 = vld [vmem:[#allocation57_spill] sm:$0xff]  ;;  %vm19020_vm11 = vmmov %vm18994_vm1 }
0x123f   :  { %v12146_v23 = vpop.eup %12145  ;;  %v16878_v25 = vmul.f32 %v12144_v31, %v16769_v56  ;;  %12159 = vrcp.f32 %v7810_v15  ;;  %v18011_v24 = vrot.slane %v16805_v2, 7  ;;  %v7997_v40 = vmul.f32 %v16837_v6, %v18986_v8 }
0x1240   :  { %v12148_v20 = vpop.eup %12147  ;;  %10578 = vmatprep.mubr.msk.bf16.mxu1 %vm18985_vm7, %v8572_v43  ;;  %v8076_v54 = vmul.f32 %v16862_v26, %v18987_v52  ;;  %v8077_v56 = vmul.f32 %v16858_v22, %v18988_v48  ;;  %v18013_v9 = vrot.slane %v16811_v27, 7  ;;  %v16892_v32 = vmul.f32 %v12146_v23, %v16775_v18  ;;  %v11921_v23 = vld [vmem:[%s17657_s3 + $0x48] sm:$0xff]   ;;  %vm19024_vm7 = vmmov %vm18994_vm1 }
0x1241   :  { %v12150_v7 = vpop.eup %12149  ;;  %v7813_v10 = vadd.f32 1.0, %v12148_v20  ;;  %v11647_v38 = vpack.i.bf16 %v8027_v44, %v8026_v58  ;;  %v7969_v14 = vrot.slane %v16867_v34, 1  ;;  %v7968_v15 = vrot.slane %v16878_v25, 1  ;;  %v11922_v44 = vld [vmem:[%s17657_s3 + $0x8] sm:$0xff]   ;;  %9852 = vmatprep.subr.bf16.mxu0 %v11921_v23 }
0x1242   :  { %v12152_v35 = vpop.eup %12151  ;;  %v7812_v31 = vadd.f32 1.0, %v12150_v7  ;;  %v11657_v43 = vpack.i.bf16 %v7997_v40, %v7996_v4  ;;  %v8575_v18 = vpack.c.bf16 %v8077_v56, %v8076_v54  ;;  %v16902_v58 = vsel %vm18989_vm3, %v7899_v16, %v7900_v29  ;;  %v18993_v4 = vld [vmem:[#allocation19_spill] sm:$0xff]  ;;  %v18995_v54 = vld [vmem:[#allocation14_spill] sm:$0xff]  ;;  %v18996_v56 = vld [vmem:[#allocation17_spill] sm:$0xff]  ;;  %9853 = vmatpush3.bf16.msra.mxu0 %v11922_v44 }
0x1243   :  { %v12154_v30 = vpop.eup %12153  ;;  %v16897_v11 = vmul.f32 %v12152_v35, %v16777_v36  ;;  %12161 = vrcp.f32 %v7813_v10  ;;  %11648 = vrot.lane.b32.xlu1 %v11647_v38, %s12196_s18  ;;  %v16909_v62 = vsel %vm18990_vm5, %v18011_v24, %v7899_v16  ;;  %v8043_v36 = vmul.f32 %v16902_v58, %v18991_v60  ;;  %v19001_v44 = vld [vmem:[#allocation61_spill] sm:$0xff]  ;;  %v19010_v24 = vld [vmem:[#allocation18_spill] sm:$0xff]  ;;  %v19012_v23 = vld [vmem:[#allocation103_spill] sm:$0xff] }
0x1244   :  { %12163 = vrcp.f32 %v7812_v31  ;;  %11658 = vrot.lane.b32.xlu0 %v11657_v43, %s12203_s8  ;;  %v18014_v49 = vrot.slane %v16892_v32, 1  ;;  %10579 = vmatmul.mubr.msk.bf16.vlgmr.msra.gmra.mrb[172].mxu1 %vm18992_vm6, %v8575_v18  ;;  %v8042_v20 = vmul.f32 %v16909_v62, %v18993_v4  ;;  %v16927_v16 = vsel %vm18994_vm1, %v7900_v29, %v18013_v9  ;;  %v19000_v18 = vld [vmem:[#allocation62_spill] sm:$0xff]  ;;  %vm19027_vm3 = vmmov %vm18976_vm0 }
0x1245   :  { %v7970_v40 = vrot.slane %v16897_v11, 1  ;;  %v16931_v52 = vmul.f32 %v12154_v30, %v16783_v13  ;;  %v8012_v48 = vmul.f32 %v16902_v58, %v18995_v54  ;;  %v8013_v7 = vmul.f32 %v16927_v16, %v18996_v56  ;;  %v18999_v30 = vld [vmem:[#allocation70_spill] sm:$0xff]  ;;  %vm19028_vm5 = vmmov %vm18976_vm0 }
0x1246   :  { %v12156_v8 = vpop.eup %12155  ;;  %v11652_v35 = vpack.i.bf16 %v8043_v36, %v8042_v20  ;;  %v16942_v29 = vsel %vm18997_vm15, %v7968_v15, %v7969_v14  ;;  %v16948_v13 = vsel %vm18998_vm4, %v7967_v21, %v7968_v15  ;;  %v11923_v36 = vld [vmem:[%s17657_s3 + $0x50] sm:$0xff]   ;;  %v8060_v4 = vmul.f32 %v16811_v27, %v19001_v44  ;;  %v19002_v20 = vld [vmem:[#allocation25_spill] sm:$0xff]  ;;  %vm19034_vm1 = vmmov %vm18976_vm0 }
0x1247   :  { %v12158_v10 = vpop.eup %12157  ;;  %v16938_v38 = vmul.f32 %v12156_v8, %v16785_v61  ;;  %v11662_v43 = vpack.i.bf16 %v8013_v7, %v8012_v48  ;;  %v8078_v61 = vmul.f32 %v16948_v13, %v18999_v30  ;;  %v8079_v60 = vmul.f32 %v16942_v29, %v19000_v18  ;;  %v11924_v21 = vld [vmem:[%s17657_s3 + $0x10] sm:$0xff]   ;;  %9854 = vmatprep.subr.bf16.mxu0 %v11923_v36  ;;  %v19003_v30 = vld [vmem:[#allocation30_spill] sm:$0xff]  ;;  %v19004_v18 = vld [vmem:[#allocation99_spill] sm:$0xff] }
0x1248   :  { %v16951_v31 = vmul.f32 %v12158_v10, %v16791_v5  ;;  %v7902_v5 = vrot.slane %v16833_v39, 7  ;;  %11653 = vrot.lane.b32.xlu1 %v11652_v35, %s12203_s8  ;;  %v8061_v8 = vmul.f32 %v16833_v39, %v19002_v20  ;;  %v7973_v54 = vrot.slane %v16931_v52, 1  ;;  %9855 = vmatpush3.bf16.msra.mxu0 %v11924_v21  ;;  %v19008_v36 = vld [vmem:[#allocation69_spill] sm:$0xff]  ;;  %vm19035_vm15 = vmmov %vm18976_vm0 }
0x1249   :  { %v12160_v15 = vpop.eup %12159  ;;  %v7972_v48 = vrot.slane %v16938_v38, 1  ;;  %11663 = vrot.lane.b32.xlu0 %v11662_v43, %s12202_s29  ;;  %v8578_v7 = vpack.c.bf16 %v8079_v60, %v8078_v61  ;;  %v7950_v35 = vmul.f32 %v16811_v27, %v19003_v30  ;;  %v7951_v44 = vmul.f32 %v16833_v39, %v19004_v18  ;;  %v11926_v21 = vld [vmem:[%s17657_s3 + $0x18] sm:$0xff]   ;;  %v19009_v30 = vld [vmem:[#allocation67_spill] sm:$0xff]  ;;  %vm19041_vm4 = vmmov %vm18976_vm0 }
0x124a   :  { %v16973_v56 = vmul.f32 %v12160_v15, %v16793_v50  ;;  %v11667_v10 = vpack.i.bf16 %v8061_v8, %v8060_v4  ;;  %v16984_v20 = vsel %vm19005_vm13, %v7970_v40, %v18014_v49  ;;  %v11925_v50 = vld [vmem:[%s17657_s3 + $0x58] sm:$0xff]   ;;  %v7975_v43 = vrot.slane %v16951_v31, 1  ;;  %v19013_v49 = vld [vmem:[#allocation38_spill] sm:$0xff]  ;;  %vm19042_vm13 = vmmov %vm18992_vm6 }
0x124b   :  { %10582 = vmatprep.mubr.msk.bf16.mxu1 %vm19006_vm10, %v8578_v7  ;;  %v16994_v60 = vsel %vm19007_vm9, %v7969_v14, %v7970_v40  ;;  %v8081_v15 = vmul.f32 %v16984_v20, %v19008_v36  ;;  %v11672_v8 = vpack.i.bf16 %v7951_v44, %v7950_v35  ;;  %v8028_v7 = vmul.f32 %v16837_v6, %v19010_v24  ;;  %vm19045_vm10 = vmmov %vm19024_vm7 }
0x124c   :  { %v7974_v61 = vrot.slane %v16973_v56, 1  ;;  %11668 = vrot.lane.b32.xlu1 %v11667_v10, %s12202_s29  ;;  %v8080_v18 = vmul.f32 %v16994_v60, %v19009_v30  ;;  %v8029_v14 = vmul.f32 %v16862_v26, %v19011_v0  ;;  %v7998_v9 = vmul.f32 %v16862_v26, %v19012_v23  ;;  %9856 = vmatprep.subr.bf16.mxu0 %v11925_v50  ;;  %v19016_v23 = vld [vmem:[#allocation80_spill] sm:$0xff]  ;;  %v11928_v50 = vld [vmem:[%s17657_s3 + $0x20] sm:$0xff]   ;;  %vm19047_vm9 = vmmov %vm18992_vm6 }
0x124d   :  { %v12162_v4 = vpop.eup %12161  ;;  %v7999_v10 = vmul.f32 %v16858_v22, %v19013_v49  ;;  %v17017_v35 = vsel %vm18976_vm0, %v7972_v48, %v7973_v54  ;;  %11673 = vrot.lane.b32.xlu0 %v11672_v8, %s12196_s18  ;;  %9857 = vmatpush3.bf16.msra.mxu0 %v11926_v21  ;;  %v19019_v21 = vrot.slane %v16811_v27, 7  ;;  %vm19056_vm0 = vmmov %vm19024_vm7 }
0x124e   :  { %v12164_v40 = vpop.eup %12163  ;;  %v17009_v36 = vmul.f32 %v12162_v4, %v16799_v37  ;;  %v8581_v0 = vpack.c.bf16 %v8081_v15, %v8080_v18  ;;  %v11677_v24 = vpack.i.bf16 %v8029_v14, %v8028_v7  ;;  %v19014_v37 = vrot.slane %v16892_v32, 1  ;;  %v19018_v4 = vld [vmem:[#allocation96_spill] sm:$0xff]  ;;  %v19022_v14 = vld [vmem:[#allocation22_spill] sm:$0xff] }
0x124f   :  { %v17020_v6 = vmul.f32 %v12164_v40, %v16807_v41  ;;  %v11927_v41 = vld [vmem:[%s17657_s3 + $0x60] sm:$0xff]   ;;  %v8083_v8 = vmul.f32 %v17017_v35, %v19018_v4  ;;  %v17047_v30 = vsel %vm19020_vm11, %v19019_v21, %v7902_v5  ;;  %v19021_v18 = vld [vmem:[#allocation20_spill] sm:$0xff]  ;;  %v17066_v21 = vsel %vm19027_vm3, %v7974_v61, %v7975_v43  ;;  %vm19062_vm11 = vmmov %vm19056_vm0 }
0x1250   :  { %v17027_v26 = vsel %vm19015_vm2, %v19014_v37, %v7972_v48  ;;  %v7977_v49 = vrot.slane %v17009_v36, 1  ;;  %10583 = vmatmul.mubr.msk.bf16.gmra.mrb[176].mxu1 %vm19017_vm14, %v8581_v0  ;;  %11678 = vrot.lane.b32.xlu1 %v11677_v24, %s12196_s18  ;;  %v11687_v48 = vpack.i.bf16 %v7999_v10, %v7998_v9  ;;  %v8044_v7 = vmul.f32 %v16927_v16, %v19021_v18  ;;  %v19025_v10 = vld [vmem:[#allocation21_spill] sm:$0xff]  ;;  %vm19057_vm2 = vmmov %vm18992_vm6 }
0x1251   :  { %v8082_v44 = vmul.f32 %v17027_v26, %v19016_v23  ;;  %v7976_v15 = vrot.slane %v17020_v6, 1  ;;  %v8045_v40 = vmul.f32 %v17047_v30, %v19022_v14  ;;  %v19023_v0 = vrot.slane %v16826_v12, 7  ;;  %9858 = vmatprep.subr.bf16.mxu0 %v11927_v41  ;;  %v19026_v23 = vld [vmem:[#allocation43_spill] sm:$0xff]  ;;  %v19029_v14 = vld [vmem:[#allocation98_spill] sm:$0xff]  ;;  %vm19059_vm14 = vmmov %vm19056_vm0 }
0x1252   :  { %v8014_v24 = vmul.f32 %v17047_v30, %v19025_v10  ;;  %11688 = vrot.lane.b32.xlu0 %v11687_v48, %s12203_s8  ;;  %v17070_v18 = vsel %vm19028_vm5, %v7973_v54, %v7974_v61  ;;  %v19030_v10 = vld [vmem:[#allocation100_spill] sm:$0xff]  ;;  %9859 = vmatpush3.bf16.msra.mxu0 %v11928_v50  ;;  %v7904_v48 = vrot.slane %v16878_v25, 7  ;;  %vm19076_vm3 = vmmov %vm19056_vm0 }
0x1253   :  { %v17057_v9 = vsel %vm19024_vm7, %v7902_v5, %v19023_v0  ;;  %v8584_v37 = vpack.c.bf16 %v8083_v8, %v8082_v44  ;;  %v11682_v5 = vpack.i.bf16 %v8045_v40, %v8044_v7  ;;  %v8084_v0 = vmul.f32 %v17070_v18, %v19029_v14  ;;  %v11929_v44 = vld [vmem:[%s17657_s3 + $0x68] sm:$0xff]   ;;  %v19032_v61 = vld [vmem:[#allocation36_spill] sm:$0xff]  ;;  %v19033_v14 = vld [vmem:[#allocation66_spill] sm:$0xff] }
0x1254   :  { %v8015_v4 = vmul.f32 %v17057_v9, %v19026_v23  ;;  %v8085_v41 = vmul.f32 %v17066_v21, %v19030_v10  ;;  %v19031_v23 = vld [vmem:[#allocation58_spill] sm:$0xff]  ;;  %v7953_v7 = vmul.f32 %v16878_v25, %v19032_v61  ;;  %v8062_v50 = vmul.f32 %v16826_v12, %v19033_v14  ;;  %9860 = vmatprep.subr.bf16.mxu0 %v11929_v44  ;;  %v19046_v44 = vld [vmem:[#allocation47_spill] sm:$0xff]  ;;  %vm19073_vm7 = vmmov %vm19056_vm0 }
0x1255   :  { %10586 = vmatprep.mubr.msk.bf16.mxu1 %vm18992_vm6, %v8584_v37  ;;  %v8063_v54 = vmul.f32 %v16878_v25, %v19031_v23  ;;  %11683 = vrot.lane.b32.xlu1 %v11682_v5, %s12203_s8  ;;  %v17090_v10 = vsel %vm19034_vm1, %v7976_v15, %v7977_v49  ;;  %v17094_v37 = vsel %vm19035_vm15, %v7975_v43, %v7976_v15  ;;  %v19037_v23 = vld [vmem:[#allocation86_spill] sm:$0xff]  ;;  %v11930_v15 = vld [vmem:[%s17657_s3 + $0x28] sm:$0xff]   ;;  %vm19089_vm5 = vmmov %vm19056_vm0 }
0x1256   :  { %v11692_v8 = vpack.i.bf16 %v8015_v4, %v8014_v24  ;;  %v8587_v40 = vpack.c.bf16 %v8085_v41, %v8084_v0  ;;  %v19036_v24 = vld [vmem:[#allocation101_spill] sm:$0xff]  ;;  %v8086_v5 = vmul.f32 %v17094_v37, %v19037_v23  ;;  %v19039_v14 = vld [vmem:[#allocation46_spill] sm:$0xff]  ;;  %v17109_v43 = vsel %vm19041_vm4, %v7977_v49, %v19040_v57  ;;  %v11931_v57 = vld [vmem:[%s17657_s3 + $0x70] sm:$0xff]   ;;  %9861 = vmatpush3.bf16.msra.mxu0 %v11930_v15 }
0x1257   :  { %v7952_v4 = vmul.f32 %v16826_v12, %v19036_v24  ;;  %v19038_v0 = vld [vmem:[#allocation117_spill] sm:$0xff]  ;;  %v11697_v61 = vpack.i.bf16 %v8063_v54, %v8062_v50  ;;  %v8031_v28 = vmul.f32 %v16948_v13, %v19039_v14  ;;  %v19044_v50 = vrot.slane %v16826_v12, 7  ;;  %v19052_v49 = vld [vmem:[#allocation91_spill] sm:$0xff]  ;;  %9862 = vmatprep.subr.bf16.mxu0 %v11931_v57  ;;  %vm19092_vm6 = vmmov %vm19056_vm0 }
0x1258   :  { %11693 = vrot.lane.b32.xlu0 %v11692_v8, %s12202_s29  ;;  %v8087_v41 = vmul.f32 %v17090_v10, %v19038_v0  ;;  %10587 = vmatmul.mubr.msk.bf16.gmra.mrb[180].mxu1 %vm19042_vm13, %v8587_v40  ;;  %v19043_v23 = vld [vmem:[#allocation13_spill] sm:$0xff]  ;;  %v19048_v40 = vld [vmem:[#allocation3_spill] sm:$0xff]  ;;  %v19054_v15 = vrot.slane %v16805_v2, 7  ;;  %v7995_v57 = vmul.f32 %v16847_v3, %v18752_v47  ;;  %vm19108_vm1 = vmmov %vm19056_vm0 }
0x1259   :  { %v11702_v8 = vpack.i.bf16 %v7953_v7, %v7952_v4  ;;  %v7946_v54 = vmul.f32 %v17009_v36, %v19043_v23  ;;  %v17121_v0 = vsel %vm19045_vm10, %v19044_v50, %v7904_v48  ;;  %11698 = vrot.lane.b32.xlu1 %v11697_v61, %s12202_s29  ;;  %v8030_v7 = vmul.f32 %v16858_v22, %v19046_v44  ;;  %v19050_v23 = vld [vmem:[#allocation65_spill] sm:$0xff]  ;;  %v11932_v61 = vld [vmem:[%s17657_s3 + $0x30] sm:$0xff]   ;;  %v19051_v44 = vld [vmem:[#allocation119_spill] sm:$0xff] }
0x125a   :  { %v8590_v24 = vpack.c.bf16 %v8087_v41, %v8086_v5  ;;  %v7947_v4 = vmul.f32 %v16805_v2, %v19048_v40  ;;  %v19049_v5 = vld [vmem:[#allocation5_spill] sm:$0xff]  ;;  %v8047_v50 = vmul.f32 %v17121_v0, %v19050_v23  ;;  %v7906_v22 = vrot.slane %v16897_v11, 7  ;;  %9863 = vmatpush3.bf16.msra.mxu0 %v11932_v61  ;;  %vm19110_vm15 = vmmov %vm19056_vm0 }
0x125b   :  { %v8088_v41 = vmul.f32 %v17109_v43, %v19049_v5  ;;  %v11707_v14 = vpack.i.bf16 %v8031_v28, %v8030_v7  ;;  %v7994_v40 = vmul.f32 %v17109_v43, %v19052_v49  ;;  %v19053_v28 = vld [vmem:[#allocation52_spill] sm:$0xff]  ;;  %v19055_v5 = vrot.slane %v17009_v36, 7  ;;  %v11934_v47 = vld [vmem:[%s17657_s3 + $0x38] sm:$0xff]   ;;  %vm19119_vm4 = vmmov %vm19056_vm0 }
0x125c   :  { %11703 = vrot.lane.b32.xlu0 %v11702_v8, %s12196_s18  ;;  %10590 = vmatprep.mubr.msk.bf16.mxu1 %vm19047_vm9, %v8590_v24  ;;  %v11727_v8 = vpack.i.bf16 %v7947_v4, %v7946_v54  ;;  %v8089_v24 = vmul.f32 %v16847_v3, %v19051_v44  ;;  %v8046_v7 = vmul.f32 %v17057_v9, %v19053_v28  ;;  %v7905_v54 = vrot.slane %v16867_v34, 7  ;;  %v11933_v44 = vld [vmem:[%s17657_s3 + $0x78] sm:$0xff]   ;;  %vm19130_vm13 = vmmov %vm19057_vm2 }
0x125d   :  { %11708 = vrot.lane.b32.xlu1 %v11707_v14, %s12196_s18  ;;  %v17155_v23 = vsel %vm19056_vm0, %v19055_v5, %v19054_v15  ;;  %v8033_v14 = vmul.f32 %v16994_v60, %v18753_v59  ;;  %v11732_v28 = vpack.i.bf16 %v7995_v57, %v7994_v40  ;;  %v19058_v15 = vld [vmem:[#allocation15_spill] sm:$0xff]  ;;  %v19060_v59 = vld [vmem:[#allocation50_spill] sm:$0xff]  ;;  %v19063_v40 = vld [vmem:[#allocation56_spill] sm:$0xff]  ;;  %9864 = vmatprep.subr.bf16.mxu0 %v11933_v44  ;;  %v7908_v44 = vrot.slane %v16938_v38, 7 }
0x125e   :  { %v8593_v4 = vpack.c.bf16 %v8089_v24, %v8088_v41  ;;  %v11712_v49 = vpack.i.bf16 %v8047_v50, %v8046_v7  ;;  %v8010_v5 = vmul.f32 %v17155_v23, %v19058_v15  ;;  %v17171_v41 = vsel %vm19059_vm14, %v7905_v54, %v7906_v22  ;;  %v19061_v50 = vld [vmem:[#allocation11_spill] sm:$0xff]  ;;  %v19064_v57 = vld [vmem:[#allocation106_spill] sm:$0xff]  ;;  %v19065_v15 = vld [vmem:[#allocation41_spill] sm:$0xff]  ;;  %9865 = vmatpush3.bf16.msra.mxu0 %v11934_v47 }
0x125f   :  { %v8032_v3 = vmul.f32 %v16942_v29, %v19060_v59  ;;  %v8011_v61 = vmul.f32 %v16909_v62, %v19061_v50  ;;  %v8049_v7 = vmul.f32 %v17171_v41, %v19063_v40  ;;  %v8001_v59 = vmul.f32 %v16942_v29, %v19065_v15  ;;  %v19070_v47 = vld [vmem:[#allocation68_spill] sm:$0xff]  ;;  %v19072_v15 = vld [vmem:[#allocation110_spill] sm:$0xff]  ;;  %vm19131_vm10 = vmmov %vm19057_vm2 }
0x1260   :  { %11728 = vrot.lane.b32.xlu0 %v11727_v8, %s12196_s18  ;;  %10591 = vmatmul.mubr.msk.bf16.gmra.mrb[184].mxu1 %vm19057_vm2, %v8593_v4  ;;  %v17184_v8 = vsel %vm19062_vm11, %v7904_v48, %v7905_v54  ;;  %v19067_v54 = vld [vmem:[#allocation60_spill] sm:$0xff]  ;;  %v7907_v40 = vrot.slane %v16892_v32, 7  ;;  %vm19132_vm9 = vmmov %vm19057_vm2 }
0x1261   :  { %11713 = vrot.lane.b32.xlu1 %v11712_v49, %s12203_s8  ;;  %v11717_v24 = vpack.i.bf16 %v8033_v14, %v8032_v3  ;;  %v11737_v4 = vpack.i.bf16 %v8011_v61, %v8010_v5  ;;  %v8000_v49 = vmul.f32 %v16948_v13, %v19064_v57  ;;  %v8065_v14 = vmul.f32 %v16897_v11, %v19067_v54  ;;  %v19068_v3 = vld [vmem:[#allocation45_spill] sm:$0xff]  ;;  %v19069_v61 = vld [vmem:[#allocation24_spill] sm:$0xff]  ;;  %vm19133_vm0 = vmmov %vm19057_vm2 }
0x1262   :  { %v8016_v13 = vmul.f32 %v17121_v0, %v19068_v3  ;;  %v8017_v29 = vmul.f32 %v17184_v8, %v19069_v61  ;;  %v19075_v54 = vld [vmem:[#allocation64_spill] sm:$0xff]  ;;  %vm19136_vm2 = vmmov %vm19133_vm0 }
0x1263   :  { %v11742_v5 = vpack.i.bf16 %v8001_v59, %v8000_v49  ;;  %v7955_v59 = vmul.f32 %v16897_v11, %v19072_v15  ;;  %v19080_v15 = vld [vmem:[#allocation105_spill] sm:$0xff]  ;;  %vm19137_vm14 = vmmov %vm19133_vm0 }
0x1264   :  { %11733 = vrot.lane.b32.xlu0 %v11732_v28, %s12203_s8  ;;  %v19066_v28 = vld [vmem:[#allocation54_spill] sm:$0xff]  ;;  %v11752_v49 = vpack.i.bf16 %v8017_v29, %v8016_v13  ;;  %v19077_v13 = vld [vmem:[#allocation72_spill] sm:$0xff]  ;;  %v19078_v29 = vld [vmem:[#allocation115_spill] sm:$0xff] }
0x1265   :  { %11718 = vrot.lane.b32.xlu1 %v11717_v24, %s12196_s18  ;;  %v8048_v50 = vmul.f32 %v17184_v8, %v19066_v28  ;;  %v8064_v24 = vmul.f32 %v16867_v34, %v19070_v47  ;;  %v17214_v28 = vsel %vm19073_vm7, %v7907_v40, %v7908_v44  ;;  %v8002_v47 = vmul.f32 %v16994_v60, %v19078_v29  ;;  %v19095_v60 = vld [vmem:[#allocation79_spill] sm:$0xff]  ;;  %vm19138_vm11 = vmmov %vm19133_vm0 }
0x1266   :  { %v8051_v61 = vmul.f32 %v17214_v28, %v19077_v13  ;;  %v19084_v13 = vld [vmem:[#allocation32_spill] sm:$0xff]  ;;  %vm19139_vm7 = vmmov %vm19133_vm0 }
0x1267   :  { %v11722_v48 = vpack.i.bf16 %v8049_v7, %v8048_v50  ;;  %v11747_v7 = vpack.i.bf16 %v8065_v14, %v8064_v24  ;;  %v19074_v50 = vld [vmem:[#allocation84_spill] sm:$0xff]  ;;  %v7954_v14 = vmul.f32 %v16867_v34, %v19075_v54  ;;  %v8018_v29 = vmul.f32 %v17171_v41, %v19084_v13 }
0x1268   :  { %11738 = vrot.lane.b32.xlu0 %v11737_v4, %s12202_s29  ;;  %v19071_v4 = vld [vmem:[#allocation49_spill] sm:$0xff] }
0x1269   :  { %11723 = vrot.lane.b32.xlu1 %v11722_v48, %s12203_s8  ;;  %v8035_v57 = vmul.f32 %v17027_v26, %v19071_v4  ;;  %v8034_v48 = vmul.f32 %v16984_v20, %v19074_v50  ;;  %v11762_v24 = vpack.i.bf16 %v7955_v59, %v7954_v14  ;;  %v19081_v50 = vld [vmem:[#allocation37_spill] sm:$0xff] }
0x126a   :  { %v17238_v54 = vmul.f32 %v17090_v10, %v19081_v50  ;;  %v7909_v50 = vrot.slane %v16931_v52, 7 }
0x126b   :  { %v11757_v3 = vpack.i.bf16 %v8035_v57, %v8034_v48  ;;  %v7910_v48 = vrot.slane %v16973_v56, 7 }
0x126c   :  { %11743 = vrot.lane.b32.xlu0 %v11742_v5, %s12203_s8  ;;  %v17224_v5 = vsel %vm19076_vm3, %v7906_v22, %v7907_v40  ;;  %v19082_v22 = vld [vmem:[#allocation8_spill] sm:$0xff]  ;;  %vm19142_vm3 = vmmov %vm19133_vm0 }
0x126d   :  { %11748 = vrot.lane.b32.xlu1 %v11747_v7, %s12202_s29  ;;  %v19079_v7 = vld [vmem:[#allocation74_spill] sm:$0xff]  ;;  %v8050_v40 = vmul.f32 %v17224_v5, %v19082_v22  ;;  %v19087_v22 = vld [vmem:[#allocation51_spill] sm:$0xff]  ;;  %v17264_v13 = vsel %vm19089_vm5, %v7909_v50, %v7910_v48  ;;  %vm19143_vm5 = vmmov %vm19133_vm0 }
0x126e   :  { %v8003_v4 = vmul.f32 %v16984_v20, %v19079_v7  ;;  %v19083_v20 = vld [vmem:[#allocation93_spill] sm:$0xff] }
0x126f   :  { %v11767_v57 = vpack.i.bf16 %v8051_v61, %v8050_v40  ;;  %v8067_v59 = vmul.f32 %v16938_v38, %v19083_v20  ;;  %v19085_v7 = vld [vmem:[#allocation81_spill] sm:$0xff]  ;;  %v8037_v40 = vmul.f32 %v17070_v18, %v19087_v22 }
0x1270   :  { %11753 = vrot.lane.b32.xlu0 %v11752_v49, %s12202_s29  ;;  %v17234_v49 = vmul.f32 %v17094_v37, %v19080_v15  ;;  %v11772_v14 = vpack.i.bf16 %v8003_v4, %v8002_v47  ;;  %v19086_v15 = vld [vmem:[#allocation75_spill] sm:$0xff] }
0x1271   :  { %11758 = vrot.lane.b32.xlu1 %v11757_v3, %s12196_s18  ;;  %v8019_v3 = vmul.f32 %v17224_v5, %v19085_v7  ;;  %v19088_v4 = vld [vmem:[#allocation71_spill] sm:$0xff] }
0x1272   :  { %v7957_v20 = vmul.f32 %v16938_v38, %v19088_v4  ;;  %v19094_v4 = vld [vmem:[#allocation73_spill] sm:$0xff] }
0x1273   :  { %v11782_v47 = vpack.i.bf16 %v8019_v3, %v8018_v29  ;;  %v17274_v29 = vsel %vm19092_vm6, %v7908_v44, %v7909_v50  ;;  %v19097_v50 = vld [vmem:[#allocation95_spill] sm:$0xff]  ;;  %vm19144_vm6 = vmmov %vm19133_vm0 }
0x1274   :  { %11763 = vrot.lane.b32.xlu0 %v11762_v24, %s12196_s18  ;;  %v8066_v24 = vmul.f32 %v16892_v32, %v19086_v15  ;;  %v19093_v15 = vld [vmem:[#allocation89_spill] sm:$0xff] }
0x1275   :  { %11768 = vrot.lane.b32.xlu1 %v11767_v57, %s12203_s8  ;;  %v19090_v57 = vld [vmem:[#allocation4_spill] sm:$0xff] }
0x1276   :  { %v11777_v61 = vpack.i.bf16 %v8067_v59, %v8066_v24  ;;  %v8036_v7 = vmul.f32 %v17017_v35, %v19090_v57  ;;  %v8053_v24 = vmul.f32 %v17264_v13, %v19093_v15  ;;  %v8005_v57 = vmul.f32 %v17017_v35, %v19095_v60  ;;  %v19098_v15 = vld [vmem:[#allocation2_spill] sm:$0xff] }
0x1277   :  { %v19100_v35 = vld [vmem:[#allocation78_spill] sm:$0xff] }
0x1278   :  { %11773 = vrot.lane.b32.xlu0 %v11772_v14, %s12203_s8  ;;  %v19091_v14 = vld [vmem:[#allocation113_spill] sm:$0xff]  ;;  %v11787_v3 = vpack.i.bf16 %v8037_v40, %v8036_v7  ;;  %v8069_v40 = vmul.f32 %v16973_v56, %v19097_v50  ;;  %v8068_v60 = vmul.f32 %v16931_v52, %v19100_v35 }
0x1279   :  { %11778 = vrot.lane.b32.xlu1 %v11777_v61, %s12202_s29  ;;  %v7956_v59 = vmul.f32 %v16892_v32, %v19091_v14  ;;  %v8004_v61 = vmul.f32 %v17027_v26, %v19094_v4  ;;  %v7912_v4 = vrot.slane %v17020_v6, 7 }
0x127b   :  { %v11792_v22 = vpack.i.bf16 %v7957_v20, %v7956_v59  ;;  %v11802_v7 = vpack.i.bf16 %v8005_v57, %v8004_v61  ;;  %v8020_v20 = vmul.f32 %v17214_v28, %v19098_v15  ;;  %v19099_v59 = vld [vmem:[#allocation35_spill] sm:$0xff]  ;;  %v19102_v57 = vld [vmem:[#allocation29_spill] sm:$0xff] }
0x127c   :  { %11783 = vrot.lane.b32.xlu0 %v11782_v47, %s12202_s29  ;;  %v19096_v47 = vld [vmem:[#allocation87_spill] sm:$0xff]  ;;  %v8021_v26 = vmul.f32 %v17274_v29, %v19099_v59 }
0x127d   :  { %11788 = vrot.lane.b32.xlu1 %v11787_v3, %s12196_s18  ;;  %v8052_v14 = vmul.f32 %v17274_v29, %v19096_v47  ;;  %v11807_v3 = vpack.i.bf16 %v8069_v40, %v8068_v60  ;;  %v7959_v47 = vmul.f32 %v16973_v56, %v19102_v57  ;;  %v19105_v59 = vld [vmem:[#allocation111_spill] sm:$0xff] }
0x127e   :  { %v11812_v61 = vpack.i.bf16 %v8021_v26, %v8020_v20  ;;  %v8039_v35 = vmul.f32 %v17094_v37, %v19105_v59  ;;  %v19106_v26 = vld [vmem:[#allocation120_spill] sm:$0xff] }
0x127f   :  { %v11797_v44 = vpack.i.bf16 %v8053_v24, %v8052_v14  ;;  %v7911_v14 = vrot.slane %v16951_v31, 7  ;;  %v8006_v60 = vmul.f32 %v17070_v18, %v19106_v26  ;;  %v19111_v18 = vld [vmem:[#allocation82_spill] sm:$0xff]  ;;  %v19113_v59 = vld [vmem:[#allocation40_spill] sm:$0xff] }
0x1280   :  { %11793 = vrot.lane.b32.xlu0 %v11792_v22, %s12196_s18  ;;  %v19101_v22 = vld [vmem:[#allocation77_spill] sm:$0xff] }
0x1281   :  { %11798 = vrot.lane.b32.xlu1 %v11797_v44, %s12203_s8  ;;  %v8071_v24 = vmul.f32 %v17020_v6, %v19101_v22  ;;  %v19103_v44 = vld [vmem:[#allocation83_spill] sm:$0xff]  ;;  %v19107_v22 = vld [vmem:[#allocation104_spill] sm:$0xff] }
0x1282   :  { %v8070_v50 = vmul.f32 %v16951_v31, %v19103_v44  ;;  %v8007_v57 = vmul.f32 %v17066_v21, %v19107_v22 }
0x1284   :  { %11803 = vrot.lane.b32.xlu0 %v11802_v7, %s12203_s8  ;;  %v19104_v7 = vld [vmem:[#allocation97_spill] sm:$0xff]  ;;  %v11827_v15 = vpack.i.bf16 %v8071_v24, %v8070_v50  ;;  %v17323_v24 = vsel %vm19110_vm15, %v7910_v48, %v7911_v14  ;;  %v11822_v50 = vpack.i.bf16 %v8007_v57, %v8006_v60  ;;  %v19117_v57 = vld [vmem:[#allocation102_spill] sm:$0xff]  ;;  %vm19146_vm15 = vmmov %vm19133_vm0 }
0x1285   :  { %11808 = vrot.lane.b32.xlu1 %v11807_v3, %s12202_s29  ;;  %v7958_v40 = vmul.f32 %v16931_v52, %v19104_v7  ;;  %v17316_v3 = vsel %vm19108_vm1, %v7911_v14, %v7912_v4  ;;  %v19112_v7 = vld [vmem:[#allocation107_spill] sm:$0xff]  ;;  %v19115_v14 = vld [vmem:[#allocation114_spill] sm:$0xff]  ;;  %vm19145_vm1 = vmmov %vm19133_vm0 }
0x1287   :  { %v11817_v20 = vpack.i.bf16 %v7959_v47, %v7958_v40  ;;  %v8055_v47 = vmul.f32 %v17316_v3, %v19111_v18  ;;  %v8022_v40 = vmul.f32 %v17264_v13, %v19112_v7  ;;  %v19120_v18 = vld [vmem:[#allocation116_spill] sm:$0xff]  ;;  %v19122_v7 = vld [vmem:[#allocation31_spill] sm:$0xff] }
0x1288   :  { %11813 = vrot.lane.b32.xlu0 %v11812_v61, %s12202_s29  ;;  %v19109_v61 = vld [vmem:[#allocation53_spill] sm:$0xff] }
0x1289   :  { %11828 = vrot.lane.b32.xlu1 %v11827_v15, %s12202_s29  ;;  %v8038_v44 = vmul.f32 %v17066_v21, %v19109_v61  ;;  %v8023_v15 = vmul.f32 %v17323_v24, %v19113_v59  ;;  %v19114_v21 = vld [vmem:[#allocation27_spill] sm:$0xff]  ;;  %v7961_v61 = vmul.f32 %v17020_v6, %v19117_v57 }
0x128a   :  { %v8054_v26 = vmul.f32 %v17323_v24, %v19114_v21  ;;  %v19124_v21 = vld [vmem:[#allocation108_spill] sm:$0xff] }
0x128b   :  { %v11842_v37 = vpack.i.bf16 %v8039_v35, %v8038_v44  ;;  %v8040_v35 = vmul.f32 %v17090_v10, %v19115_v14  ;;  %v11832_v22 = vpack.i.bf16 %v8023_v15, %v8022_v40  ;;  %v19118_v44 = vrot.slane %v17009_v36, 7 }
0x128c   :  { %11818 = vrot.lane.b32.xlu0 %v11817_v20, %s12196_s18  ;;  %v11847_v48 = vpack.i.bf16 %v8055_v47, %v8054_v26  ;;  %v19116_v20 = vld [vmem:[#allocation55_spill] sm:$0xff]  ;;  %v7960_v10 = vmul.f32 %v16951_v31, %v19120_v18  ;;  %v8057_v40 = vmul.f32 %v17155_v23, %v19122_v7  ;;  %v8024_v26 = vmul.f32 %v17316_v3, %v19124_v21 }
0x128d   :  { %11843 = vrot.lane.b32.xlu1 %v11842_v37, %s12196_s18  ;;  %v8041_v60 = vmul.f32 %v17109_v43, %v19116_v20  ;;  %v17346_v37 = vsel %vm19119_vm4, %v7912_v4, %v19118_v44  ;;  %v19123_v4 = vld [vmem:[#allocation85_spill] sm:$0xff]  ;;  %vm19147_vm4 = vmmov %vm19133_vm0 }
0x128e   :  { %v11837_v59 = vpack.i.bf16 %v7961_v61, %v7960_v10  ;;  %v8072_v15 = vmul.f32 %v17009_v36, %v19123_v4 }
0x128f   :  { %v11852_v47 = vpack.i.bf16 %v8041_v60, %v8040_v35  ;;  %v19126_v35 = vld [vmem:[#allocation76_spill] sm:$0xff]  ;;  %v19127_v60 = vpack.i.bf16 %v17238_v54, %v17234_v49 }
0x1290   :  { %11823 = vrot.lane.b32.xlu0 %v11822_v50, %s12203_s8  ;;  %v19121_v50 = vld [vmem:[#allocation26_spill] sm:$0xff]  ;;  %v8073_v20 = vmul.f32 %v16805_v2, %v19126_v35 }
0x1291   :  { %11848 = vrot.lane.b32.xlu1 %v11847_v48, %s12203_s8  ;;  %v8056_v43 = vmul.f32 %v17346_v37, %v19121_v50  ;;  %v19125_v48 = vld [vmem:[#allocation109_spill] sm:$0xff] }
0x1292   :  { %v8025_v14 = vmul.f32 %v17346_v37, %v19125_v48 }
0x1293   :  { %v11857_v45 = vpack.i.bf16 %v8057_v40, %v8056_v43  ;;  %v19128_v40 = vld [vmem:[#allocation122_spill] sm:$0xff] }
0x1294   :  { %11833 = vrot.lane.b32.xlu0 %v11832_v22, %s12202_s29  ;;  %v11867_v22 = vpack.i.bf16 %v8073_v20, %v8072_v15  ;;  %v11872_v57 = vpack.i.bf16 %v8025_v14, %v8024_v26 }
0x1295   :  { %11853 = vrot.lane.b32.xlu1 %v11852_v47, %s12196_s18 }
0x1298   :  { %11838 = vrot.lane.b32.xlu0 %v11837_v59, %s12196_s18  ;;  %v7932_v59 = vmul.f32 %v16909_v62, %v19128_v40 }
0x1299   :  { %11858 = vrot.lane.b32.xlu1 %v11857_v45, %s12203_s8  ;;  %v19129_v45 = vld [vmem:[#allocation124_spill] sm:$0xff] }
0x129a   :  { %v7933_v49 = vmul.f32 %v16902_v58, %v19129_v45 }
0x129c   :  { %11863 = vrot.lane.b32.xlu0 %v19127_v60, %s12203_s8 }
0x129d   :  { %11868 = vrot.lane.b32.xlu1 %v11867_v22, %s12202_s29 }
0x12a0   :  { %11873 = vrot.lane.b32.xlu0 %v11872_v57, %s12202_s29 }
0x12ae   :  { %v11639_v61 = vpop.permute.xlu1 %11638  ;;  %v11644_v44 = vpop.permute.xlu0 %11643 }
0x12af   :  { %v11646_v47 = vunpack.i.h.bf16 %v11644_v44  ;;  %v11645_v50 = vunpack.i.l.bf16 %v11644_v44  ;;  %v11641_v15 = vunpack.i.h.bf16 %v11639_v61  ;;  %v11640_v21 = vunpack.i.l.bf16 %v11639_v61 }
0x12b1   :  { %v8476_v48 = vsel %vm19130_vm13, %v7932_v59, %v11645_v50  ;;  %v8477_v14 = vsel %vm19131_vm10, %v7933_v49, %v11646_v47  ;;  %vm19148_vm13 = vmmov %vm19133_vm0 }
0x12b2   :  { %vm19149_vm10 = vmmov %vm19133_vm0 }
0x12b5   :  { %v11649_v18 = vpop.permute.xlu1 %11648 }
0x12b6   :  { %v11659_v10 = vpop.permute.xlu0 %11658  ;;  %v11651_v43 = vunpack.i.h.bf16 %v11649_v18  ;;  %v11650_v7 = vunpack.i.l.bf16 %v11649_v18 }
0x12b7   :  { %v11661_v54 = vunpack.i.h.bf16 %v11659_v10  ;;  %v11660_v4 = vunpack.i.l.bf16 %v11659_v10 }
0x12b8   :  { %v8523_v22 = vsel %vm19132_vm9, %v16802_v55, %v11651_v43  ;;  %v8522_v62 = vsel %vm19133_vm0, %v16805_v2, %v11650_v7  ;;  %vm19151_vm9 = vmmov %vm19133_vm0 }
0x12b9   :  { %v8492_v44 = vsel %vm4052_vm12, %v8476_v48, %v11660_v4  ;;  %v8493_v61 = vsel %vm4052_vm12, %v8477_v14, %v11661_v54  ;;  %v19134_v48 = vld [vmem:[#allocation123_spill] sm:$0xff]  ;;  %v19135_v14 = vld [vmem:[#allocation10_spill] sm:$0xff] }
0x12ba   :  { %v11654_v26 = vpop.permute.xlu1 %11653 }
0x12bb   :  { %v11656_v35 = vunpack.i.h.bf16 %v11654_v26  ;;  %v11655_v20 = vunpack.i.l.bf16 %v11654_v26  ;;  %v11664_v60 = vpop.permute.xlu0 %11663 }
0x12bc   :  { %v11666_v57 = vunpack.i.h.bf16 %v11664_v60  ;;  %v11665_v58 = vunpack.i.l.bf16 %v11664_v60 }
0x12bd   :  { %v8539_v18 = vsel %vm4052_vm12, %v8523_v22, %v11656_v35  ;;  %v8538_v10 = vsel %vm4052_vm12, %v8522_v62, %v11655_v20  ;;  %v7935_v35 = vmul.f32 %v17047_v30, %v19135_v14 }
0x12be   :  { %v11669_v47 = vpop.permute.xlu1 %11668  ;;  %v8554_v50 = vsel %vm4069_vm8, %v8538_v10, %v11640_v21  ;;  %v8555_v40 = vsel %vm4069_vm8, %v8539_v18, %v11641_v15  ;;  %v17390_v55 = vsel %vm4069_vm8, %v8492_v44, %v11665_v58  ;;  %v17393_v2 = vsel %vm4069_vm8, %v8493_v61, %v11666_v57 }
0x12bf   :  { %v8571_v43 = vpack.c.bf16 %v8555_v40, %v8554_v50  ;;  %v11674_v59 = vpop.permute.xlu0 %11673  ;;  %v7934_v15 = vmul.f32 %v16927_v16, %v19134_v48 }
0x12c0   :  { %v11676_v54 = vunpack.i.h.bf16 %v11674_v59  ;;  %v11675_v4 = vunpack.i.l.bf16 %v11674_v59 }
0x12c1   :  { %8762 = vmatprep.mubr.bf16.mxu0 %v8571_v43 }
0x12c2   :  { %v11679_v45 = vpop.permute.xlu1 %11678  ;;  %v8478_v22 = vsel %vm19136_vm2, %v7934_v15, %v11675_v4  ;;  %v8479_v62 = vsel %vm19137_vm14, %v7935_v35, %v11676_v54  ;;  %vm19153_vm2 = vmmov %vm19133_vm0 }
0x12c3   :  { %v11681_v43 = vunpack.i.h.bf16 %v11679_v45  ;;  %v11680_v59 = vunpack.i.l.bf16 %v11679_v45  ;;  %vm19154_vm14 = vmmov %vm19133_vm0 }
0x12c4   :  { %v11689_v49 = vpop.permute.xlu0 %11688 }
0x12c5   :  { %v11691_v26 = vunpack.i.h.bf16 %v11689_v49  ;;  %v11690_v21 = vunpack.i.l.bf16 %v11689_v49  ;;  %v8524_v48 = vsel %vm19139_vm7, %v16817_v53, %v11680_v59  ;;  %vm19156_vm7 = vmmov %vm19133_vm0 }
0x12c7   :  { %v11684_v20 = vpop.permute.xlu1 %11683  ;;  %v8494_v44 = vsel %vm4052_vm12, %v8478_v22, %v11690_v21  ;;  %v8495_v61 = vsel %vm4052_vm12, %v8479_v62, %v11691_v26  ;;  %v8525_v26 = vsel %vm19138_vm11, %v16811_v27, %v11681_v43  ;;  %v11671_v62 = vunpack.i.h.bf16 %v11669_v47  ;;  %vm19155_vm11 = vmmov %vm19133_vm0 }
0x12c8   :  { %v11686_v54 = vunpack.i.h.bf16 %v11684_v20  ;;  %v11685_v4 = vunpack.i.l.bf16 %v11684_v20 }
0x12ca   :  { %v11694_v60 = vpop.permute.xlu0 %11693  ;;  %v8541_v14 = vsel %vm4052_vm12, %v8525_v26, %v11686_v54  ;;  %v8540_v35 = vsel %vm4052_vm12, %v8524_v48, %v11685_v4 }
0x12cb   :  { %v11696_v57 = vunpack.i.h.bf16 %v11694_v60  ;;  %v11695_v58 = vunpack.i.l.bf16 %v11694_v60  ;;  %v17405_v18 = vpop.permute.xlu1 %11698  ;;  %v8557_v4 = vsel %vm4069_vm8, %v8541_v14, %v11671_v62  ;;  %v7936_v14 = vmul.f32 %v17057_v9, %v18543_v42 }
0x12cc   :  { %v11701_v9 = vunpack.i.h.bf16 %v17405_v18 }
0x12cd   :  { %v17408_v10 = vsel %vm4069_vm8, %v8494_v44, %v11695_v58  ;;  %v17411_v16 = vsel %vm4069_vm8, %v8495_v61, %v11696_v57  ;;  %v11670_v57 = vunpack.i.l.bf16 %v11669_v47  ;;  %v19140_v44 = vld [vmem:[#allocation39_spill] sm:$0xff]  ;;  %v19141_v61 = vld [vmem:[#allocation121_spill] sm:$0xff] }
0x12ce   :  { %v11704_v30 = vpop.permute.xlu0 %11703  ;;  %v7930_v20 = vmul.f32 %v17346_v37, %v19140_v44  ;;  %v7931_v27 = vmul.f32 %v17155_v23, %v19141_v61 }
0x12cf   :  { %v11709_v40 = vpop.permute.xlu1 %11708  ;;  %v8556_v54 = vsel %vm4069_vm8, %v8540_v35, %v11670_v57  ;;  %v11706_v35 = vunpack.i.h.bf16 %v11704_v30  ;;  %v7937_v57 = vmul.f32 %v17121_v0, %v18544_v46 }
0x12d0   :  { %v11711_v50 = vunpack.i.h.bf16 %v11709_v40  ;;  %v11710_v53 = vunpack.i.l.bf16 %v11709_v40 }
0x12d2   :  { %v11729_v49 = vpop.permute.xlu0 %11728 }
0x12d3   :  { %v11714_v21 = vpop.permute.xlu1 %11713  ;;  %v11731_v60 = vunpack.i.h.bf16 %v11729_v49  ;;  %v11730_v22 = vunpack.i.l.bf16 %v11729_v49 }
0x12d4   :  { %v11715_v7 = vunpack.i.l.bf16 %v11714_v21 }
0x12d5   :  { %v8474_v49 = vsel %vm19142_vm3, %v7930_v20, %v11730_v22  ;;  %v8475_v47 = vsel %vm19143_vm5, %v7931_v27, %v11731_v60  ;;  %v11705_v22 = vunpack.i.l.bf16 %v11704_v30  ;;  %v11700_v30 = vunpack.i.l.bf16 %v17405_v18  ;;  %vm19157_vm3 = vmmov %vm19133_vm0 }
0x12d6   :  { %v11734_v15 = vpop.permute.xlu0 %11733  ;;  %vm19158_vm5 = vmmov %vm19133_vm0 }
0x12d7   :  { %v11736_v45 = vunpack.i.h.bf16 %v11734_v15  ;;  %v11735_v58 = vunpack.i.l.bf16 %v11734_v15  ;;  %v11719_v43 = vpop.permute.xlu1 %11718  ;;  %v11716_v15 = vunpack.i.h.bf16 %v11714_v21  ;;  %v8527_v21 = vsel %vm19144_vm6, %v16826_v12, %v11711_v50  ;;  %vm19159_vm6 = vmmov %vm19133_vm0 }
0x12d8   :  { %v8480_v0 = vsel %vm19146_vm15, %v7936_v14, %v11705_v22  ;;  %v8481_v12 = vsel %vm19147_vm4, %v7937_v57, %v11706_v35  ;;  %vm19161_vm15 = vmmov %vm19133_vm0 }
0x12d9   :  { %v8490_v37 = vsel %vm4052_vm12, %v8474_v49, %v11735_v58  ;;  %v8491_v23 = vsel %vm4052_vm12, %v8475_v47, %v11736_v45  ;;  %v8526_v45 = vsel %vm19145_vm1, %v16833_v39, %v11710_v53  ;;  %v8574_v58 = vpack.c.bf16 %v8557_v4, %v8556_v54  ;;  %vm19160_vm1 = vmmov %vm19133_vm0 }
0x12da   :  { %v11739_v59 = vpop.permute.xlu0 %11738  ;;  %v8543_v20 = vsel %vm4052_vm12, %v8527_v21, %v11716_v15  ;;  %v8542_v27 = vsel %vm4052_vm12, %v8526_v45, %v11715_v7  ;;  %v11721_v4 = vunpack.i.h.bf16 %v11719_v43  ;;  %v11720_v49 = vunpack.i.l.bf16 %v11719_v43  ;;  %vm19162_vm4 = vmmov %vm19133_vm0 }
0x12db   :  { %v11741_v26 = vunpack.i.h.bf16 %v11739_v59  ;;  %v11740_v48 = vunpack.i.l.bf16 %v11739_v59  ;;  %v11724_v61 = vpop.permute.xlu1 %11723  ;;  %v8558_v54 = vsel %vm4069_vm8, %v8542_v27, %v11700_v30  ;;  %v8559_v7 = vsel %vm4069_vm8, %v8543_v20, %v11701_v9 }
0x12dc   :  { %v11726_v18 = vunpack.i.h.bf16 %v11724_v61  ;;  %v8577_v43 = vpack.c.bf16 %v8559_v7, %v8558_v54  ;;  %v8529_v22 = vsel %vm19148_vm13, %v16867_v34, %v11721_v4  ;;  %v19152_v4 = vpack.c.bf16 %v17411_v16, %v17408_v10  ;;  %vm19165_vm13 = vmmov %vm19133_vm0 }
0x12dd   :  { %v8506_v44 = vsel %vm4069_vm8, %v8490_v37, %v11740_v48  ;;  %v8507_v40 = vsel %vm4069_vm8, %v8491_v23, %v11741_v26  ;;  %v11725_v48 = vunpack.i.l.bf16 %v11724_v61  ;;  %v8528_v61 = vsel %vm19149_vm10, %v16878_v25, %v11720_v49  ;;  %vm19166_vm10 = vmmov %vm19133_vm0 }
0x12de   :  { %v8570_v62 = vpack.c.bf16 %v8507_v40, %v8506_v44  ;;  %v11744_v60 = vpop.permute.xlu0 %11743  ;;  %v7938_v25 = vmul.f32 %v17184_v8, %v18846_v19 }
0x12df   :  { %v11746_v59 = vunpack.i.h.bf16 %v11744_v60  ;;  %v11745_v42 = vunpack.i.l.bf16 %v11744_v60  ;;  %v11749_v46 = vpop.permute.xlu1 %11748  ;;  %v8545_v60 = vsel %vm4052_vm12, %v8529_v22, %v11726_v18  ;;  %v8544_v57 = vsel %vm4052_vm12, %v8528_v61, %v11725_v48 }
0x12e0   :  { %8763 = vmatmul.mubr.bf16.vlgmr.msra.gmra.mrb[156].mxu0 %v8570_v62  ;;  %v11751_v44 = vunpack.i.h.bf16 %v11749_v46  ;;  %v11750_v40 = vunpack.i.l.bf16 %v11749_v46  ;;  %v19150_v62 = vpack.c.bf16 %v17393_v2, %v17390_v55  ;;  %v7939_v55 = vmul.f32 %v17171_v41, %v18847_v33 }
0x12e1   :  { %8770 = vmatprep.mubr.bf16.mxu0 %v8574_v58  ;;  %v8497_v47 = vsel %vm4052_vm12, %v8481_v12, %v11746_v59  ;;  %v8496_v26 = vsel %vm4052_vm12, %v8480_v0, %v11745_v42 }
0x12e2   :  { %v11754_v50 = vpop.permute.xlu0 %11753  ;;  %v8560_v27 = vsel %vm4069_vm8, %v8544_v57, %v11750_v40  ;;  %v8561_v34 = vsel %vm4069_vm8, %v8545_v60, %v11751_v44 }
0x12e3   :  { %v11756_v39 = vunpack.i.h.bf16 %v11754_v50  ;;  %v11755_v53 = vunpack.i.l.bf16 %v11754_v50  ;;  %v11759_v15 = vpop.permute.xlu1 %11758  ;;  %v8580_v9 = vpack.c.bf16 %v8561_v34, %v8560_v27 }
0x12e4   :  { %v11761_v30 = vunpack.i.h.bf16 %v11759_v15  ;;  %v11760_v46 = vunpack.i.l.bf16 %v11759_v15 }
0x12e5   :  { %v17452_v37 = vsel %vm4069_vm8, %v8496_v26, %v11755_v53  ;;  %v17455_v23 = vsel %vm4069_vm8, %v8497_v47, %v11756_v39 }
0x12e6   :  { %v11764_v14 = vpop.permute.xlu0 %11763  ;;  %v8579_v35 = vpack.c.bf16 %v17455_v23, %v17452_v37  ;;  %v8531_v18 = vsel %vm19153_vm2, %v16892_v32, %v11761_v30  ;;  %v8530_v48 = vsel %vm19154_vm14, %v16897_v11, %v11760_v46  ;;  %v7940_v11 = vmul.f32 %v17224_v5, %v18852_v1 }
0x12e7   :  { %v11769_v21 = vpop.permute.xlu1 %11768  ;;  %v11766_v45 = vunpack.i.h.bf16 %v11764_v14  ;;  %v11765_v58 = vunpack.i.l.bf16 %v11764_v14 }
0x12e8   :  { %8771 = vmatmul.mubr.bf16.gmra.mrb[160].mxu0 %v19150_v62  ;;  %v11771_v39 = vunpack.i.h.bf16 %v11769_v21  ;;  %v11770_v53 = vunpack.i.l.bf16 %v11769_v21  ;;  %v7941_v21 = vmul.f32 %v17214_v28, %v18853_v17 }
0x12e9   :  { %8778 = vmatprep.mubr.bf16.mxu0 %v8577_v43  ;;  %v8483_v0 = vsel %vm19151_vm9, %v7939_v55, %v11766_v45  ;;  %v8482_v12 = vsel %vm19133_vm0, %v7938_v25, %v11765_v58  ;;  %vm19167_vm9 = vmmov %vm19133_vm0 }
0x12ea   :  { %v11774_v20 = vpop.permute.xlu0 %11773  ;;  %v8547_v23 = vsel %vm4052_vm12, %v8531_v18, %v11771_v39  ;;  %v8546_v44 = vsel %vm4052_vm12, %v8530_v48, %v11770_v53 }
0x12eb   :  { %v11776_v2 = vunpack.i.h.bf16 %v11774_v20  ;;  %v11775_v59 = vunpack.i.l.bf16 %v11774_v20  ;;  %v11779_v42 = vpop.permute.xlu1 %11778 }
0x12ec   :  { %v11781_v33 = vunpack.i.h.bf16 %v11779_v42  ;;  %v11780_v41 = vunpack.i.l.bf16 %v11779_v42 }
0x12ed   :  { %v8498_v19 = vsel %vm4052_vm12, %v8482_v12, %v11775_v59  ;;  %v8499_v8 = vsel %vm4052_vm12, %v8483_v0, %v11776_v2 }
0x12ee   :  { %v11784_v50 = vpop.permute.xlu0 %11783  ;;  %v8562_v10 = vsel %vm4069_vm8, %v8546_v44, %v11780_v41  ;;  %v8563_v16 = vsel %vm4069_vm8, %v8547_v23, %v11781_v33  ;;  %v7942_v41 = vmul.f32 %v17274_v29, %v18858_v63 }
0x12ef   :  { %v11786_v54 = vunpack.i.h.bf16 %v11784_v50  ;;  %v11785_v7 = vunpack.i.l.bf16 %v11784_v50  ;;  %v11789_v49 = vpop.permute.xlu1 %11788  ;;  %v8583_v57 = vpack.c.bf16 %v8563_v16, %v8562_v10 }
0x12f0   :  { %8779 = vmatmul.mubr.bf16.gmra.mrb[164].mxu0 %v19152_v4  ;;  %v11791_v40 = vunpack.i.h.bf16 %v11789_v49  ;;  %v11790_v14 = vunpack.i.l.bf16 %v11789_v49  ;;  %v7943_v4 = vmul.f32 %v17264_v13, %v18859_v51 }
0x12f1   :  { %8786 = vmatprep.mubr.bf16.mxu0 %v8580_v9  ;;  %v8514_v47 = vsel %vm4069_vm8, %v8498_v19, %v11785_v7  ;;  %v8515_v26 = vsel %vm4069_vm8, %v8499_v8, %v11786_v54 }
0x12f2   :  { %v11794_v15 = vpop.permute.xlu0 %11793  ;;  %v8582_v37 = vpack.c.bf16 %v8515_v26, %v8514_v47  ;;  %v8533_v20 = vsel %vm19155_vm11, %v16931_v52, %v11791_v40  ;;  %v8532_v27 = vsel %vm19156_vm7, %v16938_v38, %v11790_v14 }
0x12f3   :  { %v11799_v43 = vpop.permute.xlu1 %11798  ;;  %v11796_v22 = vunpack.i.h.bf16 %v11794_v15  ;;  %v11795_v61 = vunpack.i.l.bf16 %v11794_v15 }
0x12f4   :  { %v11801_v32 = vunpack.i.h.bf16 %v11799_v43  ;;  %v11800_v60 = vunpack.i.l.bf16 %v11799_v43 }
0x12f5   :  { %v8485_v25 = vsel %vm19157_vm3, %v7941_v21, %v11796_v22  ;;  %v8484_v55 = vsel %vm19158_vm5, %v7940_v11, %v11795_v61 }
0x12f6   :  { %v11804_v62 = vpop.permute.xlu0 %11803  ;;  %v8549_v17 = vsel %vm4052_vm12, %v8533_v20, %v11801_v32  ;;  %v8548_v28 = vsel %vm4052_vm12, %v8532_v27, %v11800_v60 }
0x12f7   :  { %v11806_v45 = vunpack.i.h.bf16 %v11804_v62  ;;  %v11805_v58 = vunpack.i.l.bf16 %v11804_v62  ;;  %v11809_v34 = vpop.permute.xlu1 %11808 }
0x12f8   :  { %8787 = vmatmul.mubr.bf16.gmra.mrb[168].mxu0 %v8579_v35  ;;  %v11811_v2 = vunpack.i.h.bf16 %v11809_v34  ;;  %v11810_v1 = vunpack.i.l.bf16 %v11809_v34 }
0x12f9   :  { %8794 = vmatprep.mubr.bf16.mxu0 %v8583_v57  ;;  %v8500_v52 = vsel %vm4052_vm12, %v8484_v55, %v11805_v58  ;;  %v8501_v42 = vsel %vm4052_vm12, %v8485_v25, %v11806_v45  ;;  %v19163_v55 = vld [vmem:[#allocation131_spill] sm:$0xff] }
0x12fa   :  { %v11814_v5 = vpop.permute.xlu0 %11813  ;;  %v8564_v38 = vsel %vm4069_vm8, %v8548_v28, %v11810_v1  ;;  %v8565_v9 = vsel %vm4069_vm8, %v8549_v17, %v11811_v2  ;;  %v7944_v2 = vmul.f32 %v17323_v24, %v19163_v55  ;;  %v19164_v1 = vld [vmem:[#allocation132_spill] sm:$0xff] }
0x12fb   :  { %v11816_v35 = vunpack.i.h.bf16 %v11814_v5  ;;  %v11815_v59 = vunpack.i.l.bf16 %v11814_v5  ;;  %v11829_v30 = vpop.permute.xlu1 %11828  ;;  %v8586_v46 = vpack.c.bf16 %v8565_v9, %v8564_v38  ;;  %v7945_v5 = vmul.f32 %v17316_v3, %v19164_v1 }
0x12fc   :  { %v11831_v26 = vunpack.i.h.bf16 %v11829_v30  ;;  %v11830_v18 = vunpack.i.l.bf16 %v11829_v30 }
0x12fd   :  { %v8516_v0 = vsel %vm4069_vm8, %v8500_v52, %v11815_v59  ;;  %v8517_v12 = vsel %vm4069_vm8, %v8501_v42, %v11816_v35 }
0x12fe   :  { %v11819_v50 = vpop.permute.xlu0 %11818  ;;  %v8585_v39 = vpack.c.bf16 %v8517_v12, %v8516_v0 }
0x12ff   :  { %v11844_v53 = vpop.permute.xlu1 %11843  ;;  %v11821_v54 = vunpack.i.h.bf16 %v11819_v50  ;;  %v11820_v7 = vunpack.i.l.bf16 %v11819_v50 }
0x1300   :  { %8795 = vmatmul.mubr.bf16.gmra.mrb[172].mxu0 %v8582_v37  ;;  %v11846_v8 = vunpack.i.h.bf16 %v11844_v53  ;;  %v11845_v33 = vunpack.i.l.bf16 %v11844_v53 }
0x1301   :  { %8802 = vmatprep.mubr.bf16.mxu0 %v8586_v46  ;;  %v8487_v15 = vsel %vm19159_vm6, %v7943_v4, %v11821_v54  ;;  %v8486_v37 = vsel %vm19160_vm1, %v7942_v41, %v11820_v7 }
0x1302   :  { %v11824_v19 = vpop.permute.xlu0 %11823  ;;  %v8535_v16 = vsel %vm19161_vm15, %v16951_v31, %v11846_v8  ;;  %v8534_v63 = vsel %vm19162_vm4, %v16973_v56, %v11845_v33 }
0x1303   :  { %v11826_v49 = vunpack.i.h.bf16 %v11824_v19  ;;  %v11825_v47 = vunpack.i.l.bf16 %v11824_v19  ;;  %v11849_v48 = vpop.permute.xlu1 %11848 }
0x1304   :  { %v11851_v44 = vunpack.i.h.bf16 %v11849_v48  ;;  %v11850_v10 = vunpack.i.l.bf16 %v11849_v48 }
0x1305   :  { %v8502_v13 = vsel %vm4052_vm12, %v8486_v37, %v11825_v47  ;;  %v8503_v40 = vsel %vm4052_vm12, %v8487_v15, %v11826_v49 }
0x1306   :  { %v11834_v23 = vpop.permute.xlu0 %11833  ;;  %v8551_v14 = vsel %vm4052_vm12, %v8535_v16, %v11851_v44  ;;  %v8550_v43 = vsel %vm4052_vm12, %v8534_v63, %v11850_v10 }
0x1307   :  { %v11836_v29 = vunpack.i.h.bf16 %v11834_v23  ;;  %v11835_v51 = vunpack.i.l.bf16 %v11834_v23  ;;  %v11854_v22 = vpop.permute.xlu1 %11853  ;;  %v8566_v61 = vsel %vm4069_vm8, %v8550_v43, %v11830_v18  ;;  %v8567_v62 = vsel %vm4069_vm8, %v8551_v14, %v11831_v26 }
0x1308   :  { %8803 = vmatmul.mubr.bf16.gmra.mrb[176].mxu0 %v8585_v39  ;;  %v8589_v60 = vpack.c.bf16 %v8567_v62, %v8566_v61  ;;  %v11856_v11 = vunpack.i.h.bf16 %v11854_v22  ;;  %v11855_v21 = vunpack.i.l.bf16 %v11854_v22 }
0x1309   :  { %v8518_v31 = vsel %vm4069_vm8, %v8502_v13, %v11835_v51  ;;  %v8519_v56 = vsel %vm4069_vm8, %v8503_v40, %v11836_v29  ;;  %v17564_v51 = vld [vmem:[%s17656_s1 + $0xb] ss:$0 sm:$0xff] }
0x130a   :  { %v11839_v32 = vpop.permute.xlu0 %11838  ;;  %v8588_v57 = vpack.c.bf16 %v8519_v56, %v8518_v31  ;;  %8810 = vmatprep.mubr.bf16.mxu0 %v8589_v60  ;;  %v8537_v35 = vsel %vm19165_vm13, %v17009_v36, %v11856_v11  ;;  %v8536_v59 = vsel %vm19166_vm10, %v17020_v6, %v11855_v21 }
0x130b   :  { %v11859_v45 = vpop.permute.xlu1 %11858  ;;  %v11841_v58 = vunpack.i.h.bf16 %v11839_v32  ;;  %v11840_v20 = vunpack.i.l.bf16 %v11839_v32 }
0x130c   :  { %v11861_v34 = vunpack.i.h.bf16 %v11859_v45  ;;  %v11860_v25 = vunpack.i.l.bf16 %v11859_v45 }
0x130d   :  { %v8488_v42 = vsel %vm19167_vm9, %v7944_v2, %v11840_v20  ;;  %v8489_v38 = vsel %vm19133_vm0, %v7945_v5, %v11841_v58 }
0x130e   :  { %v11864_v27 = vpop.permute.xlu0 %11863  ;;  %v8553_v46 = vsel %vm4052_vm12, %v8537_v35, %v11861_v34  ;;  %v8552_v3 = vsel %vm4052_vm12, %v8536_v59, %v11860_v25 }
0x130f   :  { %v11866_v17 = vunpack.i.h.bf16 %v11864_v27  ;;  %v11865_v28 = vunpack.i.l.bf16 %v11864_v27  ;;  %v11869_v52 = vpop.permute.xlu1 %11868 }
0x1310   :  { %8811 = vmatmul.mubr.bf16.gmra.mrb[180].mxu0 %v8588_v57  ;;  %v11871_v9 = vunpack.i.h.bf16 %v11869_v52  ;;  %v11870_v30 = vunpack.i.l.bf16 %v11869_v52 }
0x1311   :  { %v8504_v50 = vsel %vm4052_vm12, %v8488_v42, %v11865_v28  ;;  %v8505_v36 = vsel %vm4052_vm12, %v8489_v38, %v11866_v17  ;;  %vm19168_vm12 = vcmask 31744  }
0x1312   :  { %v11874_v24 = vpop.permute.xlu0 %11873  ;;  %v8568_v6 = vsel %vm4069_vm8, %v8552_v3, %v11870_v30  ;;  %v8569_v39 = vsel %vm4069_vm8, %v8553_v46, %v11871_v9 }
0x1313   :  { %v11876_v0 = vunpack.i.h.bf16 %v11874_v24  ;;  %v11875_v12 = vunpack.i.l.bf16 %v11874_v24  ;;  %v8592_v53 = vpack.c.bf16 %v8569_v39, %v8568_v6 }
0x1315   :  { %v8520_v54 = vsel %vm4069_vm8, %v8504_v50, %v11875_v12  ;;  %v8521_v7 = vsel %vm4069_vm8, %v8505_v36, %v11876_v0  ;;  %8818 = vmatprep.mubr.bf16.mxu0 %v8592_v53  ;;  %vm19169_vm8 = vmmov %vm19168_vm12 }
0x1316   :  { %v8591_v19 = vpack.c.bf16 %v8521_v7, %v8520_v54  ;;  %vm19170_vm2 = vmmov %vm19169_vm8 }
0x1317   :  { %v10580_v8 = vpop.f32.mrb[172].mxu1  ;;  %vm19171_vm14 = vmmov %vm19170_vm2 }
0x1318   :  { %8819 = vmatmul.mubr.bf16.gmra.mrb[184].mxu0 %v8591_v19  ;;  %v8861_v33 = vpop.f32.mrb[173].mxu1  ;;  %vm19172_vm11 = vmmov %vm19170_vm2 }
0x1319   :  { %v10581_v41 = vpop.f32.mrb[174].mxu1  ;;  %vm19173_vm7 = vmmov %vm19170_vm2 }
0x131a   :  { %v8864_v4 = vpop.f32.mrb[175].mxu1  ;;  %vm19174_vm3 = vmmov %vm19170_vm2 }
0x131b   :  { %vm19175_vm5 = vmmov %vm19170_vm2 }
0x131c   :  { %vm19176_vm6 = vmmov %vm19170_vm2 }
0x131d   :  { %vm19177_vm1 = vmmov %vm19170_vm2 }
0x131e   :  { %vm19178_vm15 = vmmov %vm19177_vm1 }
0x131f   :  { %vm19179_vm4 = vmmov %vm19177_vm1 }
0x1320   :  { %vm19180_vm13 = vmmov %vm19177_vm1 }
0x1321   :  { %vm19181_vm10 = vmmov %vm19177_vm1 }
0x1322   :  { %vm19182_vm9 = vmmov %vm19177_vm1 }
0x1323   :  { %v10584_v49 = vpop.f32.mrb[176].mxu1  ;;  %vm19183_vm0 = vmmov %vm19177_vm1 }
0x1324   :  { %v8877_v47 = vpop.f32.mrb[177].mxu1 }
0x1325   :  { %v10585_v26 = vpop.f32.mrb[178].mxu1 }
0x1326   :  { %v8880_v18 = vpop.f32.mrb[179].mxu1 }
0x132b   :  { %v17545_v48 = vpop.f32.mrb[180].mxu1 }
0x132c   :  { %v17547_v15 = vpop.f32.mrb[181].mxu1 }
0x132d   :  { %v17549_v37 = vpop.f32.mrb[182].mxu1 }
0x132e   :  { %v17551_v23 = vpop.f32.mrb[183].mxu1 }
0x1333   :  { %v17553_v44 = vpop.f32.mrb[184].mxu1 }
0x1334   :  { %v17555_v10 = vpop.f32.mrb[185].mxu1 }
0x1335   :  { %v17557_v16 = vpop.f32.mrb[186].mxu1 }
0x1336   :  { %v17559_v63 = vpop.f32.mrb[187].mxu1 }
0x13b3   :  { %v9866_v29 = vpop.f32.mrb[156].mxu0 }
0x13b4   :  { %v9867_v13 = vpop.f32.mrb[157].mxu0 }
0x13b5   :  { %v9868_v40 = vadd.f32 %v9867_v13, %v9866_v29  ;;  %v9869_v14 = vpop.f32.mrb[158].mxu0 }
0x13b6   :  { %v9870_v43 = vpop.f32.mrb[159].mxu0 }
0x13b7   :  { %v8765_v22 = vadd.f32 %v9868_v40, %v17564_v51  ;;  %v9871_v61 = vadd.f32 %v9870_v43, %v9869_v14 }
0x13b9   :  { %v8862_v62 = vadd.f32 %v8861_v33, %v8765_v22  ;;  %v8768_v31 = vadd.f32 %v9871_v61, %v17564_v51 }
0x13bb   :  { %8924 = vst.msk [vmem:[%s17658_s4] sm:$0xff] %vm19168_vm12, %v8862_v62  ;;  %v8865_v56 = vadd.f32 %v8864_v4, %v8768_v31  ;;  %v9872_v32 = vpop.f32.mrb[160].mxu0 }
0x13bc   :  { %v9873_v60 = vpop.f32.mrb[161].mxu0 }
0x13bd   :  { %8925 = vst.msk [vmem:[%s17658_s4 + $0x8] sm:$0xff] %vm19169_vm8, %v8865_v56  ;;  %v9874_v57 = vadd.f32 %v9873_v60, %v9872_v32  ;;  %v9875_v11 = vpop.f32.mrb[162].mxu0 }
0x13be   :  { %v9876_v21 = vpop.f32.mrb[163].mxu0 }
0x13bf   :  { %v8773_v45 = vadd.f32 %v9874_v57, %v17564_v51  ;;  %v9877_v58 = vadd.f32 %v9876_v21, %v9875_v11 }
0x13c1   :  { %v8870_v20 = vadd.f32 %v10580_v8, %v8773_v45  ;;  %v8776_v27 = vadd.f32 %v9877_v58, %v17564_v51 }
0x13c3   :  { %8926 = vst.msk [vmem:[%s17658_s4 + $0x10] sm:$0xff] %vm19170_vm2, %v8870_v20  ;;  %v8873_v34 = vadd.f32 %v10581_v41, %v8776_v27  ;;  %v9878_v25 = vpop.f32.mrb[164].mxu0 }
0x13c4   :  { %v9879_v55 = vpop.f32.mrb[165].mxu0 }
0x13c5   :  { %8927 = vst.msk [vmem:[%s17658_s4 + $0x18] sm:$0xff] %vm19171_vm14, %v8873_v34  ;;  %v9880_v2 = vadd.f32 %v9879_v55, %v9878_v25  ;;  %v9881_v1 = vpop.f32.mrb[166].mxu0 }
0x13c6   :  { %v9882_v5 = vpop.f32.mrb[167].mxu0 }
0x13c7   :  { %v8781_v17 = vadd.f32 %v9880_v2, %v17564_v51  ;;  %v9883_v28 = vadd.f32 %v9882_v5, %v9881_v1 }
0x13c9   :  { %v8878_v35 = vadd.f32 %v8877_v47, %v8781_v17  ;;  %v8784_v59 = vadd.f32 %v9883_v28, %v17564_v51 }
0x13cb   :  { %8928 = vst.msk [vmem:[%s17658_s4 + $0x20] sm:$0xff] %vm19172_vm11, %v8878_v35  ;;  %v8881_v52 = vadd.f32 %v8880_v18, %v8784_v59  ;;  %v9884_v42 = vpop.f32.mrb[168].mxu0 }
0x13cc   :  { %v9885_v38 = vpop.f32.mrb[169].mxu0 }
0x13cd   :  { %8929 = vst.msk [vmem:[%s17658_s4 + $0x28] sm:$0xff] %vm19173_vm7, %v8881_v52  ;;  %v9886_v9 = vadd.f32 %v9885_v38, %v9884_v42  ;;  %v9887_v30 = vpop.f32.mrb[170].mxu0 }
0x13ce   :  { %v9888_v24 = vpop.f32.mrb[171].mxu0 }
0x13cf   :  { %v8789_v46 = vadd.f32 %v9886_v9, %v17564_v51  ;;  %v9889_v3 = vadd.f32 %v9888_v24, %v9887_v30 }
0x13d1   :  { %v8886_v0 = vadd.f32 %v10584_v49, %v8789_v46  ;;  %v8792_v12 = vadd.f32 %v9889_v3, %v17564_v51 }
0x13d3   :  { %8930 = vst.msk [vmem:[%s17658_s4 + $0x30] sm:$0xff] %vm19174_vm3, %v8886_v0  ;;  %v8889_v50 = vadd.f32 %v10585_v26, %v8792_v12  ;;  %v9890_v36 = vpop.f32.mrb[172].mxu0 }
0x13d4   :  { %v9891_v6 = vpop.f32.mrb[173].mxu0 }
0x13d5   :  { %8931 = vst.msk [vmem:[%s17658_s4 + $0x38] sm:$0xff] %vm19175_vm5, %v8889_v50  ;;  %v9892_v39 = vadd.f32 %v9891_v6, %v9890_v36  ;;  %v9893_v53 = vpop.f32.mrb[174].mxu0 }
0x13d6   :  { %v9894_v54 = vpop.f32.mrb[175].mxu0 }
0x13d7   :  { %v8797_v7 = vadd.f32 %v9892_v39, %v17564_v51  ;;  %v9895_v19 = vadd.f32 %v9894_v54, %v9893_v53 }
0x13d9   :  { %v8894_v8 = vadd.f32 %v17547_v15, %v8797_v7  ;;  %v8800_v33 = vadd.f32 %v9895_v19, %v17564_v51 }
0x13db   :  { %8932 = vst.msk [vmem:[%s17658_s4 + $0x40] sm:$0xff] %vm19176_vm6, %v8894_v8  ;;  %v8897_v41 = vadd.f32 %v17551_v23, %v8800_v33  ;;  %v9896_v4 = vpop.f32.mrb[176].mxu0 }
0x13dc   :  { %v9897_v49 = vpop.f32.mrb[177].mxu0 }
0x13dd   :  { %8933 = vst.msk [vmem:[%s17658_s4 + $0x48] sm:$0xff] %vm19177_vm1, %v8897_v41  ;;  %v9898_v47 = vadd.f32 %v9897_v49, %v9896_v4  ;;  %v9899_v26 = vpop.f32.mrb[178].mxu0 }
0x13de   :  { %v9900_v18 = vpop.f32.mrb[179].mxu0 }
0x13df   :  { %v8805_v15 = vadd.f32 %v9898_v47, %v17564_v51  ;;  %v9901_v29 = vadd.f32 %v9900_v18, %v9899_v26 }
0x13e1   :  { %v8902_v13 = vadd.f32 %v17545_v48, %v8805_v15  ;;  %v8808_v40 = vadd.f32 %v9901_v29, %v17564_v51 }
0x13e3   :  { %8934 = vst.msk [vmem:[%s17658_s4 + $0x50] sm:$0xff] %vm19178_vm15, %v8902_v13  ;;  %v8905_v23 = vadd.f32 %v17549_v37, %v8808_v40  ;;  %v9902_v14 = vpop.f32.mrb[180].mxu0 }
0x13e4   :  { %v9903_v43 = vpop.f32.mrb[181].mxu0 }
0x13e5   :  { %8935 = vst.msk [vmem:[%s17658_s4 + $0x58] sm:$0xff] %vm19179_vm4, %v8905_v23  ;;  %v9904_v22 = vadd.f32 %v9903_v43, %v9902_v14  ;;  %v9905_v61 = vpop.f32.mrb[182].mxu0 }
0x13e6   :  { %v9906_v62 = vpop.f32.mrb[183].mxu0 }
0x13e7   :  { %v8813_v48 = vadd.f32 %v9904_v22, %v17564_v51  ;;  %v9907_v31 = vadd.f32 %v9906_v62, %v9905_v61 }
0x13e9   :  { %v8910_v56 = vadd.f32 %v17555_v10, %v8813_v48  ;;  %v8816_v32 = vadd.f32 %v9907_v31, %v17564_v51 }
0x13eb   :  { %8936 = vst.msk [vmem:[%s17658_s4 + $0x60] sm:$0xff] %vm19180_vm13, %v8910_v56  ;;  %v8913_v37 = vadd.f32 %v17559_v63, %v8816_v32  ;;  %v9908_v60 = vpop.f32.mrb[184].mxu0 }
0x13ec   :  { %v9909_v57 = vpop.f32.mrb[185].mxu0 }
0x13ed   :  { %8937 = vst.msk [vmem:[%s17658_s4 + $0x68] sm:$0xff] %vm19181_vm10, %v8913_v37  ;;  %v9910_v11 = vadd.f32 %v9909_v57, %v9908_v60  ;;  %v9911_v21 = vpop.f32.mrb[186].mxu0 }
0x13ee   :  { %v9912_v45 = vpop.f32.mrb[187].mxu0 }
0x13ef   :  { %v8821_v10 = vadd.f32 %v9910_v11, %v17564_v51  ;;  %v9913_v58 = vadd.f32 %v9912_v45, %v9911_v21 }
0x13f1   :  { %v8918_v20 = vadd.f32 %v17553_v44, %v8821_v10  ;;  %v8824_v27 = vadd.f32 %v9913_v58, %v17564_v51 }
0x13f3   :  { %8938 = vst.msk [vmem:[%s17658_s4 + $0x70] sm:$0xff] %vm19182_vm9, %v8918_v20  ;;  %v8921_v63 = vadd.f32 %v17557_v16, %v8824_v27 }
0x13f5   :  { %8939 = vst.msk [vmem:[%s17658_s4 + $0x78] sm:$0xff] %vm19183_vm0, %v8921_v63 }

</bundles_post_ra>
